<compile_context>
chip_gen: v5e
topology: v5e:2x2
jax: 0.10.0
libtpu: 0.0.40
codegen_flags: <defaults>
</compile_context>

<pallas_src>
import functools

import jax
import jax.numpy as jnp
from jax.experimental import pallas as pl
from jax.experimental.pallas import tpu as pltpu

_LANE = 128          # channel axis is zero-padded up to this (lane-dense layout)
_NEG = -3.0e38       # finite "-inf" for pool padding (no SiLU(-inf) NaN)
_OFF = 8             # sublane-aligned start column of the image interior in scratches


def _round_up(x, m):
    return (x + m - 1) // m * m


# ---------------------------------------------------------------------------
# In-kernel helpers
# ---------------------------------------------------------------------------
def _write_frame(ref, val, h, w):
    """Write ONLY the 1-pixel halo frame (rows {0,h+1}, cols {_OFF-1,_OFF+w}) of
    a padded (h+2, Wp, C) scratch.  The interior is fully overwritten by the
    caller every step, so no full-buffer memset is issued."""
    c = ref.shape[-1]
    row = jnp.full((1, w + 2, c), val, ref.dtype)
    col = jnp.full((h + 2, 1, c), val, ref.dtype)
    ref[0:1, _OFF - 1:_OFF + w + 1, :] = row
    ref[h + 1:h + 2, _OFF - 1:_OFF + w + 1, :] = row
    ref[:, _OFF - 1:_OFF, :] = col
    ref[:, _OFF + w:_OFF + w + 1, :] = col


def _conv3x3(pad_ref, w_ref, b_ref, h, w):
    """3x3 'SAME' conv as 9 accumulated MXU dots read straight from the padded
    VMEM scratch (no materialized im2col buffer).

    pad_ref: (h+2, Wp, Cin) with the image at rows [1,h+1), cols [_OFF,_OFF+w)
             and a 1-px halo frame around it.
    w_ref:   (9, Cin, Cout) tap-major packed weights (VMEM resident).
    b_ref:   (1, Cout).
    Returns f32 (h, w, Cout).
    """
    cin = pad_ref.shape[-1]
    cout = w_ref.shape[-1]
    acc = jnp.zeros((h * w, cout), jnp.float32)
    for dy in range(3):
        for dx in range(3):
            tap = pad_ref[dy:dy + h, _OFF - 1 + dx:_OFF - 1 + dx + w, :]
            acc = acc + jnp.dot(tap.reshape(h * w, cin), w_ref[3 * dy + dx],
                                preferred_element_type=jnp.float32)
    return (acc + b_ref[...]).reshape(h, w, cout)


# ---------------------------------------------------------------------------
# Fused ImpalaBlock kernel (one batch element per grid step)
# ---------------------------------------------------------------------------
def _impala_kernel(x_ref, cw_ref, cb_ref,
                   w11_ref, b11_ref, w12_ref, b12_ref,
                   w21_ref, b21_ref, w22_ref, b22_ref,
                   o_ref,
                   xpad_ref, ypad_ref, rowmax_ref, apad_ref, hpad_ref,
                   *, H, W, Hout, Wout):
    # ---- conv3x3 + bias (entirely in VMEM) ---------------------------------
    _write_frame(xpad_ref, 0.0, H, W)
    xpad_ref[1:H + 1, _OFF:_OFF + W, :] = x_ref[...]
    y = _conv3x3(xpad_ref, cw_ref, cb_ref, H, W)

    # ---- max-pool 3x3 / stride 2 / pad 1 (separable) + SiLU ----------------
    _write_frame(ypad_ref, _NEG, H, W)
    ypad_ref[1:H + 1, _OFF:_OFF + W, :] = y
    # dx pass: 3 sublane-strided reads -> (H+2, Wout, C) scratch
    rowmax_ref[...] = jnp.maximum(
        jnp.maximum(ypad_ref[:, pl.ds(_OFF - 1, Wout, 2), :],
                    ypad_ref[:, pl.ds(_OFF, Wout, 2), :]),
        ypad_ref[:, pl.ds(_OFF + 1, Wout, 2), :])
    # dy pass: 3 cheap major-axis strided reads
    a = jnp.maximum(
        jnp.maximum(rowmax_ref[pl.ds(0, Hout, 2), :, :],
                    rowmax_ref[pl.ds(1, Hout, 2), :, :]),
        rowmax_ref[pl.ds(2, Hout, 2), :, :])
    a = a * jax.nn.sigmoid(a)                                   # SiLU (f32)

    # ---- two residual blocks; the activation never leaves VMEM --------------
    _write_frame(apad_ref, 0.0, Hout, Wout)
    _write_frame(hpad_ref, 0.0, Hout, Wout)
    for w1, b1, w2, b2 in ((w11_ref, b11_ref, w12_ref, b12_ref),
                           (w21_ref, b21_ref, w22_ref, b22_ref)):
        apad_ref[1:Hout + 1, _OFF:_OFF + Wout, :] = a
        h = _conv3x3(apad_ref, w1, b1, Hout, Wout)
        h = h * jax.nn.sigmoid(h)
        hpad_ref[1:Hout + 1, _OFF:_OFF + Wout, :] = h
        z = _conv3x3(hpad_ref, w2, b2, Hout, Wout) + a          # residual add (f32)
        a = z * jax.nn.sigmoid(z)

    o_ref[...] = a.astype(o_ref.dtype)


# ---------------------------------------------------------------------------
# pallas_call wrapper
# ---------------------------------------------------------------------------
def _compiler_params(step_bytes):
    # Review opt #11: size the scoped-VMEM limit from the per-step footprint
    # rather than a fixed 32 MiB (v5e/v6e: 128 MiB physical; v7x: 64 MiB).
    limit = int(min(96 * 2 ** 20, max(32 * 2 ** 20, int(1.5 * step_bytes))))
    return pltpu.CompilerParams(
        dimension_semantics=("parallel",),   # megacore: batch across TCs (v7x)
        vmem_limit_bytes=limit,
    )


def _const_spec(shape):
    if len(shape) == 3:
        return pl.BlockSpec(shape, lambda n: (0, 0, 0))
    return pl.BlockSpec(shape, lambda n: (0, 0))


def _pack_weight(w, cin_p, cout_p):
    """(3,3,Cin,Cout) HWIO -> zero-padded, tap-major (9, Cin_p, Cout_p)."""
    kh, kw, cin, cout = w.shape
    w = jnp.pad(w, ((0, 0), (0, 0), (0, cin_p - cin), (0, cout_p - cout)))
    return w.reshape(kh * kw, cin_p, cout_p)


def _pack_bias(b, cout_p):
    return jnp.pad(b, (0, cout_p - b.shape[0])).reshape(1, cout_p)


def impala_block(x_nchw, p):
    """ImpalaBlock.forward. x_nchw: (N, in_ch, H, W) -> (N, out_ch, H//2, W//2)."""
    N, Cin, H, W = x_nchw.shape
    Cout = p["conv_w"].shape[-1]
    cin_p = _round_up(Cin, _LANE)
    cout_p = _round_up(Cout, _LANE)
    Hout = (H + 2 - 3) // 2 + 1
    Wout = (W + 2 - 3) // 2 + 1
    win_p = _round_up(W + _OFF + 1, 8)       # padded-scratch widths, sublane aligned
    wout_p = _round_up(Wout + _OFF + 1, 8)

    # One-time layout repack: NCHW -> lane-dense NHWC, channels zero-padded to a
    # multiple of 128.  Padded channels stay exactly 0 through conv/pool/SiLU/
    # residual, so they are simply sliced off at the end.
    x = jnp.transpose(x_nchw, (0, 2, 3, 1))
    x = jnp.pad(x, ((0, 0), (0, 0), (0, 0), (0, cin_p - Cin)))

    args = (
        x,
        _pack_weight(p["conv_w"], cin_p, cout_p), _pack_bias(p["conv_b"], cout_p),
        _pack_weight(p["res1_w1"], cout_p, cout_p), _pack_bias(p["res1_b1"], cout_p),
        _pack_weight(p["res1_w2"], cout_p, cout_p), _pack_bias(p["res1_b2"], cout_p),
        _pack_weight(p["res2_w1"], cout_p, cout_p), _pack_bias(p["res2_b1"], cout_p),
        _pack_weight(p["res2_w2"], cout_p, cout_p), _pack_bias(p["res2_b2"], cout_p),
    )

    in_specs = [pl.BlockSpec((None, H, W, cin_p), lambda n: (n, 0, 0, 0))]
    for a in args[1:]:
        in_specs.append(_const_spec(a.shape))    # resident weights / biases

    scratch_shapes = [
        pltpu.VMEM((H + 2, win_p, cin_p), jnp.float32),        # xpad (zero frame)
        pltpu.VMEM((H + 2, win_p, cout_p), jnp.float32),       # ypad (conv out, _NEG frame)
        pltpu.VMEM((H + 2, Wout, cout_p), jnp.float32),        # rowmax (pool dx pass)
        pltpu.VMEM((Hout + 2, wout_p, cout_p), jnp.float32),   # apad (zero frame)
        pltpu.VMEM((Hout + 2, wout_p, cout_p), jnp.float32),   # hpad (zero frame)
    ]

    f32 = 4
    step_bytes = f32 * (
        (H + 2) * win_p * (cin_p + cout_p)                       # xpad + ypad
        + (H + 2) * Wout * cout_p                                # rowmax
        + 2 * (Hout + 2) * wout_p * cout_p                       # apad + hpad
        + 2 * (H * W * cin_p + Hout * Wout * cout_p)             # double-buffered I/O
        + 2 * (9 * cin_p * cout_p + 4 * 9 * cout_p * cout_p + 5 * cout_p))  # weights

    kernel = functools.partial(_impala_kernel, H=H, W=W, Hout=Hout, Wout=Wout)
    y = pl.pallas_call(
        kernel,
        out_shape=jax.ShapeDtypeStruct((N, Hout, Wout, cout_p), jnp.float32),
        grid=(N,),
        in_specs=in_specs,
        out_specs=pl.BlockSpec((None, Hout, Wout, cout_p), lambda n: (n, 0, 0, 0)),
        scratch_shapes=scratch_shapes,
        compiler_params=_compiler_params(step_bytes),
    )(*args)

    return jnp.transpose(y[..., :Cout], (0, 3, 1, 2))           # NHWC -> NCHW


# ---------------------------------------------------------------------------
# Deterministic synthetic parameters (shapes from the PyTorch __init__)
# ---------------------------------------------------------------------------
def init_params(key, in_ch, out_ch):
    ks = jax.random.split(key, 10)

    def conv_init(kw, kb, cin, cout):
        w = jax.random.normal(kw, (3, 3, cin, cout), jnp.float32) * 0.1
        b = jax.random.normal(kb, (cout,), jnp.float32) * 0.1
        return w, b

    p = {}
    p["conv_w"], p["conv_b"] = conv_init(ks[0], ks[1], in_ch, out_ch)
    p["res1_w1"], p["res1_b1"] = conv_init(ks[2], ks[3], out_ch, out_ch)
    p["res1_w2"], p["res1_b2"] = conv_init(ks[4], ks[5], out_ch, out_ch)
    p["res2_w1"], p["res2_b1"] = conv_init(ks[6], ks[7], out_ch, out_ch)
    p["res2_w2"], p["res2_b2"] = conv_init(ks[8], ks[9], out_ch, out_ch)
    return p


# ---------------------------------------------------------------------------
# Pure-JAX reference for verification
# ---------------------------------------------------------------------------
def _ref_conv(x, w, b):
    return jax.lax.conv_general_dilated(
        x, w, window_strides=(1, 1), padding="SAME",
        dimension_numbers=("NHWC", "HWIO", "NHWC")) + b


def _ref_impala(x_nchw, p):
    x = jnp.transpose(x_nchw, (0, 2, 3, 1))
    y = _ref_conv(x, p["conv_w"], p["conv_b"])
    y = jax.lax.reduce_window(y, -jnp.inf, jax.lax.max,
                              (1, 3, 3, 1), (1, 2, 2, 1),
                              ((0, 0), (1, 1), (1, 1), (0, 0)))
    y = jax.nn.silu(y)
    for r in ("res1", "res2"):
        h = jax.nn.silu(_ref_conv(y, p[f"{r}_w1"], p[f"{r}_b1"]))
        y = jax.nn.silu(y + _ref_conv(h, p[f"{r}_w2"], p[f"{r}_b2"]))
    return jnp.transpose(y, (0, 3, 1, 2))


if __name__ == "__main__":
    key = jax.random.PRNGKey(0)
    kx, kp = jax.random.split(key)

    in_ch, out_ch = 4, 8
    x = jax.random.normal(kx, (2, in_ch, 16, 16), jnp.float32)  # NCHW
    params = init_params(kp, in_ch, out_ch)

    fwd = jax.jit(impala_block)
    out = jax.block_until_ready(fwd(x, params))
    ref = jax.block_until_ready(_ref_impala(x, params))

    assert out.shape == (2, out_ch, 8, 8), out.shape
    max_err = float(jnp.max(jnp.abs(out - ref)))
    # f32 compute path with default MXU precision; 2e-2 leaves headroom for the
    # (deliberate, documented) future bf16-input switch on v6e/v7x.
    assert jnp.allclose(out, ref, atol=2e-2, rtol=2e-2), max_err
    print("KERNEL_OK")
</pallas_src>

<mosaic_0001>
module attributes {stable_mosaic.version = 11 : i64} {
  func.func @_impala_kernel(%arg0: i32, %arg1: memref<1x16x16x128xf32, #tpu.memory_space<vmem>>, %arg2: memref<9x128x128xf32, #tpu.memory_space<vmem>>, %arg3: memref<1x128xf32, #tpu.memory_space<vmem>>, %arg4: memref<9x128x128xf32, #tpu.memory_space<vmem>>, %arg5: memref<1x128xf32, #tpu.memory_space<vmem>>, %arg6: memref<9x128x128xf32, #tpu.memory_space<vmem>>, %arg7: memref<1x128xf32, #tpu.memory_space<vmem>>, %arg8: memref<9x128x128xf32, #tpu.memory_space<vmem>>, %arg9: memref<1x128xf32, #tpu.memory_space<vmem>>, %arg10: memref<9x128x128xf32, #tpu.memory_space<vmem>>, %arg11: memref<1x128xf32, #tpu.memory_space<vmem>>, %arg12: memref<1x8x8x128xf32, #tpu.memory_space<vmem>>, %arg13: memref<18x32x128xf32, #tpu.memory_space<vmem>>, %arg14: memref<18x32x128xf32, #tpu.memory_space<vmem>>, %arg15: memref<18x8x128xf32, #tpu.memory_space<vmem>>, %arg16: memref<10x24x128xf32, #tpu.memory_space<vmem>>, %arg17: memref<10x24x128xf32, #tpu.memory_space<vmem>>) attributes {dimension_semantics = [#tpu.dimension_semantics<parallel>], iteration_bounds = array<i64: 2>, scalar_prefetch = 0 : i64, scratch_operands = 5 : i64, tpu.core_type = #tpu.core_type<tc>, window_params = [{transform_indices = @transform_0, window_bounds = array<i64: 1, 16, 16, 128>}, {pipeline_mode = #tpu.pipeline_mode<synchronous>, transform_indices = @transform_1, window_bounds = array<i64: 9, 128, 128>}, {pipeline_mode = #tpu.pipeline_mode<synchronous>, transform_indices = @transform_2, window_bounds = array<i64: 1, 128>}, {pipeline_mode = #tpu.pipeline_mode<synchronous>, transform_indices = @transform_3, window_bounds = array<i64: 9, 128, 128>}, {pipeline_mode = #tpu.pipeline_mode<synchronous>, transform_indices = @transform_4, window_bounds = array<i64: 1, 128>}, {pipeline_mode = #tpu.pipeline_mode<synchronous>, transform_indices = @transform_5, window_bounds = array<i64: 9, 128, 128>}, {pipeline_mode = #tpu.pipeline_mode<synchronous>, transform_indices = @transform_6, window_bounds = array<i64: 1, 128>}, {pipeline_mode = #tpu.pipeline_mode<synchronous>, transform_indices = @transform_7, window_bounds = array<i64: 9, 128, 128>}, {pipeline_mode = #tpu.pipeline_mode<synchronous>, transform_indices = @transform_8, window_bounds = array<i64: 1, 128>}, {pipeline_mode = #tpu.pipeline_mode<synchronous>, transform_indices = @transform_9, window_bounds = array<i64: 9, 128, 128>}, {pipeline_mode = #tpu.pipeline_mode<synchronous>, transform_indices = @transform_10, window_bounds = array<i64: 1, 128>}, {transform_indices = @transform_11, window_bounds = array<i64: 1, 8, 8, 128>}]} {
    %cst = arith.constant 0.000000e+00 : f32
    %0 = vector.broadcast %cst : f32 to vector<1x18x128xf32>
    %cst_0 = arith.constant 0.000000e+00 : f32
    %1 = vector.broadcast %cst_0 : f32 to vector<18x1x128xf32>
    %c0 = arith.constant 0 : index
    %c7 = arith.constant 7 : index
    %c0_1 = arith.constant 0 : index
    %2 = vector.load %arg13[%c0, %c7, %c0_1] : memref<18x32x128xf32, #tpu.memory_space<vmem>>, vector<1x18x128xf32>
    tpu.vector_store %arg13[%c0, %c7, %c0_1], %0 {strides = array<i32>} : memref<18x32x128xf32, #tpu.memory_space<vmem>>, vector<1x18x128xf32>,
    %c17 = arith.constant 17 : index
    %c7_2 = arith.constant 7 : index
    %c0_3 = arith.constant 0 : index
    %3 = vector.load %arg13[%c17, %c7_2, %c0_3] : memref<18x32x128xf32, #tpu.memory_space<vmem>>, vector<1x18x128xf32>
    tpu.vector_store %arg13[%c17, %c7_2, %c0_3], %0 {strides = array<i32>} : memref<18x32x128xf32, #tpu.memory_space<vmem>>, vector<1x18x128xf32>,
    %c0_4 = arith.constant 0 : index
    %c7_5 = arith.constant 7 : index
    %c0_6 = arith.constant 0 : index
    %4 = vector.load %arg13[%c0_4, %c7_5, %c0_6] : memref<18x32x128xf32, #tpu.memory_space<vmem>>, vector<18x1x128xf32>
    tpu.vector_store %arg13[%c0_4, %c7_5, %c0_6], %1 {strides = array<i32>} : memref<18x32x128xf32, #tpu.memory_space<vmem>>, vector<18x1x128xf32>,
    %c0_7 = arith.constant 0 : index
    %c24 = arith.constant 24 : index
    %c0_8 = arith.constant 0 : index
    %5 = vector.load %arg13[%c0_7, %c24, %c0_8] : memref<18x32x128xf32, #tpu.memory_space<vmem>>, vector<18x1x128xf32>
    tpu.vector_store %arg13[%c0_7, %c24, %c0_8], %1 {strides = array<i32>} : memref<18x32x128xf32, #tpu.memory_space<vmem>>, vector<18x1x128xf32>,
    %c0_9 = arith.constant 0 : index
    %c0_10 = arith.constant 0 : index
    %c0_11 = arith.constant 0 : index
    %c0_12 = arith.constant 0 : index
    %6 = vector.load %arg1[%c0_9, %c0_10, %c0_11, %c0_12] : memref<1x16x16x128xf32, #tpu.memory_space<vmem>>, vector<1x16x16x128xf32>
    %7 = vector.shape_cast %6 : vector<1x16x16x128xf32> to vector<16x16x128xf32>
    %c1 = arith.constant 1 : index
    %c8 = arith.constant 8 : index
    %c0_13 = arith.constant 0 : index
    %8 = vector.load %arg13[%c1, %c8, %c0_13] : memref<18x32x128xf32, #tpu.memory_space<vmem>>, vector<16x16x128xf32>
    tpu.vector_store %arg13[%c1, %c8, %c0_13], %7 {strides = array<i32>} : memref<18x32x128xf32, #tpu.memory_space<vmem>>, vector<16x16x128xf32>,
    %cst_14 = arith.constant 0.000000e+00 : f32
    %9 = vector.broadcast %cst_14 : f32 to vector<256x128xf32>
    %c0_15 = arith.constant 0 : index
    %c7_16 = arith.constant 7 : index
    %c0_17 = arith.constant 0 : index
    %10 = vector.load %arg13[%c0_15, %c7_16, %c0_17] : memref<18x32x128xf32, #tpu.memory_space<vmem>>, vector<16x16x128xf32>
    %11 = vector.shape_cast %10 : vector<16x16x128xf32> to vector<256x128xf32>
    %c0_18 = arith.constant 0 : index
    %c0_19 = arith.constant 0 : index
    %c0_20 = arith.constant 0 : index
    %12 = vector.load %arg2[%c0_18, %c0_19, %c0_20] : memref<9x128x128xf32, #tpu.memory_space<vmem>>, vector<1x128x128xf32>
    %13 = vector.shape_cast %12 : vector<1x128x128xf32> to vector<128x128xf32>
    %cst_21 = arith.constant dense<0.000000e+00> : vector<256x128xf32>
    %14 = tpu.matmul %11, %13, %cst_21 {dimension_numbers = #tpu.dot_dimension_numbers<[1], [0], [0], [1], [0, 0, 1, 1], [], []>} : vector<256x128xf32>, vector<128x128xf32>, vector<256x128xf32> -> vector<256x128xf32>
    %15 = arith.addf %9, %14 : vector<256x128xf32>
    %c0_22 = arith.constant 0 : index
    %c8_23 = arith.constant 8 : index
    %c0_24 = arith.constant 0 : index
    %16 = vector.load %arg13[%c0_22, %c8_23, %c0_24] : memref<18x32x128xf32, #tpu.memory_space<vmem>>, vector<16x16x128xf32>
    %17 = vector.shape_cast %16 : vector<16x16x128xf32> to vector<256x128xf32>
    %c1_25 = arith.constant 1 : index
    %c0_26 = arith.constant 0 : index
    %c0_27 = arith.constant 0 : index
    %18 = vector.load %arg2[%c1_25, %c0_26, %c0_27] : memref<9x128x128xf32, #tpu.memory_space<vmem>>, vector<1x128x128xf32>
    %19 = vector.shape_cast %18 : vector<1x128x128xf32> to vector<128x128xf32>
    %cst_28 = arith.constant dense<0.000000e+00> : vector<256x128xf32>
    %20 = tpu.matmul %17, %19, %cst_28 {dimension_numbers = #tpu.dot_dimension_numbers<[1], [0], [0], [1], [0, 0, 1, 1], [], []>} : vector<256x128xf32>, vector<128x128xf32>, vector<256x128xf32> -> vector<256x128xf32>
    %21 = arith.addf %15, %20 : vector<256x128xf32>
    %c0_29 = arith.constant 0 : index
    %c9 = arith.constant 9 : index
    %c0_30 = arith.constant 0 : index
    %22 = vector.load %arg13[%c0_29, %c9, %c0_30] : memref<18x32x128xf32, #tpu.memory_space<vmem>>, vector<16x16x128xf32>
    %23 = vector.shape_cast %22 : vector<16x16x128xf32> to vector<256x128xf32>
    %c2 = arith.constant 2 : index
    %c0_31 = arith.constant 0 : index
    %c0_32 = arith.constant 0 : index
    %24 = vector.load %arg2[%c2, %c0_31, %c0_32] : memref<9x128x128xf32, #tpu.memory_space<vmem>>, vector<1x128x128xf32>
    %25 = vector.shape_cast %24 : vector<1x128x128xf32> to vector<128x128xf32>
    %cst_33 = arith.constant dense<0.000000e+00> : vector<256x128xf32>
    %26 = tpu.matmul %23, %25, %cst_33 {dimension_numbers = #tpu.dot_dimension_numbers<[1], [0], [0], [1], [0, 0, 1, 1], [], []>} : vector<256x128xf32>, vector<128x128xf32>, vector<256x128xf32> -> vector<256x128xf32>
    %27 = arith.addf %21, %26 : vector<256x128xf32>
    %c1_34 = arith.constant 1 : index
    %c7_35 = arith.constant 7 : index
    %c0_36 = arith.constant 0 : index
    %28 = vector.load %arg13[%c1_34, %c7_35, %c0_36] : memref<18x32x128xf32, #tpu.memory_space<vmem>>, vector<16x16x128xf32>
    %29 = vector.shape_cast %28 : vector<16x16x128xf32> to vector<256x128xf32>
    %c3 = arith.constant 3 : index
    %c0_37 = arith.constant 0 : index
    %c0_38 = arith.constant 0 : index
    %30 = vector.load %arg2[%c3, %c0_37, %c0_38] : memref<9x128x128xf32, #tpu.memory_space<vmem>>, vector<1x128x128xf32>
    %31 = vector.shape_cast %30 : vector<1x128x128xf32> to vector<128x128xf32>
    %cst_39 = arith.constant dense<0.000000e+00> : vector<256x128xf32>
    %32 = tpu.matmul %29, %31, %cst_39 {dimension_numbers = #tpu.dot_dimension_numbers<[1], [0], [0], [1], [0, 0, 1, 1], [], []>} : vector<256x128xf32>, vector<128x128xf32>, vector<256x128xf32> -> vector<256x128xf32>
    %33 = arith.addf %27, %32 : vector<256x128xf32>
    %c1_40 = arith.constant 1 : index
    %c8_41 = arith.constant 8 : index
    %c0_42 = arith.constant 0 : index
    %34 = vector.load %arg13[%c1_40, %c8_41, %c0_42] : memref<18x32x128xf32, #tpu.memory_space<vmem>>, vector<16x16x128xf32>
    %35 = vector.shape_cast %34 : vector<16x16x128xf32> to vector<256x128xf32>
    %c4 = arith.constant 4 : index
    %c0_43 = arith.constant 0 : index
    %c0_44 = arith.constant 0 : index
    %36 = vector.load %arg2[%c4, %c0_43, %c0_44] : memref<9x128x128xf32, #tpu.memory_space<vmem>>, vector<1x128x128xf32>
    %37 = vector.shape_cast %36 : vector<1x128x128xf32> to vector<128x128xf32>
    %cst_45 = arith.constant dense<0.000000e+00> : vector<256x128xf32>
    %38 = tpu.matmul %35, %37, %cst_45 {dimension_numbers = #tpu.dot_dimension_numbers<[1], [0], [0], [1], [0, 0, 1, 1], [], []>} : vector<256x128xf32>, vector<128x128xf32>, vector<256x128xf32> -> vector<256x128xf32>
    %39 = arith.addf %33, %38 : vector<256x128xf32>
    %c1_46 = arith.constant 1 : index
    %c9_47 = arith.constant 9 : index
    %c0_48 = arith.constant 0 : index
    %40 = vector.load %arg13[%c1_46, %c9_47, %c0_48] : memref<18x32x128xf32, #tpu.memory_space<vmem>>, vector<16x16x128xf32>
    %41 = vector.shape_cast %40 : vector<16x16x128xf32> to vector<256x128xf32>
    %c5 = arith.constant 5 : index
    %c0_49 = arith.constant 0 : index
    %c0_50 = arith.constant 0 : index
    %42 = vector.load %arg2[%c5, %c0_49, %c0_50] : memref<9x128x128xf32, #tpu.memory_space<vmem>>, vector<1x128x128xf32>
    %43 = vector.shape_cast %42 : vector<1x128x128xf32> to vector<128x128xf32>
    %cst_51 = arith.constant dense<0.000000e+00> : vector<256x128xf32>
    %44 = tpu.matmul %41, %43, %cst_51 {dimension_numbers = #tpu.dot_dimension_numbers<[1], [0], [0], [1], [0, 0, 1, 1], [], []>} : vector<256x128xf32>, vector<128x128xf32>, vector<256x128xf32> -> vector<256x128xf32>
    %45 = arith.addf %39, %44 : vector<256x128xf32>
    %c2_52 = arith.constant 2 : index
    %c7_53 = arith.constant 7 : index
    %c0_54 = arith.constant 0 : index
    %46 = vector.load %arg13[%c2_52, %c7_53, %c0_54] : memref<18x32x128xf32, #tpu.memory_space<vmem>>, vector<16x16x128xf32>
    %47 = vector.shape_cast %46 : vector<16x16x128xf32> to vector<256x128xf32>
    %c6 = arith.constant 6 : index
    %c0_55 = arith.constant 0 : index
    %c0_56 = arith.constant 0 : index
    %48 = vector.load %arg2[%c6, %c0_55, %c0_56] : memref<9x128x128xf32, #tpu.memory_space<vmem>>, vector<1x128x128xf32>
    %49 = vector.shape_cast %48 : vector<1x128x128xf32> to vector<128x128xf32>
    %cst_57 = arith.constant dense<0.000000e+00> : vector<256x128xf32>
    %50 = tpu.matmul %47, %49, %cst_57 {dimension_numbers = #tpu.dot_dimension_numbers<[1], [0], [0], [1], [0, 0, 1, 1], [], []>} : vector<256x128xf32>, vector<128x128xf32>, vector<256x128xf32> -> vector<256x128xf32>
    %51 = arith.addf %45, %50 : vector<256x128xf32>
    %c2_58 = arith.constant 2 : index
    %c8_59 = arith.constant 8 : index
    %c0_60 = arith.constant 0 : index
    %52 = vector.load %arg13[%c2_58, %c8_59, %c0_60] : memref<18x32x128xf32, #tpu.memory_space<vmem>>, vector<16x16x128xf32>
    %53 = vector.shape_cast %52 : vector<16x16x128xf32> to vector<256x128xf32>
    %c7_61 = arith.constant 7 : index
    %c0_62 = arith.constant 0 : index
    %c0_63 = arith.constant 0 : index
    %54 = vector.load %arg2[%c7_61, %c0_62, %c0_63] : memref<9x128x128xf32, #tpu.memory_space<vmem>>, vector<1x128x128xf32>
    %55 = vector.shape_cast %54 : vector<1x128x128xf32> to vector<128x128xf32>
    %cst_64 = arith.constant dense<0.000000e+00> : vector<256x128xf32>
    %56 = tpu.matmul %53, %55, %cst_64 {dimension_numbers = #tpu.dot_dimension_numbers<[1], [0], [0], [1], [0, 0, 1, 1], [], []>} : vector<256x128xf32>, vector<128x128xf32>, vector<256x128xf32> -> vector<256x128xf32>
    %57 = arith.addf %51, %56 : vector<256x128xf32>
    %c2_65 = arith.constant 2 : index
    %c9_66 = arith.constant 9 : index
    %c0_67 = arith.constant 0 : index
    %58 = vector.load %arg13[%c2_65, %c9_66, %c0_67] : memref<18x32x128xf32, #tpu.memory_space<vmem>>, vector<16x16x128xf32>
    %59 = vector.shape_cast %58 : vector<16x16x128xf32> to vector<256x128xf32>
    %c8_68 = arith.constant 8 : index
    %c0_69 = arith.constant 0 : index
    %c0_70 = arith.constant 0 : index
    %60 = vector.load %arg2[%c8_68, %c0_69, %c0_70] : memref<9x128x128xf32, #tpu.memory_space<vmem>>, vector<1x128x128xf32>
    %61 = vector.shape_cast %60 : vector<1x128x128xf32> to vector<128x128xf32>
    %cst_71 = arith.constant dense<0.000000e+00> : vector<256x128xf32>
    %62 = tpu.matmul %59, %61, %cst_71 {dimension_numbers = #tpu.dot_dimension_numbers<[1], [0], [0], [1], [0, 0, 1, 1], [], []>} : vector<256x128xf32>, vector<128x128xf32>, vector<256x128xf32> -> vector<256x128xf32>
    %63 = arith.addf %57, %62 : vector<256x128xf32>
    %c0_72 = arith.constant 0 : index
    %c0_73 = arith.constant 0 : index
    %64 = vector.load %arg3[%c0_72, %c0_73] : memref<1x128xf32, #tpu.memory_space<vmem>>, vector<1x128xf32>
    %65 = vector.broadcast %64 : vector<1x128xf32> to vector<256x128xf32>
    %66 = arith.addf %63, %65 : vector<256x128xf32>
    %67 = vector.shape_cast %66 : vector<256x128xf32> to vector<16x16x128xf32>
    %cst_74 = arith.constant -3.000000e+38 : f32
    %68 = vector.broadcast %cst_74 : f32 to vector<1x18x128xf32>
    %cst_75 = arith.constant -3.000000e+38 : f32
    %69 = vector.broadcast %cst_75 : f32 to vector<18x1x128xf32>
    %c0_76 = arith.constant 0 : index
    %c7_77 = arith.constant 7 : index
    %c0_78 = arith.constant 0 : index
    %70 = vector.load %arg14[%c0_76, %c7_77, %c0_78] : memref<18x32x128xf32, #tpu.memory_space<vmem>>, vector<1x18x128xf32>
    tpu.vector_store %arg14[%c0_76, %c7_77, %c0_78], %68 {strides = array<i32>} : memref<18x32x128xf32, #tpu.memory_space<vmem>>, vector<1x18x128xf32>,
    %c17_79 = arith.constant 17 : index
    %c7_80 = arith.constant 7 : index
    %c0_81 = arith.constant 0 : index
    %71 = vector.load %arg14[%c17_79, %c7_80, %c0_81] : memref<18x32x128xf32, #tpu.memory_space<vmem>>, vector<1x18x128xf32>
    tpu.vector_store %arg14[%c17_79, %c7_80, %c0_81], %68 {strides = array<i32>} : memref<18x32x128xf32, #tpu.memory_space<vmem>>, vector<1x18x128xf32>,
    %c0_82 = arith.constant 0 : index
    %c7_83 = arith.constant 7 : index
    %c0_84 = arith.constant 0 : index
    %72 = vector.load %arg14[%c0_82, %c7_83, %c0_84] : memref<18x32x128xf32, #tpu.memory_space<vmem>>, vector<18x1x128xf32>
    tpu.vector_store %arg14[%c0_82, %c7_83, %c0_84], %69 {strides = array<i32>} : memref<18x32x128xf32, #tpu.memory_space<vmem>>, vector<18x1x128xf32>,
    %c0_85 = arith.constant 0 : index
    %c24_86 = arith.constant 24 : index
    %c0_87 = arith.constant 0 : index
    %73 = vector.load %arg14[%c0_85, %c24_86, %c0_87] : memref<18x32x128xf32, #tpu.memory_space<vmem>>, vector<18x1x128xf32>
    tpu.vector_store %arg14[%c0_85, %c24_86, %c0_87], %69 {strides = array<i32>} : memref<18x32x128xf32, #tpu.memory_space<vmem>>, vector<18x1x128xf32>,
    %c1_88 = arith.constant 1 : index
    %c8_89 = arith.constant 8 : index
    %c0_90 = arith.constant 0 : index
    %74 = vector.load %arg14[%c1_88, %c8_89, %c0_90] : memref<18x32x128xf32, #tpu.memory_space<vmem>>, vector<16x16x128xf32>
    tpu.vector_store %arg14[%c1_88, %c8_89, %c0_90], %67 {strides = array<i32>} : memref<18x32x128xf32, #tpu.memory_space<vmem>>, vector<16x16x128xf32>,
    %c0_91 = arith.constant 0 : index
    %c7_92 = arith.constant 7 : index
    %c0_93 = arith.constant 0 : index
    %75 = tpu.strided_load %arg14[%c0_91, %c7_92, %c0_93] {strides = array<i32: 1, 2, 1>} : memref<18x32x128xf32, #tpu.memory_space<vmem>>, vector<18x8x128xf32>
    %c0_94 = arith.constant 0 : index
    %c8_95 = arith.constant 8 : index
    %c0_96 = arith.constant 0 : index
    %76 = tpu.strided_load %arg14[%c0_94, %c8_95, %c0_96] {strides = array<i32: 1, 2, 1>} : memref<18x32x128xf32, #tpu.memory_space<vmem>>, vector<18x8x128xf32>
    %77 = arith.maximumf %75, %76 : vector<18x8x128xf32>
    %c0_97 = arith.constant 0 : index
    %c9_98 = arith.constant 9 : index
    %c0_99 = arith.constant 0 : index
    %78 = tpu.strided_load %arg14[%c0_97, %c9_98, %c0_99] {strides = array<i32: 1, 2, 1>} : memref<18x32x128xf32, #tpu.memory_space<vmem>>, vector<18x8x128xf32>
    %79 = arith.maximumf %77, %78 : vector<18x8x128xf32>
    %c0_100 = arith.constant 0 : index
    %c0_101 = arith.constant 0 : index
    %c0_102 = arith.constant 0 : index
    %80 = vector.load %arg15[%c0_100, %c0_101, %c0_102] : memref<18x8x128xf32, #tpu.memory_space<vmem>>, vector<18x8x128xf32>
    tpu.vector_store %arg15[%c0_100, %c0_101, %c0_102], %79 {strides = array<i32>} : memref<18x8x128xf32, #tpu.memory_space<vmem>>, vector<18x8x128xf32>,
    %c0_103 = arith.constant 0 : index
    %c0_104 = arith.constant 0 : index
    %c0_105 = arith.constant 0 : index
    %81 = tpu.strided_load %arg15[%c0_103, %c0_104, %c0_105] {strides = array<i32: 2, 1, 1>} : memref<18x8x128xf32, #tpu.memory_space<vmem>>, vector<8x8x128xf32>
    %c1_106 = arith.constant 1 : index
    %c0_107 = arith.constant 0 : index
    %c0_108 = arith.constant 0 : index
    %82 = tpu.strided_load %arg15[%c1_106, %c0_107, %c0_108] {strides = array<i32: 2, 1, 1>} : memref<18x8x128xf32, #tpu.memory_space<vmem>>, vector<8x8x128xf32>
    %83 = arith.maximumf %81, %82 : vector<8x8x128xf32>
    %c2_109 = arith.constant 2 : index
    %c0_110 = arith.constant 0 : index
    %c0_111 = arith.constant 0 : index
    %84 = tpu.strided_load %arg15[%c2_109, %c0_110, %c0_111] {strides = array<i32: 2, 1, 1>} : memref<18x8x128xf32, #tpu.memory_space<vmem>>, vector<8x8x128xf32>
    %85 = arith.maximumf %83, %84 : vector<8x8x128xf32>
    %86 = arith.negf %85 : vector<8x8x128xf32>
    %87 = math.exp %86 : vector<8x8x128xf32>
    %cst_112 = arith.constant 1.000000e+00 : f32
    %88 = vector.broadcast %cst_112 : f32 to vector<8x8x128xf32>
    %89 = arith.addf %88, %87 : vector<8x8x128xf32>
    %90 = arith.divf %88, %89 : vector<8x8x128xf32>
    %91 = arith.mulf %85, %90 : vector<8x8x128xf32>
    %cst_113 = arith.constant 0.000000e+00 : f32
    %92 = vector.broadcast %cst_113 : f32 to vector<1x10x128xf32>
    %cst_114 = arith.constant 0.000000e+00 : f32
    %93 = vector.broadcast %cst_114 : f32 to vector<10x1x128xf32>
    %c0_115 = arith.constant 0 : index
    %c7_116 = arith.constant 7 : index
    %c0_117 = arith.constant 0 : index
    %94 = vector.load %arg16[%c0_115, %c7_116, %c0_117] : memref<10x24x128xf32, #tpu.memory_space<vmem>>, vector<1x10x128xf32>
    tpu.vector_store %arg16[%c0_115, %c7_116, %c0_117], %92 {strides = array<i32>} : memref<10x24x128xf32, #tpu.memory_space<vmem>>, vector<1x10x128xf32>,
    %c9_118 = arith.constant 9 : index
    %c7_119 = arith.constant 7 : index
    %c0_120 = arith.constant 0 : index
    %95 = vector.load %arg16[%c9_118, %c7_119, %c0_120] : memref<10x24x128xf32, #tpu.memory_space<vmem>>, vector<1x10x128xf32>
    tpu.vector_store %arg16[%c9_118, %c7_119, %c0_120], %92 {strides = array<i32>} : memref<10x24x128xf32, #tpu.memory_space<vmem>>, vector<1x10x128xf32>,
    %c0_121 = arith.constant 0 : index
    %c7_122 = arith.constant 7 : index
    %c0_123 = arith.constant 0 : index
    %96 = vector.load %arg16[%c0_121, %c7_122, %c0_123] : memref<10x24x128xf32, #tpu.memory_space<vmem>>, vector<10x1x128xf32>
    tpu.vector_store %arg16[%c0_121, %c7_122, %c0_123], %93 {strides = array<i32>} : memref<10x24x128xf32, #tpu.memory_space<vmem>>, vector<10x1x128xf32>,
    %c0_124 = arith.constant 0 : index
    %c16 = arith.constant 16 : index
    %c0_125 = arith.constant 0 : index
    %97 = vector.load %arg16[%c0_124, %c16, %c0_125] : memref<10x24x128xf32, #tpu.memory_space<vmem>>, vector<10x1x128xf32>
    tpu.vector_store %arg16[%c0_124, %c16, %c0_125], %93 {strides = array<i32>} : memref<10x24x128xf32, #tpu.memory_space<vmem>>, vector<10x1x128xf32>,
    %cst_126 = arith.constant 0.000000e+00 : f32
    %98 = vector.broadcast %cst_126 : f32 to vector<1x10x128xf32>
    %cst_127 = arith.constant 0.000000e+00 : f32
    %99 = vector.broadcast %cst_127 : f32 to vector<10x1x128xf32>
    %c0_128 = arith.constant 0 : index
    %c7_129 = arith.constant 7 : index
    %c0_130 = arith.constant 0 : index
    %100 = vector.load %arg17[%c0_128, %c7_129, %c0_130] : memref<10x24x128xf32, #tpu.memory_space<vmem>>, vector<1x10x128xf32>
    tpu.vector_store %arg17[%c0_128, %c7_129, %c0_130], %98 {strides = array<i32>} : memref<10x24x128xf32, #tpu.memory_space<vmem>>, vector<1x10x128xf32>,
    %c9_131 = arith.constant 9 : index
    %c7_132 = arith.constant 7 : index
    %c0_133 = arith.constant 0 : index
    %101 = vector.load %arg17[%c9_131, %c7_132, %c0_133] : memref<10x24x128xf32, #tpu.memory_space<vmem>>, vector<1x10x128xf32>
    tpu.vector_store %arg17[%c9_131, %c7_132, %c0_133], %98 {strides = array<i32>} : memref<10x24x128xf32, #tpu.memory_space<vmem>>, vector<1x10x128xf32>,
    %c0_134 = arith.constant 0 : index
    %c7_135 = arith.constant 7 : index
    %c0_136 = arith.constant 0 : index
    %102 = vector.load %arg17[%c0_134, %c7_135, %c0_136] : memref<10x24x128xf32, #tpu.memory_space<vmem>>, vector<10x1x128xf32>
    tpu.vector_store %arg17[%c0_134, %c7_135, %c0_136], %99 {strides = array<i32>} : memref<10x24x128xf32, #tpu.memory_space<vmem>>, vector<10x1x128xf32>,
    %c0_137 = arith.constant 0 : index
    %c16_138 = arith.constant 16 : index
    %c0_139 = arith.constant 0 : index
    %103 = vector.load %arg17[%c0_137, %c16_138, %c0_139] : memref<10x24x128xf32, #tpu.memory_space<vmem>>, vector<10x1x128xf32>
    tpu.vector_store %arg17[%c0_137, %c16_138, %c0_139], %99 {strides = array<i32>} : memref<10x24x128xf32, #tpu.memory_space<vmem>>, vector<10x1x128xf32>,
    %c1_140 = arith.constant 1 : index
    %c8_141 = arith.constant 8 : index
    %c0_142 = arith.constant 0 : index
    %104 = vector.load %arg16[%c1_140, %c8_141, %c0_142] : memref<10x24x128xf32, #tpu.memory_space<vmem>>, vector<8x8x128xf32>
    tpu.vector_store %arg16[%c1_140, %c8_141, %c0_142], %91 {strides = array<i32>} : memref<10x24x128xf32, #tpu.memory_space<vmem>>, vector<8x8x128xf32>,
    %cst_143 = arith.constant 0.000000e+00 : f32
    %105 = vector.broadcast %cst_143 : f32 to vector<64x128xf32>
    %c0_144 = arith.constant 0 : index
    %c7_145 = arith.constant 7 : index
    %c0_146 = arith.constant 0 : index
    %106 = vector.load %arg16[%c0_144, %c7_145, %c0_146] : memref<10x24x128xf32, #tpu.memory_space<vmem>>, vector<8x8x128xf32>
    %107 = vector.shape_cast %106 : vector<8x8x128xf32> to vector<64x128xf32>
    %c0_147 = arith.constant 0 : index
    %c0_148 = arith.constant 0 : index
    %c0_149 = arith.constant 0 : index
    %108 = vector.load %arg4[%c0_147, %c0_148, %c0_149] : memref<9x128x128xf32, #tpu.memory_space<vmem>>, vector<1x128x128xf32>
    %109 = vector.shape_cast %108 : vector<1x128x128xf32> to vector<128x128xf32>
    %cst_150 = arith.constant dense<0.000000e+00> : vector<64x128xf32>
    %110 = tpu.matmul %107, %109, %cst_150 {dimension_numbers = #tpu.dot_dimension_numbers<[1], [0], [0], [1], [0, 0, 1, 1], [], []>} : vector<64x128xf32>, vector<128x128xf32>, vector<64x128xf32> -> vector<64x128xf32>
    %111 = arith.addf %105, %110 : vector<64x128xf32>
    %c0_151 = arith.constant 0 : index
    %c8_152 = arith.constant 8 : index
    %c0_153 = arith.constant 0 : index
    %112 = vector.load %arg16[%c0_151, %c8_152, %c0_153] : memref<10x24x128xf32, #tpu.memory_space<vmem>>, vector<8x8x128xf32>
    %113 = vector.shape_cast %112 : vector<8x8x128xf32> to vector<64x128xf32>
    %c1_154 = arith.constant 1 : index
    %c0_155 = arith.constant 0 : index
    %c0_156 = arith.constant 0 : index
    %114 = vector.load %arg4[%c1_154, %c0_155, %c0_156] : memref<9x128x128xf32, #tpu.memory_space<vmem>>, vector<1x128x128xf32>
    %115 = vector.shape_cast %114 : vector<1x128x128xf32> to vector<128x128xf32>
    %cst_157 = arith.constant dense<0.000000e+00> : vector<64x128xf32>
    %116 = tpu.matmul %113, %115, %cst_157 {dimension_numbers = #tpu.dot_dimension_numbers<[1], [0], [0], [1], [0, 0, 1, 1], [], []>} : vector<64x128xf32>, vector<128x128xf32>, vector<64x128xf32> -> vector<64x128xf32>
    %117 = arith.addf %111, %116 : vector<64x128xf32>
    %c0_158 = arith.constant 0 : index
    %c9_159 = arith.constant 9 : index
    %c0_160 = arith.constant 0 : index
    %118 = vector.load %arg16[%c0_158, %c9_159, %c0_160] : memref<10x24x128xf32, #tpu.memory_space<vmem>>, vector<8x8x128xf32>
    %119 = vector.shape_cast %118 : vector<8x8x128xf32> to vector<64x128xf32>
    %c2_161 = arith.constant 2 : index
    %c0_162 = arith.constant 0 : index
    %c0_163 = arith.constant 0 : index
    %120 = vector.load %arg4[%c2_161, %c0_162, %c0_163] : memref<9x128x128xf32, #tpu.memory_space<vmem>>, vector<1x128x128xf32>
    %121 = vector.shape_cast %120 : vector<1x128x128xf32> to vector<128x128xf32>
    %cst_164 = arith.constant dense<0.000000e+00> : vector<64x128xf32>
    %122 = tpu.matmul %119, %121, %cst_164 {dimension_numbers = #tpu.dot_dimension_numbers<[1], [0], [0], [1], [0, 0, 1, 1], [], []>} : vector<64x128xf32>, vector<128x128xf32>, vector<64x128xf32> -> vector<64x128xf32>
    %123 = arith.addf %117, %122 : vector<64x128xf32>
    %c1_165 = arith.constant 1 : index
    %c7_166 = arith.constant 7 : index
    %c0_167 = arith.constant 0 : index
    %124 = vector.load %arg16[%c1_165, %c7_166, %c0_167] : memref<10x24x128xf32, #tpu.memory_space<vmem>>, vector<8x8x128xf32>
    %125 = vector.shape_cast %124 : vector<8x8x128xf32> to vector<64x128xf32>
    %c3_168 = arith.constant 3 : index
    %c0_169 = arith.constant 0 : index
    %c0_170 = arith.constant 0 : index
    %126 = vector.load %arg4[%c3_168, %c0_169, %c0_170] : memref<9x128x128xf32, #tpu.memory_space<vmem>>, vector<1x128x128xf32>
    %127 = vector.shape_cast %126 : vector<1x128x128xf32> to vector<128x128xf32>
    %cst_171 = arith.constant dense<0.000000e+00> : vector<64x128xf32>
    %128 = tpu.matmul %125, %127, %cst_171 {dimension_numbers = #tpu.dot_dimension_numbers<[1], [0], [0], [1], [0, 0, 1, 1], [], []>} : vector<64x128xf32>, vector<128x128xf32>, vector<64x128xf32> -> vector<64x128xf32>
    %129 = arith.addf %123, %128 : vector<64x128xf32>
    %c1_172 = arith.constant 1 : index
    %c8_173 = arith.constant 8 : index
    %c0_174 = arith.constant 0 : index
    %130 = vector.load %arg16[%c1_172, %c8_173, %c0_174] : memref<10x24x128xf32, #tpu.memory_space<vmem>>, vector<8x8x128xf32>
    %131 = vector.shape_cast %130 : vector<8x8x128xf32> to vector<64x128xf32>
    %c4_175 = arith.constant 4 : index
    %c0_176 = arith.constant 0 : index
    %c0_177 = arith.constant 0 : index
    %132 = vector.load %arg4[%c4_175, %c0_176, %c0_177] : memref<9x128x128xf32, #tpu.memory_space<vmem>>, vector<1x128x128xf32>
    %133 = vector.shape_cast %132 : vector<1x128x128xf32> to vector<128x128xf32>
    %cst_178 = arith.constant dense<0.000000e+00> : vector<64x128xf32>
    %134 = tpu.matmul %131, %133, %cst_178 {dimension_numbers = #tpu.dot_dimension_numbers<[1], [0], [0], [1], [0, 0, 1, 1], [], []>} : vector<64x128xf32>, vector<128x128xf32>, vector<64x128xf32> -> vector<64x128xf32>
    %135 = arith.addf %129, %134 : vector<64x128xf32>
    %c1_179 = arith.constant 1 : index
    %c9_180 = arith.constant 9 : index
    %c0_181 = arith.constant 0 : index
    %136 = vector.load %arg16[%c1_179, %c9_180, %c0_181] : memref<10x24x128xf32, #tpu.memory_space<vmem>>, vector<8x8x128xf32>
    %137 = vector.shape_cast %136 : vector<8x8x128xf32> to vector<64x128xf32>
    %c5_182 = arith.constant 5 : index
    %c0_183 = arith.constant 0 : index
    %c0_184 = arith.constant 0 : index
    %138 = vector.load %arg4[%c5_182, %c0_183, %c0_184] : memref<9x128x128xf32, #tpu.memory_space<vmem>>, vector<1x128x128xf32>
    %139 = vector.shape_cast %138 : vector<1x128x128xf32> to vector<128x128xf32>
    %cst_185 = arith.constant dense<0.000000e+00> : vector<64x128xf32>
    %140 = tpu.matmul %137, %139, %cst_185 {dimension_numbers = #tpu.dot_dimension_numbers<[1], [0], [0], [1], [0, 0, 1, 1], [], []>} : vector<64x128xf32>, vector<128x128xf32>, vector<64x128xf32> -> vector<64x128xf32>
    %141 = arith.addf %135, %140 : vector<64x128xf32>
    %c2_186 = arith.constant 2 : index
    %c7_187 = arith.constant 7 : index
    %c0_188 = arith.constant 0 : index
    %142 = vector.load %arg16[%c2_186, %c7_187, %c0_188] : memref<10x24x128xf32, #tpu.memory_space<vmem>>, vector<8x8x128xf32>
    %143 = vector.shape_cast %142 : vector<8x8x128xf32> to vector<64x128xf32>
    %c6_189 = arith.constant 6 : index
    %c0_190 = arith.constant 0 : index
    %c0_191 = arith.constant 0 : index
    %144 = vector.load %arg4[%c6_189, %c0_190, %c0_191] : memref<9x128x128xf32, #tpu.memory_space<vmem>>, vector<1x128x128xf32>
    %145 = vector.shape_cast %144 : vector<1x128x128xf32> to vector<128x128xf32>
    %cst_192 = arith.constant dense<0.000000e+00> : vector<64x128xf32>
    %146 = tpu.matmul %143, %145, %cst_192 {dimension_numbers = #tpu.dot_dimension_numbers<[1], [0], [0], [1], [0, 0, 1, 1], [], []>} : vector<64x128xf32>, vector<128x128xf32>, vector<64x128xf32> -> vector<64x128xf32>
    %147 = arith.addf %141, %146 : vector<64x128xf32>
    %c2_193 = arith.constant 2 : index
    %c8_194 = arith.constant 8 : index
    %c0_195 = arith.constant 0 : index
    %148 = vector.load %arg16[%c2_193, %c8_194, %c0_195] : memref<10x24x128xf32, #tpu.memory_space<vmem>>, vector<8x8x128xf32>
    %149 = vector.shape_cast %148 : vector<8x8x128xf32> to vector<64x128xf32>
    %c7_196 = arith.constant 7 : index
    %c0_197 = arith.constant 0 : index
    %c0_198 = arith.constant 0 : index
    %150 = vector.load %arg4[%c7_196, %c0_197, %c0_198] : memref<9x128x128xf32, #tpu.memory_space<vmem>>, vector<1x128x128xf32>
    %151 = vector.shape_cast %150 : vector<1x128x128xf32> to vector<128x128xf32>
    %cst_199 = arith.constant dense<0.000000e+00> : vector<64x128xf32>
    %152 = tpu.matmul %149, %151, %cst_199 {dimension_numbers = #tpu.dot_dimension_numbers<[1], [0], [0], [1], [0, 0, 1, 1], [], []>} : vector<64x128xf32>, vector<128x128xf32>, vector<64x128xf32> -> vector<64x128xf32>
    %153 = arith.addf %147, %152 : vector<64x128xf32>
    %c2_200 = arith.constant 2 : index
    %c9_201 = arith.constant 9 : index
    %c0_202 = arith.constant 0 : index
    %154 = vector.load %arg16[%c2_200, %c9_201, %c0_202] : memref<10x24x128xf32, #tpu.memory_space<vmem>>, vector<8x8x128xf32>
    %155 = vector.shape_cast %154 : vector<8x8x128xf32> to vector<64x128xf32>
    %c8_203 = arith.constant 8 : index
    %c0_204 = arith.constant 0 : index
    %c0_205 = arith.constant 0 : index
    %156 = vector.load %arg4[%c8_203, %c0_204, %c0_205] : memref<9x128x128xf32, #tpu.memory_space<vmem>>, vector<1x128x128xf32>
    %157 = vector.shape_cast %156 : vector<1x128x128xf32> to vector<128x128xf32>
    %cst_206 = arith.constant dense<0.000000e+00> : vector<64x128xf32>
    %158 = tpu.matmul %155, %157, %cst_206 {dimension_numbers = #tpu.dot_dimension_numbers<[1], [0], [0], [1], [0, 0, 1, 1], [], []>} : vector<64x128xf32>, vector<128x128xf32>, vector<64x128xf32> -> vector<64x128xf32>
    %159 = arith.addf %153, %158 : vector<64x128xf32>
    %c0_207 = arith.constant 0 : index
    %c0_208 = arith.constant 0 : index
    %160 = vector.load %arg5[%c0_207, %c0_208] : memref<1x128xf32, #tpu.memory_space<vmem>>, vector<1x128xf32>
    %161 = vector.broadcast %160 : vector<1x128xf32> to vector<64x128xf32>
    %162 = arith.addf %159, %161 : vector<64x128xf32>
    %163 = vector.shape_cast %162 : vector<64x128xf32> to vector<8x8x128xf32>
    %164 = arith.negf %163 : vector<8x8x128xf32>
    %165 = math.exp %164 : vector<8x8x128xf32>
    %cst_209 = arith.constant 1.000000e+00 : f32
    %166 = vector.broadcast %cst_209 : f32 to vector<8x8x128xf32>
    %167 = arith.addf %166, %165 : vector<8x8x128xf32>
    %168 = arith.divf %166, %167 : vector<8x8x128xf32>
    %169 = arith.mulf %163, %168 : vector<8x8x128xf32>
    %c1_210 = arith.constant 1 : index
    %c8_211 = arith.constant 8 : index
    %c0_212 = arith.constant 0 : index
    %170 = vector.load %arg17[%c1_210, %c8_211, %c0_212] : memref<10x24x128xf32, #tpu.memory_space<vmem>>, vector<8x8x128xf32>
    tpu.vector_store %arg17[%c1_210, %c8_211, %c0_212], %169 {strides = array<i32>} : memref<10x24x128xf32, #tpu.memory_space<vmem>>, vector<8x8x128xf32>,
    %cst_213 = arith.constant 0.000000e+00 : f32
    %171 = vector.broadcast %cst_213 : f32 to vector<64x128xf32>
    %c0_214 = arith.constant 0 : index
    %c7_215 = arith.constant 7 : index
    %c0_216 = arith.constant 0 : index
    %172 = vector.load %arg17[%c0_214, %c7_215, %c0_216] : memref<10x24x128xf32, #tpu.memory_space<vmem>>, vector<8x8x128xf32>
    %173 = vector.shape_cast %172 : vector<8x8x128xf32> to vector<64x128xf32>
    %c0_217 = arith.constant 0 : index
    %c0_218 = arith.constant 0 : index
    %c0_219 = arith.constant 0 : index
    %174 = vector.load %arg6[%c0_217, %c0_218, %c0_219] : memref<9x128x128xf32, #tpu.memory_space<vmem>>, vector<1x128x128xf32>
    %175 = vector.shape_cast %174 : vector<1x128x128xf32> to vector<128x128xf32>
    %cst_220 = arith.constant dense<0.000000e+00> : vector<64x128xf32>
    %176 = tpu.matmul %173, %175, %cst_220 {dimension_numbers = #tpu.dot_dimension_numbers<[1], [0], [0], [1], [0, 0, 1, 1], [], []>} : vector<64x128xf32>, vector<128x128xf32>, vector<64x128xf32> -> vector<64x128xf32>
    %177 = arith.addf %171, %176 : vector<64x128xf32>
    %c0_221 = arith.constant 0 : index
    %c8_222 = arith.constant 8 : index
    %c0_223 = arith.constant 0 : index
    %178 = vector.load %arg17[%c0_221, %c8_222, %c0_223] : memref<10x24x128xf32, #tpu.memory_space<vmem>>, vector<8x8x128xf32>
    %179 = vector.shape_cast %178 : vector<8x8x128xf32> to vector<64x128xf32>
    %c1_224 = arith.constant 1 : index
    %c0_225 = arith.constant 0 : index
    %c0_226 = arith.constant 0 : index
    %180 = vector.load %arg6[%c1_224, %c0_225, %c0_226] : memref<9x128x128xf32, #tpu.memory_space<vmem>>, vector<1x128x128xf32>
    %181 = vector.shape_cast %180 : vector<1x128x128xf32> to vector<128x128xf32>
    %cst_227 = arith.constant dense<0.000000e+00> : vector<64x128xf32>
    %182 = tpu.matmul %179, %181, %cst_227 {dimension_numbers = #tpu.dot_dimension_numbers<[1], [0], [0], [1], [0, 0, 1, 1], [], []>} : vector<64x128xf32>, vector<128x128xf32>, vector<64x128xf32> -> vector<64x128xf32>
    %183 = arith.addf %177, %182 : vector<64x128xf32>
    %c0_228 = arith.constant 0 : index
    %c9_229 = arith.constant 9 : index
    %c0_230 = arith.constant 0 : index
    %184 = vector.load %arg17[%c0_228, %c9_229, %c0_230] : memref<10x24x128xf32, #tpu.memory_space<vmem>>, vector<8x8x128xf32>
    %185 = vector.shape_cast %184 : vector<8x8x128xf32> to vector<64x128xf32>
    %c2_231 = arith.constant 2 : index
    %c0_232 = arith.constant 0 : index
    %c0_233 = arith.constant 0 : index
    %186 = vector.load %arg6[%c2_231, %c0_232, %c0_233] : memref<9x128x128xf32, #tpu.memory_space<vmem>>, vector<1x128x128xf32>
    %187 = vector.shape_cast %186 : vector<1x128x128xf32> to vector<128x128xf32>
    %cst_234 = arith.constant dense<0.000000e+00> : vector<64x128xf32>
    %188 = tpu.matmul %185, %187, %cst_234 {dimension_numbers = #tpu.dot_dimension_numbers<[1], [0], [0], [1], [0, 0, 1, 1], [], []>} : vector<64x128xf32>, vector<128x128xf32>, vector<64x128xf32> -> vector<64x128xf32>
    %189 = arith.addf %183, %188 : vector<64x128xf32>
    %c1_235 = arith.constant 1 : index
    %c7_236 = arith.constant 7 : index
    %c0_237 = arith.constant 0 : index
    %190 = vector.load %arg17[%c1_235, %c7_236, %c0_237] : memref<10x24x128xf32, #tpu.memory_space<vmem>>, vector<8x8x128xf32>
    %191 = vector.shape_cast %190 : vector<8x8x128xf32> to vector<64x128xf32>
    %c3_238 = arith.constant 3 : index
    %c0_239 = arith.constant 0 : index
    %c0_240 = arith.constant 0 : index
    %192 = vector.load %arg6[%c3_238, %c0_239, %c0_240] : memref<9x128x128xf32, #tpu.memory_space<vmem>>, vector<1x128x128xf32>
    %193 = vector.shape_cast %192 : vector<1x128x128xf32> to vector<128x128xf32>
    %cst_241 = arith.constant dense<0.000000e+00> : vector<64x128xf32>
    %194 = tpu.matmul %191, %193, %cst_241 {dimension_numbers = #tpu.dot_dimension_numbers<[1], [0], [0], [1], [0, 0, 1, 1], [], []>} : vector<64x128xf32>, vector<128x128xf32>, vector<64x128xf32> -> vector<64x128xf32>
    %195 = arith.addf %189, %194 : vector<64x128xf32>
    %c1_242 = arith.constant 1 : index
    %c8_243 = arith.constant 8 : index
    %c0_244 = arith.constant 0 : index
    %196 = vector.load %arg17[%c1_242, %c8_243, %c0_244] : memref<10x24x128xf32, #tpu.memory_space<vmem>>, vector<8x8x128xf32>
    %197 = vector.shape_cast %196 : vector<8x8x128xf32> to vector<64x128xf32>
    %c4_245 = arith.constant 4 : index
    %c0_246 = arith.constant 0 : index
    %c0_247 = arith.constant 0 : index
    %198 = vector.load %arg6[%c4_245, %c0_246, %c0_247] : memref<9x128x128xf32, #tpu.memory_space<vmem>>, vector<1x128x128xf32>
    %199 = vector.shape_cast %198 : vector<1x128x128xf32> to vector<128x128xf32>
    %cst_248 = arith.constant dense<0.000000e+00> : vector<64x128xf32>
    %200 = tpu.matmul %197, %199, %cst_248 {dimension_numbers = #tpu.dot_dimension_numbers<[1], [0], [0], [1], [0, 0, 1, 1], [], []>} : vector<64x128xf32>, vector<128x128xf32>, vector<64x128xf32> -> vector<64x128xf32>
    %201 = arith.addf %195, %200 : vector<64x128xf32>
    %c1_249 = arith.constant 1 : index
    %c9_250 = arith.constant 9 : index
    %c0_251 = arith.constant 0 : index
    %202 = vector.load %arg17[%c1_249, %c9_250, %c0_251] : memref<10x24x128xf32, #tpu.memory_space<vmem>>, vector<8x8x128xf32>
    %203 = vector.shape_cast %202 : vector<8x8x128xf32> to vector<64x128xf32>
    %c5_252 = arith.constant 5 : index
    %c0_253 = arith.constant 0 : index
    %c0_254 = arith.constant 0 : index
    %204 = vector.load %arg6[%c5_252, %c0_253, %c0_254] : memref<9x128x128xf32, #tpu.memory_space<vmem>>, vector<1x128x128xf32>
    %205 = vector.shape_cast %204 : vector<1x128x128xf32> to vector<128x128xf32>
    %cst_255 = arith.constant dense<0.000000e+00> : vector<64x128xf32>
    %206 = tpu.matmul %203, %205, %cst_255 {dimension_numbers = #tpu.dot_dimension_numbers<[1], [0], [0], [1], [0, 0, 1, 1], [], []>} : vector<64x128xf32>, vector<128x128xf32>, vector<64x128xf32> -> vector<64x128xf32>
    %207 = arith.addf %201, %206 : vector<64x128xf32>
    %c2_256 = arith.constant 2 : index
    %c7_257 = arith.constant 7 : index
    %c0_258 = arith.constant 0 : index
    %208 = vector.load %arg17[%c2_256, %c7_257, %c0_258] : memref<10x24x128xf32, #tpu.memory_space<vmem>>, vector<8x8x128xf32>
    %209 = vector.shape_cast %208 : vector<8x8x128xf32> to vector<64x128xf32>
    %c6_259 = arith.constant 6 : index
    %c0_260 = arith.constant 0 : index
    %c0_261 = arith.constant 0 : index
    %210 = vector.load %arg6[%c6_259, %c0_260, %c0_261] : memref<9x128x128xf32, #tpu.memory_space<vmem>>, vector<1x128x128xf32>
    %211 = vector.shape_cast %210 : vector<1x128x128xf32> to vector<128x128xf32>
    %cst_262 = arith.constant dense<0.000000e+00> : vector<64x128xf32>
    %212 = tpu.matmul %209, %211, %cst_262 {dimension_numbers = #tpu.dot_dimension_numbers<[1], [0], [0], [1], [0, 0, 1, 1], [], []>} : vector<64x128xf32>, vector<128x128xf32>, vector<64x128xf32> -> vector<64x128xf32>
    %213 = arith.addf %207, %212 : vector<64x128xf32>
    %c2_263 = arith.constant 2 : index
    %c8_264 = arith.constant 8 : index
    %c0_265 = arith.constant 0 : index
    %214 = vector.load %arg17[%c2_263, %c8_264, %c0_265] : memref<10x24x128xf32, #tpu.memory_space<vmem>>, vector<8x8x128xf32>
    %215 = vector.shape_cast %214 : vector<8x8x128xf32> to vector<64x128xf32>
    %c7_266 = arith.constant 7 : index
    %c0_267 = arith.constant 0 : index
    %c0_268 = arith.constant 0 : index
    %216 = vector.load %arg6[%c7_266, %c0_267, %c0_268] : memref<9x128x128xf32, #tpu.memory_space<vmem>>, vector<1x128x128xf32>
    %217 = vector.shape_cast %216 : vector<1x128x128xf32> to vector<128x128xf32>
    %cst_269 = arith.constant dense<0.000000e+00> : vector<64x128xf32>
    %218 = tpu.matmul %215, %217, %cst_269 {dimension_numbers = #tpu.dot_dimension_numbers<[1], [0], [0], [1], [0, 0, 1, 1], [], []>} : vector<64x128xf32>, vector<128x128xf32>, vector<64x128xf32> -> vector<64x128xf32>
    %219 = arith.addf %213, %218 : vector<64x128xf32>
    %c2_270 = arith.constant 2 : index
    %c9_271 = arith.constant 9 : index
    %c0_272 = arith.constant 0 : index
    %220 = vector.load %arg17[%c2_270, %c9_271, %c0_272] : memref<10x24x128xf32, #tpu.memory_space<vmem>>, vector<8x8x128xf32>
    %221 = vector.shape_cast %220 : vector<8x8x128xf32> to vector<64x128xf32>
    %c8_273 = arith.constant 8 : index
    %c0_274 = arith.constant 0 : index
    %c0_275 = arith.constant 0 : index
    %222 = vector.load %arg6[%c8_273, %c0_274, %c0_275] : memref<9x128x128xf32, #tpu.memory_space<vmem>>, vector<1x128x128xf32>
    %223 = vector.shape_cast %222 : vector<1x128x128xf32> to vector<128x128xf32>
    %cst_276 = arith.constant dense<0.000000e+00> : vector<64x128xf32>
    %224 = tpu.matmul %221, %223, %cst_276 {dimension_numbers = #tpu.dot_dimension_numbers<[1], [0], [0], [1], [0, 0, 1, 1], [], []>} : vector<64x128xf32>, vector<128x128xf32>, vector<64x128xf32> -> vector<64x128xf32>
    %225 = arith.addf %219, %224 : vector<64x128xf32>
    %c0_277 = arith.constant 0 : index
    %c0_278 = arith.constant 0 : index
    %226 = vector.load %arg7[%c0_277, %c0_278] : memref<1x128xf32, #tpu.memory_space<vmem>>, vector<1x128xf32>
    %227 = vector.broadcast %226 : vector<1x128xf32> to vector<64x128xf32>
    %228 = arith.addf %225, %227 : vector<64x128xf32>
    %229 = vector.shape_cast %228 : vector<64x128xf32> to vector<8x8x128xf32>
    %230 = arith.addf %229, %91 : vector<8x8x128xf32>
    %231 = arith.negf %230 : vector<8x8x128xf32>
    %232 = math.exp %231 : vector<8x8x128xf32>
    %cst_279 = arith.constant 1.000000e+00 : f32
    %233 = vector.broadcast %cst_279 : f32 to vector<8x8x128xf32>
    %234 = arith.addf %233, %232 : vector<8x8x128xf32>
    %235 = arith.divf %233, %234 : vector<8x8x128xf32>
    %236 = arith.mulf %230, %235 : vector<8x8x128xf32>
    %c1_280 = arith.constant 1 : index
    %c8_281 = arith.constant 8 : index
    %c0_282 = arith.constant 0 : index
    %237 = vector.load %arg16[%c1_280, %c8_281, %c0_282] : memref<10x24x128xf32, #tpu.memory_space<vmem>>, vector<8x8x128xf32>
    tpu.vector_store %arg16[%c1_280, %c8_281, %c0_282], %236 {strides = array<i32>} : memref<10x24x128xf32, #tpu.memory_space<vmem>>, vector<8x8x128xf32>,
    %cst_283 = arith.constant 0.000000e+00 : f32
    %238 = vector.broadcast %cst_283 : f32 to vector<64x128xf32>
    %c0_284 = arith.constant 0 : index
    %c7_285 = arith.constant 7 : index
    %c0_286 = arith.constant 0 : index
    %239 = vector.load %arg16[%c0_284, %c7_285, %c0_286] : memref<10x24x128xf32, #tpu.memory_space<vmem>>, vector<8x8x128xf32>
    %240 = vector.shape_cast %239 : vector<8x8x128xf32> to vector<64x128xf32>
    %c0_287 = arith.constant 0 : index
    %c0_288 = arith.constant 0 : index
    %c0_289 = arith.constant 0 : index
    %241 = vector.load %arg8[%c0_287, %c0_288, %c0_289] : memref<9x128x128xf32, #tpu.memory_space<vmem>>, vector<1x128x128xf32>
    %242 = vector.shape_cast %241 : vector<1x128x128xf32> to vector<128x128xf32>
    %cst_290 = arith.constant dense<0.000000e+00> : vector<64x128xf32>
    %243 = tpu.matmul %240, %242, %cst_290 {dimension_numbers = #tpu.dot_dimension_numbers<[1], [0], [0], [1], [0, 0, 1, 1], [], []>} : vector<64x128xf32>, vector<128x128xf32>, vector<64x128xf32> -> vector<64x128xf32>
    %244 = arith.addf %238, %243 : vector<64x128xf32>
    %c0_291 = arith.constant 0 : index
    %c8_292 = arith.constant 8 : index
    %c0_293 = arith.constant 0 : index
    %245 = vector.load %arg16[%c0_291, %c8_292, %c0_293] : memref<10x24x128xf32, #tpu.memory_space<vmem>>, vector<8x8x128xf32>
    %246 = vector.shape_cast %245 : vector<8x8x128xf32> to vector<64x128xf32>
    %c1_294 = arith.constant 1 : index
    %c0_295 = arith.constant 0 : index
    %c0_296 = arith.constant 0 : index
    %247 = vector.load %arg8[%c1_294, %c0_295, %c0_296] : memref<9x128x128xf32, #tpu.memory_space<vmem>>, vector<1x128x128xf32>
    %248 = vector.shape_cast %247 : vector<1x128x128xf32> to vector<128x128xf32>
    %cst_297 = arith.constant dense<0.000000e+00> : vector<64x128xf32>
    %249 = tpu.matmul %246, %248, %cst_297 {dimension_numbers = #tpu.dot_dimension_numbers<[1], [0], [0], [1], [0, 0, 1, 1], [], []>} : vector<64x128xf32>, vector<128x128xf32>, vector<64x128xf32> -> vector<64x128xf32>
    %250 = arith.addf %244, %249 : vector<64x128xf32>
    %c0_298 = arith.constant 0 : index
    %c9_299 = arith.constant 9 : index
    %c0_300 = arith.constant 0 : index
    %251 = vector.load %arg16[%c0_298, %c9_299, %c0_300] : memref<10x24x128xf32, #tpu.memory_space<vmem>>, vector<8x8x128xf32>
    %252 = vector.shape_cast %251 : vector<8x8x128xf32> to vector<64x128xf32>
    %c2_301 = arith.constant 2 : index
    %c0_302 = arith.constant 0 : index
    %c0_303 = arith.constant 0 : index
    %253 = vector.load %arg8[%c2_301, %c0_302, %c0_303] : memref<9x128x128xf32, #tpu.memory_space<vmem>>, vector<1x128x128xf32>
    %254 = vector.shape_cast %253 : vector<1x128x128xf32> to vector<128x128xf32>
    %cst_304 = arith.constant dense<0.000000e+00> : vector<64x128xf32>
    %255 = tpu.matmul %252, %254, %cst_304 {dimension_numbers = #tpu.dot_dimension_numbers<[1], [0], [0], [1], [0, 0, 1, 1], [], []>} : vector<64x128xf32>, vector<128x128xf32>, vector<64x128xf32> -> vector<64x128xf32>
    %256 = arith.addf %250, %255 : vector<64x128xf32>
    %c1_305 = arith.constant 1 : index
    %c7_306 = arith.constant 7 : index
    %c0_307 = arith.constant 0 : index
    %257 = vector.load %arg16[%c1_305, %c7_306, %c0_307] : memref<10x24x128xf32, #tpu.memory_space<vmem>>, vector<8x8x128xf32>
    %258 = vector.shape_cast %257 : vector<8x8x128xf32> to vector<64x128xf32>
    %c3_308 = arith.constant 3 : index
    %c0_309 = arith.constant 0 : index
    %c0_310 = arith.constant 0 : index
    %259 = vector.load %arg8[%c3_308, %c0_309, %c0_310] : memref<9x128x128xf32, #tpu.memory_space<vmem>>, vector<1x128x128xf32>
    %260 = vector.shape_cast %259 : vector<1x128x128xf32> to vector<128x128xf32>
    %cst_311 = arith.constant dense<0.000000e+00> : vector<64x128xf32>
    %261 = tpu.matmul %258, %260, %cst_311 {dimension_numbers = #tpu.dot_dimension_numbers<[1], [0], [0], [1], [0, 0, 1, 1], [], []>} : vector<64x128xf32>, vector<128x128xf32>, vector<64x128xf32> -> vector<64x128xf32>
    %262 = arith.addf %256, %261 : vector<64x128xf32>
    %c1_312 = arith.constant 1 : index
    %c8_313 = arith.constant 8 : index
    %c0_314 = arith.constant 0 : index
    %263 = vector.load %arg16[%c1_312, %c8_313, %c0_314] : memref<10x24x128xf32, #tpu.memory_space<vmem>>, vector<8x8x128xf32>
    %264 = vector.shape_cast %263 : vector<8x8x128xf32> to vector<64x128xf32>
    %c4_315 = arith.constant 4 : index
    %c0_316 = arith.constant 0 : index
    %c0_317 = arith.constant 0 : index
    %265 = vector.load %arg8[%c4_315, %c0_316, %c0_317] : memref<9x128x128xf32, #tpu.memory_space<vmem>>, vector<1x128x128xf32>
    %266 = vector.shape_cast %265 : vector<1x128x128xf32> to vector<128x128xf32>
    %cst_318 = arith.constant dense<0.000000e+00> : vector<64x128xf32>
    %267 = tpu.matmul %264, %266, %cst_318 {dimension_numbers = #tpu.dot_dimension_numbers<[1], [0], [0], [1], [0, 0, 1, 1], [], []>} : vector<64x128xf32>, vector<128x128xf32>, vector<64x128xf32> -> vector<64x128xf32>
    %268 = arith.addf %262, %267 : vector<64x128xf32>
    %c1_319 = arith.constant 1 : index
    %c9_320 = arith.constant 9 : index
    %c0_321 = arith.constant 0 : index
    %269 = vector.load %arg16[%c1_319, %c9_320, %c0_321] : memref<10x24x128xf32, #tpu.memory_space<vmem>>, vector<8x8x128xf32>
    %270 = vector.shape_cast %269 : vector<8x8x128xf32> to vector<64x128xf32>
    %c5_322 = arith.constant 5 : index
    %c0_323 = arith.constant 0 : index
    %c0_324 = arith.constant 0 : index
    %271 = vector.load %arg8[%c5_322, %c0_323, %c0_324] : memref<9x128x128xf32, #tpu.memory_space<vmem>>, vector<1x128x128xf32>
    %272 = vector.shape_cast %271 : vector<1x128x128xf32> to vector<128x128xf32>
    %cst_325 = arith.constant dense<0.000000e+00> : vector<64x128xf32>
    %273 = tpu.matmul %270, %272, %cst_325 {dimension_numbers = #tpu.dot_dimension_numbers<[1], [0], [0], [1], [0, 0, 1, 1], [], []>} : vector<64x128xf32>, vector<128x128xf32>, vector<64x128xf32> -> vector<64x128xf32>
    %274 = arith.addf %268, %273 : vector<64x128xf32>
    %c2_326 = arith.constant 2 : index
    %c7_327 = arith.constant 7 : index
    %c0_328 = arith.constant 0 : index
    %275 = vector.load %arg16[%c2_326, %c7_327, %c0_328] : memref<10x24x128xf32, #tpu.memory_space<vmem>>, vector<8x8x128xf32>
    %276 = vector.shape_cast %275 : vector<8x8x128xf32> to vector<64x128xf32>
    %c6_329 = arith.constant 6 : index
    %c0_330 = arith.constant 0 : index
    %c0_331 = arith.constant 0 : index
    %277 = vector.load %arg8[%c6_329, %c0_330, %c0_331] : memref<9x128x128xf32, #tpu.memory_space<vmem>>, vector<1x128x128xf32>
    %278 = vector.shape_cast %277 : vector<1x128x128xf32> to vector<128x128xf32>
    %cst_332 = arith.constant dense<0.000000e+00> : vector<64x128xf32>
    %279 = tpu.matmul %276, %278, %cst_332 {dimension_numbers = #tpu.dot_dimension_numbers<[1], [0], [0], [1], [0, 0, 1, 1], [], []>} : vector<64x128xf32>, vector<128x128xf32>, vector<64x128xf32> -> vector<64x128xf32>
    %280 = arith.addf %274, %279 : vector<64x128xf32>
    %c2_333 = arith.constant 2 : index
    %c8_334 = arith.constant 8 : index
    %c0_335 = arith.constant 0 : index
    %281 = vector.load %arg16[%c2_333, %c8_334, %c0_335] : memref<10x24x128xf32, #tpu.memory_space<vmem>>, vector<8x8x128xf32>
    %282 = vector.shape_cast %281 : vector<8x8x128xf32> to vector<64x128xf32>
    %c7_336 = arith.constant 7 : index
    %c0_337 = arith.constant 0 : index
    %c0_338 = arith.constant 0 : index
    %283 = vector.load %arg8[%c7_336, %c0_337, %c0_338] : memref<9x128x128xf32, #tpu.memory_space<vmem>>, vector<1x128x128xf32>
    %284 = vector.shape_cast %283 : vector<1x128x128xf32> to vector<128x128xf32>
    %cst_339 = arith.constant dense<0.000000e+00> : vector<64x128xf32>
    %285 = tpu.matmul %282, %284, %cst_339 {dimension_numbers = #tpu.dot_dimension_numbers<[1], [0], [0], [1], [0, 0, 1, 1], [], []>} : vector<64x128xf32>, vector<128x128xf32>, vector<64x128xf32> -> vector<64x128xf32>
    %286 = arith.addf %280, %285 : vector<64x128xf32>
    %c2_340 = arith.constant 2 : index
    %c9_341 = arith.constant 9 : index
    %c0_342 = arith.constant 0 : index
    %287 = vector.load %arg16[%c2_340, %c9_341, %c0_342] : memref<10x24x128xf32, #tpu.memory_space<vmem>>, vector<8x8x128xf32>
    %288 = vector.shape_cast %287 : vector<8x8x128xf32> to vector<64x128xf32>
    %c8_343 = arith.constant 8 : index
    %c0_344 = arith.constant 0 : index
    %c0_345 = arith.constant 0 : index
    %289 = vector.load %arg8[%c8_343, %c0_344, %c0_345] : memref<9x128x128xf32, #tpu.memory_space<vmem>>, vector<1x128x128xf32>
    %290 = vector.shape_cast %289 : vector<1x128x128xf32> to vector<128x128xf32>
    %cst_346 = arith.constant dense<0.000000e+00> : vector<64x128xf32>
    %291 = tpu.matmul %288, %290, %cst_346 {dimension_numbers = #tpu.dot_dimension_numbers<[1], [0], [0], [1], [0, 0, 1, 1], [], []>} : vector<64x128xf32>, vector<128x128xf32>, vector<64x128xf32> -> vector<64x128xf32>
    %292 = arith.addf %286, %291 : vector<64x128xf32>
    %c0_347 = arith.constant 0 : index
    %c0_348 = arith.constant 0 : index
    %293 = vector.load %arg9[%c0_347, %c0_348] : memref<1x128xf32, #tpu.memory_space<vmem>>, vector<1x128xf32>
    %294 = vector.broadcast %293 : vector<1x128xf32> to vector<64x128xf32>
    %295 = arith.addf %292, %294 : vector<64x128xf32>
    %296 = vector.shape_cast %295 : vector<64x128xf32> to vector<8x8x128xf32>
    %297 = arith.negf %296 : vector<8x8x128xf32>
    %298 = math.exp %297 : vector<8x8x128xf32>
    %cst_349 = arith.constant 1.000000e+00 : f32
    %299 = vector.broadcast %cst_349 : f32 to vector<8x8x128xf32>
    %300 = arith.addf %299, %298 : vector<8x8x128xf32>
    %301 = arith.divf %299, %300 : vector<8x8x128xf32>
    %302 = arith.mulf %296, %301 : vector<8x8x128xf32>
    %c1_350 = arith.constant 1 : index
    %c8_351 = arith.constant 8 : index
    %c0_352 = arith.constant 0 : index
    %303 = vector.load %arg17[%c1_350, %c8_351, %c0_352] : memref<10x24x128xf32, #tpu.memory_space<vmem>>, vector<8x8x128xf32>
    tpu.vector_store %arg17[%c1_350, %c8_351, %c0_352], %302 {strides = array<i32>} : memref<10x24x128xf32, #tpu.memory_space<vmem>>, vector<8x8x128xf32>,
    %cst_353 = arith.constant 0.000000e+00 : f32
    %304 = vector.broadcast %cst_353 : f32 to vector<64x128xf32>
    %c0_354 = arith.constant 0 : index
    %c7_355 = arith.constant 7 : index
    %c0_356 = arith.constant 0 : index
    %305 = vector.load %arg17[%c0_354, %c7_355, %c0_356] : memref<10x24x128xf32, #tpu.memory_space<vmem>>, vector<8x8x128xf32>
    %306 = vector.shape_cast %305 : vector<8x8x128xf32> to vector<64x128xf32>
    %c0_357 = arith.constant 0 : index
    %c0_358 = arith.constant 0 : index
    %c0_359 = arith.constant 0 : index
    %307 = vector.load %arg10[%c0_357, %c0_358, %c0_359] : memref<9x128x128xf32, #tpu.memory_space<vmem>>, vector<1x128x128xf32>
    %308 = vector.shape_cast %307 : vector<1x128x128xf32> to vector<128x128xf32>
    %cst_360 = arith.constant dense<0.000000e+00> : vector<64x128xf32>
    %309 = tpu.matmul %306, %308, %cst_360 {dimension_numbers = #tpu.dot_dimension_numbers<[1], [0], [0], [1], [0, 0, 1, 1], [], []>} : vector<64x128xf32>, vector<128x128xf32>, vector<64x128xf32> -> vector<64x128xf32>
    %310 = arith.addf %304, %309 : vector<64x128xf32>
    %c0_361 = arith.constant 0 : index
    %c8_362 = arith.constant 8 : index
    %c0_363 = arith.constant 0 : index
    %311 = vector.load %arg17[%c0_361, %c8_362, %c0_363] : memref<10x24x128xf32, #tpu.memory_space<vmem>>, vector<8x8x128xf32>
    %312 = vector.shape_cast %311 : vector<8x8x128xf32> to vector<64x128xf32>
    %c1_364 = arith.constant 1 : index
    %c0_365 = arith.constant 0 : index
    %c0_366 = arith.constant 0 : index
    %313 = vector.load %arg10[%c1_364, %c0_365, %c0_366] : memref<9x128x128xf32, #tpu.memory_space<vmem>>, vector<1x128x128xf32>
    %314 = vector.shape_cast %313 : vector<1x128x128xf32> to vector<128x128xf32>
    %cst_367 = arith.constant dense<0.000000e+00> : vector<64x128xf32>
    %315 = tpu.matmul %312, %314, %cst_367 {dimension_numbers = #tpu.dot_dimension_numbers<[1], [0], [0], [1], [0, 0, 1, 1], [], []>} : vector<64x128xf32>, vector<128x128xf32>, vector<64x128xf32> -> vector<64x128xf32>
    %316 = arith.addf %310, %315 : vector<64x128xf32>
    %c0_368 = arith.constant 0 : index
    %c9_369 = arith.constant 9 : index
    %c0_370 = arith.constant 0 : index
    %317 = vector.load %arg17[%c0_368, %c9_369, %c0_370] : memref<10x24x128xf32, #tpu.memory_space<vmem>>, vector<8x8x128xf32>
    %318 = vector.shape_cast %317 : vector<8x8x128xf32> to vector<64x128xf32>
    %c2_371 = arith.constant 2 : index
    %c0_372 = arith.constant 0 : index
    %c0_373 = arith.constant 0 : index
    %319 = vector.load %arg10[%c2_371, %c0_372, %c0_373] : memref<9x128x128xf32, #tpu.memory_space<vmem>>, vector<1x128x128xf32>
    %320 = vector.shape_cast %319 : vector<1x128x128xf32> to vector<128x128xf32>
    %cst_374 = arith.constant dense<0.000000e+00> : vector<64x128xf32>
    %321 = tpu.matmul %318, %320, %cst_374 {dimension_numbers = #tpu.dot_dimension_numbers<[1], [0], [0], [1], [0, 0, 1, 1], [], []>} : vector<64x128xf32>, vector<128x128xf32>, vector<64x128xf32> -> vector<64x128xf32>
    %322 = arith.addf %316, %321 : vector<64x128xf32>
    %c1_375 = arith.constant 1 : index
    %c7_376 = arith.constant 7 : index
    %c0_377 = arith.constant 0 : index
    %323 = vector.load %arg17[%c1_375, %c7_376, %c0_377] : memref<10x24x128xf32, #tpu.memory_space<vmem>>, vector<8x8x128xf32>
    %324 = vector.shape_cast %323 : vector<8x8x128xf32> to vector<64x128xf32>
    %c3_378 = arith.constant 3 : index
    %c0_379 = arith.constant 0 : index
    %c0_380 = arith.constant 0 : index
    %325 = vector.load %arg10[%c3_378, %c0_379, %c0_380] : memref<9x128x128xf32, #tpu.memory_space<vmem>>, vector<1x128x128xf32>
    %326 = vector.shape_cast %325 : vector<1x128x128xf32> to vector<128x128xf32>
    %cst_381 = arith.constant dense<0.000000e+00> : vector<64x128xf32>
    %327 = tpu.matmul %324, %326, %cst_381 {dimension_numbers = #tpu.dot_dimension_numbers<[1], [0], [0], [1], [0, 0, 1, 1], [], []>} : vector<64x128xf32>, vector<128x128xf32>, vector<64x128xf32> -> vector<64x128xf32>
    %328 = arith.addf %322, %327 : vector<64x128xf32>
    %c1_382 = arith.constant 1 : index
    %c8_383 = arith.constant 8 : index
    %c0_384 = arith.constant 0 : index
    %329 = vector.load %arg17[%c1_382, %c8_383, %c0_384] : memref<10x24x128xf32, #tpu.memory_space<vmem>>, vector<8x8x128xf32>
    %330 = vector.shape_cast %329 : vector<8x8x128xf32> to vector<64x128xf32>
    %c4_385 = arith.constant 4 : index
    %c0_386 = arith.constant 0 : index
    %c0_387 = arith.constant 0 : index
    %331 = vector.load %arg10[%c4_385, %c0_386, %c0_387] : memref<9x128x128xf32, #tpu.memory_space<vmem>>, vector<1x128x128xf32>
    %332 = vector.shape_cast %331 : vector<1x128x128xf32> to vector<128x128xf32>
    %cst_388 = arith.constant dense<0.000000e+00> : vector<64x128xf32>
    %333 = tpu.matmul %330, %332, %cst_388 {dimension_numbers = #tpu.dot_dimension_numbers<[1], [0], [0], [1], [0, 0, 1, 1], [], []>} : vector<64x128xf32>, vector<128x128xf32>, vector<64x128xf32> -> vector<64x128xf32>
    %334 = arith.addf %328, %333 : vector<64x128xf32>
    %c1_389 = arith.constant 1 : index
    %c9_390 = arith.constant 9 : index
    %c0_391 = arith.constant 0 : index
    %335 = vector.load %arg17[%c1_389, %c9_390, %c0_391] : memref<10x24x128xf32, #tpu.memory_space<vmem>>, vector<8x8x128xf32>
    %336 = vector.shape_cast %335 : vector<8x8x128xf32> to vector<64x128xf32>
    %c5_392 = arith.constant 5 : index
    %c0_393 = arith.constant 0 : index
    %c0_394 = arith.constant 0 : index
    %337 = vector.load %arg10[%c5_392, %c0_393, %c0_394] : memref<9x128x128xf32, #tpu.memory_space<vmem>>, vector<1x128x128xf32>
    %338 = vector.shape_cast %337 : vector<1x128x128xf32> to vector<128x128xf32>
    %cst_395 = arith.constant dense<0.000000e+00> : vector<64x128xf32>
    %339 = tpu.matmul %336, %338, %cst_395 {dimension_numbers = #tpu.dot_dimension_numbers<[1], [0], [0], [1], [0, 0, 1, 1], [], []>} : vector<64x128xf32>, vector<128x128xf32>, vector<64x128xf32> -> vector<64x128xf32>
    %340 = arith.addf %334, %339 : vector<64x128xf32>
    %c2_396 = arith.constant 2 : index
    %c7_397 = arith.constant 7 : index
    %c0_398 = arith.constant 0 : index
    %341 = vector.load %arg17[%c2_396, %c7_397, %c0_398] : memref<10x24x128xf32, #tpu.memory_space<vmem>>, vector<8x8x128xf32>
    %342 = vector.shape_cast %341 : vector<8x8x128xf32> to vector<64x128xf32>
    %c6_399 = arith.constant 6 : index
    %c0_400 = arith.constant 0 : index
    %c0_401 = arith.constant 0 : index
    %343 = vector.load %arg10[%c6_399, %c0_400, %c0_401] : memref<9x128x128xf32, #tpu.memory_space<vmem>>, vector<1x128x128xf32>
    %344 = vector.shape_cast %343 : vector<1x128x128xf32> to vector<128x128xf32>
    %cst_402 = arith.constant dense<0.000000e+00> : vector<64x128xf32>
    %345 = tpu.matmul %342, %344, %cst_402 {dimension_numbers = #tpu.dot_dimension_numbers<[1], [0], [0], [1], [0, 0, 1, 1], [], []>} : vector<64x128xf32>, vector<128x128xf32>, vector<64x128xf32> -> vector<64x128xf32>
    %346 = arith.addf %340, %345 : vector<64x128xf32>
    %c2_403 = arith.constant 2 : index
    %c8_404 = arith.constant 8 : index
    %c0_405 = arith.constant 0 : index
    %347 = vector.load %arg17[%c2_403, %c8_404, %c0_405] : memref<10x24x128xf32, #tpu.memory_space<vmem>>, vector<8x8x128xf32>
    %348 = vector.shape_cast %347 : vector<8x8x128xf32> to vector<64x128xf32>
    %c7_406 = arith.constant 7 : index
    %c0_407 = arith.constant 0 : index
    %c0_408 = arith.constant 0 : index
    %349 = vector.load %arg10[%c7_406, %c0_407, %c0_408] : memref<9x128x128xf32, #tpu.memory_space<vmem>>, vector<1x128x128xf32>
    %350 = vector.shape_cast %349 : vector<1x128x128xf32> to vector<128x128xf32>
    %cst_409 = arith.constant dense<0.000000e+00> : vector<64x128xf32>
    %351 = tpu.matmul %348, %350, %cst_409 {dimension_numbers = #tpu.dot_dimension_numbers<[1], [0], [0], [1], [0, 0, 1, 1], [], []>} : vector<64x128xf32>, vector<128x128xf32>, vector<64x128xf32> -> vector<64x128xf32>
    %352 = arith.addf %346, %351 : vector<64x128xf32>
    %c2_410 = arith.constant 2 : index
    %c9_411 = arith.constant 9 : index
    %c0_412 = arith.constant 0 : index
    %353 = vector.load %arg17[%c2_410, %c9_411, %c0_412] : memref<10x24x128xf32, #tpu.memory_space<vmem>>, vector<8x8x128xf32>
    %354 = vector.shape_cast %353 : vector<8x8x128xf32> to vector<64x128xf32>
    %c8_413 = arith.constant 8 : index
    %c0_414 = arith.constant 0 : index
    %c0_415 = arith.constant 0 : index
    %355 = vector.load %arg10[%c8_413, %c0_414, %c0_415] : memref<9x128x128xf32, #tpu.memory_space<vmem>>, vector<1x128x128xf32>
    %356 = vector.shape_cast %355 : vector<1x128x128xf32> to vector<128x128xf32>
    %cst_416 = arith.constant dense<0.000000e+00> : vector<64x128xf32>
    %357 = tpu.matmul %354, %356, %cst_416 {dimension_numbers = #tpu.dot_dimension_numbers<[1], [0], [0], [1], [0, 0, 1, 1], [], []>} : vector<64x128xf32>, vector<128x128xf32>, vector<64x128xf32> -> vector<64x128xf32>
    %358 = arith.addf %352, %357 : vector<64x128xf32>
    %c0_417 = arith.constant 0 : index
    %c0_418 = arith.constant 0 : index
    %359 = vector.load %arg11[%c0_417, %c0_418] : memref<1x128xf32, #tpu.memory_space<vmem>>, vector<1x128xf32>
    %360 = vector.broadcast %359 : vector<1x128xf32> to vector<64x128xf32>
    %361 = arith.addf %358, %360 : vector<64x128xf32>
    %362 = vector.shape_cast %361 : vector<64x128xf32> to vector<8x8x128xf32>
    %363 = arith.addf %362, %236 : vector<8x8x128xf32>
    %364 = arith.negf %363 : vector<8x8x128xf32>
    %365 = math.exp %364 : vector<8x8x128xf32>
    %cst_419 = arith.constant 1.000000e+00 : f32
    %366 = vector.broadcast %cst_419 : f32 to vector<8x8x128xf32>
    %367 = arith.addf %366, %365 : vector<8x8x128xf32>
    %368 = arith.divf %366, %367 : vector<8x8x128xf32>
    %369 = arith.mulf %363, %368 : vector<8x8x128xf32>
    %c0_420 = arith.constant 0 : index
    %c0_421 = arith.constant 0 : index
    %c0_422 = arith.constant 0 : index
    %c0_423 = arith.constant 0 : index
    %370 = vector.load %arg12[%c0_420, %c0_421, %c0_422, %c0_423] : memref<1x8x8x128xf32, #tpu.memory_space<vmem>>, vector<1x8x8x128xf32>
    %371 = vector.shape_cast %370 : vector<1x8x8x128xf32> to vector<8x8x128xf32>
    %372 = vector.shape_cast %369 : vector<8x8x128xf32> to vector<1x8x8x128xf32>
    tpu.vector_store %arg12[%c0_420, %c0_421, %c0_422, %c0_423], %372 {strides = array<i32>} : memref<1x8x8x128xf32, #tpu.memory_space<vmem>>, vector<1x8x8x128xf32>,
    return
  }
  func.func @transform_0(%arg0: i32) -> (i32, i32, i32, i32) {
    %c0_i32 = arith.constant 0 : i32
    %c0_i32_0 = arith.constant 0 : i32
    %c0_i32_1 = arith.constant 0 : i32
    %c0_i32_2 = arith.constant 0 : i32
    return %arg0, %c0_i32, %c0_i32_0, %c0_i32_1 : i32, i32, i32, i32
  }
  func.func @transform_1(%arg0: i32) -> (i32, i32, i32) {
    %c0_i32 = arith.constant 0 : i32
    %c0_i32_0 = arith.constant 0 : i32
    %c0_i32_1 = arith.constant 0 : i32
    %c0_i32_2 = arith.constant 0 : i32
    return %c0_i32, %c0_i32_0, %c0_i32_1 : i32, i32, i32
  }
  func.func @transform_2(%arg0: i32) -> (i32, i32) {
    %c0_i32 = arith.constant 0 : i32
    %c0_i32_0 = arith.constant 0 : i32
    %c0_i32_1 = arith.constant 0 : i32
    return %c0_i32, %c0_i32_0 : i32, i32
  }
  func.func @transform_3(%arg0: i32) -> (i32, i32, i32) {
    %c0_i32 = arith.constant 0 : i32
    %c0_i32_0 = arith.constant 0 : i32
    %c0_i32_1 = arith.constant 0 : i32
    %c0_i32_2 = arith.constant 0 : i32
    return %c0_i32, %c0_i32_0, %c0_i32_1 : i32, i32, i32
  }
  func.func @transform_4(%arg0: i32) -> (i32, i32) {
    %c0_i32 = arith.constant 0 : i32
    %c0_i32_0 = arith.constant 0 : i32
    %c0_i32_1 = arith.constant 0 : i32
    return %c0_i32, %c0_i32_0 : i32, i32
  }
  func.func @transform_5(%arg0: i32) -> (i32, i32, i32) {
    %c0_i32 = arith.constant 0 : i32
    %c0_i32_0 = arith.constant 0 : i32
    %c0_i32_1 = arith.constant 0 : i32
    %c0_i32_2 = arith.constant 0 : i32
    return %c0_i32, %c0_i32_0, %c0_i32_1 : i32, i32, i32
  }
  func.func @transform_6(%arg0: i32) -> (i32, i32) {
    %c0_i32 = arith.constant 0 : i32
    %c0_i32_0 = arith.constant 0 : i32
    %c0_i32_1 = arith.constant 0 : i32
    return %c0_i32, %c0_i32_0 : i32, i32
  }
  func.func @transform_7(%arg0: i32) -> (i32, i32, i32) {
    %c0_i32 = arith.constant 0 : i32
    %c0_i32_0 = arith.constant 0 : i32
    %c0_i32_1 = arith.constant 0 : i32
    %c0_i32_2 = arith.constant 0 : i32
    return %c0_i32, %c0_i32_0, %c0_i32_1 : i32, i32, i32
  }
  func.func @transform_8(%arg0: i32) -> (i32, i32) {
    %c0_i32 = arith.constant 0 : i32
    %c0_i32_0 = arith.constant 0 : i32
    %c0_i32_1 = arith.constant 0 : i32
    return %c0_i32, %c0_i32_0 : i32, i32
  }
  func.func @transform_9(%arg0: i32) -> (i32, i32, i32) {
    %c0_i32 = arith.constant 0 : i32
    %c0_i32_0 = arith.constant 0 : i32
    %c0_i32_1 = arith.constant 0 : i32
    %c0_i32_2 = arith.constant 0 : i32
    return %c0_i32, %c0_i32_0, %c0_i32_1 : i32, i32, i32
  }
  func.func @transform_10(%arg0: i32) -> (i32, i32) {
    %c0_i32 = arith.constant 0 : i32
    %c0_i32_0 = arith.constant 0 : i32
    %c0_i32_1 = arith.constant 0 : i32
    return %c0_i32, %c0_i32_0 : i32, i32
  }
  func.func @transform_11(%arg0: i32) -> (i32, i32, i32, i32) {
    %c0_i32 = arith.constant 0 : i32
    %c0_i32_0 = arith.constant 0 : i32
    %c0_i32_1 = arith.constant 0 : i32
    %c0_i32_2 = arith.constant 0 : i32
    return %arg0, %c0_i32, %c0_i32_0, %c0_i32_1 : i32, i32, i32, i32
  }
}

</mosaic_0001>

<bundles_post_ra>
// kernel: impala_block.1
= control target key start
LH: loop header
LB: loop body
LE: loop exit
PB: predicated region body
PF: predicated region fallthrough
CT: control target
= control target key end

     0   :  { %s7067_s17 = smov 0   ;;  %s11255_s0 = inlined_call_operand.vmem [shape: f32[2,16,16,128], index: 0, kind: input, shape index: {}]   ;;  %s11256_s1 = inlined_call_operand.vmem [shape: f32[9,128,128], index: 1, kind: input, shape index: {}]   ;;  %s11257_s2 = inlined_call_operand.vmem [shape: f32[1,128], index: 2, kind: input, shape index: {}]   ;;  %s11258_s3 = inlined_call_operand.vmem [shape: f32[9,128,128], index: 3, kind: input, shape index: {}]   ;;  %s11259_s4 = inlined_call_operand.vmem [shape: f32[1,128], index: 4, kind: input, shape index: {}]   ;;  %s11260_s5 = inlined_call_operand.vmem [shape: f32[9,128,128], index: 5, kind: input, shape index: {}]   ;;  %s11261_s6 = inlined_call_operand.vmem [shape: f32[1,128], index: 6, kind: input, shape index: {}]   ;;  %s11262_s7 = inlined_call_operand.vmem [shape: f32[9,128,128], index: 7, kind: input, shape index: {}]   ;;  %s11263_s8 = inlined_call_operand.vmem [shape: f32[1,128], index: 8, kind: input, shape index: {}]   ;;  %s11264_s9 = inlined_call_operand.vmem [shape: f32[9,128,128], index: 9, kind: input, shape index: {}]   ;;  %s11265_s10 = inlined_call_operand.vmem [shape: f32[1,128], index: 10, kind: input, shape index: {}]   ;;  %s11266_s11 = inlined_call_operand.vmem [shape: f32[2,8,8,128], index: 11, kind: output, shape index: {}]  }
   0x1 LB: > { %s6102_s18 = sadd.s32 4294967295, %s7003_s17   ;;  %p6106_p0 = scmp.ge.s32.totalorder %s7003_s17, 1  ;;  %s7003_s17 = sphi %s7067_s17, %s21_s17  }
   0x2   : > { %p337_p1 = scmp.lt.s32.totalorder %s7003_s17, 3 }
   0x4   : > { %p338_p2 = pnand %p6106_p0, %p337_p1 }
   0x6   : > { %341 = sbr.rel (%p338_p2) target bundleno = 2146 (0x862), region = 64 }
   0xb   : > { %v6126_v0 = vld [vmem:[%s11256_s1 + $0xf8] sm:$0xff]  ;;  %v6125_v3 = vld [vmem:[%s11256_s1 + $0xf0] sm:$0xff]  ;;  %v7005_v6 = vmov 0.0   ;;  %v6124_v8 = vld [vmem:[%s11256_s1 + $0xe8] sm:$0xff]  ;;  %p377_p3 = scmp.lt.s32.totalorder %s6102_s18, 1 }
   0xc   : > { %v542_v1 = vld [vmem:[%s11256_s1 + $0x78] sm:$0xff]  ;;  %592 = vmatpush.msra.mxu0 %v6126_v0  ;;  %v541_v4 = vld [vmem:[%s11256_s1 + $0x70] sm:$0xff]  ;;  %387 = vst [vmem:[#allocation2 + $0x7] sm:$0xff] %v7005_v6  ;;  %v540_v9 = vld [vmem:[%s11256_s1 + $0x68] sm:$0xff] }
   0xd   : > { %v6142_v2 = vld [vmem:[%s11256_s1 + $0x178] sm:$0xff]  ;;  %705 = vmatpush.msra.mxu1 %v542_v1  ;;  %v6141_v5 = vld [vmem:[%s11256_s1 + $0x170] sm:$0xff]  ;;  %388 = vst [vmem:[#allocation2 + $0xf] sm:$0xff] %v7005_v6  ;;  %v6140_v10 = vld [vmem:[%s11256_s1 + $0x168] sm:$0xff]  ;;  %s11326_s18 = smov (!%p377_p3, %s6102_s18), 1 }
   0xe   : > { %867 = vmatpush.msra.mxu2 %v6142_v2  ;;  %v6158_v7 = vld [vmem:[%s11256_s1 + $0x1f8] sm:$0xff]  ;;  %593 = vmatpush.msra.mxu0 %v6125_v3  ;;  %v6157_v11 = vld [vmem:[%s11256_s1 + $0x1f0] sm:$0xff]  ;;  %389 = vst [vmem:[#allocation2 + $0x17] sm:$0x3] %v7005_v6  ;;  %v6123_v12 = vld [vmem:[%s11256_s1 + $0xe0] sm:$0xff]  ;;  %s6793_s30 = sshll.u32 %s11326_s18, 8 }
   0xf   : > { %706 = vmatpush.msra.mxu1 %v541_v4  ;;  %1061 = vmatpush.msra.mxu3 %v6158_v7  ;;  %v539_v13 = vld [vmem:[%s11256_s1 + $0x60] sm:$0xff]  ;;  %391 = vst [vmem:[#allocation2 + $0x227] sm:$0xff] %v7005_v6  ;;  %v6156_v15 = vld [vmem:[%s11256_s1 + $0x1e8] sm:$0xff]  ;;  %v6122_v16 = vld [vmem:[%s11256_s1 + $0xd8] sm:$0xff]  ;;  %s7353_s14 = scalar_lea.vmem %s11255_s0, %s6793_s30  ;;  %s6794_s16 = sshll.u32 %s11326_s18, 6 }
  0x10   : > { %868 = vmatpush.msra.mxu2 %v6141_v5  ;;  %594 = vmatpush.msra.mxu0 %v6124_v8  ;;  %v6139_v14 = vld [vmem:[%s11256_s1 + $0x160] sm:$0xff]  ;;  %392 = vst [vmem:[#allocation2 + $0x22f] sm:$0xff] %v7005_v6  ;;  %v538_v17 = vld [vmem:[%s11256_s1 + $0x58] sm:$0xff]  ;;  %v6121_v20 = vld [vmem:[%s11256_s1 + $0xd0] sm:$0xff]  ;;  %s11197_s20 = scalar_lea.vmem %s11266_s11, %s6794_s16 }
  0x11   : > { %707 = vmatpush.msra.mxu1 %v540_v9  ;;  %1062 = vmatpush.msra.mxu3 %v6157_v11  ;;  %393 = vst [vmem:[#allocation2 + $0x237] sm:$0x3] %v7005_v6  ;;  %v6138_v18 = vld [vmem:[%s11256_s1 + $0x158] sm:$0xff]  ;;  %v6155_v19 = vld [vmem:[%s11256_s1 + $0x1e0] sm:$0xff]  ;;  %v537_v21 = vld [vmem:[%s11256_s1 + $0x50] sm:$0xff] }
  0x12   : > { %869 = vmatpush.msra.mxu2 %v6140_v10  ;;  %595 = vmatpush.msra.mxu0 %v6123_v12  ;;  %394 = vst [vmem:[#allocation2 + $0x7] sm:$0x1] %v7005_v6  ;;  %v6137_v22 = vld [vmem:[%s11256_s1 + $0x150] sm:$0xff]  ;;  %v6154_v23 = vld [vmem:[%s11256_s1 + $0x1d8] sm:$0xff]  ;;  %v6120_v24 = vld [vmem:[%s11256_s1 + $0xc8] sm:$0xff] }
  0x13   : > { %708 = vmatpush.msra.mxu1 %v539_v13  ;;  %1063 = vmatpush.msra.mxu3 %v6156_v15  ;;  %395 = vst [vmem:[#allocation2 + $0x27] sm:$0x1] %v7005_v6  ;;  %v536_v25 = vld [vmem:[%s11256_s1 + $0x48] sm:$0xff]  ;;  %v6153_v27 = vld [vmem:[%s11256_s1 + $0x1d0] sm:$0xff]  ;;  %v6119_v28 = vld [vmem:[%s11256_s1 + $0xc0] sm:$0xff] }
  0x14   : > { %870 = vmatpush.msra.mxu2 %v6139_v14  ;;  %596 = vmatpush.msra.mxu0 %v6122_v16  ;;  %396 = vst [vmem:[#allocation2 + $0x47] sm:$0x1] %v7005_v6  ;;  %v6136_v26 = vld [vmem:[%s11256_s1 + $0x148] sm:$0xff]  ;;  %v535_v29 = vld [vmem:[%s11256_s1 + $0x40] sm:$0xff]  ;;  %v6118_v32 = vld [vmem:[%s11256_s1 + $0xb8] sm:$0xff] }
  0x15   : > { %709 = vmatpush.msra.mxu1 %v538_v17  ;;  %1064 = vmatpush.msra.mxu3 %v6155_v19  ;;  %397 = vst [vmem:[#allocation2 + $0x67] sm:$0x1] %v7005_v6  ;;  %v6135_v30 = vld [vmem:[%s11256_s1 + $0x140] sm:$0xff]  ;;  %v6152_v31 = vld [vmem:[%s11256_s1 + $0x1c8] sm:$0xff]  ;;  %v534_v33 = vld [vmem:[%s11256_s1 + $0x38] sm:$0xff] }
  0x16   : > { %871 = vmatpush.msra.mxu2 %v6138_v18  ;;  %597 = vmatpush.msra.mxu0 %v6121_v20  ;;  %398 = vst [vmem:[#allocation2 + $0x87] sm:$0x1] %v7005_v6  ;;  %v6134_v34 = vld [vmem:[%s11256_s1 + $0x138] sm:$0xff]  ;;  %v6151_v35 = vld [vmem:[%s11256_s1 + $0x1c0] sm:$0xff]  ;;  %v6117_v36 = vld [vmem:[%s11256_s1 + $0xb0] sm:$0xff] }
  0x17   : > { %710 = vmatpush.msra.mxu1 %v537_v21  ;;  %1065 = vmatpush.msra.mxu3 %v6154_v23  ;;  %399 = vst [vmem:[#allocation2 + $0xa7] sm:$0x1] %v7005_v6  ;;  %v533_v37 = vld [vmem:[%s11256_s1 + $0x30] sm:$0xff]  ;;  %v6150_v39 = vld [vmem:[%s11256_s1 + $0x1b8] sm:$0xff]  ;;  %v6116_v40 = vld [vmem:[%s11256_s1 + $0xa8] sm:$0xff] }
  0x18   : > { %872 = vmatpush.msra.mxu2 %v6137_v22  ;;  %598 = vmatpush.msra.mxu0 %v6120_v24  ;;  %400 = vst [vmem:[#allocation2 + $0xc7] sm:$0x1] %v7005_v6  ;;  %v6133_v38 = vld [vmem:[%s11256_s1 + $0x130] sm:$0xff]  ;;  %v532_v41 = vld [vmem:[%s11256_s1 + $0x28] sm:$0xff]  ;;  %v6115_v44 = vld [vmem:[%s11256_s1 + $0xa0] sm:$0xff] }
  0x19   : > { %711 = vmatpush.msra.mxu1 %v536_v25  ;;  %1066 = vmatpush.msra.mxu3 %v6153_v27  ;;  %401 = vst [vmem:[#allocation2 + $0xe7] sm:$0x1] %v7005_v6  ;;  %v6132_v42 = vld [vmem:[%s11256_s1 + $0x128] sm:$0xff]  ;;  %v6149_v43 = vld [vmem:[%s11256_s1 + $0x1b0] sm:$0xff]  ;;  %v531_v45 = vld [vmem:[%s11256_s1 + $0x20] sm:$0xff] }
  0x1a   : > { %873 = vmatpush.msra.mxu2 %v6136_v26  ;;  %599 = vmatpush.msra.mxu0 %v6119_v28  ;;  %402 = vst [vmem:[#allocation2 + $0x107] sm:$0x1] %v7005_v6  ;;  %v6131_v46 = vld [vmem:[%s11256_s1 + $0x120] sm:$0xff]  ;;  %v6148_v47 = vld [vmem:[%s11256_s1 + $0x1a8] sm:$0xff]  ;;  %v6114_v48 = vld [vmem:[%s11256_s1 + $0x98] sm:$0xff] }
  0x1b   : > { %712 = vmatpush.msra.mxu1 %v535_v29  ;;  %1067 = vmatpush.msra.mxu3 %v6152_v31  ;;  %403 = vst [vmem:[#allocation2 + $0x127] sm:$0x1] %v7005_v6  ;;  %v530_v49 = vld [vmem:[%s11256_s1 + $0x18] sm:$0xff]  ;;  %v6147_v51 = vld [vmem:[%s11256_s1 + $0x1a0] sm:$0xff]  ;;  %v6113_v52 = vld [vmem:[%s11256_s1 + $0x90] sm:$0xff] }
  0x1c   : > { %874 = vmatpush.msra.mxu2 %v6135_v30  ;;  %600 = vmatpush.msra.mxu0 %v6118_v32  ;;  %404 = vst [vmem:[#allocation2 + $0x147] sm:$0x1] %v7005_v6  ;;  %v6130_v50 = vld [vmem:[%s11256_s1 + $0x118] sm:$0xff]  ;;  %v529_v53 = vld [vmem:[%s11256_s1 + $0x10] sm:$0xff]  ;;  %v6112_v56 = vld [vmem:[%s11256_s1 + $0x88] sm:$0xff] }
  0x1d   : > { %713 = vmatpush.msra.mxu1 %v534_v33  ;;  %1068 = vmatpush.msra.mxu3 %v6151_v35  ;;  %405 = vst [vmem:[#allocation2 + $0x167] sm:$0x1] %v7005_v6  ;;  %v6129_v54 = vld [vmem:[%s11256_s1 + $0x110] sm:$0xff]  ;;  %v6146_v55 = vld [vmem:[%s11256_s1 + $0x198] sm:$0xff]  ;;  %v528_v57 = vld [vmem:[%s11256_s1 + $0x8] sm:$0xff] }
  0x1e   : > { %875 = vmatpush.msra.mxu2 %v6134_v34  ;;  %601 = vmatpush.msra.mxu0 %v6117_v36  ;;  %406 = vst [vmem:[#allocation2 + $0x187] sm:$0x1] %v7005_v6  ;;  %v6128_v58 = vld [vmem:[%s11256_s1 + $0x108] sm:$0xff]  ;;  %v6145_v59 = vld [vmem:[%s11256_s1 + $0x190] sm:$0xff]  ;;  %v6111_v60 = vld [vmem:[%s11256_s1 + $0x80] sm:$0xff] }
  0x1f   : > { %714 = vmatpush.msra.mxu1 %v533_v37  ;;  %1069 = vmatpush.msra.mxu3 %v6150_v39  ;;  %407 = vst [vmem:[#allocation2 + $0x1a7] sm:$0x1] %v7005_v6  ;;  %v527_v61 = vld [vmem:[%s11256_s1] sm:$0xff]  ;;  %v6144_v63 = vld [vmem:[%s11256_s1 + $0x188] sm:$0xff]  ;;  %v6174_v4 = vld [vmem:[%s11256_s1 + $0x278] sm:$0xff] }
  0x20   : > { %876 = vmatpush.msra.mxu2 %v6133_v38  ;;  %602 = vmatpush.msra.mxu0 %v6116_v40  ;;  %408 = vst [vmem:[#allocation2 + $0x1c7] sm:$0x1] %v7005_v6  ;;  %v6127_v62 = vld [vmem:[%s11256_s1 + $0x100] sm:$0xff]  ;;  %v543_v0 = vld [vmem:[#allocation2 + $0x8] sm:$0xff]  ;;  %v544_v5 = vld [vmem:[#allocation2 + $0x10] sm:$0xff] }
  0x21   : > { %715 = vmatpush.msra.mxu1 %v532_v41  ;;  %1070 = vmatpush.msra.mxu3 %v6149_v43  ;;  %409 = vst [vmem:[#allocation2 + $0x1e7] sm:$0x1] %v7005_v6  ;;  %v495_v1 = vld [vmem:[#allocation2 + $0x7] sm:$0xff]  ;;  %v6173_v8 = vld [vmem:[%s11256_s1 + $0x270] sm:$0xff]  ;;  %v433_v12 = vld [vmem:[%s7353_s14 + $0x18] sm:$0xff] }
  0x22   : > { %877 = vmatpush.msra.mxu2 %v6132_v42  ;;  %603 = vmatpush.msra.mxu0 %v6115_v44  ;;  %410 = vst [vmem:[#allocation2 + $0x207] sm:$0x1] %v7005_v6  ;;  %v818_v2 = vld [vmem:[#allocation2 + $0x9] sm:$0xff]  ;;  %v6143_v3 = vld [vmem:[%s11256_s1 + $0x180] sm:$0xff]  ;;  %v437_v23 = vld [vmem:[%s7353_s14 + $0x38] sm:$0xff] }
  0x23   : > { %716 = vmatpush.msra.mxu1 %v531_v45  ;;  %1071 = vmatpush.msra.mxu3 %v6148_v47  ;;  %413 = vst [vmem:[#allocation2 + $0x38] sm:$0x1] %v7005_v6  ;;  %v430_v7 = vld [vmem:[%s7353_s14] sm:$0xff]  ;;  %v431_v9 = vld [vmem:[%s7353_s14 + $0x8] sm:$0xff]  ;;  %v432_v11 = vld [vmem:[%s7353_s14 + $0x10] sm:$0xff] }
  0x24   : > { %878 = vmatpush.msra.mxu2 %v6131_v46  ;;  %604 = vmatpush.msra.mxu0 %v6114_v48  ;;  %414 = vst [vmem:[#allocation2 + $0x58] sm:$0x1] %v7005_v6  ;;  %v6172_v13 = vld [vmem:[%s11256_s1 + $0x268] sm:$0xff]  ;;  %v434_v14 = vld [vmem:[%s7353_s14 + $0x20] sm:$0xff]  ;;  %v436_v19 = vld [vmem:[%s7353_s14 + $0x30] sm:$0xff] }
  0x25   : > { %717 = vmatpush.msra.mxu1 %v530_v49  ;;  %1072 = vmatpush.msra.mxu3 %v6147_v51  ;;  %415 = vst [vmem:[#allocation2 + $0x78] sm:$0x1] %v7005_v6  ;;  %v435_v16 = vld [vmem:[%s7353_s14 + $0x28] sm:$0xff]  ;;  %v6171_v20 = vld [vmem:[%s11256_s1 + $0x260] sm:$0xff]  ;;  %v6170_v27 = vld [vmem:[%s11256_s1 + $0x258] sm:$0xff] }
  0x26   : > { %879 = vmatpush.msra.mxu2 %v6130_v50  ;;  %605 = vmatpush.msra.mxu0 %v6113_v52  ;;  %416 = vst [vmem:[#allocation2 + $0x98] sm:$0x1] %v7005_v6  ;;  %v438_v26 = vld [vmem:[%s7353_s14 + $0x40] sm:$0xff]  ;;  %v439_v30 = vld [vmem:[%s7353_s14 + $0x48] sm:$0xff]  ;;  %v440_v33 = vld [vmem:[%s7353_s14 + $0x50] sm:$0xff] }
  0x27   : > { %718 = vmatpush.msra.mxu1 %v529_v53  ;;  %1073 = vmatpush.msra.mxu3 %v6146_v55  ;;  %417 = vst [vmem:[#allocation2 + $0xb8] sm:$0x1] %v7005_v6  ;;  %v6169_v34 = vld [vmem:[%s11256_s1 + $0x250] sm:$0xff]  ;;  %v441_v37 = vld [vmem:[%s7353_s14 + $0x58] sm:$0xff]  ;;  %v442_v40 = vld [vmem:[%s7353_s14 + $0x60] sm:$0xff] }
  0x28   : > { %880 = vmatpush.msra.mxu2 %v6129_v54  ;;  %606 = vmatpush.msra.mxu0 %v6112_v56  ;;  %418 = vst [vmem:[#allocation2 + $0xd8] sm:$0x1] %v7005_v6  ;;  %v6168_v41 = vld [vmem:[%s11256_s1 + $0x248] sm:$0xff]  ;;  %v444_v47 = vld [vmem:[%s7353_s14 + $0x70] sm:$0xff]  ;;  %v6167_v48 = vld [vmem:[%s11256_s1 + $0x240] sm:$0xff] }
  0x29   : > { %719 = vmatpush.msra.mxu1 %v528_v57  ;;  %1074 = vmatpush.msra.mxu3 %v6145_v59  ;;  %419 = vst [vmem:[#allocation2 + $0xf8] sm:$0x1] %v7005_v6  ;;  %v443_v44 = vld [vmem:[%s7353_s14 + $0x68] sm:$0xff]  ;;  %v445_v51 = vld [vmem:[%s7353_s14 + $0x78] sm:$0xff]  ;;  %v446_v54 = vld [vmem:[%s7353_s14 + $0x80] sm:$0xff] }
  0x2a   : > { %881 = vmatpush.msra.mxu2 %v6128_v58  ;;  %607 = vmatpush.msra.mxu0 %v6111_v60  ;;  %420 = vst [vmem:[#allocation2 + $0x118] sm:$0x1] %v7005_v6  ;;  %v6166_v56 = vld [vmem:[%s11256_s1 + $0x238] sm:$0xff]  ;;  %v447_v59 = vld [vmem:[%s7353_s14 + $0x88] sm:$0xff] }
  0x2b   : > { %720 = vmatpush.msra.mxu1 %v527_v61  ;;  %1075 = vmatpush.msra.mxu3 %v6144_v63  ;;  %421 = vst [vmem:[#allocation2 + $0x138] sm:$0x1] %v7005_v6  ;;  %v448_v63 = vld [vmem:[%s7353_s14 + $0x90] sm:$0xff] }
  0x2c   : > { %882 = vmatpush.msra.mxu2 %v6127_v62  ;;  %608 = vmatmul.f32.vlgmr.msra.gmra.mxu0 %v543_v0  ;;  %422 = vst [vmem:[#allocation2 + $0x158] sm:$0x1] %v7005_v6 }
  0x2d   : > { %721 = vmatmul.f32.vlgmr.msra.gmra.mxu1 %v495_v1  ;;  %423 = vst [vmem:[#allocation2 + $0x178] sm:$0x1] %v7005_v6  ;;  %883 = vmatmul.f32.vlgmr.msra.gmra.mxu2 %v818_v2  ;;  %v6165_v2 = vld [vmem:[%s11256_s1 + $0x230] sm:$0xff] }
  0x2e   : > { %424 = vst [vmem:[#allocation2 + $0x198] sm:$0x1] %v7005_v6  ;;  %1076 = vmatpush.msra.mxu3 %v6143_v3  ;;  %1255 = vmatpush.msrb.mxu0 %v6174_v4 }
  0x2f   : > { %425 = vst [vmem:[#allocation2 + $0x1b8] sm:$0x1] %v7005_v6 }
  0x30   : > { %426 = vst [vmem:[#allocation2 + $0x1d8] sm:$0x1] %v7005_v6  ;;  %1256 = vmatpush.msrb.mxu0 %v6173_v8 }
  0x31   : > { %427 = vst [vmem:[#allocation2 + $0x1f8] sm:$0x1] %v7005_v6 }
  0x32   : > { %428 = vst [vmem:[#allocation2 + $0x218] sm:$0x1] %v7005_v6  ;;  %1257 = vmatpush.msrb.mxu0 %v6172_v13 }
  0x33   : > { %2653 = vst [vmem:[#allocation5 + $0x7] sm:$0xff] %v7005_v6 }
  0x34   : > { %2654 = vst [vmem:[#allocation5 + $0xf] sm:$0x3] %v7005_v6  ;;  %611 = vmatmul.f32.gmra.mxu0 %v544_v5 }
  0x35   : > { %724 = vmatmul.f32.gmra.mxu1 %v7005_v6  ;;  %2656 = vst [vmem:[#allocation5 + $0xdf] sm:$0xff] %v7005_v6  ;;  %1258 = vmatpush.msrb.mxu0 %v6171_v20 }
  0x36   : > { %2657 = vst [vmem:[#allocation5 + $0xe7] sm:$0x3] %v7005_v6 }
  0x37   : > { %2659 = vst [vmem:[#allocation5 + $0x1f] sm:$0x1] %v7005_v6  ;;  %1259 = vmatpush.msrb.mxu0 %v6170_v27 }
  0x38   : > { %2660 = vst [vmem:[#allocation5 + $0x37] sm:$0x1] %v7005_v6 }
  0x39   : > { %2661 = vst [vmem:[#allocation5 + $0x4f] sm:$0x1] %v7005_v6  ;;  %1260 = vmatpush.msrb.mxu0 %v6169_v34 }
  0x3a   : > { %2662 = vst [vmem:[#allocation5 + $0x67] sm:$0x1] %v7005_v6 }
  0x3b   : > { %2663 = vst [vmem:[#allocation5 + $0x7f] sm:$0x1] %v7005_v6  ;;  %1261 = vmatpush.msrb.mxu0 %v6168_v41 }
  0x3c   : > { %2664 = vst [vmem:[#allocation5 + $0x97] sm:$0x1] %v7005_v6  ;;  %614 = vmatmul.f32.gmra.mxu0 %v430_v7 }
  0x3d   : > { %2665 = vst [vmem:[#allocation5 + $0xaf] sm:$0x1] %v7005_v6  ;;  %1262 = vmatpush.msrb.mxu0 %v6167_v48 }
  0x3e   : > { %2666 = vst [vmem:[#allocation5 + $0xc7] sm:$0x1] %v7005_v6 }
  0x3f   : > { %2669 = vst [vmem:[#allocation5 + $0x28] sm:$0x1] %v7005_v6  ;;  %1263 = vmatpush.msrb.mxu0 %v6166_v56 }
  0x40   : > { %2670 = vst [vmem:[#allocation5 + $0x40] sm:$0x1] %v7005_v6 }
  0x41   : > { %2671 = vst [vmem:[#allocation5 + $0x58] sm:$0x1] %v7005_v6  ;;  %1264 = vmatpush.msrb.mxu0 %v6165_v2 }
  0x42   : > { %2672 = vst [vmem:[#allocation5 + $0x70] sm:$0x1] %v7005_v6 }
  0x43   : > { %2673 = vst [vmem:[#allocation5 + $0x88] sm:$0x1] %v7005_v6 }
  0x44   : > { %2674 = vst [vmem:[#allocation5 + $0xa0] sm:$0x1] %v7005_v6  ;;  %617 = vmatmul.f32.gmra.mxu0 %v431_v9 }
  0x45   : > { %2675 = vst [vmem:[#allocation5 + $0xb8] sm:$0x1] %v7005_v6 }
  0x46   : > { %2676 = vst [vmem:[#allocation5 + $0xd0] sm:$0x1] %v7005_v6 }
  0x47   : > { %2678 = vst [vmem:[#allocation6 + $0x7] sm:$0xff] %v7005_v6 }
  0x48   : > { %2679 = vst [vmem:[#allocation6 + $0xf] sm:$0x3] %v7005_v6 }
  0x49   : > { %2681 = vst [vmem:[#allocation6 + $0xdf] sm:$0xff] %v7005_v6 }
  0x4a   : > { %2682 = vst [vmem:[#allocation6 + $0xe7] sm:$0x3] %v7005_v6 }
  0x4b   : > { %2684 = vst [vmem:[#allocation6 + $0x1f] sm:$0x1] %v7005_v6 }
  0x4c   : > { %2685 = vst [vmem:[#allocation6 + $0x37] sm:$0x1] %v7005_v6  ;;  %620 = vmatmul.f32.gmra.mxu0 %v432_v11 }
  0x4d   : > { %2686 = vst [vmem:[#allocation6 + $0x4f] sm:$0x1] %v7005_v6 }
  0x4e   : > { %2687 = vst [vmem:[#allocation6 + $0x67] sm:$0x1] %v7005_v6 }
  0x4f   : > { %2688 = vst [vmem:[#allocation6 + $0x7f] sm:$0x1] %v7005_v6 }
  0x50   : > { %2689 = vst [vmem:[#allocation6 + $0x97] sm:$0x1] %v7005_v6 }
  0x51   : > { %2690 = vst [vmem:[#allocation6 + $0xaf] sm:$0x1] %v7005_v6 }
  0x52   : > { %2691 = vst [vmem:[#allocation6 + $0xc7] sm:$0x1] %v7005_v6 }
  0x53   : > { %2694 = vst [vmem:[#allocation6 + $0x28] sm:$0x1] %v7005_v6 }
  0x54   : > { %2695 = vst [vmem:[#allocation6 + $0x40] sm:$0x1] %v7005_v6  ;;  %623 = vmatmul.f32.gmra.mxu0 %v433_v12 }
  0x55   : > { %2696 = vst [vmem:[#allocation6 + $0x58] sm:$0x1] %v7005_v6 }
  0x56   : > { %2697 = vst [vmem:[#allocation6 + $0x70] sm:$0x1] %v7005_v6 }
  0x57   : > { %2698 = vst [vmem:[#allocation6 + $0x88] sm:$0x1] %v7005_v6 }
  0x58   : > { %2699 = vst [vmem:[#allocation6 + $0xa0] sm:$0x1] %v7005_v6 }
  0x59   : > { %2700 = vst [vmem:[#allocation6 + $0xb8] sm:$0x1] %v7005_v6 }
  0x5a   : > { %2701 = vst [vmem:[#allocation6 + $0xd0] sm:$0x1] %v7005_v6 }
  0x5b   : > { %411 = vst [vmem:[#allocation2 + $0x227] sm:$0x1] %v7005_v6 }
  0x5c   : > { %412 = vst [vmem:[#allocation2 + $0x18] sm:$0x1] %v7005_v6  ;;  %626 = vmatmul.f32.gmra.mxu0 %v434_v14 }
  0x5d   : > { %429 = vst [vmem:[#allocation2 + $0x238] sm:$0x1] %v7005_v6 }
  0x5e   : > { %2658 = vst [vmem:[#allocation5 + $0x7] sm:$0x1] %v7005_v6 }
  0x5f   : > { %2667 = vst [vmem:[#allocation5 + $0xdf] sm:$0x1] %v7005_v6 }
  0x60   : > { %2668 = vst [vmem:[#allocation5 + $0x10] sm:$0x1] %v7005_v6 }
  0x61   : > { %2677 = vst [vmem:[#allocation5 + $0xe8] sm:$0x1] %v7005_v6 }
  0x62   : > { %2683 = vst [vmem:[#allocation6 + $0x7] sm:$0x1] %v7005_v6 }
  0x63   : > { %2692 = vst [vmem:[#allocation6 + $0xdf] sm:$0x1] %v7005_v6  ;;  %v819_v10 = vld [vmem:[#allocation2 + $0x11] sm:$0xff] }
  0x64   : > { %2693 = vst [vmem:[#allocation6 + $0x10] sm:$0x1] %v7005_v6  ;;  %886 = vmatmul.f32.gmra.mxu2 %v819_v10  ;;  %629 = vmatmul.f32.gmra.mxu0 %v435_v16 }
  0x65   : > { %2702 = vst [vmem:[#allocation6 + $0xe8] sm:$0x1] %v7005_v6 }
  0x66   : > { %463 = vst [vmem:[#allocation2 + $0x28] sm:$0xff] %v430_v7  ;;  %v449_v7 = vld [vmem:[%s7353_s14 + $0x98] sm:$0xff] }
  0x67   : > { %464 = vst [vmem:[#allocation2 + $0x30] sm:$0xff] %v431_v9 }
  0x68   : > { %465 = vst [vmem:[#allocation2 + $0x48] sm:$0xff] %v432_v11 }
  0x69   : > { %466 = vst [vmem:[#allocation2 + $0x50] sm:$0xff] %v433_v12  ;;  %v450_v12 = vld [vmem:[%s7353_s14 + $0xa0] sm:$0xff] }
  0x6a   : > { %467 = vst [vmem:[#allocation2 + $0x68] sm:$0xff] %v434_v14 }
  0x6b   : > { %468 = vst [vmem:[#allocation2 + $0x70] sm:$0xff] %v435_v16 }
  0x6c   : > { %469 = vst [vmem:[#allocation2 + $0x88] sm:$0xff] %v436_v19  ;;  %632 = vmatmul.f32.gmra.mxu0 %v436_v19 }
  0x6d   : > { %v1012_v15 = vld [vmem:[#allocation2 + $0x27] sm:$0xff]  ;;  %470 = vst [vmem:[#allocation2 + $0x90] sm:$0xff] %v437_v23 }
  0x6e   : > { %1077 = vmatmul.f32.vlgmr.msra.gmra.mxu3 %v1012_v15  ;;  %727 = vmatmul.f32.gmra.mxu1 %v1012_v15  ;;  %v820_v6 = vld [vmem:[#allocation2 + $0x29] sm:$0xff]  ;;  %v821_v18 = vld [vmem:[#allocation2 + $0x31] sm:$0xff]  ;;  %471 = vst [vmem:[#allocation2 + $0xa8] sm:$0xff] %v438_v26 }
  0x6f   : > { %889 = vmatmul.f32.gmra.mxu2 %v820_v6  ;;  %v1013_v17 = vld [vmem:[#allocation2 + $0x2f] sm:$0xff]  ;;  %v1014_v21 = vld [vmem:[#allocation2 + $0x47] sm:$0xff]  ;;  %472 = vst [vmem:[#allocation2 + $0xb0] sm:$0xff] %v439_v30 }
  0x70   : > { %v822_v22 = vld [vmem:[#allocation2 + $0x49] sm:$0xff]  ;;  %v823_v25 = vld [vmem:[#allocation2 + $0x51] sm:$0xff]  ;;  %473 = vst [vmem:[#allocation2 + $0xc8] sm:$0xff] %v440_v33 }
  0x71   : > { %v1015_v24 = vld [vmem:[#allocation2 + $0x4f] sm:$0xff]  ;;  %v1016_v28 = vld [vmem:[#allocation2 + $0x67] sm:$0xff]  ;;  %474 = vst [vmem:[#allocation2 + $0xd0] sm:$0xff] %v441_v37 }
  0x72   : > { %v824_v29 = vld [vmem:[#allocation2 + $0x69] sm:$0xff]  ;;  %v825_v32 = vld [vmem:[#allocation2 + $0x71] sm:$0xff]  ;;  %475 = vst [vmem:[#allocation2 + $0xe8] sm:$0xff] %v442_v40 }
  0x73   : > { %v1017_v31 = vld [vmem:[#allocation2 + $0x6f] sm:$0xff]  ;;  %v1018_v35 = vld [vmem:[#allocation2 + $0x87] sm:$0xff]  ;;  %476 = vst [vmem:[#allocation2 + $0xf0] sm:$0xff] %v443_v44 }
  0x74   : > { %635 = vmatmul.f32.gmra.mxu0 %v437_v23  ;;  %v826_v36 = vld [vmem:[#allocation2 + $0x89] sm:$0xff]  ;;  %v827_v39 = vld [vmem:[#allocation2 + $0x91] sm:$0xff]  ;;  %477 = vst [vmem:[#allocation2 + $0x108] sm:$0xff] %v444_v47 }
  0x75   : > { %v1019_v38 = vld [vmem:[#allocation2 + $0x8f] sm:$0xff]  ;;  %v1020_v42 = vld [vmem:[#allocation2 + $0xa7] sm:$0xff]  ;;  %478 = vst [vmem:[#allocation2 + $0x110] sm:$0xff] %v445_v51 }
  0x76   : > { %1080 = vmatmul.f32.gmra.mxu3 %v1013_v17  ;;  %730 = vmatmul.f32.gmra.mxu1 %v1013_v17  ;;  %v828_v43 = vld [vmem:[#allocation2 + $0xa9] sm:$0xff]  ;;  %v829_v46 = vld [vmem:[#allocation2 + $0xb1] sm:$0xff]  ;;  %479 = vst [vmem:[#allocation2 + $0x128] sm:$0xff] %v446_v54 }
  0x77   : > { %892 = vmatmul.f32.gmra.mxu2 %v821_v18  ;;  %v1021_v45 = vld [vmem:[#allocation2 + $0xaf] sm:$0xff]  ;;  %v1022_v49 = vld [vmem:[#allocation2 + $0xc7] sm:$0xff]  ;;  %480 = vst [vmem:[#allocation2 + $0x130] sm:$0xff] %v447_v59 }
  0x78   : > { %v830_v50 = vld [vmem:[#allocation2 + $0xc9] sm:$0xff]  ;;  %v831_v53 = vld [vmem:[#allocation2 + $0xd1] sm:$0xff]  ;;  %481 = vst [vmem:[#allocation2 + $0x148] sm:$0xff] %v448_v63 }
  0x79   : > { %v1023_v52 = vld [vmem:[#allocation2 + $0xcf] sm:$0xff]  ;;  %v1024_v57 = vld [vmem:[#allocation2 + $0xe7] sm:$0xff]  ;;  %482 = vst [vmem:[#allocation2 + $0x150] sm:$0xff] %v449_v7 }
  0x7a   : > { %v832_v58 = vld [vmem:[#allocation2 + $0xe9] sm:$0xff]  ;;  %v833_v62 = vld [vmem:[#allocation2 + $0xf1] sm:$0xff]  ;;  %483 = vst [vmem:[#allocation2 + $0x168] sm:$0xff] %v450_v12 }
  0x7b   : > { %v1025_v61 = vld [vmem:[#allocation2 + $0xef] sm:$0xff]  ;;  %v1026_v3 = vld [vmem:[#allocation2 + $0x107] sm:$0xff] }
  0x7c   : > { %638 = vmatmul.f32.gmra.mxu0 %v438_v26  ;;  %v834_v4 = vld [vmem:[#allocation2 + $0x109] sm:$0xff]  ;;  %v835_v11 = vld [vmem:[#allocation2 + $0x111] sm:$0xff] }
  0x7d   : > { %v1027_v10 = vld [vmem:[#allocation2 + $0x10f] sm:$0xff]  ;;  %v1028_v17 = vld [vmem:[#allocation2 + $0x127] sm:$0xff] }
  0x7e   : > { %1083 = vmatmul.f32.gmra.mxu3 %v1014_v21  ;;  %733 = vmatmul.f32.gmra.mxu1 %v1014_v21  ;;  %v6164_v6 = vld [vmem:[%s11256_s1 + $0x228] sm:$0xff] }
  0x7f   : > { %895 = vmatmul.f32.gmra.mxu2 %v822_v22  ;;  %1265 = vmatpush.msrb.mxu0 %v6164_v6  ;;  %v836_v20 = vld [vmem:[#allocation2 + $0x129] sm:$0xff] }
  0x80   : > { %v451_v21 = vld [vmem:[%s7353_s14 + $0xa8] sm:$0xff]  ;;  %v6161_v6 = vld [vmem:[%s11256_s1 + $0x210] sm:$0xff] }
  0x81   : > { %484 = vst [vmem:[#allocation2 + $0x170] sm:$0xff] %v451_v21 }
  0x84   : > { %641 = vmatmul.f32.gmra.mxu0 %v439_v30 }
  0x86   : > { %1086 = vmatmul.f32.gmra.mxu3 %v1015_v24  ;;  %736 = vmatmul.f32.gmra.mxu1 %v1015_v24 }
  0x87   : > { %898 = vmatmul.f32.gmra.mxu2 %v823_v25 }
  0x8c   : > { %644 = vmatmul.f32.gmra.mxu0 %v440_v33 }
  0x8e   : > { %1089 = vmatmul.f32.gmra.mxu3 %v1016_v28  ;;  %739 = vmatmul.f32.gmra.mxu1 %v1016_v28  ;;  %v1029_v28 = vld [vmem:[#allocation2 + $0x12f] sm:$0xff] }
  0x8f   : > { %901 = vmatmul.f32.gmra.mxu2 %v824_v29 }
  0x94   : > { %647 = vmatmul.f32.gmra.mxu0 %v441_v37 }
  0x96   : > { %1092 = vmatmul.f32.gmra.mxu3 %v1017_v31  ;;  %742 = vmatmul.f32.gmra.mxu1 %v1017_v31  ;;  %v837_v31 = vld [vmem:[#allocation2 + $0x131] sm:$0xff] }
  0x97   : > { %904 = vmatmul.f32.gmra.mxu2 %v825_v32  ;;  %v452_v32 = vld [vmem:[%s7353_s14 + $0xb0] sm:$0xff] }
  0x98   : > { %485 = vst [vmem:[#allocation2 + $0x188] sm:$0xff] %v452_v32 }
  0x9c   : > { %650 = vmatmul.f32.gmra.mxu0 %v442_v40 }
  0x9e   : > { %1095 = vmatmul.f32.gmra.mxu3 %v1018_v35  ;;  %745 = vmatmul.f32.gmra.mxu1 %v1018_v35 }
  0x9f   : > { %907 = vmatmul.f32.gmra.mxu2 %v826_v36 }
  0xa4   : > { %653 = vmatmul.f32.gmra.mxu0 %v443_v44 }
  0xa6   : > { %1098 = vmatmul.f32.gmra.mxu3 %v1019_v38  ;;  %748 = vmatmul.f32.gmra.mxu1 %v1019_v38  ;;  %v6163_v38 = vld [vmem:[%s11256_s1 + $0x220] sm:$0xff] }
  0xa7   : > { %910 = vmatmul.f32.gmra.mxu2 %v827_v39  ;;  %v1030_v39 = vld [vmem:[#allocation2 + $0x147] sm:$0xff]  ;;  %1266 = vmatpush.msrb.mxu0 %v6163_v38 }
  0xa9   : > { %v609_v55 = vpop.f32.mrf.mxu0 }
  0xaa   : > { %v722_v1 = vpop.f32.mrf.mxu1 }
  0xab   : > { %v723_v19 = vadd.f32 %v722_v1, %v609_v55 }
  0xac   : > { %656 = vmatmul.f32.gmra.mxu0 %v444_v47 }
  0xae   : > { %1101 = vmatmul.f32.gmra.mxu3 %v1020_v42  ;;  %751 = vmatmul.f32.gmra.mxu1 %v1020_v42  ;;  %v838_v42 = vld [vmem:[#allocation2 + $0x149] sm:$0xff] }
  0xaf   : > { %913 = vmatmul.f32.gmra.mxu2 %v828_v43  ;;  %v453_v43 = vld [vmem:[%s7353_s14 + $0xb8] sm:$0xff] }
  0xb0   : > { %v884_v5 = vpop.f32.mrf.mxu2  ;;  %486 = vst [vmem:[#allocation2 + $0x190] sm:$0xff] %v453_v43 }
  0xb1   : > { %v612_v60 = vpop.f32.mrf.mxu0  ;;  %v980_v22 = vadd.f32 %v884_v5, %v723_v19 }
  0xb2   : > { %v725_v9 = vpop.f32.mrf.mxu1 }
  0xb3   : > { %v726_v13 = vadd.f32 %v725_v9, %v612_v60  ;;  %v1032_v60 = vld [vmem:[#allocation2 + $0x167] sm:$0xff] }
  0xb4   : > { %659 = vmatmul.f32.gmra.mxu0 %v445_v51 }
  0xb6   : > { %1104 = vmatmul.f32.gmra.mxu3 %v1021_v45  ;;  %754 = vmatmul.f32.gmra.mxu1 %v1021_v45 }
  0xb7   : > { %916 = vmatmul.f32.gmra.mxu2 %v829_v46 }
  0xb9   : > { %v615_v0 = vpop.f32.mrf.mxu0 }
  0xbc   : > { %662 = vmatmul.f32.gmra.mxu0 %v446_v54 }
  0xbe   : > { %1107 = vmatmul.f32.gmra.mxu3 %v1022_v49  ;;  %757 = vmatmul.f32.gmra.mxu1 %v1022_v49  ;;  %v1031_v49 = vld [vmem:[#allocation2 + $0x14f] sm:$0xff] }
  0xbf   : > { %919 = vmatmul.f32.gmra.mxu2 %v830_v50 }
  0xc1   : > { %v618_v8 = vpop.f32.mrf.mxu0 }
  0xc4   : > { %665 = vmatmul.f32.gmra.mxu0 %v447_v59  ;;  %v6162_v59 = vld [vmem:[%s11256_s1 + $0x218] sm:$0xff] }
  0xc5   : > { %1267 = vmatpush.msrb.mxu0 %v6162_v59  ;;  %v6188_v59 = vld [vmem:[%s11256_s1 + $0x2e8] sm:$0xff] }
  0xc6   : > { %1110 = vmatmul.f32.gmra.mxu3 %v1023_v52  ;;  %760 = vmatmul.f32.gmra.mxu1 %v1023_v52  ;;  %v839_v52 = vld [vmem:[#allocation2 + $0x151] sm:$0xff] }
  0xc7   : > { %922 = vmatmul.f32.gmra.mxu2 %v831_v53  ;;  %v454_v53 = vld [vmem:[%s7353_s14 + $0xc0] sm:$0xff]  ;;  %1268 = vmatpush.msrb.mxu0 %v6161_v6  ;;  %v6200_v6 = vld [vmem:[%s11256_s1 + $0x348] sm:$0xff] }
  0xc8   : > { %487 = vst [vmem:[#allocation2 + $0x1a8] sm:$0xff] %v454_v53 }
  0xc9   : > { %v621_v14 = vpop.f32.mrf.mxu0 }
  0xcc   : > { %668 = vmatmul.f32.gmra.mxu0 %v448_v63  ;;  %v840_v63 = vld [vmem:[#allocation2 + $0x169] sm:$0xff] }
  0xce   : > { %1113 = vmatmul.f32.gmra.mxu3 %v1024_v57  ;;  %763 = vmatmul.f32.gmra.mxu1 %v1024_v57 }
  0xcf   : > { %925 = vmatmul.f32.gmra.mxu2 %v832_v58 }
  0xd1   : > { %v624_v23 = vpop.f32.mrf.mxu0 }
  0xd4   : > { %671 = vmatmul.f32.gmra.mxu0 %v449_v7  ;;  %v1033_v7 = vld [vmem:[#allocation2 + $0x16f] sm:$0xff] }
  0xd6   : > { %1116 = vmatmul.f32.gmra.mxu3 %v1025_v61  ;;  %766 = vmatmul.f32.gmra.mxu1 %v1025_v61 }
  0xd7   : > { %928 = vmatmul.f32.gmra.mxu2 %v833_v62 }
  0xd9   : > { %v627_v33 = vpop.f32.mrf.mxu0 }
  0xdc   : > { %674 = vmatmul.f32.gmra.mxu0 %v450_v12 }
  0xde   : > { %1119 = vmatmul.f32.gmra.mxu3 %v1026_v3  ;;  %769 = vmatmul.f32.gmra.mxu1 %v1026_v3 }
  0xdf   : > { %931 = vmatmul.f32.gmra.mxu2 %v834_v4 }
  0xe1   : > { %v630_v44 = vpop.f32.mrf.mxu0 }
  0xe4   : > { %677 = vmatmul.f32.gmra.mxu0 %v451_v21  ;;  %v457_v21 = vld [vmem:[%s7353_s14 + $0xd8] sm:$0xff] }
  0xe5   : > { %490 = vst [vmem:[#allocation2 + $0x1d0] sm:$0xff] %v457_v21 }
  0xe6   : > { %1122 = vmatmul.f32.gmra.mxu3 %v1027_v10  ;;  %772 = vmatmul.f32.gmra.mxu1 %v1027_v10  ;;  %v841_v10 = vld [vmem:[#allocation2 + $0x171] sm:$0xff] }
  0xe7   : > { %934 = vmatmul.f32.gmra.mxu2 %v835_v11  ;;  %v887_v15 = vpop.f32.mrf.mxu2  ;;  %v456_v11 = vld [vmem:[%s7353_s14 + $0xd0] sm:$0xff] }
  0xe8   : > { %v981_v16 = vadd.f32 %v887_v15, %v726_v13  ;;  %489 = vst [vmem:[#allocation2 + $0x1c8] sm:$0xff] %v456_v11 }
  0xe9   : > { %v633_v54 = vpop.f32.mrf.mxu0 }
  0xeb   : > { %v728_v18 = vpop.f32.mrf.mxu1 }
  0xec   : > { %v729_v25 = vadd.f32 %v728_v18, %v615_v0  ;;  %680 = vmatmul.f32.gmra.mxu0 %v452_v32  ;;  %v455_v0 = vld [vmem:[%s7353_s14 + $0xc8] sm:$0xff]  ;;  %v7459_v32 = vld [vmem:[%s7353_s14 + $0xe0] sm:$0xff] }
  0xed   : > { %488 = vst [vmem:[#allocation2 + $0x1b0] sm:$0xff] %v455_v0 }
  0xee   : > { %1125 = vmatmul.f32.gmra.mxu3 %v1028_v17  ;;  %775 = vmatmul.f32.gmra.mxu1 %v1028_v17  ;;  %v1034_v17 = vld [vmem:[#allocation2 + $0x187] sm:$0xff]  ;;  %491 = vst [vmem:[#allocation2 + $0x1e8] sm:$0xff] %v7459_v32 }
  0xef   : > { %937 = vmatmul.f32.gmra.mxu2 %v836_v20  ;;  %v842_v20 = vld [vmem:[#allocation2 + $0x189] sm:$0xff] }
  0xf1   : > { %v1078_v24 = vpop.f32.mrf.mxu3  ;;  %v636_v1 = vpop.f32.mrf.mxu0 }
  0xf2   : > { %v7425_v26 = vadd.f32 %v1078_v24, %v980_v22  ;;  %v890_v27 = vpop.f32.mrf.mxu2 }
  0xf3   : > { %v982_v29 = vadd.f32 %v890_v27, %v729_v25  ;;  %v731_v30 = vpop.f32.mrf.mxu1 }
  0xf4   : > { %v732_v35 = vadd.f32 %v731_v30, %v618_v8  ;;  %683 = vmatmul.f32.gmra.mxu0 %v453_v43 }
  0xf6   : > { %1128 = vmatmul.f32.gmra.mxu3 %v1029_v28  ;;  %778 = vmatmul.f32.gmra.mxu1 %v1029_v28  ;;  %v1035_v28 = vld [vmem:[#allocation2 + $0x18f] sm:$0xff] }
  0xf7   : > { %940 = vmatmul.f32.gmra.mxu2 %v837_v31  ;;  %v843_v31 = vld [vmem:[#allocation2 + $0x191] sm:$0xff] }
  0xf9   : > { %v1081_v34 = vpop.f32.mrf.mxu3  ;;  %v7446_v12 = vpop.f32.mrf.mxu0 }
  0xfa   : > { %v7428_v36 = vadd.f32 %v1081_v34, %v981_v16  ;;  %v893_v37 = vpop.f32.mrf.mxu2 }
  0xfb   : > { %v983_v40 = vadd.f32 %v893_v37, %v732_v35  ;;  %v734_v41 = vpop.f32.mrf.mxu1 }
  0xfc   : > { %v735_v46 = vadd.f32 %v734_v41, %v621_v14  ;;  %686 = vmatmul.f32.gmra.mxu0 %v454_v53  ;;  %v1036_v41 = vld [vmem:[#allocation2 + $0x1a7] sm:$0xff]  ;;  %v6221_v53 = vld [vmem:[%s11256_s1 + $0x3f0] sm:$0xff] }
  0xfe   : > { %1131 = vmatmul.f32.gmra.mxu3 %v1030_v39  ;;  %781 = vmatmul.f32.gmra.mxu1 %v1030_v39  ;;  %v6160_v39 = vld [vmem:[%s11256_s1 + $0x208] sm:$0xff] }
  0xff   : > { %943 = vmatmul.f32.gmra.mxu2 %v838_v42  ;;  %1269 = vmatpush.msrb.mxu0 %v6160_v39  ;;  %v6181_v39 = vld [vmem:[%s11256_s1 + $0x2b0] sm:$0xff] }
 0x101   : > { %v1084_v45 = vpop.f32.mrf.mxu3  ;;  %v7454_v22 = vpop.f32.mrf.mxu0 }
 0x102   : > { %v7434_v47 = vadd.f32 %v1084_v45, %v982_v29  ;;  %v896_v48 = vpop.f32.mrf.mxu2  ;;  %v7473_v45 = vld [vmem:[%s7353_s14 + $0xe8] sm:$0xff] }
 0x103   : > { %v984_v50 = vadd.f32 %v896_v48, %v735_v46  ;;  %v737_v51 = vpop.f32.mrf.mxu1  ;;  %v6190_v46 = vld [vmem:[%s11256_s1 + $0x2f8] sm:$0xff]  ;;  %v6205_v48 = vld [vmem:[%s11256_s1 + $0x370] sm:$0xff]  ;;  %492 = vst [vmem:[#allocation2 + $0x1f0] sm:$0xff] %v7473_v45 }
 0x104   : > { %v738_v56 = vadd.f32 %v737_v51, %v624_v23  ;;  %689 = vmatmul.f32.gmra.mxu0 %v455_v0  ;;  %1449 = vmatpush.msrb.mxu1 %v6190_v46  ;;  %v6189_v51 = vld [vmem:[%s11256_s1 + $0x2f0] sm:$0xff] }
 0x106   : > { %1134 = vmatmul.f32.gmra.mxu3 %v1031_v49  ;;  %784 = vmatmul.f32.gmra.mxu1 %v1031_v49  ;;  %v6222_v49 = vld [vmem:[%s11256_s1 + $0x3f8] sm:$0xff] }
 0x107   : > { %946 = vmatmul.f32.gmra.mxu2 %v839_v52  ;;  %1838 = vmatpush.msrb.mxu3 %v6222_v49  ;;  %v6204_v52 = vld [vmem:[%s11256_s1 + $0x368] sm:$0xff] }
 0x108   : > { %1450 = vmatpush.msrb.mxu1 %v6189_v51 }
 0x109   : > { %v1087_v55 = vpop.f32.mrf.mxu3  ;;  %1839 = vmatpush.msrb.mxu3 %v6221_v53  ;;  %v6196_v53 = vld [vmem:[%s11256_s1 + $0x328] sm:$0xff] }
 0x10a   : > { %v7437_v57 = vadd.f32 %v1087_v55, %v983_v40  ;;  %v899_v58 = vpop.f32.mrf.mxu2  ;;  %v6206_v40 = vld [vmem:[%s11256_s1 + $0x378] sm:$0xff]  ;;  %1451 = vmatpush.msrb.mxu1 %v6188_v59  ;;  %v6195_v59 = vld [vmem:[%s11256_s1 + $0x320] sm:$0xff] }
 0x10b   : > { %v985_v61 = vadd.f32 %v899_v58, %v738_v56  ;;  %v740_v62 = vpop.f32.mrf.mxu1  ;;  %1644 = vmatpush.msrb.mxu2 %v6206_v40 }
 0x10c   : > { %v741_v3 = vadd.f32 %v740_v62, %v627_v33  ;;  %v7461_v33 = vpop.f32.mrf.mxu0  ;;  %692 = vmatmul.f32.gmra.mxu0 %v456_v11  ;;  %v1037_v62 = vld [vmem:[#allocation2 + $0x1af] sm:$0xff] }
 0x10d   : > { %1645 = vmatpush.msrb.mxu2 %v6205_v48  ;;  %v6201_v11 = vld [vmem:[%s11256_s1 + $0x350] sm:$0xff] }
 0x10e   : > { %1137 = vmatmul.f32.gmra.mxu3 %v1032_v60  ;;  %787 = vmatmul.f32.gmra.mxu1 %v1032_v60  ;;  %v6203_v60 = vld [vmem:[%s11256_s1 + $0x360] sm:$0xff]  ;;  %v1039_v48 = vld [vmem:[#allocation2 + $0x1cf] sm:$0xff] }
 0x10f   : > { %949 = vmatmul.f32.gmra.mxu2 %v840_v63 }
 0x110   : > { %1646 = vmatpush.msrb.mxu2 %v6204_v52  ;;  %v847_v52 = vld [vmem:[#allocation2 + $0x1d1] sm:$0xff] }
 0x111   : > { %v1090_v2 = vpop.f32.mrf.mxu3 }
 0x112   : > { %v7443_v4 = vadd.f32 %v1090_v2, %v984_v50  ;;  %v902_v5 = vpop.f32.mrf.mxu2  ;;  %v845_v2 = vld [vmem:[#allocation2 + $0x1b1] sm:$0xff]  ;;  %1647 = vmatpush.msrb.mxu2 %v6203_v60 }
 0x113   : > { %v986_v8 = vadd.f32 %v902_v5, %v741_v3  ;;  %v743_v9 = vpop.f32.mrf.mxu1  ;;  %v6219_v3 = vld [vmem:[%s11256_s1 + $0x3e0] sm:$0xff]  ;;  %v6202_v5 = vld [vmem:[%s11256_s1 + $0x358] sm:$0xff] }
 0x114   : > { %v744_v14 = vadd.f32 %v743_v9, %v630_v44  ;;  %v844_v44 = vld [vmem:[#allocation2 + $0x1a9] sm:$0xff]  ;;  %v7484_v50 = vpop.f32.mrf.mxu0  ;;  %695 = vmatmul.f32.gmra.mxu0 %v457_v21  ;;  %v6218_v9 = vld [vmem:[%s11256_s1 + $0x3d8] sm:$0xff]  ;;  %1648 = vmatpush.msrb.mxu2 %v6202_v5 }
 0x115   : > { %v1038_v21 = vld [vmem:[#allocation2 + $0x1c7] sm:$0xff]  ;;  %v6178_v60 = vld [vmem:[%s11256_s1 + $0x298] sm:$0xff]  ;;  %v6209_v5 = vld [vmem:[%s11256_s1 + $0x390] sm:$0xff] }
 0x116   : > { %1140 = vmatmul.f32.gmra.mxu3 %v1033_v7  ;;  %790 = vmatmul.f32.gmra.mxu1 %v1033_v7  ;;  %v460_v7 = vld [vmem:[%s7353_s14 + $0xf0] sm:$0xff] }
 0x117   : > { %952 = vmatmul.f32.gmra.mxu2 %v841_v10  ;;  %493 = vst [vmem:[#allocation2 + $0x208] sm:$0xff] %v460_v7 }
 0x118   : > { %1649 = vmatpush.msrb.mxu2 %v6201_v11  ;;  %v848_v11 = vld [vmem:[#allocation2 + $0x1e9] sm:$0xff] }
 0x119   : > { %v1093_v13 = vpop.f32.mrf.mxu3 }
 0x11a   : > { %v7448_v15 = vadd.f32 %v1093_v13, %v985_v61  ;;  %v905_v16 = vpop.f32.mrf.mxu2  ;;  %v6220_v61 = vld [vmem:[%s11256_s1 + $0x3e8] sm:$0xff]  ;;  %v6217_v13 = vld [vmem:[%s11256_s1 + $0x3d0] sm:$0xff]  ;;  %1650 = vmatpush.msrb.mxu2 %v6200_v6  ;;  %v6175_v6 = vld [vmem:[%s11256_s1 + $0x280] sm:$0xff] }
 0x11b   : > { %v987_v18 = vadd.f32 %v905_v16, %v744_v14  ;;  %v746_v19 = vpop.f32.mrf.mxu1  ;;  %1840 = vmatpush.msrb.mxu3 %v6220_v61  ;;  %v6210_v61 = vld [vmem:[%s11256_s1 + $0x398] sm:$0xff] }
 0x11c   : > { %v747_v24 = vadd.f32 %v746_v19, %v633_v54  ;;  %v7526_v10 = vpop.f32.mrf.mxu0  ;;  %698 = vmatmul.f32.gmra.mxu0 %v7459_v32  ;;  %v6184_v19 = vld [vmem:[%s11256_s1 + $0x2c8] sm:$0xff]  ;;  %v6182_v32 = vld [vmem:[%s11256_s1 + $0x2b8] sm:$0xff] }
 0x11d   : > { %1841 = vmatpush.msrb.mxu3 %v6219_v3 }
 0x11e   : > { %1143 = vmatmul.f32.gmra.mxu3 %v1034_v17  ;;  %793 = vmatmul.f32.gmra.mxu1 %v1034_v17 }
 0x11f   : > { %955 = vmatmul.f32.gmra.mxu2 %v842_v20  ;;  %1842 = vmatpush.msrb.mxu3 %v6218_v9  ;;  %v6216_v20 = vld [vmem:[%s11256_s1 + $0x3c8] sm:$0xff] }
 0x120   : > { %v1206_v9 = vld [vmem:[#allocation2 + $0x28] sm:$0xff] }
 0x121   : > { %v1096_v23 = vpop.f32.mrf.mxu3  ;;  %1843 = vmatpush.msrb.mxu3 %v6217_v13  ;;  %v6193_v13 = vld [vmem:[%s11256_s1 + $0x310] sm:$0xff] }
 0x122   : > { %v7456_v25 = vadd.f32 %v1096_v23, %v986_v8  ;;  %v908_v27 = vpop.f32.mrf.mxu2  ;;  %v6186_v8 = vld [vmem:[%s11256_s1 + $0x2d8] sm:$0xff] }
 0x123   : > { %v988_v29 = vadd.f32 %v908_v27, %v747_v24  ;;  %v749_v30 = vpop.f32.mrf.mxu1  ;;  %v6159_v24 = vld [vmem:[%s11256_s1 + $0x200] sm:$0xff]  ;;  %v846_v27 = vld [vmem:[#allocation2 + $0x1c9] sm:$0xff]  ;;  %1844 = vmatpush.msrb.mxu3 %v6216_v20 }
 0x124   : > { %v750_v35 = vadd.f32 %v749_v30, %v636_v1  ;;  %v6187_v1 = vld [vmem:[%s11256_s1 + $0x2e0] sm:$0xff]  ;;  %1270 = vmatpush.msrb.mxu0 %v6159_v24 }
 0x125   : > { %1452 = vmatpush.msrb.mxu1 %v6187_v1  ;;  %v6215_v30 = vld [vmem:[%s11256_s1 + $0x3c0] sm:$0xff]  ;;  %701 = vmatmul.f32.gmra.mxu0 %v7473_v45  ;;  %v6212_v45 = vld [vmem:[%s11256_s1 + $0x3a8] sm:$0xff]  ;;  %v6177_v1 = vld [vmem:[%s11256_s1 + $0x290] sm:$0xff] }
 0x126   : > { %1146 = vmatmul.f32.gmra.mxu3 %v1035_v28  ;;  %796 = vmatmul.f32.gmra.mxu1 %v1035_v28  ;;  %v6183_v28 = vld [vmem:[%s11256_s1 + $0x2c0] sm:$0xff] }
 0x127   : > { %958 = vmatmul.f32.gmra.mxu2 %v843_v31  ;;  %1453 = vmatpush.msrb.mxu1 %v6186_v8  ;;  %v461_v31 = vld [vmem:[%s7353_s14 + $0xf8] sm:$0xff]  ;;  %v6207_v20 = vld [vmem:[%s11256_s1 + $0x380] sm:$0xff] }
 0x128   : > { %494 = vst [vmem:[#allocation2 + $0x210] sm:$0xff] %v461_v31  ;;  %1845 = vmatpush.msrb.mxu3 %v6215_v30 }
 0x129   : > { %v1099_v34 = vpop.f32.mrf.mxu3 }
 0x12a   : > { %v7464_v37 = vadd.f32 %v1099_v34, %v987_v18  ;;  %v911_v38 = vpop.f32.mrf.mxu2  ;;  %v7568_v34 = vpop.f32.mrf.mxu0 }
 0x12b   : > { %v989_v42 = vadd.f32 %v911_v38, %v750_v35  ;;  %v752_v43 = vpop.f32.mrf.mxu1  ;;  %v6198_v35 = vld [vmem:[%s11256_s1 + $0x338] sm:$0xff] }
 0x12c   : > { %v753_v55 = vadd.f32 %v752_v43, %v7446_v12  ;;  %v6185_v12 = vld [vmem:[%s11256_s1 + $0x2d0] sm:$0xff]  ;;  %v6214_v38 = vld [vmem:[%s11256_s1 + $0x3b8] sm:$0xff] }
 0x12d   : > { %1454 = vmatpush.msrb.mxu1 %v6185_v12  ;;  %v6213_v43 = vld [vmem:[%s11256_s1 + $0x3b0] sm:$0xff]  ;;  %1846 = vmatpush.msrb.mxu3 %v6214_v38  ;;  %v6176_v12 = vld [vmem:[%s11256_s1 + $0x288] sm:$0xff] }
 0x12e   : > { %1149 = vmatmul.f32.gmra.mxu3 %v1036_v41  ;;  %799 = vmatmul.f32.gmra.mxu1 %v1036_v41 }
 0x12f   : > { %961 = vmatmul.f32.gmra.mxu2 %v844_v44  ;;  %1455 = vmatpush.msrb.mxu1 %v6184_v19  ;;  %v6192_v19 = vld [vmem:[%s11256_s1 + $0x308] sm:$0xff] }
 0x130   : > { %1847 = vmatpush.msrb.mxu3 %v6213_v43  ;;  %1271 = vmatmul.f32.vlgmr.msrb.gmra.mxu0 %v1206_v9  ;;  %v1597_v9 = vld [vmem:[#allocation2 + $0x67] sm:$0xff] }
 0x131   : > { %v1102_v54 = vpop.f32.mrf.mxu3  ;;  %1456 = vmatpush.msrb.mxu1 %v6183_v28  ;;  %v1207_v28 = vld [vmem:[#allocation2 + $0x30] sm:$0xff] }
 0x132   : > { %v7497_v56 = vadd.f32 %v1102_v54, %v988_v29  ;;  %v914_v58 = vpop.f32.mrf.mxu2  ;;  %v6199_v29 = vld [vmem:[%s11256_s1 + $0x340] sm:$0xff]  ;;  %1848 = vmatpush.msrb.mxu3 %v6212_v45 }
 0x133   : > { %v7508_v63 = vadd.f32 %v914_v58, %v753_v55  ;;  %v755_v0 = vpop.f32.mrf.mxu1  ;;  %1651 = vmatpush.msrb.mxu2 %v6199_v29  ;;  %1457 = vmatpush.msrb.mxu1 %v6182_v32  ;;  %v6179_v54 = vld [vmem:[%s11256_s1 + $0x2a0] sm:$0xff]  ;;  %v7605_v58 = vpop.f32.mrf.mxu0  ;;  %v1041_v29 = vld [vmem:[#allocation2 + $0x1ef] sm:$0xff] }
 0x134   : > { %v756_v16 = vadd.f32 %v755_v0, %v7454_v22  ;;  %v6211_v55 = vld [vmem:[%s11256_s1 + $0x3a0] sm:$0xff]  ;;  %v6194_v0 = vld [vmem:[%s11256_s1 + $0x318] sm:$0xff] }
 0x135   : > { %1652 = vmatpush.msrb.mxu2 %v6198_v35  ;;  %1458 = vmatpush.msrb.mxu1 %v6181_v39  ;;  %v849_v32 = vld [vmem:[#allocation2 + $0x1f1] sm:$0xff] }
 0x136   : > { %1152 = vmatmul.f32.gmra.mxu3 %v1037_v62  ;;  %802 = vmatmul.f32.gmra.mxu1 %v1037_v62 }
 0x137   : > { %964 = vmatmul.f32.gmra.mxu2 %v845_v2  ;;  %1849 = vmatpush.msrb.mxu3 %v6211_v55 }
 0x138   : > { %1274 = vmatmul.f32.gmra.mxu0 %v1207_v28 }
 0x139   : > { %v1105_v14 = vpop.f32.mrf.mxu3  ;;  %1850 = vmatpush.msrb.mxu3 %v6210_v61  ;;  %v1596_v61 = vld [vmem:[#allocation2 + $0x4f] sm:$0xff] }
 0x13a   : > { %v7542_v17 = vadd.f32 %v1105_v14, %v989_v42  ;;  %v917_v18 = vpop.f32.mrf.mxu2  ;;  %v6197_v42 = vld [vmem:[%s11256_s1 + $0x330] sm:$0xff]  ;;  %v6208_v14 = vld [vmem:[%s11256_s1 + $0x388] sm:$0xff] }
 0x13b   : > { %v7550_v22 = vadd.f32 %v917_v18, %v756_v16  ;;  %v758_v23 = vpop.f32.mrf.mxu1  ;;  %1653 = vmatpush.msrb.mxu2 %v6197_v42  ;;  %1851 = vmatpush.msrb.mxu3 %v6209_v5  ;;  %v6238_v16 = vld [vmem:[%s11256_s1 + $0x478] sm:$0xff]  ;;  %v660_v18 = vpop.f32.mrf.mxu0  ;;  %v1042_v42 = vld [vmem:[#allocation2 + $0x207] sm:$0xff] }
 0x13c   : > { %v759_v41 = vadd.f32 %v758_v23, %v7461_v33  ;;  %v6180_v33 = vld [vmem:[%s11256_s1 + $0x2a8] sm:$0xff]  ;;  %v6191_v23 = vld [vmem:[%s11256_s1 + $0x300] sm:$0xff]  ;;  %2032 = vmatpush.msra.mxu0 %v6238_v16 }
 0x13d   : > { %1459 = vmatpush.msrb.mxu1 %v6180_v33  ;;  %1654 = vmatpush.msrb.mxu2 %v6196_v53  ;;  %v1400_v33 = vld [vmem:[#allocation2 + $0x29] sm:$0xff] }
 0x13e   : > { %1155 = vmatmul.f32.gmra.mxu3 %v1038_v21  ;;  %805 = vmatmul.f32.gmra.mxu1 %v1038_v21  ;;  %v6236_v5 = vld [vmem:[%s11256_s1 + $0x468] sm:$0xff] }
 0x13f   : > { %967 = vmatmul.f32.gmra.mxu2 %v846_v27  ;;  %1460 = vmatpush.msrb.mxu1 %v6179_v54  ;;  %v7665_v54 = vld [vmem:[#allocation2 + $0x20f] sm:$0xff] }
 0x140   : > { %1655 = vmatpush.msrb.mxu2 %v6195_v59  ;;  %1852 = vmatpush.msrb.mxu3 %v6208_v14 }
 0x141   : > { %v1108_v40 = vpop.f32.mrf.mxu3  ;;  %1461 = vmatpush.msrb.mxu1 %v6178_v60  ;;  %v1401_v60 = vld [vmem:[#allocation2 + $0x31] sm:$0xff] }
 0x142   : > { %v7588_v44 = vadd.f32 %v1108_v40, %v7508_v63  ;;  %v920_v46 = vpop.f32.mrf.mxu2  ;;  %1656 = vmatpush.msrb.mxu2 %v6194_v0  ;;  %1853 = vmatpush.msrb.mxu3 %v6207_v20  ;;  %v7678_v20 = vld [vmem:[#allocation2 + $0x51] sm:$0xff] }
 0x143   : > { %v992_v49 = vadd.f32 %v920_v46, %v759_v41  ;;  %v761_v51 = vpop.f32.mrf.mxu1  ;;  %1462 = vmatpush.msrb.mxu1 %v6177_v1  ;;  %v6237_v41 = vld [vmem:[%s11256_s1 + $0x470] sm:$0xff] }
 0x144   : > { %v762_v63 = vadd.f32 %v761_v51, %v7484_v50  ;;  %v1040_v50 = vld [vmem:[#allocation2 + $0x1e7] sm:$0xff]  ;;  %1657 = vmatpush.msrb.mxu2 %v6193_v13  ;;  %2033 = vmatpush.msra.mxu0 %v6237_v41 }
 0x145   : > { %1463 = vmatpush.msrb.mxu1 %v6176_v12 }
 0x146   : > { %1158 = vmatmul.f32.gmra.mxu3 %v1039_v48  ;;  %808 = vmatmul.f32.gmra.mxu1 %v1039_v48  ;;  %v1595_v48 = vld [vmem:[#allocation2 + $0x47] sm:$0xff] }
 0x147   : > { %970 = vmatmul.f32.gmra.mxu2 %v847_v52  ;;  %1464 = vmatpush.msrb.mxu1 %v6175_v6 }
 0x148   : > { %1658 = vmatpush.msrb.mxu2 %v6192_v19  ;;  %2034 = vmatpush.msra.mxu0 %v6236_v5  ;;  %v1795_v5 = vld [vmem:[#allocation2 + $0xa8] sm:$0xff] }
 0x149   : > { %v1111_v62 = vpop.f32.mrf.mxu3 }
 0x14a   : > { %v7624_v2 = vadd.f32 %v1111_v62, %v7550_v22  ;;  %v923_v3 = vpop.f32.mrf.mxu2  ;;  %1659 = vmatpush.msrb.mxu2 %v6191_v23  ;;  %v1790_v62 = vld [vmem:[#allocation2 + $0x50] sm:$0xff] }
 0x14b   : > { %v993_v7 = vadd.f32 %v923_v3, %v762_v63  ;;  %v764_v8 = vpop.f32.mrf.mxu1 }
 0x14c   : > { %v765_v22 = vadd.f32 %v764_v8, %v7526_v10  ;;  %v663_v10 = vpop.f32.mrf.mxu0  ;;  %v7673_v8 = vld [vmem:[#allocation2 + $0x49] sm:$0xff] }
 0x14e   : > { %1161 = vmatmul.f32.gmra.mxu3 %v1040_v50  ;;  %811 = vmatmul.f32.gmra.mxu1 %v1040_v50 }
 0x14f   : > { %973 = vmatmul.f32.gmra.mxu2 %v848_v11  ;;  %v1791_v11 = vld [vmem:[#allocation2 + $0x68] sm:$0xff] }
 0x151   : > { %v1114_v21 = vpop.f32.mrf.mxu3 }
 0x152   : > { %v7654_v24 = vadd.f32 %v1114_v21, %v992_v49  ;;  %v926_v27 = vpop.f32.mrf.mxu2  ;;  %v1789_v49 = vld [vmem:[#allocation2 + $0x48] sm:$0xff] }
 0x153   : > { %v994_v30 = vadd.f32 %v926_v27, %v765_v22  ;;  %v767_v31 = vpop.f32.mrf.mxu1  ;;  %1277 = vmatmul.f32.gmra.mxu0 %v1789_v49  ;;  %v1598_v21 = vld [vmem:[#allocation2 + $0x6f] sm:$0xff] }
 0x154   : > { %v768_v38 = vadd.f32 %v767_v31, %v7568_v34  ;;  %v666_v51 = vpop.f32.mrf.mxu0  ;;  %v1792_v22 = vld [vmem:[#allocation2 + $0x70] sm:$0xff]  ;;  %v6235_v31 = vld [vmem:[%s11256_s1 + $0x460] sm:$0xff] }
 0x155   : > { %2035 = vmatpush.msra.mxu0 %v6235_v31 }
 0x156   : > { %1164 = vmatmul.f32.gmra.mxu3 %v1041_v29  ;;  %814 = vmatmul.f32.gmra.mxu1 %v1041_v29 }
 0x157   : > { %976 = vmatmul.f32.gmra.mxu2 %v849_v32 }
 0x159   : > { %v1117_v35 = vpop.f32.mrf.mxu3 }
 0x15a   : > { %v7657_v39 = vadd.f32 %v1117_v35, %v993_v7  ;;  %v929_v40 = vpop.f32.mrf.mxu2  ;;  %v7686_v35 = vld [vmem:[#allocation2 + $0x69] sm:$0xff] }
 0x15b   : > { %v995_v43 = vadd.f32 %v929_v40, %v768_v38  ;;  %v770_v46 = vpop.f32.mrf.mxu1  ;;  %1280 = vmatmul.f32.gmra.mxu0 %v1790_v62  ;;  %v1599_v38 = vld [vmem:[#allocation2 + $0x87] sm:$0xff] }
 0x15c   : > { %v771_v52 = vadd.f32 %v770_v46, %v7605_v58  ;;  %v669_v63 = vpop.f32.mrf.mxu0  ;;  %v1793_v40 = vld [vmem:[#allocation2 + $0x88] sm:$0xff] }
 0x15e   : > { %1167 = vmatmul.f32.gmra.mxu3 %v1042_v42  ;;  %1465 = vmatmul.f32.vlgmr.msrb.gmra.mxu1 %v1400_v33 }
 0x15f   : > { %1660 = vmatmul.f32.vlgmr.msrb.gmra.mxu2 %v1595_v48 }
 0x161   : > { %v1120_v34 = vpop.f32.mrf.mxu3 }
 0x162   : > { %v7663_v45 = vadd.f32 %v1120_v34, %v994_v30  ;;  %v932_v53 = vpop.f32.mrf.mxu2  ;;  %v1600_v34 = vld [vmem:[#allocation2 + $0x8f] sm:$0xff] }
 0x163   : > { %v996_v55 = vadd.f32 %v932_v53, %v771_v52  ;;  %v773_v59 = vpop.f32.mrf.mxu1  ;;  %1283 = vmatmul.f32.gmra.mxu0 %v1791_v11  ;;  %v1794_v52 = vld [vmem:[#allocation2 + $0x90] sm:$0xff] }
 0x164   : > { %v774_v1 = vadd.f32 %v773_v59, %v660_v18  ;;  %v672_v12 = vpop.f32.mrf.mxu0 }
 0x166   : > { %1170 = vmatmul.f32.gmra.mxu3 %v7665_v54  ;;  %1468 = vmatmul.f32.gmra.mxu1 %v1401_v60 }
 0x167   : > { %1663 = vmatmul.f32.gmra.mxu2 %v1596_v61 }
 0x169   : > { %v1123_v0 = vpop.f32.mrf.mxu3 }
 0x16a   : > { %v7668_v3 = vadd.f32 %v1123_v0, %v995_v43  ;;  %v935_v58 = vpop.f32.mrf.mxu2 }
 0x16b   : > { %v997_v50 = vadd.f32 %v935_v58, %v774_v1  ;;  %v776_v7 = vpop.f32.mrf.mxu1  ;;  %1286 = vmatmul.f32.gmra.mxu0 %v1792_v22  ;;  %v7699_v1 = vld [vmem:[#allocation2 + $0x89] sm:$0xff] }
 0x16c   : > { %v777_v14 = vadd.f32 %v776_v7, %v663_v10  ;;  %v675_v23 = vpop.f32.mrf.mxu0  ;;  %v1601_v58 = vld [vmem:[#allocation2 + $0xa7] sm:$0xff] }
 0x16e   : > { %1854 = vmatmul.f32.vlgmr.msrb.gmra.mxu3 %v1789_v49  ;;  %1471 = vmatmul.f32.gmra.mxu1 %v7673_v8 }
 0x16f   : > { %1666 = vmatmul.f32.gmra.mxu2 %v1597_v9 }
 0x171   : > { %v1126_v13 = vpop.f32.mrf.mxu3 }
 0x172   : > { %v7676_v16 = vadd.f32 %v1126_v13, %v996_v55  ;;  %v938_v6 = vpop.f32.mrf.mxu2 }
 0x173   : > { %v998_v18 = vadd.f32 %v938_v6, %v777_v14  ;;  %v779_v19 = vpop.f32.mrf.mxu1  ;;  %1289 = vmatmul.f32.gmra.mxu0 %v1793_v40  ;;  %v7704_v6 = vld [vmem:[#allocation2 + $0x91] sm:$0xff] }
 0x174   : > { %v780_v28 = vadd.f32 %v779_v19, %v666_v51  ;;  %v678_v41 = vpop.f32.mrf.mxu0  ;;  %v7691_v51 = vld [vmem:[#allocation2 + $0x71] sm:$0xff] }
 0x175   : > { %v1796_v19 = vld [vmem:[#allocation2 + $0xb0] sm:$0xff] }
 0x176   : > { %1857 = vmatmul.f32.gmra.mxu3 %v1790_v62  ;;  %1474 = vmatmul.f32.gmra.mxu1 %v7678_v20  ;;  %v6234_v62 = vld [vmem:[%s11256_s1 + $0x458] sm:$0xff] }
 0x177   : > { %1669 = vmatmul.f32.gmra.mxu2 %v1598_v21  ;;  %2036 = vmatpush.msra.mxu0 %v6234_v62 }
 0x179   : > { %v1129_v27 = vpop.f32.mrf.mxu3 }
 0x17a   : > { %v7681_v29 = vadd.f32 %v1129_v27, %v997_v50  ;;  %v941_v30 = vpop.f32.mrf.mxu2 }
 0x17b   : > { %v999_v32 = vadd.f32 %v941_v30, %v780_v28  ;;  %v782_v10 = vpop.f32.mrf.mxu1  ;;  %1292 = vmatmul.f32.gmra.mxu0 %v1794_v52  ;;  %v6233_v30 = vld [vmem:[%s11256_s1 + $0x450] sm:$0xff] }
 0x17c   : > { %v783_v43 = vadd.f32 %v782_v10, %v669_v63  ;;  %v681_v53 = vpop.f32.mrf.mxu0  ;;  %v7712_v10 = vld [vmem:[#allocation2 + $0xa9] sm:$0xff]  ;;  %2037 = vmatpush.msra.mxu0 %v6233_v30  ;;  %v7730_v30 = vld [vmem:[#allocation2 + $0xd1] sm:$0xff] }
 0x17e   : > { %1860 = vmatmul.f32.gmra.mxu3 %v1791_v11  ;;  %1477 = vmatmul.f32.gmra.mxu1 %v7686_v35 }
 0x17f   : > { %1672 = vmatmul.f32.gmra.mxu2 %v1599_v38  ;;  %v1603_v38 = vld [vmem:[#allocation2 + $0xc7] sm:$0xff] }
 0x181   : > { %v1132_v42 = vpop.f32.mrf.mxu3 }
 0x182   : > { %v7689_v46 = vadd.f32 %v1132_v42, %v998_v18  ;;  %v944_v33 = vpop.f32.mrf.mxu2  ;;  %v1602_v18 = vld [vmem:[#allocation2 + $0xaf] sm:$0xff] }
 0x183   : > { %v1000_v48 = vadd.f32 %v944_v33, %v783_v43  ;;  %v785_v49 = vpop.f32.mrf.mxu1  ;;  %1295 = vmatmul.f32.gmra.mxu0 %v1795_v5 }
 0x184   : > { %11267 = vst [vmem:[#allocation7_spill] sm:$0xff] %v7689_v46  ;;  %v786_v59 = vadd.f32 %v785_v49, %v672_v12  ;;  %v684_v50 = vpop.f32.mrf.mxu0  ;;  %v1819_v46 = vld [vmem:[#allocation2 + $0x228] sm:$0xff] }
 0x186   : > { %1863 = vmatmul.f32.gmra.mxu3 %v1792_v22  ;;  %1480 = vmatmul.f32.gmra.mxu1 %v7691_v51 }
 0x187   : > { %1675 = vmatmul.f32.gmra.mxu2 %v1600_v34 }
 0x189   : > { %v1135_v55 = vpop.f32.mrf.mxu3 }
 0x18a   : > { %v7694_v60 = vadd.f32 %v1135_v55, %v999_v32  ;;  %v947_v61 = vpop.f32.mrf.mxu2  ;;  %v1604_v55 = vld [vmem:[#allocation2 + $0xcf] sm:$0xff] }
 0x18b   : > { %v1001_v63 = vadd.f32 %v947_v61, %v786_v59  ;;  %v788_v0 = vpop.f32.mrf.mxu1  ;;  %1298 = vmatmul.f32.gmra.mxu0 %v1796_v19  ;;  %v1798_v59 = vld [vmem:[#allocation2 + $0xd0] sm:$0xff] }
 0x18c   : > { %11268 = vst [vmem:[#allocation8_spill] sm:$0xff] %v7694_v60  ;;  %v789_v9 = vadd.f32 %v788_v0, %v675_v23  ;;  %v687_v21 = vpop.f32.mrf.mxu0  ;;  %v1625_v60 = vld [vmem:[#allocation2 + $0x227] sm:$0xff] }
 0x18e   : > { %1866 = vmatmul.f32.gmra.mxu3 %v1793_v40  ;;  %1483 = vmatmul.f32.gmra.mxu1 %v7699_v1  ;;  %v1797_v40 = vld [vmem:[#allocation2 + $0xc8] sm:$0xff] }
 0x18f   : > { %1678 = vmatmul.f32.gmra.mxu2 %v1601_v58  ;;  %v6232_v58 = vld [vmem:[%s11256_s1 + $0x448] sm:$0xff] }
 0x190   : > { %2038 = vmatpush.msra.mxu0 %v6232_v58 }
 0x191   : > { %v1138_v7 = vpop.f32.mrf.mxu3 }
 0x192   : > { %v7702_v11 = vadd.f32 %v1138_v7, %v1000_v48  ;;  %v950_v12 = vpop.f32.mrf.mxu2 }
 0x193   : > { %v1002_v13 = vadd.f32 %v950_v12, %v789_v9  ;;  %v791_v14 = vpop.f32.mrf.mxu1  ;;  %1301 = vmatmul.f32.gmra.mxu0 %v1797_v40  ;;  %v7725_v9 = vld [vmem:[#allocation2 + $0xc9] sm:$0xff] }
 0x194   : > { %11269 = vst [vmem:[#allocation9_spill] sm:$0xff] %v7702_v11  ;;  %v792_v27 = vadd.f32 %v791_v14, %v678_v41  ;;  %v690_v42 = vpop.f32.mrf.mxu0  ;;  %v1605_v12 = vld [vmem:[#allocation2 + $0xe7] sm:$0xff] }
 0x196   : > { %1869 = vmatmul.f32.gmra.mxu3 %v1794_v52  ;;  %1486 = vmatmul.f32.gmra.mxu1 %v7704_v6  ;;  %v7717_v52 = vld [vmem:[#allocation2 + $0xb1] sm:$0xff] }
 0x197   : > { %1681 = vmatmul.f32.gmra.mxu2 %v1602_v18 }
 0x199   : > { %v1141_v22 = vpop.f32.mrf.mxu3 }
 0x19a   : > { %v7707_v28 = vadd.f32 %v1141_v22, %v1001_v63  ;;  %v953_v23 = vpop.f32.mrf.mxu2 }
 0x19b   : > { %v1003_v31 = vadd.f32 %v953_v23, %v792_v27  ;;  %v794_v32 = vpop.f32.mrf.mxu1  ;;  %1304 = vmatmul.f32.gmra.mxu0 %v1798_v59 }
 0x19c   : > { %11270 = vst [vmem:[#allocation10_spill] sm:$0xff] %v7707_v28  ;;  %v795_v43 = vadd.f32 %v794_v32, %v681_v53  ;;  %v693_v61 = vpop.f32.mrf.mxu0  ;;  %v1800_v32 = vld [vmem:[#allocation2 + $0xf0] sm:$0xff] }
 0x19d   : > { %v7865_v28 = vld [vmem:[#allocation2 + $0x1f1] sm:$0xff] }
 0x19e   : > { %1872 = vmatmul.f32.gmra.mxu3 %v1795_v5  ;;  %1489 = vmatmul.f32.gmra.mxu1 %v7712_v10 }
 0x19f   : > { %1684 = vmatmul.f32.gmra.mxu2 %v1603_v38 }
 0x1a1   : > { %v1144_v41 = vpop.f32.mrf.mxu3 }
 0x1a2   : > { %v7715_v33 = vadd.f32 %v1144_v41, %v1002_v13  ;;  %v956_v48 = vpop.f32.mrf.mxu2  ;;  %v1799_v13 = vld [vmem:[#allocation2 + $0xe8] sm:$0xff] }
 0x1a3   : > { %v1004_v49 = vadd.f32 %v956_v48, %v795_v43  ;;  %v797_v34 = vpop.f32.mrf.mxu1  ;;  %1307 = vmatmul.f32.gmra.mxu0 %v1799_v13  ;;  %v6231_v48 = vld [vmem:[%s11256_s1 + $0x440] sm:$0xff] }
 0x1a4   : > { %11271 = vst [vmem:[#allocation11_spill] sm:$0xff] %v7715_v33  ;;  %v798_v63 = vadd.f32 %v797_v34, %v684_v50  ;;  %v696_v14 = vpop.f32.mrf.mxu0  ;;  %2039 = vmatpush.msra.mxu0 %v6231_v48  ;;  %v7751_v48 = vld [vmem:[#allocation2 + $0x109] sm:$0xff] }
 0x1a5   : > { %v1817_v33 = vld [vmem:[#allocation2 + $0x208] sm:$0xff] }
 0x1a6   : > { %1875 = vmatmul.f32.gmra.mxu3 %v1796_v19  ;;  %1492 = vmatmul.f32.gmra.mxu1 %v7717_v52 }
 0x1a7   : > { %1687 = vmatmul.f32.gmra.mxu2 %v1604_v55  ;;  %v7738_v55 = vld [vmem:[#allocation2 + $0xe9] sm:$0xff] }
 0x1a9   : > { %v1147_v62 = vpop.f32.mrf.mxu3 }
 0x1aa   : > { %v7720_v0 = vadd.f32 %v1147_v62, %v1003_v31  ;;  %v959_v53 = vpop.f32.mrf.mxu2  ;;  %v1606_v31 = vld [vmem:[#allocation2 + $0xef] sm:$0xff]  ;;  %v1607_v62 = vld [vmem:[#allocation2 + $0x107] sm:$0xff] }
 0x1ab   : > { %v1005_v5 = vadd.f32 %v959_v53, %v798_v63  ;;  %v800_v7 = vpop.f32.mrf.mxu1  ;;  %1310 = vmatmul.f32.gmra.mxu0 %v1800_v32 }
 0x1ac   : > { %11272 = vst [vmem:[#allocation12_spill] sm:$0xff] %v7720_v0  ;;  %v801_v18 = vadd.f32 %v800_v7, %v687_v21  ;;  %v699_v38 = vpop.f32.mrf.mxu0 }
 0x1ae   : > { %1878 = vmatmul.f32.gmra.mxu3 %v1797_v40  ;;  %1495 = vmatmul.f32.gmra.mxu1 %v7725_v9 }
 0x1af   : > { %1690 = vmatmul.f32.gmra.mxu2 %v1605_v12 }
 0x1b1   : > { %v1150_v50 = vpop.f32.mrf.mxu3 }
 0x1b2   : > { %v7728_v19 = vadd.f32 %v1150_v50, %v1004_v49  ;;  %v962_v22 = vpop.f32.mrf.mxu2  ;;  %v7743_v50 = vld [vmem:[#allocation2 + $0xf1] sm:$0xff] }
 0x1b3   : > { %v1006_v27 = vadd.f32 %v962_v22, %v801_v18  ;;  %v803_v23 = vpop.f32.mrf.mxu1  ;;  %v1608_v18 = vld [vmem:[#allocation2 + $0x10f] sm:$0xff] }
 0x1b4   : > { %11273 = vst [vmem:[#allocation13_spill] sm:$0xff] %v7728_v19  ;;  %v804_v41 = vadd.f32 %v803_v23, %v690_v42  ;;  %v702_v42 = vpop.f32.mrf.mxu0  ;;  %v1802_v22 = vld [vmem:[#allocation2 + $0x110] sm:$0xff] }
 0x1b6   : > { %1881 = vmatmul.f32.gmra.mxu3 %v1798_v59  ;;  %1498 = vmatmul.f32.gmra.mxu1 %v7730_v30  ;;  %v1801_v59 = vld [vmem:[#allocation2 + $0x108] sm:$0xff] }
 0x1b7   : > { %1693 = vmatmul.f32.gmra.mxu2 %v1606_v31  ;;  %1313 = vmatmul.f32.gmra.mxu0 %v1801_v59 }
 0x1b9   : > { %v1153_v40 = vpop.f32.mrf.mxu3 }
 0x1ba   : > { %v7733_v43 = vadd.f32 %v1153_v40, %v1005_v5  ;;  %v965_v21 = vpop.f32.mrf.mxu2 }
 0x1bb   : > { %v1007_v49 = vadd.f32 %v965_v21, %v804_v41  ;;  %v806_v34 = vpop.f32.mrf.mxu1 }
 0x1bc   : > { %11274 = vst [vmem:[#allocation14_spill] sm:$0xff] %v7733_v43  ;;  %v807_v53 = vadd.f32 %v806_v34, %v693_v61  ;;  %v1272_v61 = vpop.f32.mrf.mxu0  ;;  %v1609_v34 = vld [vmem:[#allocation2 + $0x127] sm:$0xff]  ;;  %v1810_v43 = vld [vmem:[#allocation2 + $0x190] sm:$0xff] }
 0x1be   : > { %1884 = vmatmul.f32.gmra.mxu3 %v1799_v13  ;;  %1501 = vmatmul.f32.gmra.mxu1 %v7738_v55 }
 0x1bf   : > { %1696 = vmatmul.f32.gmra.mxu2 %v1607_v62  ;;  %1316 = vmatmul.f32.gmra.mxu0 %v1802_v22 }
 0x1c1   : > { %v1156_v63 = vpop.f32.mrf.mxu3 }
 0x1c2   : > { %v7741_v58 = vadd.f32 %v1156_v63, %v1006_v27  ;;  %v968_v5 = vpop.f32.mrf.mxu2  ;;  %v6230_v27 = vld [vmem:[%s11256_s1 + $0x438] sm:$0xff] }
 0x1c3   : > { %v1008_v7 = vadd.f32 %v968_v5, %v807_v53  ;;  %v809_v12 = vpop.f32.mrf.mxu1  ;;  %2040 = vmatpush.msra.mxu0 %v6230_v27 }
 0x1c4   : > { %11275 = vst [vmem:[#allocation15_spill] sm:$0xff] %v7741_v58  ;;  %v810_v23 = vadd.f32 %v809_v12, %v696_v14  ;;  %v1275_v53 = vpop.f32.mrf.mxu0 }
 0x1c5   : > { %v1369_v58 = vadd.f32 %v1275_v53, %v7428_v36  ;;  %v1613_v36 = vld [vmem:[#allocation2 + $0x167] sm:$0xff] }
 0x1c6   : > { %1887 = vmatmul.f32.gmra.mxu3 %v1800_v32  ;;  %1504 = vmatmul.f32.gmra.mxu1 %v7743_v50  ;;  %v1803_v32 = vld [vmem:[#allocation2 + $0x128] sm:$0xff] }
 0x1c7   : > { %1699 = vmatmul.f32.gmra.mxu2 %v1608_v18  ;;  %1319 = vmatmul.f32.gmra.mxu0 %v1803_v32  ;;  %v7756_v18 = vld [vmem:[#allocation2 + $0x111] sm:$0xff]  ;;  %v1807_v53 = vld [vmem:[#allocation2 + $0x168] sm:$0xff] }
 0x1c9   : > { %v1159_v13 = vpop.f32.mrf.mxu3 }
 0x1ca   : > { %v7746_v31 = vadd.f32 %v1159_v13, %v1007_v49  ;;  %v971_v40 = vpop.f32.mrf.mxu2  ;;  %v1610_v13 = vld [vmem:[#allocation2 + $0x12f] sm:$0xff] }
 0x1cb   : > { %v1009_v41 = vadd.f32 %v971_v40, %v810_v23  ;;  %v812_v21 = vpop.f32.mrf.mxu1  ;;  %v1804_v23 = vld [vmem:[#allocation2 + $0x130] sm:$0xff] }
 0x1cc   : > { %11276 = vst [vmem:[#allocation16_spill] sm:$0xff] %v7746_v31  ;;  %v813_v49 = vadd.f32 %v812_v21, %v699_v38  ;;  %v6229_v21 = vld [vmem:[%s11256_s1 + $0x430] sm:$0xff] }
 0x1cd   : > { %2041 = vmatpush.msra.mxu0 %v6229_v21  ;;  %v1612_v21 = vld [vmem:[#allocation2 + $0x14f] sm:$0xff] }
 0x1ce   : > { %1890 = vmatmul.f32.gmra.mxu3 %v1801_v59  ;;  %1507 = vmatmul.f32.gmra.mxu1 %v7751_v48  ;;  %v1806_v31 = vld [vmem:[#allocation2 + $0x150] sm:$0xff] }
 0x1cf   : > { %1702 = vmatmul.f32.gmra.mxu2 %v1609_v34  ;;  %1322 = vmatmul.f32.gmra.mxu0 %v1804_v23 }
 0x1d1   : > { %v1162_v14 = vpop.f32.mrf.mxu3 }
 0x1d2   : > { %v7754_v62 = vadd.f32 %v1162_v14, %v1008_v7  ;;  %v974_v63 = vpop.f32.mrf.mxu2  ;;  %v1278_v7 = vpop.f32.mrf.mxu0 }
 0x1d3   : > { %v1010_v5 = vadd.f32 %v974_v63, %v813_v49  ;;  %v815_v12 = vpop.f32.mrf.mxu1  ;;  %v7764_v49 = vld [vmem:[#allocation2 + $0x129] sm:$0xff] }
 0x1d4   : > { %11277 = vst [vmem:[#allocation17_spill] sm:$0xff] %v7754_v62  ;;  %v816_v40 = vadd.f32 %v815_v12, %v702_v42  ;;  %v1611_v63 = vld [vmem:[#allocation2 + $0x147] sm:$0xff]  ;;  %v1368_v62 = vadd.f32 %v1272_v61, %v7425_v26 }
 0x1d6   : > { %1893 = vmatmul.f32.gmra.mxu3 %v1802_v22  ;;  %1510 = vmatmul.f32.gmra.mxu1 %v7756_v18  ;;  %v1805_v22 = vld [vmem:[#allocation2 + $0x148] sm:$0xff] }
 0x1d7   : > { %1705 = vmatmul.f32.gmra.mxu2 %v1610_v13  ;;  %1325 = vmatmul.f32.gmra.mxu0 %v1805_v22 }
 0x1d9   : > { %v1165_v59 = vpop.f32.mrf.mxu3 }
 0x1da   : > { %v7759_v27 = vadd.f32 %v1165_v59, %v1009_v41  ;;  %v977_v38 = vpop.f32.mrf.mxu2  ;;  %v1281_v59 = vpop.f32.mrf.mxu0 }
 0x1db   : > { %v1011_v34 = vadd.f32 %v977_v38, %v816_v40  ;;  %v1466_v14 = vpop.f32.mrf.mxu1 }
 0x1dc   : > { %11278 = vst [vmem:[#allocation18_spill] sm:$0xff] %v7759_v27  ;;  %v1562_v41 = vadd.f32 %v1466_v14, %v1368_v62  ;;  %v7770_v27 = vld [vmem:[#allocation2 + $0x131] sm:$0xff]  ;;  %v6228_v14 = vld [vmem:[%s11256_s1 + $0x428] sm:$0xff] }
 0x1dd   : > { %2042 = vmatpush.msra.mxu0 %v6228_v14  ;;  %v1614_v14 = vld [vmem:[#allocation2 + $0x16f] sm:$0xff] }
 0x1de   : > { %1896 = vmatmul.f32.gmra.mxu3 %v1803_v32  ;;  %1513 = vmatmul.f32.gmra.mxu1 %v7764_v49 }
 0x1df   : > { %1708 = vmatmul.f32.gmra.mxu2 %v1611_v63  ;;  %1328 = vmatmul.f32.gmra.mxu0 %v1806_v31 }
 0x1e1   : > { %v1168_v42 = vpop.f32.mrf.mxu3 }
 0x1e2   : > { %v7768_v12 = vadd.f32 %v1168_v42, %v1010_v5  ;;  %v1661_v13 = vpop.f32.mrf.mxu2  ;;  %v1284_v5 = vpop.f32.mrf.mxu0 }
 0x1e3   : > { %v1757_v40 = vadd.f32 %v1661_v13, %v1562_v41  ;;  %v1469_v38 = vpop.f32.mrf.mxu1  ;;  %v7779_v41 = vld [vmem:[#allocation2 + $0x149] sm:$0xff] }
 0x1e4   : > { %11279 = vst [vmem:[#allocation19_spill] sm:$0xff] %v7768_v12  ;;  %v1563_v61 = vadd.f32 %v1469_v38, %v1369_v58  ;;  %v1371_v12 = vadd.f32 %v1281_v59, %v7437_v57  ;;  %v1615_v57 = vld [vmem:[#allocation2 + $0x187] sm:$0xff]  ;;  %v1372_v59 = vadd.f32 %v1284_v5, %v7443_v4 }
 0x1e6   : > { %1899 = vmatmul.f32.gmra.mxu3 %v1804_v23  ;;  %1516 = vmatmul.f32.gmra.mxu1 %v7770_v27  ;;  %v1370_v23 = vadd.f32 %v1278_v7, %v7434_v47 }
 0x1e7   : > { %1711 = vmatmul.f32.gmra.mxu2 %v1612_v21  ;;  %1331 = vmatmul.f32.gmra.mxu0 %v1807_v53 }
 0x1e9   : > { %v1171_v26 = vpop.f32.mrf.mxu3 }
 0x1ea   : > { %v7774_v32 = vadd.f32 %v1171_v26, %v1011_v34  ;;  %v1664_v62 = vpop.f32.mrf.mxu2  ;;  %v1287_v21 = vpop.f32.mrf.mxu0 }
 0x1eb   : > { %v1758_v63 = vadd.f32 %v1664_v62, %v1563_v61  ;;  %v1472_v42 = vpop.f32.mrf.mxu1  ;;  %v7785_v62 = vld [vmem:[#allocation2 + $0x151] sm:$0xff]  ;;  %v1373_v19 = vadd.f32 %v1287_v21, %v7448_v15  ;;  %v1811_v21 = vld [vmem:[#allocation2 + $0x1a8] sm:$0xff] }
 0x1ec   : > { %11280 = vst [vmem:[#allocation20_spill] sm:$0xff] %v7774_v32  ;;  %v1564_v34 = vadd.f32 %v1472_v42, %v1370_v23  ;;  %v1808_v32 = vld [vmem:[#allocation2 + $0x170] sm:$0xff] }
 0x1ee   : > { %1902 = vmatmul.f32.gmra.mxu3 %v1805_v22  ;;  %1519 = vmatmul.f32.gmra.mxu1 %v7779_v41 }
 0x1ef   : > { %1714 = vmatmul.f32.gmra.mxu2 %v1613_v36  ;;  %1334 = vmatmul.f32.gmra.mxu0 %v1808_v32  ;;  %v6227_v36 = vld [vmem:[%s11256_s1 + $0x420] sm:$0xff] }
 0x1f0   : > { %2043 = vmatpush.msra.mxu0 %v6227_v36  ;;  %v1616_v36 = vld [vmem:[#allocation2 + $0x18f] sm:$0xff] }
 0x1f1   : > { %v1855_v58 = vpop.f32.mrf.mxu3 }
 0x1f2   : > { %v7783_v13 = vadd.f32 %v1855_v58, %v1757_v40  ;;  %v1667_v38 = vpop.f32.mrf.mxu2  ;;  %v1290_v42 = vpop.f32.mrf.mxu0 }
 0x1f3   : > { %v1759_v26 = vadd.f32 %v1667_v38, %v1564_v34  ;;  %v1475_v61 = vpop.f32.mrf.mxu1  ;;  %v7794_v34 = vld [vmem:[#allocation2 + $0x169] sm:$0xff] }
 0x1f4   : > { %v1565_v7 = vadd.f32 %v1475_v61, %v1371_v12 }
 0x1f6   : > { %1905 = vmatmul.f32.gmra.mxu3 %v1806_v31  ;;  %1522 = vmatmul.f32.gmra.mxu1 %v7785_v62  ;;  %v1809_v31 = vld [vmem:[#allocation2 + $0x188] sm:$0xff] }
 0x1f7   : > { %1717 = vmatmul.f32.gmra.mxu2 %v1614_v14  ;;  %1337 = vmatmul.f32.gmra.mxu0 %v1809_v31 }
 0x1f9   : > { %v1858_v47 = vpop.f32.mrf.mxu3 }
 0x1fa   : > { %v7789_v22 = vadd.f32 %v1858_v47, %v1758_v63  ;;  %v1670_v40 = vpop.f32.mrf.mxu2  ;;  %v1293_v14 = vpop.f32.mrf.mxu0 }
 0x1fb   : > { %v1760_v23 = vadd.f32 %v1670_v40, %v1565_v7  ;;  %v1478_v58 = vpop.f32.mrf.mxu1  ;;  %v7800_v40 = vld [vmem:[#allocation2 + $0x171] sm:$0xff]  ;;  %v1375_v0 = vadd.f32 %v1293_v14, %v7464_v37  ;;  %v1619_v37 = vld [vmem:[#allocation2 + $0x1c7] sm:$0xff] }
 0x1fc   : > { %v1566_v63 = vadd.f32 %v1478_v58, %v1372_v59 }
 0x1fe   : > { %1908 = vmatmul.f32.gmra.mxu3 %v1807_v53  ;;  %1525 = vmatmul.f32.gmra.mxu1 %v7794_v34 }
 0x1ff   : > { %1720 = vmatmul.f32.gmra.mxu2 %v1615_v57  ;;  %1340 = vmatmul.f32.gmra.mxu0 %v1810_v43  ;;  %v6226_v57 = vld [vmem:[%s11256_s1 + $0x418] sm:$0xff] }
 0x200   : > { %2044 = vmatpush.msra.mxu0 %v6226_v57  ;;  %v1812_v57 = vld [vmem:[#allocation2 + $0x1b0] sm:$0xff] }
 0x201   : > { %v1861_v12 = vpop.f32.mrf.mxu3 }
 0x202   : > { %v7798_v38 = vadd.f32 %v1861_v12, %v1759_v26  ;;  %v1673_v61 = vpop.f32.mrf.mxu2  ;;  %v7806_v58 = vpop.f32.mrf.mxu0  ;;  %v7811_v12 = vld [vmem:[#allocation2 + $0x189] sm:$0xff] }
 0x203   : > { %v1761_v47 = vadd.f32 %v1673_v61, %v1566_v63  ;;  %v1481_v7 = vpop.f32.mrf.mxu1  ;;  %v1374_v63 = vadd.f32 %v1290_v42, %v7456_v25 }
 0x204   : > { %v1567_v5 = vadd.f32 %v1481_v7, %v1373_v19 }
 0x206   : > { %1911 = vmatmul.f32.gmra.mxu3 %v1808_v32  ;;  %1528 = vmatmul.f32.gmra.mxu1 %v7800_v40  ;;  %v1617_v32 = vld [vmem:[#allocation2 + $0x1a7] sm:$0xff] }
 0x207   : > { %1723 = vmatmul.f32.gmra.mxu2 %v1616_v36  ;;  %1343 = vmatmul.f32.gmra.mxu0 %v1811_v21 }
 0x209   : > { %v1864_v4 = vpop.f32.mrf.mxu3 }
 0x20a   : > { %v7804_v53 = vadd.f32 %v1864_v4, %v1760_v23  ;;  %v1676_v26 = vpop.f32.mrf.mxu2  ;;  %v7817_v36 = vpop.f32.mrf.mxu0 }
 0x20b   : > { %v1762_v59 = vadd.f32 %v1676_v26, %v1567_v5  ;;  %v1484_v15 = vpop.f32.mrf.mxu1  ;;  %v7819_v5 = vld [vmem:[#allocation2 + $0x191] sm:$0xff] }
 0x20c   : > { %v1568_v23 = vadd.f32 %v1484_v15, %v1374_v63  ;;  %v1618_v26 = vld [vmem:[#allocation2 + $0x1af] sm:$0xff] }
 0x20d   : > { %v6225_v63 = vld [vmem:[%s11256_s1 + $0x410] sm:$0xff] }
 0x20e   : > { %1914 = vmatmul.f32.gmra.mxu3 %v1809_v31  ;;  %1531 = vmatmul.f32.gmra.mxu1 %v7811_v12 }
 0x20f   : > { %1726 = vmatmul.f32.gmra.mxu2 %v1617_v32  ;;  %1346 = vmatmul.f32.gmra.mxu0 %v1812_v57 }
 0x210   : > { %2045 = vmatpush.msra.mxu0 %v6225_v63  ;;  %v1621_v63 = vld [vmem:[#allocation2 + $0x1e7] sm:$0xff] }
 0x211   : > { %v1867_v19 = vpop.f32.mrf.mxu3 }
 0x212   : > { %v7815_v61 = vadd.f32 %v1867_v19, %v1761_v47  ;;  %v1679_v7 = vpop.f32.mrf.mxu2  ;;  %v7825_v32 = vpop.f32.mrf.mxu0 }
 0x213   : > { %v1763_v4 = vadd.f32 %v1679_v7, %v1568_v23  ;;  %v1487_v25 = vpop.f32.mrf.mxu1  ;;  %v7830_v23 = vld [vmem:[#allocation2 + $0x1a9] sm:$0xff]  ;;  %v7837_v7 = vld [vmem:[#allocation2 + $0x1b1] sm:$0xff] }
 0x214   : > { %v1569_v31 = vadd.f32 %v1487_v25, %v1375_v0  ;;  %v1814_v25 = vld [vmem:[#allocation2 + $0x1d0] sm:$0xff] }
 0x216   : > { %1917 = vmatmul.f32.gmra.mxu3 %v1810_v43  ;;  %1534 = vmatmul.f32.gmra.mxu1 %v7819_v5  ;;  %v1813_v43 = vld [vmem:[#allocation2 + $0x1c8] sm:$0xff] }
 0x217   : > { %1729 = vmatmul.f32.gmra.mxu2 %v1618_v26  ;;  %1349 = vmatmul.f32.gmra.mxu0 %v1813_v43  ;;  %v1620_v26 = vld [vmem:[#allocation2 + $0x1cf] sm:$0xff] }
 0x219   : > { %v1870_v42 = vpop.f32.mrf.mxu3 }
 0x21a   : > { %v7823_v47 = vadd.f32 %v1870_v42, %v1762_v59  ;;  %v1682_v15 = vpop.f32.mrf.mxu2  ;;  %v7835_v59 = vpop.f32.mrf.mxu0 }
 0x21b   : > { %v1764_v19 = vadd.f32 %v1682_v15, %v1569_v31  ;;  %v7847_v15 = vld [vmem:[#allocation2 + $0x1c9] sm:$0xff] }
 0x21e   : > { %1920 = vmatmul.f32.gmra.mxu3 %v1811_v21  ;;  %1537 = vmatmul.f32.gmra.mxu1 %v7830_v23 }
 0x21f   : > { %1732 = vmatmul.f32.gmra.mxu2 %v1619_v37  ;;  %1352 = vmatmul.f32.gmra.mxu0 %v1814_v25  ;;  %v1815_v37 = vld [vmem:[#allocation2 + $0x1e8] sm:$0xff] }
 0x221   : > { %v1873_v0 = vpop.f32.mrf.mxu3 }
 0x222   : > { %v7833_v14 = vadd.f32 %v1873_v0, %v1763_v4  ;;  %v7842_v21 = vpop.f32.mrf.mxu0  ;;  %v6224_v4 = vld [vmem:[%s11256_s1 + $0x408] sm:$0xff] }
 0x223   : > { %2046 = vmatpush.msra.mxu0 %v6224_v4  ;;  %v1622_v0 = vld [vmem:[#allocation2 + $0x1ef] sm:$0xff] }
 0x224   : > { %v7860_v4 = vld [vmem:[#allocation2 + $0x1e9] sm:$0xff] }
 0x226   : > { %1923 = vmatmul.f32.gmra.mxu3 %v1812_v57  ;;  %1540 = vmatmul.f32.gmra.mxu1 %v7837_v7 }
 0x227   : > { %1735 = vmatmul.f32.gmra.mxu2 %v1620_v26  ;;  %1355 = vmatmul.f32.gmra.mxu0 %v1815_v37  ;;  %v1816_v26 = vld [vmem:[#allocation2 + $0x1f0] sm:$0xff] }
 0x229   : > { %v1876_v42 = vpop.f32.mrf.mxu3 }
 0x22a   : > { %v7840_v31 = vadd.f32 %v1876_v42, %v1764_v19  ;;  %v7850_v57 = vpop.f32.mrf.mxu0  ;;  %v7852_v19 = vld [vmem:[#allocation2 + $0x1d1] sm:$0xff] }
 0x22e   : > { %1926 = vmatmul.f32.gmra.mxu3 %v1813_v43  ;;  %1543 = vmatmul.f32.gmra.mxu1 %v7847_v15  ;;  %v6223_v43 = vld [vmem:[%s11256_s1 + $0x400] sm:$0xff] }
 0x22f   : > { %1738 = vmatmul.f32.gmra.mxu2 %v1621_v63  ;;  %1358 = vmatmul.f32.gmra.mxu0 %v1816_v26  ;;  %v1623_v63 = vld [vmem:[#allocation2 + $0x207] sm:$0xff] }
 0x230   : > { %2047 = vmatpush.msra.mxu0 %v6223_v43  ;;  %v7871_v43 = vld [vmem:[#allocation2 + $0x209] sm:$0xff] }
 0x234   : > { %v7855_v42 = vpop.f32.mrf.mxu0 }
 0x236   : > { %1929 = vmatmul.f32.gmra.mxu3 %v1814_v25  ;;  %1546 = vmatmul.f32.gmra.mxu1 %v7852_v19 }
 0x237   : > { %1741 = vmatmul.f32.gmra.mxu2 %v1622_v0  ;;  %1361 = vmatmul.f32.gmra.mxu0 %v1817_v33  ;;  %v1818_v0 = vld [vmem:[#allocation2 + $0x210] sm:$0xff] }
 0x23c   : > { %v7863_v25 = vpop.f32.mrf.mxu0 }
 0x23e   : > { %1932 = vmatmul.f32.gmra.mxu3 %v1815_v37  ;;  %1549 = vmatmul.f32.gmra.mxu1 %v7860_v4 }
 0x23f   : > { %1744 = vmatmul.f32.gmra.mxu2 %v1623_v63  ;;  %1364 = vmatmul.f32.gmra.mxu0 %v1818_v0  ;;  %v7877_v63 = vld [vmem:[#allocation2 + $0x211] sm:$0xff] }
 0x244   : > { %v7869_v11 = vpop.f32.mrf.mxu0 }
 0x246   : > { %1935 = vmatmul.f32.gmra.mxu3 %v1816_v26  ;;  %1552 = vmatmul.f32.gmra.mxu1 %v7865_v28 }
 0x247   : > { %1747 = vmatmul.f32.gmra.mxu2 %v7665_v54  ;;  %2048 = vmatmul.f32.vlgmr.msra.gmra.mxu0 %v7673_v8  ;;  %v6970_v54 = vld [vmem:[#allocation2 + $0xf] sm:$0xff] }
 0x24c   : > { %v7875_v37 = vpop.f32.mrf.mxu0 }
 0x24e   : > { %1938 = vmatmul.f32.gmra.mxu3 %v1817_v33  ;;  %1555 = vmatmul.f32.gmra.mxu1 %v7871_v43 }
 0x24f   : > { %1750 = vmatmul.f32.gmra.mxu2 %v1625_v60  ;;  %2051 = vmatmul.f32.gmra.mxu0 %v7678_v20  ;;  %v1820_v60 = vld [vmem:[#allocation2 + $0x230] sm:$0xff] }
 0x254   : > { %v7881_v26 = vpop.f32.mrf.mxu0 }
 0x255   : > { %11281 = vst [vmem:[#allocation21_spill] sm:$0xff] %v7881_v26 }
 0x256   : > { %1941 = vmatmul.f32.gmra.mxu3 %v1818_v0  ;;  %1558 = vmatmul.f32.gmra.mxu1 %v7877_v63 }
 0x257   : > { %1753 = vmatmul.f32.gmra.mxu2 %v6970_v54  ;;  %2054 = vmatmul.f32.gmra.mxu0 %v7686_v35  ;;  %v2734_v54 = vld [vmem:[%s11258_s3 + $0x70] sm:$0xff] }
 0x25c   : > { %v7884_v8 = vpop.f32.mrf.mxu0 }
 0x25d   : > { %11282 = vst [vmem:[#allocation22_spill] sm:$0xff] %v7884_v8 }
 0x25e   : > { %1944 = vmatmul.f32.gmra.mxu3 %v1819_v46 }
 0x25f   : > { %2057 = vmatmul.f32.gmra.mxu0 %v7691_v51 }
 0x264   : > { %v7887_v33 = vpop.f32.mrf.mxu0 }
 0x265   : > { %11283 = vst [vmem:[#allocation23_spill] sm:$0xff] %v7887_v33 }
 0x266   : > { %1947 = vmatmul.f32.gmra.mxu3 %v1820_v60  ;;  %v6277_v60 = vld [vmem:[%s11258_s3 + $0x170] sm:$0xff] }
 0x267   : > { %2060 = vmatmul.f32.gmra.mxu0 %v7699_v1 }
 0x26c   : > { %v7890_v20 = vpop.f32.mrf.mxu0 }
 0x26d   : > { %11284 = vst [vmem:[#allocation24_spill] sm:$0xff] %v7890_v20  ;;  %v6249_v20 = vld [vmem:[%s11258_s3 + $0x90] sm:$0xff] }
 0x26f   : > { %2063 = vmatmul.f32.gmra.mxu0 %v7704_v6 }
 0x274   : > { %v7893_v0 = vpop.f32.mrf.mxu0 }
 0x275   : > { %11285 = vst [vmem:[#allocation25_spill] sm:$0xff] %v7893_v0 }
 0x277   : > { %2066 = vmatmul.f32.gmra.mxu0 %v7712_v10  ;;  %v2735_v10 = vld [vmem:[%s11258_s3 + $0x78] sm:$0xff] }
 0x278   : > { %2802 = vmatpush.msra.mxu2 %v2735_v10  ;;  %v6261_v10 = vld [vmem:[%s11258_s3 + $0xf0] sm:$0xff] }
 0x27a   : > { %2803 = vmatpush.msra.mxu2 %v2734_v54  ;;  %v6260_v54 = vld [vmem:[%s11258_s3 + $0xe8] sm:$0xff] }
 0x27c   : > { %v7896_v35 = vpop.f32.mrf.mxu0 }
 0x27d   : > { %11286 = vst [vmem:[#allocation26_spill] sm:$0xff] %v7896_v35  ;;  %v6267_v35 = vld [vmem:[%s11258_s3 + $0x120] sm:$0xff] }
 0x27f   : > { %2069 = vmatmul.f32.gmra.mxu0 %v7717_v52  ;;  %v6278_v52 = vld [vmem:[%s11258_s3 + $0x178] sm:$0xff] }
 0x280   : > { %2868 = vmatpush.msra.mxu3 %v6278_v52  ;;  %v2733_v52 = vld [vmem:[%s11258_s3 + $0x68] sm:$0xff] }
 0x281   : > { %2804 = vmatpush.msra.mxu2 %v2733_v52  ;;  %v7958_v52 = vpop.f32.mrf.mxu1 }
 0x282   : > { %2869 = vmatpush.msra.mxu3 %v6277_v60 }
 0x284   : > { %v7899_v46 = vpop.f32.mrf.mxu0 }
 0x285   : > { %11287 = vst [vmem:[#allocation27_spill] sm:$0xff] %v7899_v46 }
 0x287   : > { %2072 = vmatmul.f32.gmra.mxu0 %v7725_v9  ;;  %v6262_v9 = vld [vmem:[%s11258_s3 + $0xf8] sm:$0xff] }
 0x288   : > { %2761 = vmatpush.msra.mxu1 %v6262_v9  ;;  %v6276_v9 = vld [vmem:[%s11258_s3 + $0x168] sm:$0xff] }
 0x289   : > { %2870 = vmatpush.msra.mxu3 %v6276_v9 }
 0x28a   : > { %2762 = vmatpush.msra.mxu1 %v6261_v10  ;;  %v7006_v10 = vmov -3e+38  }
 0x28b   : > { %2213 = vst [vmem:[#allocation3 + $0x7] sm:$0xff] %v7006_v10 }
 0x28c   : > { %v7902_v51 = vpop.f32.mrf.mxu0  ;;  %2763 = vmatpush.msra.mxu1 %v6260_v54  ;;  %2214 = vst [vmem:[#allocation3 + $0xf] sm:$0xff] %v7006_v10  ;;  %v7961_v54 = vpop.f32.mrf.mxu2 }
 0x28d   : > { %11288 = vst [vmem:[#allocation28_spill] sm:$0xff] %v7902_v51  ;;  %v6255_v51 = vld [vmem:[%s11258_s3 + $0xc0] sm:$0xff] }
 0x28e   : > { %2215 = vst [vmem:[#allocation3 + $0x17] sm:$0x3] %v7006_v10 }
 0x28f   : > { %2075 = vmatmul.f32.gmra.mxu0 %v7730_v30  ;;  %2220 = vst [vmem:[#allocation3 + $0x7] sm:$0x1] %v7006_v10 }
 0x290   : > { %2221 = vst [vmem:[#allocation3 + $0x27] sm:$0x1] %v7006_v10 }
 0x291   : > { %2222 = vst [vmem:[#allocation3 + $0x47] sm:$0x1] %v7006_v10 }
 0x292   : > { %2223 = vst [vmem:[#allocation3 + $0x67] sm:$0x1] %v7006_v10 }
 0x293   : > { %2224 = vst [vmem:[#allocation3 + $0x87] sm:$0x1] %v7006_v10 }
 0x294   : > { %v7905_v1 = vpop.f32.mrf.mxu0  ;;  %2225 = vst [vmem:[#allocation3 + $0xa7] sm:$0x1] %v7006_v10 }
 0x295   : > { %11289 = vst [vmem:[#allocation29_spill] sm:$0xff] %v7905_v1 }
 0x296   : > { %2226 = vst [vmem:[#allocation3 + $0xc7] sm:$0x1] %v7006_v10 }
 0x297   : > { %2078 = vmatmul.f32.gmra.mxu0 %v7738_v55  ;;  %2227 = vst [vmem:[#allocation3 + $0xe7] sm:$0x1] %v7006_v10 }
 0x298   : > { %2228 = vst [vmem:[#allocation3 + $0x107] sm:$0x1] %v7006_v10 }
 0x299   : > { %2229 = vst [vmem:[#allocation3 + $0x127] sm:$0x1] %v7006_v10 }
 0x29a   : > { %2230 = vst [vmem:[#allocation3 + $0x147] sm:$0x1] %v7006_v10 }
 0x29b   : > { %2231 = vst [vmem:[#allocation3 + $0x167] sm:$0x1] %v7006_v10 }
 0x29c   : > { %v7908_v6 = vpop.f32.mrf.mxu0  ;;  %2232 = vst [vmem:[#allocation3 + $0x187] sm:$0x1] %v7006_v10 }
 0x29d   : > { %11290 = vst [vmem:[#allocation30_spill] sm:$0xff] %v7908_v6 }
 0x29e   : > { %2233 = vst [vmem:[#allocation3 + $0x1a7] sm:$0x1] %v7006_v10 }
 0x29f   : > { %2081 = vmatmul.f32.gmra.mxu0 %v7743_v50  ;;  %2234 = vst [vmem:[#allocation3 + $0x1c7] sm:$0x1] %v7006_v10 }
 0x2a0   : > { %2235 = vst [vmem:[#allocation3 + $0x1e7] sm:$0x1] %v7006_v10 }
 0x2a1   : > { %2236 = vst [vmem:[#allocation3 + $0x207] sm:$0x1] %v7006_v10  ;;  %v2729_v10 = vld [vmem:[%s11258_s3 + $0x48] sm:$0xff] }
 0x2a4   : > { %v7920_v30 = vpop.f32.mrf.mxu0 }
 0x2a5   : > { %11291 = vst [vmem:[#allocation31_spill] sm:$0xff] %v7920_v30  ;;  %v6257_v30 = vld [vmem:[%s11258_s3 + $0xd0] sm:$0xff] }
 0x2a7   : > { %2084 = vmatmul.f32.gmra.mxu0 %v7751_v48 }
 0x2ac   : > { %v7923_v55 = vpop.f32.mrf.mxu0 }
 0x2ad   : > { %11292 = vst [vmem:[#allocation32_spill] sm:$0xff] %v7923_v55  ;;  %v6273_v55 = vld [vmem:[%s11258_s3 + $0x150] sm:$0xff] }
 0x2af   : > { %2087 = vmatmul.f32.gmra.mxu0 %v7756_v18 }
 0x2b4   : > { %v7935_v50 = vpop.f32.mrf.mxu0 }
 0x2b5   : > { %11293 = vst [vmem:[#allocation33_spill] sm:$0xff] %v7935_v50  ;;  %v2730_v50 = vld [vmem:[%s11258_s3 + $0x50] sm:$0xff] }
 0x2b7   : > { %2090 = vmatmul.f32.gmra.mxu0 %v7764_v49  ;;  %v7953_v49 = vld [vmem:[%s11257_s2] ss:$0 sm:$0xff] }
 0x2bc   : > { %v7938_v48 = vpop.f32.mrf.mxu0 }
 0x2bd   : > { %11294 = vst [vmem:[#allocation34_spill] sm:$0xff] %v7938_v48 }
 0x2bf   : > { %2093 = vmatmul.f32.gmra.mxu0 %v7770_v27 }
 0x2c4   : > { %v2049_v18 = vpop.f32.mrf.mxu0 }
 0x2c5   : > { %v2145_v60 = vadd.f32 %v2049_v18, %v7783_v13  ;;  %v2732_v18 = vld [vmem:[%s11258_s3 + $0x60] sm:$0xff] }
 0x2c6   : > { %2805 = vmatpush.msra.mxu2 %v2732_v18  ;;  %v2731_v18 = vld [vmem:[%s11258_s3 + $0x58] sm:$0xff] }
 0x2c7   : > { %v2181_v48 = vadd.f32 %v7953_v49, %v2145_v60  ;;  %2096 = vmatmul.f32.gmra.mxu0 %v7779_v41  ;;  %v6275_v41 = vld [vmem:[%s11258_s3 + $0x160] sm:$0xff] }
 0x2c8   : > { %2871 = vmatpush.msra.mxu3 %v6275_v41  ;;  %v6274_v41 = vld [vmem:[%s11258_s3 + $0x158] sm:$0xff]  ;;  %2806 = vmatpush.msra.mxu2 %v2731_v18  ;;  %v6272_v18 = vld [vmem:[%s11258_s3 + $0x148] sm:$0xff] }
 0x2c9   : > { %2257 = vst [vmem:[#allocation3 + $0x28] sm:$0xff] %v2181_v48  ;;  %v7974_v48 = vpop.f32.mrf.mxu3 }
 0x2ca   : > { %2872 = vmatpush.msra.mxu3 %v6274_v41  ;;  %2807 = vmatpush.msra.mxu2 %v2730_v50 }
 0x2cc   : > { %v2052_v27 = vpop.f32.mrf.mxu0  ;;  %2873 = vmatpush.msra.mxu3 %v6273_v55  ;;  %2808 = vmatpush.msra.mxu2 %v2729_v10 }
 0x2cd   : > { %v2146_v9 = vadd.f32 %v2052_v27, %v7789_v22  ;;  %v6259_v22 = vld [vmem:[%s11258_s3 + $0xe0] sm:$0xff]  ;;  %v7979_v27 = vpop.f32.mrf.mxu2 }
 0x2ce   : > { %2764 = vmatpush.msra.mxu1 %v6259_v22  ;;  %2874 = vmatpush.msra.mxu3 %v6272_v18 }
 0x2cf   : > { %v2182_v13 = vadd.f32 %v7953_v49, %v2146_v9  ;;  %2099 = vmatmul.f32.gmra.mxu0 %v7785_v62  ;;  %v7976_v62 = vpop.f32.mrf.mxu1 }
 0x2d1   : > { %2258 = vst [vmem:[#allocation3 + $0x30] sm:$0xff] %v2182_v13  ;;  %v7981_v13 = vpop.f32.mrf.mxu3 }
 0x2d4   : > { %v2055_v60 = vpop.f32.mrf.mxu0 }
 0x2d5   : > { %v8013_v41 = vpop.f32.mrf.mxu2  ;;  %v2147_v50 = vadd.f32 %v2055_v60, %v7798_v38  ;;  %v6254_v38 = vld [vmem:[%s11258_s3 + $0xb8] sm:$0xff] }
 0x2d6   : > { %v6270_v60 = vld [vmem:[%s11258_s3 + $0x138] sm:$0xff] }
 0x2d7   : > { %2102 = vmatmul.f32.gmra.mxu0 %v7794_v34  ;;  %v6258_v34 = vld [vmem:[%s11258_s3 + $0xd8] sm:$0xff]  ;;  %v7993_v22 = vpop.f32.mrf.mxu1 }
 0x2d8   : > { %2765 = vmatpush.msra.mxu1 %v6258_v34 }
 0x2d9   : > { %v8015_v55 = vpop.f32.mrf.mxu3 }
 0x2da   : > { %2766 = vmatpush.msra.mxu1 %v6257_v30  ;;  %v2728_v30 = vld [vmem:[%s11258_s3 + $0x40] sm:$0xff] }
 0x2db   : > { %2809 = vmatpush.msra.mxu2 %v2728_v30  ;;  %v6269_v30 = vld [vmem:[%s11258_s3 + $0x130] sm:$0xff] }
 0x2dc   : > { %v2058_v9 = vpop.f32.mrf.mxu0 }
 0x2dd   : > { %v2148_v1 = vadd.f32 %v2058_v9, %v7804_v53  ;;  %v2727_v53 = vld [vmem:[%s11258_s3 + $0x38] sm:$0xff]  ;;  %v8041_v9 = vpop.f32.mrf.mxu2 }
 0x2de   : > { %2810 = vmatpush.msra.mxu2 %v2727_v53 }
 0x2df   : > { %2105 = vmatmul.f32.gmra.mxu0 %v7800_v40  ;;  %v6256_v40 = vld [vmem:[%s11258_s3 + $0xc8] sm:$0xff]  ;;  %v8019_v6 = vpop.f32.mrf.mxu1  ;;  %v2184_v46 = vadd.f32 %v7953_v49, %v2148_v1 }
 0x2e0   : > { %2767 = vmatpush.msra.mxu1 %v6256_v40  ;;  %v6271_v40 = vld [vmem:[%s11258_s3 + $0x140] sm:$0xff]  ;;  %v6268_v1 = vld [vmem:[%s11258_s3 + $0x128] sm:$0xff] }
 0x2e1   : > { %2875 = vmatpush.msra.mxu3 %v6271_v40  ;;  %v2725_v40 = vld [vmem:[%s11258_s3 + $0x28] sm:$0xff]  ;;  %2260 = vst [vmem:[#allocation3 + $0x50] sm:$0xff] %v2184_v46 }
 0x2e2   : > { %2768 = vmatpush.msra.mxu1 %v6255_v51  ;;  %v2726_v51 = vld [vmem:[%s11258_s3 + $0x30] sm:$0xff] }
 0x2e3   : > { %2876 = vmatpush.msra.mxu3 %v6270_v60  ;;  %2811 = vmatpush.msra.mxu2 %v2726_v51  ;;  %v6251_v60 = vld [vmem:[%s11258_s3 + $0xa0] sm:$0xff]  ;;  %v2328_v51 = vld [vmem:[#allocation3 + $0x28] ss:$2 sm:$0xff] }
 0x2e4   : > { %v2061_v34 = vpop.f32.mrf.mxu0  ;;  %2769 = vmatpush.msra.mxu1 %v6254_v38  ;;  %v8066_v38 = vpop.f32.mrf.mxu3 }
 0x2e5   : > { %2877 = vmatpush.msra.mxu3 %v6269_v30  ;;  %2812 = vmatpush.msra.mxu2 %v2725_v40  ;;  %v2723_v30 = vld [vmem:[%s11258_s3 + $0x18] sm:$0xff] }
 0x2e7   : > { %2108 = vmatmul.f32.gmra.mxu0 %v7811_v12  ;;  %v2149_v12 = vadd.f32 %v2061_v34, %v7815_v61  ;;  %v6253_v61 = vld [vmem:[%s11258_s3 + $0xb0] sm:$0xff]  ;;  %v2183_v34 = vadd.f32 %v7953_v49, %v2147_v50  ;;  %2878 = vmatpush.msra.mxu3 %v6268_v1 }
 0x2e8   : > { %v2326_v50 = vld [vmem:[#allocation3 + $0x8] ss:$2 sm:$0xff]  ;;  %2770 = vmatpush.msra.mxu1 %v6253_v61  ;;  %v2292_v61 = vld [vmem:[#allocation3 + $0x27] ss:$2 sm:$0xff] }
 0x2e9   : > { %2259 = vst [vmem:[#allocation3 + $0x48] sm:$0xff] %v2183_v34  ;;  %v6266_v34 = vld [vmem:[%s11258_s3 + $0x118] sm:$0xff]  ;;  %v2362_v40 = vmax.f32 %v2292_v61, %v2328_v51  ;;  %2879 = vmatpush.msra.mxu3 %v6267_v35  ;;  %v2721_v35 = vld [vmem:[%s11258_s3 + $0x8] sm:$0xff]  ;;  %v1376_v61 = vadd.f32 %v7806_v58, %v7497_v56  ;;  %v6247_v58 = vld [vmem:[%s11258_s3 + $0x80] sm:$0xff] }
 0x2eb   : > { %2880 = vmatpush.msra.mxu3 %v6266_v34  ;;  %v1570_v33 = vadd.f32 %v7958_v52, %v1376_v61  ;;  %v2712_v52 = vld [vmem:[#allocation5 + $0x7] sm:$0xff]  ;;  %v1377_v61 = vadd.f32 %v7817_v36, %v7542_v17 }
 0x2ec   : > { %v2064_v10 = vpop.f32.mrf.mxu0  ;;  %v8114_v34 = vpop.f32.mrf.mxu3 }
 0x2ed   : > { %v2150_v18 = vadd.f32 %v2064_v10, %v7823_v47  ;;  %v6252_v47 = vld [vmem:[%s11258_s3 + $0xa8] sm:$0xff]  ;;  %v2185_v10 = vadd.f32 %v7953_v49, %v2149_v12  ;;  %v2724_v12 = vld [vmem:[%s11258_s3 + $0x20] sm:$0xff] }
 0x2ee   : > { %2771 = vmatpush.msra.mxu1 %v6252_v47  ;;  %2813 = vmatpush.msra.mxu2 %v2724_v12  ;;  %v8087_v47 = vpop.f32.mrf.mxu1  ;;  %v6264_v12 = vld [vmem:[%s11258_s3 + $0x108] sm:$0xff] }
 0x2ef   : > { %2111 = vmatmul.f32.gmra.mxu0 %v7819_v5  ;;  %v2290_v5 = vld [vmem:[#allocation3 + $0x7] ss:$2 sm:$0xff]  ;;  %v2186_v53 = vadd.f32 %v7953_v49, %v2150_v18  ;;  %v6250_v18 = vld [vmem:[%s11258_s3 + $0x98] sm:$0xff]  ;;  %2261 = vst [vmem:[#allocation3 + $0x68] sm:$0xff] %v2185_v10 }
 0x2f0   : > { %2772 = vmatpush.msra.mxu1 %v6251_v60  ;;  %v2361_v46 = vmax.f32 %v2290_v5, %v2326_v50  ;;  %v2722_v10 = vld [vmem:[%s11258_s3 + $0x10] sm:$0xff]  ;;  %2814 = vmatpush.msra.mxu2 %v2723_v30  ;;  %v8099_v5 = vpop.f32.mrf.mxu2 }
 0x2f1   : > { %2262 = vst [vmem:[#allocation3 + $0x70] sm:$0xff] %v2186_v53  ;;  %v2380_v60 = vld [vmem:[#allocation3 + $0x9] ss:$2 sm:$0xff]  ;;  %v2330_v30 = vld [vmem:[#allocation3 + $0x48] ss:$2 sm:$0xff] }
 0x2f2   : > { %2773 = vmatpush.msra.mxu1 %v6250_v18  ;;  %v6265_v50 = vld [vmem:[%s11258_s3 + $0x110] sm:$0xff]  ;;  %2815 = vmatpush.msra.mxu2 %v2722_v10 }
 0x2f3   : > { %v2382_v53 = vld [vmem:[#allocation3 + $0x29] ss:$2 sm:$0xff]  ;;  %2881 = vmatpush.msra.mxu3 %v6265_v50 }
 0x2f4   : > { %v2067_v0 = vpop.f32.mrf.mxu0  ;;  %2774 = vmatpush.msra.mxu1 %v6249_v20  ;;  %v2416_v51 = vmax.f32 %v2362_v40, %v2382_v53  ;;  %v2294_v18 = vld [vmem:[#allocation3 + $0x47] ss:$2 sm:$0xff]  ;;  %2816 = vmatpush.msra.mxu2 %v2721_v35 }
 0x2f5   : > { %v2151_v1 = vadd.f32 %v2067_v0, %v7833_v14  ;;  %v6248_v0 = vld [vmem:[%s11258_s3 + $0x88] sm:$0xff]  ;;  %2882 = vmatpush.msra.mxu3 %v6264_v12  ;;  %v6263_v40 = vld [vmem:[%s11258_s3 + $0x100] sm:$0xff] }
 0x2f6   : > { %2775 = vmatpush.msra.mxu1 %v6248_v0  ;;  %v2384_v20 = vld [vmem:[#allocation3 + $0x49] ss:$2 sm:$0xff] }
 0x2f7   : > { %v2187_v14 = vadd.f32 %v7953_v49, %v2151_v1  ;;  %2114 = vmatmul.f32.gmra.mxu0 %v7830_v23  ;;  %v2415_v23 = vmax.f32 %v2361_v46, %v2380_v60  ;;  %v2363_v1 = vmax.f32 %v2294_v18, %v2330_v30  ;;  %v2720_v46 = vld [vmem:[%s11258_s3] sm:$0xff]  ;;  %v2736_v60 = vld [vmem:[#allocation5 + $0x8] sm:$0xff]  ;;  %2883 = vmatpush.msra.mxu3 %v6263_v40  ;;  %v8141_v18 = vpop.f32.mrf.mxu3 }
 0x2f8   : > { %2776 = vmatpush.msra.mxu1 %v6247_v58  ;;  %2817 = vmatpush.msra.mxu2 %v2720_v46  ;;  %v2843_v50 = vld [vmem:[#allocation5 + $0x9] sm:$0xff] }
 0x2f9   : > { %2263 = vst [vmem:[#allocation3 + $0x88] sm:$0xff] %v2187_v14  ;;  %v2468_v8 = vmax.f32 %v2415_v23, %v2416_v51  ;;  %v2417_v26 = vmax.f32 %v2363_v1, %v2384_v20  ;;  %v1765_v14 = vadd.f32 %v7961_v54, %v1570_v33  ;;  %v2296_v53 = vld [vmem:[#allocation3 + $0x67] ss:$2 sm:$0xff]  ;;  %v2332_v12 = vld [vmem:[#allocation3 + $0x68] ss:$2 sm:$0xff]  ;;  %2777 = vmatmul.f32.vlgmr.msra.gmra.mxu1 %v2736_v60  ;;  %v8136_v23 = vpop.f32.mrf.mxu2 }
 0x2fa   : > { %2818 = vmatmul.f32.vlgmr.msra.gmra.mxu2 %v2712_v52  ;;  %2884 = vmatmul.f32.vlgmr.msra.gmra.mxu3 %v2843_v50  ;;  %v2364_v51 = vmax.f32 %v2296_v53, %v2332_v12  ;;  %v2386_v1 = vld [vmem:[#allocation3 + $0x69] ss:$2 sm:$0xff] }
 0x2fb   : > { %v8132_v35 = vmax.f32 %v2468_v8, %v2417_v26  ;;  %v1959_v54 = vadd.f32 %v7974_v48, %v1765_v14  ;;  %v1571_v8 = vadd.f32 %v7976_v62, %v1377_v61  ;;  %v1378_v48 = vadd.f32 %v7825_v32, %v7588_v44 }
 0x2fc   : > { %v2070_v10 = vpop.f32.mrf.mxu0  ;;  %v2418_v17 = vmax.f32 %v2364_v51, %v2386_v1 }
 0x2fd   : > { %v2152_v56 = vadd.f32 %v2070_v10, %v7840_v31  ;;  %v8128_v31 = vpop.f32.mrf.mxu1  ;;  %v6239_v33 = vmul.f32 -1.442695, %v8132_v35  ;;  %v1766_v20 = vadd.f32 %v7979_v27, %v1571_v8 }
 0x2fe   : > { %v2469_v50 = vmax.f32 %v2417_v26, %v2418_v17 }
 0x2ff   : > { %v2188_v0 = vadd.f32 %v7953_v49, %v2152_v56  ;;  %2117 = vmatmul.f32.gmra.mxu0 %v7837_v7  ;;  %6810 = vpow2.f32 %v6239_v33  ;;  %v1960_v52 = vadd.f32 %v7981_v13, %v1766_v20  ;;  %v8160_v12 = vpop.f32.mrf.mxu3  ;;  %v1379_v13 = vadd.f32 %v7835_v59, %v7624_v2 }
 0x301   : > { %2264 = vst [vmem:[#allocation3 + $0x90] sm:$0xff] %v2188_v0  ;;  %v8151_v27 = vpop.f32.mrf.mxu2  ;;  %v1572_v0 = vadd.f32 %v7993_v22, %v1378_v48 }
 0x303   : > { %v1767_v32 = vadd.f32 %v8013_v41, %v1572_v0  ;;  %v1573_v41 = vadd.f32 %v8019_v6, %v1379_v13 }
 0x304   : > { %v2073_v7 = vpop.f32.mrf.mxu0 }
 0x305   : > { %v2153_v30 = vadd.f32 %v2073_v7, %v1959_v54  ;;  %v6811_v58 = vpop.eup %6810  ;;  %v8148_v46 = vpop.f32.mrf.mxu1  ;;  %v1961_v33 = vadd.f32 %v8015_v55, %v1767_v32  ;;  %v1768_v1 = vadd.f32 %v8041_v9, %v1573_v41  ;;  %v1380_v55 = vadd.f32 %v7842_v21, %v7654_v24 }
 0x306   : > { %v2517_v60 = vadd.f32 1.0, %v6811_v58 }
 0x307   : > { %v2189_v36 = vadd.f32 %v7953_v49, %v2153_v30  ;;  %2120 = vmatmul.f32.gmra.mxu0 %v7847_v15  ;;  %v8178_v6 = vpop.f32.mrf.mxu3  ;;  %v1962_v58 = vadd.f32 %v8066_v38, %v1768_v1 }
 0x308   : > { %v2298_v10 = vld [vmem:[#allocation3 + $0x87] ss:$2 sm:$0xff]  ;;  %v2334_v56 = vld [vmem:[#allocation3 + $0x88] ss:$2 sm:$0xff]  ;;  %6812 = vrcp.f32 %v2517_v60  ;;  %v2536_v20 = vand.u32 2147483648, %v2517_v60  ;;  %vm2530_vm1 = vweird.f32 %v2517_v60 }
 0x309   : > { %v2365_v62 = vmax.f32 %v2298_v10, %v2334_v56  ;;  %2265 = vst [vmem:[#allocation3 + $0xa8] sm:$0xff] %v2189_v36  ;;  %v2388_v40 = vld [vmem:[#allocation3 + $0x89] ss:$2 sm:$0xff]  ;;  %v8171_v8 = vpop.f32.mrf.mxu2  ;;  %v2534_v36 = vand.u32 2147483647, %v2517_v60 }
 0x30a   : > { %v2537_v9 = vor.u32 1.1754944e-38, %v2536_v20 }
 0x30b   : > { %v8153_v14 = vmax.f32 %v2365_v62, %v2388_v40  ;;  %vm2535_vm3 = vcmp.eq.f32.partialorder %v2534_v36, 8.507059e+37 }
 0x30c   : > { %v2076_v15 = vpop.f32.mrf.mxu0 }
 0x30d   : > { %v2154_v53 = vadd.f32 %v2076_v15, %v1960_v52  ;;  %v8157_v44 = vmax.f32 %v2469_v50, %v8153_v14  ;;  %v8168_v54 = vpop.f32.mrf.mxu1 }
 0x30e   : > { %v6813_v22 = vpop.eup %6812 }
 0x30f   : > { %v2190_v61 = vadd.f32 %v7953_v49, %v2154_v53  ;;  %2123 = vmatmul.f32.gmra.mxu0 %v7852_v19  ;;  %v6240_v26 = vmul.f32 -1.442695, %v8157_v44  ;;  %v2526_v51 = vmul.f32 %v6813_v22, %v2517_v60  ;;  %vm2531_vm0 = vweird.f32 %v6813_v22 }
 0x310   : > { %vm2532_vm2 = vmor %vm2530_vm1, %vm2531_vm0 }
 0x311   : > { %2266 = vst [vmem:[#allocation3 + $0xb0] sm:$0xff] %v2190_v61  ;;  %6814 = vpow2.f32 %v6240_v26  ;;  %v2527_v19 = vsub.f32 1.0, %v2526_v51  ;;  %v8186_v60 = vpop.f32.mrf.mxu2  ;;  %v8193_v61 = vpop.f32.mrf.mxu3 }
 0x313   : > { %v2528_v59 = vmul.f32 %v6813_v22, %v2527_v19 }
 0x314   : > { %v2079_v7 = vpop.f32.mrf.mxu0 }
 0x315   : > { %v2155_v30 = vadd.f32 %v2079_v7, %v1961_v33  ;;  %v2529_v10 = vadd.f32 %v6813_v22, %v2528_v59  ;;  %v8182_v52 = vpop.f32.mrf.mxu1 }
 0x317   : > { %v6815_v17 = vpop.eup %6814  ;;  %v2191_v2 = vadd.f32 %v7953_v49, %v2155_v30  ;;  %2126 = vmatmul.f32.gmra.mxu0 %v7860_v4  ;;  %v2533_v48 = vsel %vm2532_vm2, %v6813_v22, %v2529_v10  ;;  %v1574_v4 = vadd.f32 %v8087_v47, %v1380_v55  ;;  %v1381_v47 = vadd.f32 %v7850_v57, %v7657_v39 }
 0x318   : > { %v2518_v56 = vadd.f32 1.0, %v6815_v17  ;;  %v2538_v62 = vsel %vm2535_vm3, %v2537_v9, %v2533_v48  ;;  %v2300_v15 = vld [vmem:[#allocation3 + $0xa7] ss:$2 sm:$0xff]  ;;  %v2336_v0 = vld [vmem:[#allocation3 + $0xa8] ss:$2 sm:$0xff] }
 0x319   : > { %2267 = vst [vmem:[#allocation3 + $0xc8] sm:$0xff] %v2191_v2  ;;  %v2645_v24 = vmul.f32 %v2538_v62, %v8132_v35  ;;  %v1769_v50 = vadd.f32 %v8099_v5, %v1574_v4  ;;  %v2366_v5 = vmax.f32 %v2300_v15, %v2336_v0  ;;  %v1575_v22 = vadd.f32 %v8128_v31, %v1381_v47  ;;  %v8203_v59 = vpop.f32.mrf.mxu2  ;;  %v8212_v62 = vpop.f32.mrf.mxu3  ;;  %v2013_v47 = vld [vmem:[#allocation2 + $0x229] sm:$0xff] }
 0x31a   : > { %6816 = vrcp.f32 %v2518_v56  ;;  %v2551_v51 = vand.u32 2147483648, %v2518_v56  ;;  %v2549_v19 = vand.u32 2147483647, %v2518_v56  ;;  %vm2545_vm5 = vweird.f32 %v2518_v56 }
 0x31b   : > { %2704 = vst [vmem:[#allocation5 + $0x20] sm:$0xff] %v2645_v24  ;;  %2780 = vmatmul.f32.gmra.mxu1 %v2645_v24  ;;  %v1963_v35 = vadd.f32 %v8114_v34, %v1769_v50  ;;  %v1770_v39 = vadd.f32 %v8136_v23, %v1575_v22  ;;  %v1382_v2 = vadd.f32 %v7855_v42, %v7663_v45 }
 0x31c   : > { %v2082_v40 = vpop.f32.mrf.mxu0  ;;  %v2552_v23 = vor.u32 1.1754944e-38, %v2551_v51  ;;  %vm2550_vm7 = vcmp.eq.f32.partialorder %v2549_v19, 8.507059e+37 }
 0x31d   : > { %v2156_v21 = vadd.f32 %v2082_v40, %v1962_v58  ;;  %v8197_v57 = vpop.f32.mrf.mxu1  ;;  %v1964_v9 = vadd.f32 %v8141_v18, %v1770_v39  ;;  %v1576_v42 = vadd.f32 %v8148_v46, %v1382_v2 }
 0x31f   : > { %v2192_v38 = vadd.f32 %v7953_v49, %v2156_v21  ;;  %2129 = vmatmul.f32.gmra.mxu0 %v7865_v28  ;;  %v2390_v28 = vld [vmem:[#allocation3 + $0xa9] ss:$2 sm:$0xff]  ;;  %v1771_v18 = vadd.f32 %v8151_v27, %v1576_v42 }
 0x320   : > { %v6817_v53 = vpop.eup %6816  ;;  %v2420_v34 = vmax.f32 %v2366_v5, %v2390_v28 }
 0x321   : > { %2268 = vst [vmem:[#allocation3 + $0xd0] sm:$0xff] %v2192_v38  ;;  %v2541_v32 = vmul.f32 %v6817_v53, %v2518_v56  ;;  %vm2546_vm4 = vweird.f32 %v6817_v53  ;;  %v1965_v21 = vadd.f32 %v8160_v12, %v1771_v18  ;;  %v8226_v50 = vpop.f32.mrf.mxu2  ;;  %v1384_v12 = vadd.f32 %v7869_v11, %v7676_v16 }
 0x322   : > { %v2713_v41 = vld [vmem:[#allocation5 + $0x1f] sm:$0xff]  ;;  %vm2547_vm6 = vmor %vm2545_vm5, %vm2546_vm4  ;;  %v2470_v58 = vmax.f32 %v8153_v14, %v2420_v34 }
 0x323   : > { %v2542_v13 = vsub.f32 1.0, %v2541_v32  ;;  %v2844_v7 = vld [vmem:[#allocation5 + $0x21] sm:$0xff]  ;;  %2821 = vmatmul.f32.gmra.mxu2 %v2713_v41 }
 0x324   : > { %v2085_v26 = vpop.f32.mrf.mxu0  ;;  %2887 = vmatmul.f32.gmra.mxu3 %v2844_v7 }
 0x325   : > { %v2157_v33 = vadd.f32 %v2085_v26, %v1963_v35  ;;  %v2543_v30 = vmul.f32 %v6817_v53, %v2542_v13  ;;  %v8223_v46 = vpop.f32.mrf.mxu1  ;;  %v1578_v13 = vadd.f32 %v8182_v52, %v1384_v12 }
 0x327   : > { %v2193_v1 = vadd.f32 %v7953_v49, %v2157_v33  ;;  %2132 = vmatmul.f32.gmra.mxu0 %v7871_v43  ;;  %v2544_v31 = vadd.f32 %v6817_v53, %v2543_v30  ;;  %v2014_v33 = vld [vmem:[#allocation2 + $0x231] sm:$0xff]  ;;  %v1773_v51 = vadd.f32 %v8186_v60, %v1578_v13 }
 0x328   : > { %v2302_v20 = vld [vmem:[#allocation3 + $0xc7] ss:$2 sm:$0xff]  ;;  %v2338_v17 = vld [vmem:[#allocation3 + $0xc8] ss:$2 sm:$0xff] }
 0x329   : > { %v2367_v36 = vmax.f32 %v2302_v20, %v2338_v17  ;;  %2269 = vst [vmem:[#allocation3 + $0xe8] sm:$0xff] %v2193_v1  ;;  %v2392_v55 = vld [vmem:[#allocation3 + $0xc9] ss:$2 sm:$0xff]  ;;  %v2548_v10 = vsel %vm2547_vm6, %v6817_v53, %v2544_v31  ;;  %v8239_v22 = vpop.f32.mrf.mxu2  ;;  %v1967_v52 = vadd.f32 %v8193_v61, %v1773_v51 }
 0x32a   : > { %v2553_v56 = vsel %vm2550_vm7, %v2552_v23, %v2548_v10 }
 0x32b   : > { %v8208_v43 = vmax.f32 %v2367_v36, %v2392_v55  ;;  %v2646_v45 = vmul.f32 %v2553_v56, %v8157_v44  ;;  %v1383_v44 = vadd.f32 %v7863_v25, %v7668_v3  ;;  %v8230_v25 = vpop.f32.mrf.mxu3 }
 0x32c   : > { %v2088_v48 = vpop.f32.mrf.mxu0 }
 0x32d   : > { %v2158_v40 = vadd.f32 %v2088_v48, %v1964_v9  ;;  %v8215_v4 = vmax.f32 %v2470_v58, %v8208_v43  ;;  %2705 = vst [vmem:[#allocation5 + $0x38] sm:$0xff] %v2646_v45  ;;  %2783 = vmatmul.f32.gmra.mxu1 %v2646_v45  ;;  %v1577_v27 = vadd.f32 %v8168_v54, %v1383_v44  ;;  %v8236_v5 = vpop.f32.mrf.mxu1  ;;  %v11295_v58 = vld [vmem:[#allocation7_spill] sm:$0xff] }
 0x32f   : > { %v2194_v14 = vadd.f32 %v7953_v49, %v2158_v40  ;;  %v6241_v24 = vmul.f32 -1.442695, %v8215_v4  ;;  %2135 = vmatmul.f32.gmra.mxu0 %v7877_v63  ;;  %v1772_v3 = vadd.f32 %v8171_v8, %v1577_v27 }
 0x331   : > { %2270 = vst [vmem:[#allocation3 + $0xf0] sm:$0xff] %v2194_v14  ;;  %6818 = vpow2.f32 %v6241_v24  ;;  %v1966_v54 = vadd.f32 %v8178_v6, %v1772_v3  ;;  %v1385_v6 = vadd.f32 %v7875_v37, %v7681_v29  ;;  %v1721_v37 = vpop.f32.mrf.mxu2 }
 0x333   : > { %v8245_v7 = vpop.f32.mrf.mxu3  ;;  %v1579_v60 = vadd.f32 %v8197_v57, %v1385_v6  ;;  %v11296_v57 = vld [vmem:[#allocation21_spill] sm:$0xff] }
 0x334   : > { %v2091_v38 = vpop.f32.mrf.mxu0  ;;  %v2714_v0 = vld [vmem:[#allocation5 + $0x37] sm:$0xff]  ;;  %v1386_v56 = vadd.f32 %v11296_v57, %v11295_v58 }
 0x335   : > { %v2159_v15 = vadd.f32 %v2091_v38, %v1965_v21  ;;  %v2845_v53 = vld [vmem:[#allocation5 + $0x39] sm:$0xff]  ;;  %2824 = vmatmul.f32.gmra.mxu2 %v2714_v0  ;;  %v8249_v1 = vpop.f32.mrf.mxu1  ;;  %v1774_v29 = vadd.f32 %v8203_v59, %v1579_v60 }
 0x336   : > { %2890 = vmatmul.f32.gmra.mxu3 %v2845_v53  ;;  %v1580_v27 = vadd.f32 %v8223_v46, %v1386_v56 }
 0x337   : > { %v6819_v63 = vpop.eup %6818  ;;  %v2195_v32 = vadd.f32 %v7953_v49, %v2159_v15  ;;  %2138 = vmatmul.f32.gmra.mxu0 %v2013_v47  ;;  %v1968_v59 = vadd.f32 %v8212_v62, %v1774_v29 }
 0x338   : > { %v2519_v35 = vadd.f32 1.0, %v6819_v63  ;;  %v2304_v41 = vld [vmem:[#allocation3 + $0xe7] ss:$2 sm:$0xff]  ;;  %v2340_v16 = vld [vmem:[#allocation3 + $0xe8] ss:$2 sm:$0xff]  ;;  %v1775_v62 = vadd.f32 %v8226_v50, %v1580_v27 }
 0x339   : > { %2271 = vst [vmem:[#allocation3 + $0x108] sm:$0xff] %v2195_v32  ;;  %v2368_v19 = vmax.f32 %v2304_v41, %v2340_v16  ;;  %v2394_v31 = vld [vmem:[#allocation3 + $0xe9] ss:$2 sm:$0xff]  ;;  %v1724_v32 = vpop.f32.mrf.mxu2 }
 0x33a   : > { %6820 = vrcp.f32 %v2519_v35  ;;  %v2566_v17 = vand.u32 2147483648, %v2519_v35  ;;  %v2564_v36 = vand.u32 2147483647, %v2519_v35  ;;  %vm2560_vm9 = vweird.f32 %v2519_v35  ;;  %v11297_v63 = vld [vmem:[#allocation8_spill] sm:$0xff] }
 0x33b   : > { %v2422_v23 = vmax.f32 %v2368_v19, %v2394_v31  ;;  %v1915_v18 = vpop.f32.mrf.mxu3  ;;  %v1969_v46 = vadd.f32 %v8230_v25, %v1775_v62  ;;  %v11300_v25 = vld [vmem:[#allocation23_spill] sm:$0xff]  ;;  %v11301_v31 = vld [vmem:[#allocation10_spill] sm:$0xff] }
 0x33c   : > { %v2094_v26 = vpop.f32.mrf.mxu0  ;;  %v2567_v45 = vor.u32 1.1754944e-38, %v2566_v17  ;;  %vm2565_vm11 = vcmp.eq.f32.partialorder %v2564_v36, 8.507059e+37 }
 0x33d   : > { %v2160_v8 = vadd.f32 %v2094_v26, %v1966_v54  ;;  %v2471_v14 = vmax.f32 %v8208_v43, %v2422_v23  ;;  %v1529_v43 = vpop.f32.mrf.mxu1 }
 0x33f   : > { %v2196_v28 = vadd.f32 %v7953_v49, %v2160_v8  ;;  %2141 = vmatmul.f32.gmra.mxu0 %v2014_v33 }
 0x340   : > { %v6821_v11 = vpop.eup %6820 }
 0x341   : > { %2272 = vst [vmem:[#allocation3 + $0x110] sm:$0xff] %v2196_v28  ;;  %v2556_v30 = vmul.f32 %v6821_v11, %v2519_v35  ;;  %vm2561_vm8 = vweird.f32 %v6821_v11  ;;  %v11299_v28 = vld [vmem:[#allocation9_spill] sm:$0xff]  ;;  %v1727_v6 = vpop.f32.mrf.mxu2 }
 0x342   : > { %vm2562_vm10 = vmor %vm2560_vm9, %vm2561_vm8  ;;  %v1388_v41 = vadd.f32 %v11300_v25, %v11299_v28  ;;  %v11305_v25 = vld [vmem:[#allocation12_spill] sm:$0xff] }
 0x343   : > { %v2557_v34 = vsub.f32 1.0, %v2556_v30  ;;  %v1918_v54 = vpop.f32.mrf.mxu3 }
 0x344   : > { %v2097_v39 = vpop.f32.mrf.mxu0 }
 0x345   : > { %v2161_v20 = vadd.f32 %v2097_v39, %v1967_v52  ;;  %v2558_v2 = vmul.f32 %v6821_v11, %v2557_v34  ;;  %v1532_v16 = vpop.f32.mrf.mxu1  ;;  %v1582_v52 = vadd.f32 %v8249_v1, %v1388_v41  ;;  %v11306_v41 = vld [vmem:[#allocation26_spill] sm:$0xff] }
 0x347   : > { %v2197_v55 = vadd.f32 %v7953_v49, %v2161_v20  ;;  %v2559_v9 = vadd.f32 %v6821_v11, %v2558_v2  ;;  %v1777_v39 = vadd.f32 %v1721_v37, %v1582_v52  ;;  %v11302_v2 = vld [vmem:[#allocation24_spill] sm:$0xff] }
 0x348   : > { %v2306_v61 = vld [vmem:[#allocation3 + $0x107] ss:$2 sm:$0xff]  ;;  %v2342_v10 = vld [vmem:[#allocation3 + $0x108] ss:$2 sm:$0xff]  ;;  %v1389_v36 = vadd.f32 %v11302_v2, %v11301_v31 }
 0x349   : > { %v2369_v48 = vmax.f32 %v2306_v61, %v2342_v10  ;;  %2273 = vst [vmem:[#allocation3 + $0x128] sm:$0xff] %v2197_v55  ;;  %v2396_v42 = vld [vmem:[#allocation3 + $0x109] ss:$2 sm:$0xff]  ;;  %v2563_v40 = vsel %vm2562_vm10, %v6821_v11, %v2559_v9  ;;  %v1971_v23 = vadd.f32 %v1915_v18, %v1777_v39  ;;  %v1730_v1 = vpop.f32.mrf.mxu2  ;;  %v11303_v18 = vld [vmem:[#allocation11_spill] sm:$0xff] }
 0x34a   : > { %v2568_v44 = vsel %vm2565_vm11, %v2567_v45, %v2563_v40  ;;  %v1583_v9 = vadd.f32 %v1529_v43, %v1389_v36 }
 0x34b   : > { %v8257_v24 = vmax.f32 %v2369_v48, %v2396_v42  ;;  %v8260_v38 = vmul.f32 %v2568_v44, %v8215_v4  ;;  %v11298_v4 = vld [vmem:[#allocation22_spill] sm:$0xff]  ;;  %v1921_v34 = vpop.f32.mrf.mxu3 }
 0x34c   : > { %v2100_v21 = vpop.f32.mrf.mxu0  ;;  %v1387_v3 = vadd.f32 %v11298_v4, %v11297_v63  ;;  %v1778_v45 = vadd.f32 %v1724_v32, %v1583_v9 }
 0x34d   : > { %v2162_v15 = vadd.f32 %v2100_v21, %v1968_v59  ;;  %v8264_v0 = vmax.f32 %v2471_v14, %v8257_v24  ;;  %2706 = vst [vmem:[#allocation5 + $0x50] sm:$0xff] %v8260_v38  ;;  %2786 = vmatmul.f32.gmra.mxu1 %v8260_v38  ;;  %v11304_v21 = vld [vmem:[#allocation25_spill] sm:$0xff] }
 0x34e   : > { %v1581_v35 = vadd.f32 %v8236_v5, %v1387_v3  ;;  %v1390_v27 = vadd.f32 %v11304_v21, %v11303_v18  ;;  %v1972_v63 = vadd.f32 %v1918_v54, %v1778_v45 }
 0x34f   : > { %v2198_v53 = vadd.f32 %v7953_v49, %v2162_v15  ;;  %v6242_v47 = vmul.f32 -1.442695, %v8264_v0 }
 0x350   : > { %v1776_v33 = vadd.f32 %v8239_v22, %v1581_v35  ;;  %v1584_v35 = vadd.f32 %v1532_v16, %v1390_v27 }
 0x351   : > { %2274 = vst [vmem:[#allocation3 + $0x130] sm:$0xff] %v2198_v53  ;;  %6822 = vpow2.f32 %v6242_v47 }
 0x352   : > { %v1970_v11 = vadd.f32 %v8245_v7, %v1776_v33  ;;  %v1535_v7 = vpop.f32.mrf.mxu1  ;;  %v1779_v54 = vadd.f32 %v1727_v6, %v1584_v35 }
 0x353   : > { %v1924_v15 = vpop.f32.mrf.mxu3 }
 0x354   : > { %v2103_v12 = vpop.f32.mrf.mxu0  ;;  %v8275_v13 = vld [vmem:[#allocation5 + $0x4f] sm:$0xff]  ;;  %v1973_v16 = vadd.f32 %v1921_v34, %v1779_v54 }
 0x355   : > { %v2163_v26 = vadd.f32 %v2103_v12, %v1969_v46  ;;  %v8277_v50 = vld [vmem:[#allocation5 + $0x51] sm:$0xff]  ;;  %2827 = vmatmul.f32.gmra.mxu2 %v8275_v13 }
 0x356   : > { %2893 = vmatmul.f32.gmra.mxu3 %v8277_v50  ;;  %v11312_v54 = vld [vmem:[#allocation29_spill] sm:$0xff] }
 0x357   : > { %v6823_v8 = vpop.eup %6822  ;;  %v2199_v51 = vadd.f32 %v7953_v49, %v2163_v26 }
 0x358   : > { %v2520_v5 = vadd.f32 1.0, %v6823_v8  ;;  %v2308_v60 = vld [vmem:[#allocation3 + $0x127] ss:$2 sm:$0xff]  ;;  %v2344_v20 = vld [vmem:[#allocation3 + $0x128] ss:$2 sm:$0xff] }
 0x359   : > { %2275 = vst [vmem:[#allocation3 + $0x148] sm:$0xff] %v2199_v51  ;;  %v2370_v55 = vmax.f32 %v2308_v60, %v2344_v20  ;;  %v2398_v57 = vld [vmem:[#allocation3 + $0x129] ss:$2 sm:$0xff]  ;;  %v1733_v51 = vpop.f32.mrf.mxu2  ;;  %v8317_v60 = vld [vmem:[%s11257_s2] ss:$0 sm:$0xff] }
 0x35a   : > { %6824 = vrcp.f32 %v2520_v5  ;;  %v2581_v37 = vand.u32 2147483648, %v2520_v5  ;;  %v2579_v48 = vand.u32 2147483647, %v2520_v5  ;;  %vm2575_vm13 = vweird.f32 %v2520_v5  ;;  %v1538_v26 = vpop.f32.mrf.mxu1  ;;  %v11307_v20 = vld [vmem:[#allocation13_spill] sm:$0xff] }
 0x35b   : > { %v2424_v42 = vmax.f32 %v2370_v55, %v2398_v57  ;;  %v11309_v57 = vld [vmem:[#allocation14_spill] sm:$0xff] }
 0x35c   : > { %v2106_v30 = vpop.f32.mrf.mxu0  ;;  %v2582_v43 = vor.u32 1.1754944e-38, %v2581_v37  ;;  %vm2580_vm15 = vcmp.eq.f32.partialorder %v2579_v48, 8.507059e+37 }
 0x35d   : > { %v2164_v19 = vadd.f32 %v2106_v30, %v1970_v11  ;;  %v2472_v4 = vmax.f32 %v8257_v24, %v2424_v42 }
 0x35f   : > { %v2200_v22 = vadd.f32 %v7953_v49, %v2164_v19 }
 0x360   : > { %v6825_v17 = vpop.eup %6824 }
 0x361   : > { %2276 = vst [vmem:[#allocation3 + $0x150] sm:$0xff] %v2200_v22  ;;  %v2571_v29 = vmul.f32 %v6825_v17, %v2520_v5  ;;  %vm2576_vm12 = vweird.f32 %v6825_v17  ;;  %v1927_v5 = vpop.f32.mrf.mxu3  ;;  %v1736_v2 = vpop.f32.mrf.mxu2 }
 0x362   : > { %vm2577_vm14 = vmor %vm2575_vm13, %vm2576_vm12  ;;  %v1541_v22 = vpop.f32.mrf.mxu1 }
 0x363   : > { %v2572_v10 = vsub.f32 1.0, %v2571_v29 }
 0x364   : > { %v2109_v61 = vpop.f32.mrf.mxu0 }
 0x365   : > { %v2165_v58 = vadd.f32 %v2109_v61, %v1971_v23  ;;  %v2573_v56 = vmul.f32 %v6825_v17, %v2572_v10 }
 0x367   : > { %v2201_v40 = vadd.f32 %v7953_v49, %v2165_v58  ;;  %v2574_v44 = vadd.f32 %v6825_v17, %v2573_v56  ;;  %v11310_v56 = vld [vmem:[#allocation28_spill] sm:$0xff] }
 0x368   : > { %v2310_v59 = vld [vmem:[#allocation3 + $0x147] ss:$2 sm:$0xff]  ;;  %v2346_v14 = vld [vmem:[#allocation3 + $0x148] ss:$2 sm:$0xff]  ;;  %v1393_v48 = vadd.f32 %v11310_v56, %v11309_v57 }
 0x369   : > { %v2371_v62 = vmax.f32 %v2310_v59, %v2346_v14  ;;  %2277 = vst [vmem:[#allocation3 + $0x168] sm:$0xff] %v2201_v40  ;;  %v2400_v53 = vld [vmem:[#allocation3 + $0x149] ss:$2 sm:$0xff]  ;;  %v2578_v47 = vsel %vm2577_vm14, %v6825_v17, %v2574_v44  ;;  %v11308_v17 = vld [vmem:[#allocation27_spill] sm:$0xff]  ;;  %v1930_v55 = vpop.f32.mrf.mxu3  ;;  %v1739_v59 = vpop.f32.mrf.mxu2 }
 0x36a   : > { %v2583_v32 = vsel %vm2580_vm15, %v2582_v43, %v2578_v47  ;;  %v1392_v31 = vadd.f32 %v11308_v17, %v11307_v20  ;;  %v1544_v45 = vpop.f32.mrf.mxu1  ;;  %v1587_v21 = vadd.f32 %v1541_v22, %v1393_v48  ;;  %v6310_v20 = vld [vmem:[%s11258_s3 + $0x278] sm:$0xff]  ;;  %v6307_v57 = vld [vmem:[%s11258_s3 + $0x260] sm:$0xff] }
 0x36b   : > { %v8294_v3 = vmax.f32 %v2371_v62, %v2400_v53  ;;  %v8297_v12 = vmul.f32 %v2583_v32, %v8264_v0  ;;  %v1391_v0 = vadd.f32 %v11306_v41, %v11305_v25  ;;  %v6326_v17 = vld [vmem:[%s11258_s3 + $0x2f8] sm:$0xff]  ;;  %3016 = vmatpush.msrb.mxu2 %v6310_v20  ;;  %v6323_v56 = vld [vmem:[%s11258_s3 + $0x2e0] sm:$0xff] }
 0x36c   : > { %v2112_v46 = vpop.f32.mrf.mxu0  ;;  %v1782_v47 = vadd.f32 %v1736_v2, %v1587_v21  ;;  %v6325_v2 = vld [vmem:[%s11258_s3 + $0x2f0] sm:$0xff]  ;;  %3090 = vmatpush.msrb.mxu3 %v6326_v17 }
 0x36d   : > { %v2166_v8 = vadd.f32 %v2112_v46, %v1972_v63  ;;  %v8300_v33 = vmax.f32 %v2472_v4, %v8294_v3  ;;  %2707 = vst [vmem:[#allocation5 + $0x68] sm:$0xff] %v8297_v12  ;;  %2789 = vmatmul.f32.gmra.mxu1 %v8297_v12  ;;  %v1585_v30 = vadd.f32 %v1535_v7, %v1391_v0 }
 0x36e   : > { %v1586_v7 = vadd.f32 %v1538_v26, %v1392_v31  ;;  %v1976_v0 = vadd.f32 %v1930_v55, %v1782_v47  ;;  %3091 = vmatpush.msrb.mxu3 %v6325_v2  ;;  %v6288_v2 = vld [vmem:[%s11258_s3 + $0x1c8] sm:$0xff] }
 0x36f   : > { %v2202_v24 = vadd.f32 %v7953_v49, %v2166_v8  ;;  %v6243_v28 = vmul.f32 -1.442695, %v8300_v33  ;;  %v1780_v6 = vadd.f32 %v1730_v1, %v1585_v30  ;;  %v11311_v8 = vld [vmem:[#allocation15_spill] sm:$0xff] }
 0x370   : > { %v1781_v10 = vadd.f32 %v1733_v51, %v1586_v7  ;;  %v1394_v51 = vadd.f32 %v11312_v54, %v11311_v8  ;;  %v6308_v7 = vld [vmem:[%s11258_s3 + $0x268] sm:$0xff]  ;;  %v6291_v8 = vld [vmem:[%s11258_s3 + $0x1e0] sm:$0xff]  ;;  %v6306_v54 = vld [vmem:[%s11258_s3 + $0x258] sm:$0xff] }
 0x371   : > { %2278 = vst [vmem:[#allocation3 + $0x170] sm:$0xff] %v2202_v24  ;;  %6826 = vpow2.f32 %v6243_v28  ;;  %v1974_v29 = vadd.f32 %v1924_v15, %v1780_v6  ;;  %v1933_v63 = vpop.f32.mrf.mxu3  ;;  %v1742_v22 = vpop.f32.mrf.mxu2 }
 0x372   : > { %v1975_v40 = vadd.f32 %v1927_v5, %v1781_v10  ;;  %v1588_v6 = vadd.f32 %v1544_v45, %v1394_v51  ;;  %v6292_v10 = vld [vmem:[%s11258_s3 + $0x1e8] sm:$0xff]  ;;  %v6322_v51 = vld [vmem:[%s11258_s3 + $0x2d8] sm:$0xff] }
 0x374   : > { %v2115_v11 = vpop.f32.mrf.mxu0  ;;  %v8308_v19 = vld [vmem:[#allocation5 + $0x67] sm:$0xff] }
 0x375   : > { %v2167_v52 = vadd.f32 %v2115_v11, %v1973_v16  ;;  %v8310_v39 = vld [vmem:[#allocation5 + $0x69] sm:$0xff]  ;;  %2830 = vmatmul.f32.gmra.mxu2 %v8308_v19  ;;  %v1547_v16 = vpop.f32.mrf.mxu1 }
 0x376   : > { %2896 = vmatmul.f32.gmra.mxu3 %v8310_v39 }
 0x377   : > { %v6827_v49 = vpop.eup %6826  ;;  %v2203_v34 = vadd.f32 %v8317_v60, %v2167_v52 }
 0x378   : > { %v2521_v36 = vadd.f32 1.0, %v6827_v49  ;;  %v2312_v1 = vld [vmem:[#allocation3 + $0x167] ss:$2 sm:$0xff]  ;;  %v2348_v58 = vld [vmem:[#allocation3 + $0x168] ss:$2 sm:$0xff] }
 0x379   : > { %2279 = vst [vmem:[#allocation3 + $0x188] sm:$0xff] %v2203_v34  ;;  %v2372_v14 = vmax.f32 %v2312_v1, %v2348_v58  ;;  %v2402_v62 = vld [vmem:[#allocation3 + $0x169] ss:$2 sm:$0xff]  ;;  %v11314_v1 = vld [vmem:[#allocation30_spill] sm:$0xff] }
 0x37a   : > { %6828 = vrcp.f32 %v2521_v36  ;;  %v2596_v15 = vand.u32 2147483648, %v2521_v36  ;;  %v2594_v53 = vand.u32 2147483647, %v2521_v36  ;;  %vm2590_vm1 = vweird.f32 %v2521_v36 }
 0x37b   : > { %v2426_v4 = vmax.f32 %v2372_v14, %v2402_v62 }
 0x37c   : > { %v2118_v23 = vpop.f32.mrf.mxu0  ;;  %v2597_v28 = vor.u32 1.1754944e-38, %v2596_v15  ;;  %vm2595_vm3 = vcmp.eq.f32.partialorder %v2594_v53, 8.507059e+37  ;;  %v11316_v53 = vld [vmem:[#allocation31_spill] sm:$0xff] }
 0x37d   : > { %v2168_v61 = vadd.f32 %v2118_v23, %v1974_v29  ;;  %v2473_v5 = vmax.f32 %v8294_v3, %v2426_v4  ;;  %v6294_v3 = vld [vmem:[%s11258_s3 + $0x1f8] sm:$0xff]  ;;  %v1783_v29 = vadd.f32 %v1739_v59, %v1588_v6 }
 0x37e   : > { %2942 = vmatpush.msrb.mxu1 %v6294_v3  ;;  %v6320_v3 = vld [vmem:[%s11258_s3 + $0x2c8] sm:$0xff] }
 0x37f   : > { %v2204_v9 = vadd.f32 %v8317_v60, %v2168_v61  ;;  %v6324_v61 = vld [vmem:[%s11258_s3 + $0x2e8] sm:$0xff]  ;;  %v1977_v48 = vadd.f32 %v1933_v63, %v1783_v29 }
 0x380   : > { %v6829_v37 = vpop.eup %6828  ;;  %3092 = vmatpush.msrb.mxu3 %v6324_v61 }
 0x381   : > { %2280 = vst [vmem:[#allocation3 + $0x190] sm:$0xff] %v2204_v9  ;;  %v2586_v42 = vmul.f32 %v6829_v37, %v2521_v36  ;;  %vm2591_vm0 = vweird.f32 %v6829_v37  ;;  %v6293_v36 = vld [vmem:[%s11258_s3 + $0x1f0] sm:$0xff]  ;;  %v11313_v9 = vld [vmem:[#allocation16_spill] sm:$0xff] }
 0x382   : > { %vm2592_vm2 = vmor %vm2590_vm1, %vm2591_vm0  ;;  %v1395_v58 = vadd.f32 %v11314_v1, %v11313_v9  ;;  %2943 = vmatpush.msrb.mxu1 %v6293_v36  ;;  %3093 = vmatpush.msrb.mxu3 %v6323_v56  ;;  %v6303_v36 = vld [vmem:[%s11258_s3 + $0x240] sm:$0xff] }
 0x383   : > { %v2587_v18 = vsub.f32 1.0, %v2586_v42 }
 0x384   : > { %v2121_v44 = vpop.f32.mrf.mxu0  ;;  %2944 = vmatpush.msrb.mxu1 %v6292_v10  ;;  %v1589_v42 = vadd.f32 %v1547_v16, %v1395_v58  ;;  %3094 = vmatpush.msrb.mxu3 %v6322_v51  ;;  %v6302_v51 = vld [vmem:[%s11258_s3 + $0x238] sm:$0xff] }
 0x385   : > { %v2169_v27 = vadd.f32 %v2121_v44, %v1975_v40  ;;  %v2588_v43 = vmul.f32 %v6829_v37, %v2587_v18  ;;  %v1550_v40 = vpop.f32.mrf.mxu1 }
 0x386   : > { %v1784_v21 = vadd.f32 %v1742_v22, %v1589_v42  ;;  %2945 = vmatpush.msrb.mxu1 %v6291_v8  ;;  %v11317_v22 = vld [vmem:[#allocation18_spill] sm:$0xff] }
 0x387   : > { %v2205_v32 = vadd.f32 %v8317_v60, %v2169_v27  ;;  %v2589_v26 = vadd.f32 %v6829_v37, %v2588_v43  ;;  %v1745_v27 = vpop.f32.mrf.mxu2  ;;  %v11315_v43 = vld [vmem:[#allocation17_spill] sm:$0xff] }
 0x388   : > { %v2314_v46 = vld [vmem:[#allocation3 + $0x187] ss:$2 sm:$0xff]  ;;  %v2350_v35 = vld [vmem:[#allocation3 + $0x188] ss:$2 sm:$0xff]  ;;  %v1396_v47 = vadd.f32 %v11316_v53, %v11315_v43 }
 0x389   : > { %v2373_v24 = vmax.f32 %v2314_v46, %v2350_v35  ;;  %2281 = vst [vmem:[#allocation3 + $0x1a8] sm:$0xff] %v2205_v32  ;;  %v2404_v25 = vld [vmem:[#allocation3 + $0x189] ss:$2 sm:$0xff]  ;;  %v2593_v41 = vsel %vm2592_vm2, %v6829_v37, %v2589_v26  ;;  %v1936_v37 = vpop.f32.mrf.mxu3  ;;  %v11319_v43 = vld [vmem:[#allocation19_spill] sm:$0xff] }
 0x38a   : > { %v2598_v30 = vsel %vm2595_vm3, %v2597_v28, %v2593_v41  ;;  %v1978_v63 = vadd.f32 %v1936_v37, %v1784_v21  ;;  %v1590_v35 = vadd.f32 %v1550_v40, %v1396_v47  ;;  %v6305_v41 = vld [vmem:[%s11258_s3 + $0x250] sm:$0xff] }
 0x38b   : > { %v8329_v11 = vmax.f32 %v2373_v24, %v2404_v25  ;;  %v8332_v49 = vmul.f32 %v2598_v30, %v8300_v33  ;;  %v6309_v33 = vld [vmem:[%s11258_s3 + $0x270] sm:$0xff]  ;;  %v6290_v25 = vld [vmem:[%s11258_s3 + $0x1d8] sm:$0xff] }
 0x38c   : > { %v2124_v52 = vpop.f32.mrf.mxu0  ;;  %3017 = vmatpush.msrb.mxu2 %v6309_v33  ;;  %v1785_v16 = vadd.f32 %v1745_v27, %v1590_v35  ;;  %v6289_v30 = vld [vmem:[%s11258_s3 + $0x1d0] sm:$0xff]  ;;  %2946 = vmatpush.msrb.mxu1 %v6290_v25 }
 0x38d   : > { %v2170_v34 = vadd.f32 %v2124_v52, %v1976_v0  ;;  %v8344_v31 = vmax.f32 %v2473_v5, %v8329_v11  ;;  %2708 = vst [vmem:[#allocation5 + $0x80] sm:$0xff] %v8332_v49  ;;  %2792 = vmatmul.f32.gmra.mxu1 %v8332_v49  ;;  %v1553_v24 = vpop.f32.mrf.mxu1  ;;  %v6321_v0 = vld [vmem:[%s11258_s3 + $0x2d0] sm:$0xff]  ;;  %v6304_v52 = vld [vmem:[%s11258_s3 + $0x248] sm:$0xff] }
 0x38e   : > { %3018 = vmatpush.msrb.mxu2 %v6308_v7  ;;  %3095 = vmatpush.msrb.mxu3 %v6321_v0  ;;  %v11320_v53 = vld [vmem:[#allocation33_spill] sm:$0xff] }
 0x38f   : > { %v2206_v23 = vadd.f32 %v8317_v60, %v2170_v34  ;;  %v6244_v55 = vmul.f32 -1.442695, %v8344_v31  ;;  %v11318_v34 = vld [vmem:[#allocation32_spill] sm:$0xff]  ;;  %v1748_v17 = vpop.f32.mrf.mxu2  ;;  %2947 = vmatpush.msrb.mxu1 %v6289_v30  ;;  %v1398_v47 = vadd.f32 %v11320_v53, %v11319_v43  ;;  %v6317_v25 = vld [vmem:[%s11258_s3 + $0x2b0] sm:$0xff] }
 0x390   : > { %3019 = vmatpush.msrb.mxu2 %v6307_v57  ;;  %v1397_v20 = vadd.f32 %v11318_v34, %v11317_v22  ;;  %3096 = vmatpush.msrb.mxu3 %v6320_v3  ;;  %v6300_v30 = vld [vmem:[%s11258_s3 + $0x228] sm:$0xff]  ;;  %v6299_v3 = vld [vmem:[%s11258_s3 + $0x220] sm:$0xff] }
 0x391   : > { %2282 = vst [vmem:[#allocation3 + $0x1b0] sm:$0xff] %v2206_v23  ;;  %6830 = vpow2.f32 %v6244_v55  ;;  %v1939_v4 = vpop.f32.mrf.mxu3  ;;  %v6319_v23 = vld [vmem:[%s11258_s3 + $0x2c0] sm:$0xff]  ;;  %2948 = vmatpush.msrb.mxu1 %v6288_v2  ;;  %v11321_v2 = vld [vmem:[#allocation20_spill] sm:$0xff] }
 0x392   : > { %3020 = vmatpush.msrb.mxu2 %v6306_v54  ;;  %v1979_v7 = vadd.f32 %v1939_v4, %v1785_v16  ;;  %v1591_v61 = vadd.f32 %v1553_v24, %v1397_v20  ;;  %3097 = vmatpush.msrb.mxu3 %v6319_v23  ;;  %v6287_v54 = vld [vmem:[%s11258_s3 + $0x1c0] sm:$0xff]  ;;  %v6318_v24 = vld [vmem:[%s11258_s3 + $0x2b8] sm:$0xff]  ;;  %v6312_v43 = vld [vmem:[%s11258_s3 + $0x288] sm:$0xff] }
 0x393   : > { %2949 = vmatpush.msrb.mxu1 %v6287_v54  ;;  %v6283_v23 = vld [vmem:[%s11258_s3 + $0x1a0] sm:$0xff]  ;;  %v6374_v54 = vld [vmem:[%s11258_s3 + $0x478] sm:$0xff] }
 0x394   : > { %v2127_v45 = vpop.f32.mrf.mxu0  ;;  %v8376_v14 = vld [vmem:[#allocation5 + $0x7f] sm:$0xff]  ;;  %3021 = vmatpush.msrb.mxu2 %v6305_v41  ;;  %3098 = vmatpush.msrb.mxu3 %v6318_v24 }
 0x395   : > { %v2171_v59 = vadd.f32 %v2127_v45, %v1977_v48  ;;  %v8378_v44 = vld [vmem:[#allocation5 + $0x81] sm:$0xff]  ;;  %2833 = vmatmul.f32.gmra.mxu2 %v8376_v14  ;;  %v1786_v45 = vadd.f32 %v1748_v17, %v1591_v61  ;;  %v1556_v21 = vpop.f32.mrf.mxu1  ;;  %v6342_v24 = vld [vmem:[%s11258_s3 + $0x378] sm:$0xff] }
 0x396   : > { %2899 = vmatmul.f32.gmra.mxu3 %v8378_v44  ;;  %3022 = vmatpush.msrb.mxu2 %v6304_v52  ;;  %v1592_v0 = vadd.f32 %v1556_v21, %v1398_v47  ;;  %v6284_v17 = vld [vmem:[%s11258_s3 + $0x1a8] sm:$0xff] }
 0x397   : > { %v6831_v18 = vpop.eup %6830  ;;  %v2207_v15 = vadd.f32 %v8317_v60, %v2171_v59  ;;  %3099 = vmatpush.msrb.mxu3 %v6317_v25 }
 0x398   : > { %v8383_v62 = vadd.f32 1.0, %v6831_v18  ;;  %v2316_v26 = vld [vmem:[#allocation3 + $0x1a7] ss:$2 sm:$0xff]  ;;  %v2352_v5 = vld [vmem:[#allocation3 + $0x1a8] ss:$2 sm:$0xff]  ;;  %3023 = vmatpush.msrb.mxu2 %v6303_v36  ;;  %v11322_v36 = vld [vmem:[#allocation34_spill] sm:$0xff] }
 0x399   : > { %2283 = vst [vmem:[#allocation3 + $0x1c8] sm:$0xff] %v2207_v15  ;;  %v2374_v29 = vmax.f32 %v2316_v26, %v2352_v5  ;;  %v1942_v10 = vpop.f32.mrf.mxu3  ;;  %v2406_v58 = vld [vmem:[#allocation3 + $0x1a9] ss:$2 sm:$0xff] }
 0x39a   : > { %6832 = vrcp.f32 %v8383_v62  ;;  %v2611_v1 = vand.u32 2147483648, %v8383_v62  ;;  %v2609_v56 = vand.u32 2147483647, %v8383_v62  ;;  %vm2605_vm5 = vweird.f32 %v8383_v62  ;;  %3024 = vmatpush.msrb.mxu2 %v6302_v51  ;;  %v6285_v5 = vld [vmem:[%s11258_s3 + $0x1b0] sm:$0xff] }
 0x39b   : > { %v2428_v48 = vmax.f32 %v2374_v29, %v2406_v58  ;;  %v1980_v8 = vadd.f32 %v1942_v10, %v1786_v45  ;;  %v1399_v29 = vadd.f32 %v11322_v36, %v11321_v2  ;;  %v6314_v10 = vld [vmem:[%s11258_s3 + $0x298] sm:$0xff]  ;;  %v6371_v2 = vld [vmem:[%s11258_s3 + $0x460] sm:$0xff] }
 0x39c   : > { %v2130_v32 = vpop.f32.mrf.mxu0  ;;  %v2612_v15 = vor.u32 1.1754944e-38, %v2611_v1  ;;  %vm2610_vm7 = vcmp.eq.f32.partialorder %v2609_v56, 8.507059e+37  ;;  %v6297_v56 = vld [vmem:[%s11258_s3 + $0x210] sm:$0xff] }
 0x39d   : > { %v2172_v46 = vadd.f32 %v2130_v32, %v1978_v63  ;;  %v1751_v32 = vpop.f32.mrf.mxu2 }
 0x39e   : > { %v1787_v34 = vadd.f32 %v1751_v32, %v1592_v0  ;;  %v6311_v32 = vld [vmem:[%s11258_s3 + $0x280] sm:$0xff] }
 0x39f   : > { %v2208_v28 = vadd.f32 %v8317_v60, %v2172_v46  ;;  %v2474_v46 = vmax.f32 %v8329_v11, %v2428_v48 }
 0x3a0   : > { %v6833_v6 = vpop.eup %6832 }
 0x3a1   : > { %2284 = vst [vmem:[#allocation3 + $0x1d0] sm:$0xff] %v2208_v28  ;;  %v2601_v33 = vmul.f32 %v6833_v6, %v8383_v62  ;;  %vm2606_vm4 = vweird.f32 %v6833_v6  ;;  %v6301_v28 = vld [vmem:[%s11258_s3 + $0x230] sm:$0xff]  ;;  %v1945_v52 = vpop.f32.mrf.mxu3 }
 0x3a2   : > { %vm2607_vm6 = vmor %vm2605_vm5, %vm2606_vm4  ;;  %3025 = vmatpush.msrb.mxu2 %v6301_v28  ;;  %v1981_v61 = vadd.f32 %v1945_v52, %v1787_v34 }
 0x3a3   : > { %v2602_v55 = vsub.f32 1.0, %v2601_v33  ;;  %v6315_v33 = vld [vmem:[%s11258_s3 + $0x2a0] sm:$0xff] }
 0x3a4   : > { %v2133_v9 = vpop.f32.mrf.mxu0  ;;  %3026 = vmatpush.msrb.mxu2 %v6300_v30 }
 0x3a5   : > { %v2173_v37 = vadd.f32 %v2133_v9, %v1979_v7  ;;  %v2603_v57 = vmul.f32 %v6833_v6, %v2602_v55  ;;  %v6298_v7 = vld [vmem:[%s11258_s3 + $0x218] sm:$0xff]  ;;  %v1559_v55 = vpop.f32.mrf.mxu1  ;;  %v1754_v1 = vpop.f32.mrf.mxu2 }
 0x3a6   : > { %3027 = vmatpush.msrb.mxu2 %v6299_v3  ;;  %v6282_v9 = vld [vmem:[%s11258_s3 + $0x198] sm:$0xff]  ;;  %v1593_v48 = vadd.f32 %v1559_v55, %v1399_v29  ;;  %v6340_v3 = vld [vmem:[%s11258_s3 + $0x368] sm:$0xff] }
 0x3a7   : > { %v2209_v59 = vadd.f32 %v8317_v60, %v2173_v37  ;;  %v2604_v18 = vadd.f32 %v6833_v6, %v2603_v57 }
 0x3a8   : > { %v2318_v42 = vld [vmem:[#allocation3 + $0x1c7] ss:$2 sm:$0xff]  ;;  %v2354_v40 = vld [vmem:[#allocation3 + $0x1c8] ss:$2 sm:$0xff]  ;;  %3028 = vmatpush.msrb.mxu2 %v6298_v7  ;;  %v1788_v21 = vadd.f32 %v1754_v1, %v1593_v48 }
 0x3a9   : > { %v2375_v27 = vmax.f32 %v2318_v42, %v2354_v40  ;;  %v2408_v63 = vld [vmem:[#allocation3 + $0x1c9] ss:$2 sm:$0xff]  ;;  %2285 = vst [vmem:[#allocation3 + $0x1e8] sm:$0xff] %v2209_v59  ;;  %v2608_v4 = vsel %vm2607_vm6, %v6833_v6, %v2604_v18  ;;  %v1948_v53 = vpop.f32.mrf.mxu3 }
 0x3aa   : > { %v2613_v26 = vsel %vm2610_vm7, %v2612_v15, %v2608_v4  ;;  %v6316_v6 = vld [vmem:[%s11258_s3 + $0x2a8] sm:$0xff]  ;;  %v6313_v42 = vld [vmem:[%s11258_s3 + $0x290] sm:$0xff]  ;;  %3029 = vmatpush.msrb.mxu2 %v6297_v56  ;;  %v1982_v47 = vadd.f32 %v1948_v53, %v1788_v21  ;;  %v6295_v4 = vld [vmem:[%s11258_s3 + $0x200] sm:$0xff] }
 0x3ab   : > { %v8435_v35 = vmax.f32 %v2375_v27, %v2408_v63  ;;  %v8438_v62 = vmul.f32 %v2613_v26, %v8344_v31  ;;  %v6286_v31 = vld [vmem:[%s11258_s3 + $0x1b8] sm:$0xff]  ;;  %3100 = vmatpush.msrb.mxu3 %v6316_v6  ;;  %v6281_v40 = vld [vmem:[%s11258_s3 + $0x190] sm:$0xff]  ;;  %v6296_v18 = vld [vmem:[%s11258_s3 + $0x208] sm:$0xff] }
 0x3ac   : > { %v2136_v11 = vpop.f32.mrf.mxu0  ;;  %2950 = vmatpush.msrb.mxu1 %v6286_v31  ;;  %3030 = vmatpush.msrb.mxu2 %v6296_v18  ;;  %v6280_v63 = vld [vmem:[%s11258_s3 + $0x188] sm:$0xff]  ;;  %v6279_v26 = vld [vmem:[%s11258_s3 + $0x180] sm:$0xff]  ;;  %v6373_v31 = vld [vmem:[%s11258_s3 + $0x470] sm:$0xff] }
 0x3ad   : > { %v8459_v41 = vmax.f32 %v2474_v46, %v8435_v35  ;;  %v2174_v16 = vadd.f32 %v2136_v11, %v1980_v8  ;;  %2709 = vst [vmem:[#allocation5 + $0x98] sm:$0xff] %v8438_v62  ;;  %2795 = vmatmul.f32.gmra.mxu1 %v8438_v62  ;;  %3101 = vmatpush.msrb.mxu3 %v6315_v33  ;;  %v6358_v8 = vld [vmem:[%s11258_s3 + $0x3f8] sm:$0xff]  ;;  %v6357_v11 = vld [vmem:[%s11258_s3 + $0x3f0] sm:$0xff]  ;;  %v6355_v33 = vld [vmem:[%s11258_s3 + $0x3e0] sm:$0xff] }
 0x3ae   : > { %2951 = vmatpush.msrb.mxu1 %v6285_v5  ;;  %3031 = vmatpush.msrb.mxu2 %v6295_v4  ;;  %v6369_v18 = vld [vmem:[%s11258_s3 + $0x450] sm:$0xff]  ;;  %v6972_v4 = vld [vmem:[#allocation5 + $0x1f] sm:$0xff] }
 0x3af   : > { %v6245_v22 = vmul.f32 -1.442695, %v8459_v41  ;;  %v2210_v20 = vadd.f32 %v8317_v60, %v2174_v16  ;;  %3102 = vmatpush.msrb.mxu3 %v6314_v10  ;;  %v6337_v53 = vld [vmem:[%s11258_s3 + $0x350] sm:$0xff] }
 0x3b0   : > { %2952 = vmatpush.msrb.mxu1 %v6284_v17  ;;  %3239 = vmatpush.msra.mxu2 %v6358_v8  ;;  %v6372_v17 = vld [vmem:[%s11258_s3 + $0x468] sm:$0xff]  ;;  %v6351_v8 = vld [vmem:[%s11258_s3 + $0x3c0] sm:$0xff] }
 0x3b1   : > { %6834 = vpow2.f32 %v6245_v22  ;;  %2286 = vst [vmem:[#allocation3 + $0x1f0] sm:$0xff] %v2210_v20  ;;  %3103 = vmatpush.msrb.mxu3 %v6313_v42  ;;  %v6356_v20 = vld [vmem:[%s11258_s3 + $0x3e8] sm:$0xff]  ;;  %v6339_v42 = vld [vmem:[%s11258_s3 + $0x360] sm:$0xff] }
 0x3b2   : > { %2953 = vmatpush.msrb.mxu1 %v6283_v23  ;;  %3240 = vmatpush.msra.mxu2 %v6357_v11  ;;  %v6350_v11 = vld [vmem:[%s11258_s3 + $0x3b8] sm:$0xff] }
 0x3b3   : > { %3104 = vmatpush.msrb.mxu3 %v6312_v43 }
 0x3b4   : > { %v2139_v58 = vpop.f32.mrf.mxu0  ;;  %v8497_v37 = vld [vmem:[#allocation5 + $0x97] sm:$0xff]  ;;  %2954 = vmatpush.msrb.mxu1 %v6282_v9  ;;  %3241 = vmatpush.msra.mxu2 %v6356_v20 }
 0x3b5   : > { %v8499_v57 = vld [vmem:[#allocation5 + $0x99] sm:$0xff]  ;;  %v2175_v45 = vadd.f32 %v2139_v58, %v1981_v61  ;;  %2836 = vmatmul.f32.gmra.mxu2 %v8497_v37  ;;  %3105 = vmatpush.msrb.mxu3 %v6311_v32  ;;  %v6333_v20 = vld [vmem:[%s11258_s3 + $0x330] sm:$0xff] }
 0x3b6   : > { %2902 = vmatmul.f32.gmra.mxu3 %v8499_v57  ;;  %2955 = vmatpush.msrb.mxu1 %v6281_v40  ;;  %v6354_v40 = vld [vmem:[%s11258_s3 + $0x3d8] sm:$0xff] }
 0x3b7   : > { %v6835_v59 = vpop.eup %6834  ;;  %v2211_v27 = vadd.f32 %v8317_v60, %v2175_v45  ;;  %3313 = vmatpush.msra.mxu3 %v6374_v54  ;;  %3242 = vmatpush.msra.mxu2 %v6355_v33  ;;  %v6367_v54 = vld [vmem:[%s11258_s3 + $0x440] sm:$0xff] }
 0x3b8   : > { %v8516_v15 = vadd.f32 1.0, %v6835_v59  ;;  %2956 = vmatpush.msrb.mxu1 %v6280_v63  ;;  %v2320_v0 = vld [vmem:[#allocation3 + $0x1e7] ss:$2 sm:$0xff]  ;;  %v2356_v16 = vld [vmem:[#allocation3 + $0x1e8] ss:$2 sm:$0xff] }
 0x3b9   : > { %2287 = vst [vmem:[#allocation3 + $0x208] sm:$0xff] %v2211_v27  ;;  %3314 = vmatpush.msra.mxu3 %v6373_v31  ;;  %v2376_v52 = vmax.f32 %v2320_v0, %v2356_v16  ;;  %v2410_v36 = vld [vmem:[#allocation3 + $0x1e9] ss:$2 sm:$0xff]  ;;  %3243 = vmatpush.msra.mxu2 %v6354_v40  ;;  %v6430_v16 = vld [vmem:[%s11260_s5 + $0x1f8] sm:$0xff] }
 0x3ba   : > { %6836 = vrcp.f32 %v8516_v15  ;;  %2957 = vmatpush.msrb.mxu1 %v6279_v26  ;;  %v2626_v6 = vand.u32 2147483648, %v8516_v15  ;;  %v2624_v34 = vand.u32 2147483647, %v8516_v15  ;;  %vm2620_vm9 = vweird.f32 %v8516_v15  ;;  %v6353_v59 = vld [vmem:[%s11258_s3 + $0x3d0] sm:$0xff]  ;;  %v6368_v63 = vld [vmem:[%s11258_s3 + $0x448] sm:$0xff]  ;;  %3773 = vmatpush.msrb.mxu0 %v6430_v16 }
 0x3bb   : > { %3315 = vmatpush.msra.mxu3 %v6372_v17  ;;  %v2430_v23 = vmax.f32 %v2376_v52, %v2410_v36  ;;  %3244 = vmatpush.msra.mxu2 %v6353_v59  ;;  %v6336_v26 = vld [vmem:[%s11258_s3 + $0x348] sm:$0xff]  ;;  %v6975_v31 = vld [vmem:[#allocation5 + $0x37] sm:$0xff]  ;;  %v6347_v36 = vld [vmem:[%s11258_s3 + $0x3a0] sm:$0xff] }
 0x3bc   : > { %v2142_v46 = vpop.f32.mrf.mxu0  ;;  %3165 = vmatpush.msra.mxu1 %v6342_v24  ;;  %v2627_v7 = vor.u32 1.1754944e-38, %v2626_v6  ;;  %vm2625_vm11 = vcmp.eq.f32.partialorder %v2624_v34, 8.507059e+37  ;;  %v6974_v24 = vld [vmem:[#allocation5 + $0x21] sm:$0xff]  ;;  %v6349_v0 = vld [vmem:[%s11258_s3 + $0x3b0] sm:$0xff]  ;;  %v6976_v34 = vld [vmem:[#allocation5 + $0x38] sm:$0xff] }
 0x3bd   : > { %v2176_v51 = vadd.f32 %v2142_v46, %v1982_v47  ;;  %3316 = vmatpush.msra.mxu3 %v6371_v2  ;;  %v2475_v48 = vmax.f32 %v8435_v35, %v2430_v23  ;;  %v6338_v35 = vld [vmem:[%s11258_s3 + $0x358] sm:$0xff]  ;;  %v6352_v47 = vld [vmem:[%s11258_s3 + $0x3c8] sm:$0xff]  ;;  %v6329_v40 = vld [vmem:[%s11258_s3 + $0x310] sm:$0xff] }
 0x3be   : > { %3245 = vmatpush.msra.mxu2 %v6352_v47  ;;  %v6348_v17 = vld [vmem:[%s11258_s3 + $0x3a8] sm:$0xff] }
 0x3bf   : > { %v2212_v25 = vadd.f32 %v8317_v60, %v2176_v51  ;;  %v6341_v60 = vld [vmem:[%s11258_s3 + $0x370] sm:$0xff]  ;;  %v6973_v51 = vld [vmem:[#allocation5 + $0x20] sm:$0xff]  ;;  %v6332_v2 = vld [vmem:[%s11258_s3 + $0x328] sm:$0xff] }
 0x3c0   : > { %v6837_v28 = vpop.eup %6836  ;;  %3166 = vmatpush.msra.mxu1 %v6341_v60  ;;  %3246 = vmatpush.msra.mxu2 %v6351_v8  ;;  %v6977_v60 = vld [vmem:[#allocation5 + $0x39] sm:$0xff]  ;;  %v6328_v59 = vld [vmem:[%s11258_s3 + $0x308] sm:$0xff] }
 0x3c1   : > { %v2616_v5 = vmul.f32 %v6837_v28, %v8516_v15  ;;  %2288 = vst [vmem:[#allocation3 + $0x210] sm:$0xff] %v2212_v25  ;;  %vm2621_vm8 = vweird.f32 %v6837_v28  ;;  %v6366_v25 = vld [vmem:[%s11258_s3 + $0x438] sm:$0xff] }
 0x3c2   : > { %vm2622_vm10 = vmor %vm2620_vm9, %vm2621_vm8  ;;  %3167 = vmatpush.msra.mxu1 %v6340_v3  ;;  %3247 = vmatpush.msra.mxu2 %v6350_v11  ;;  %v6364_v3 = vld [vmem:[%s11258_s3 + $0x428] sm:$0xff]  ;;  %v3214_v8 = vld [vmem:[#allocation5 + $0x38] sm:$0xff]  ;;  %v8740_v11 = vpop.f32.mrf.mxu3 }
 0x3c3   : > { %v2617_v30 = vsub.f32 1.0, %v2616_v5  ;;  %v6334_v5 = vld [vmem:[%s11258_s3 + $0x338] sm:$0xff] }
 0x3c4   : > { %3168 = vmatpush.msra.mxu1 %v6339_v42  ;;  %3248 = vmatpush.msra.mxu2 %v6349_v0  ;;  %v6429_v42 = vld [vmem:[%s11260_s5 + $0x1f0] sm:$0xff] }
 0x3c5   : > { %v2618_v22 = vmul.f32 %v6837_v28, %v2617_v30  ;;  %v6365_v30 = vld [vmem:[%s11258_s3 + $0x430] sm:$0xff]  ;;  %3774 = vmatpush.msrb.mxu0 %v6429_v42  ;;  %v6395_v42 = vld [vmem:[%s11260_s5 + $0xe0] sm:$0xff] }
 0x3c6   : > { %3169 = vmatpush.msra.mxu1 %v6338_v35  ;;  %3249 = vmatpush.msra.mxu2 %v6348_v17  ;;  %v6360_v35 = vld [vmem:[%s11258_s3 + $0x408] sm:$0xff]  ;;  %v6980_v0 = vld [vmem:[#allocation5 + $0x51] sm:$0xff] }
 0x3c7   : > { %v2619_v29 = vadd.f32 %v6837_v28, %v2618_v22 }
 0x3c8   : > { %v2322_v55 = vld [vmem:[#allocation3 + $0x207] ss:$2 sm:$0xff]  ;;  %v2358_v61 = vld [vmem:[#allocation3 + $0x208] ss:$2 sm:$0xff]  ;;  %3170 = vmatpush.msra.mxu1 %v6337_v53  ;;  %3250 = vmatpush.msra.mxu2 %v6347_v36 }
 0x3c9   : > { %v2623_v10 = vsel %vm2622_vm10, %v6837_v28, %v2619_v29  ;;  %v2377_v9 = vmax.f32 %v2322_v55, %v2358_v61  ;;  %v2412_v58 = vld [vmem:[#allocation3 + $0x209] ss:$2 sm:$0xff]  ;;  %v6335_v28 = vld [vmem:[%s11258_s3 + $0x340] sm:$0xff] }
 0x3ca   : > { %v2628_v1 = vsel %vm2625_vm11, %v2627_v7, %v2623_v10  ;;  %3171 = vmatpush.msra.mxu1 %v6336_v26  ;;  %v6363_v29 = vld [vmem:[%s11258_s3 + $0x420] sm:$0xff] }
 0x3cb   : > { %v8574_v56 = vmul.f32 %v2628_v1, %v8459_v41  ;;  %v2431_v45 = vmax.f32 %v2377_v9, %v2412_v58  ;;  %v6370_v41 = vld [vmem:[%s11258_s3 + $0x458] sm:$0xff]  ;;  %v6331_v1 = vld [vmem:[%s11258_s3 + $0x320] sm:$0xff] }
 0x3cc   : > { %3317 = vmatpush.msra.mxu3 %v6370_v41  ;;  %3172 = vmatpush.msra.mxu1 %v6335_v28  ;;  %v6346_v58 = vld [vmem:[%s11258_s3 + $0x398] sm:$0xff]  ;;  %v6344_v41 = vld [vmem:[%s11258_s3 + $0x388] sm:$0xff]  ;;  %v6327_v53 = vld [vmem:[%s11258_s3 + $0x300] sm:$0xff] }
 0x3cd   : > { %2710 = vst [vmem:[#allocation5 + $0xb0] sm:$0xff] %v8574_v56  ;;  %2798 = vmatmul.f32.gmra.mxu1 %v8574_v56  ;;  %v8597_v21 = vmax.f32 %v2475_v48, %v2431_v45  ;;  %v6362_v48 = vld [vmem:[%s11258_s3 + $0x418] sm:$0xff]  ;;  %3251 = vmatpush.msra.mxu2 %v6346_v58  ;;  %v6361_v45 = vld [vmem:[%s11258_s3 + $0x410] sm:$0xff] }
 0x3ce   : > { %3318 = vmatpush.msra.mxu3 %v6369_v18  ;;  %3173 = vmatpush.msra.mxu1 %v6334_v5  ;;  %v6343_v18 = vld [vmem:[%s11258_s3 + $0x380] sm:$0xff]  ;;  %v8747_v5 = vpop.f32.mrf.mxu3  ;;  %v6397_v58 = vld [vmem:[%s11260_s5 + $0xf0] sm:$0xff] }
 0x3cf   : > { %v6246_v27 = vmul.f32 -1.442695, %v8597_v21 }
 0x3d0   : > { %3319 = vmatpush.msra.mxu3 %v6368_v63  ;;  %3174 = vmatpush.msra.mxu1 %v6333_v20  ;;  %v6427_v63 = vld [vmem:[%s11260_s5 + $0x1e0] sm:$0xff] }
 0x3d1   : > { %6838 = vpow2.f32 %v6246_v27  ;;  %v6428_v27 = vld [vmem:[%s11260_s5 + $0x1e8] sm:$0xff] }
 0x3d2   : > { %3320 = vmatpush.msra.mxu3 %v6367_v54  ;;  %3175 = vmatpush.msra.mxu1 %v6332_v2  ;;  %v3288_v54 = vld [vmem:[#allocation5 + $0x39] sm:$0xff] }
 0x3d3   : > { %3775 = vmatpush.msrb.mxu0 %v6428_v27  ;;  %v6392_v27 = vld [vmem:[%s11260_s5 + $0xc8] sm:$0xff] }
 0x3d4   : > { %v8600_v15 = vld [vmem:[#allocation5 + $0xaf] sm:$0xff]  ;;  %3321 = vmatpush.msra.mxu3 %v6366_v25  ;;  %3176 = vmatpush.msra.mxu1 %v6331_v1 }
 0x3d5   : > { %v8602_v43 = vld [vmem:[#allocation5 + $0xb1] sm:$0xff]  ;;  %2839 = vmatmul.f32.gmra.mxu2 %v8600_v15  ;;  %2958 = vmatmul.f32.vlgmr.msrb.gmra.mxu1 %v6972_v4  ;;  %v8730_v4 = vpop.f32.mrf.mxu1 }
 0x3d6   : > { %2905 = vmatmul.f32.gmra.mxu3 %v8602_v43  ;;  %3776 = vmatpush.msrb.mxu0 %v6427_v63  ;;  %v6979_v25 = vld [vmem:[#allocation5 + $0x50] sm:$0xff] }
 0x3d7   : > { %v6839_v32 = vpop.eup %6838  ;;  %3322 = vmatpush.msra.mxu3 %v6365_v30 }
 0x3d8   : > { %v2524_v46 = vadd.f32 1.0, %v6839_v32 }
 0x3d9   : > { %3323 = vmatpush.msra.mxu3 %v6364_v3  ;;  %v3221_v3 = vld [vmem:[#allocation5 + $0xe0] sm:$0xff] }
 0x3da   : > { %6840 = vrcp.f32 %v2524_v46  ;;  %v2641_v33 = vand.u32 2147483648, %v2524_v46  ;;  %v2639_v7 = vand.u32 2147483647, %v2524_v46  ;;  %vm2635_vm13 = vweird.f32 %v2524_v46 }
 0x3db   : > { %3324 = vmatpush.msra.mxu3 %v6363_v29 }
 0x3dc   : > { %v2642_v55 = vor.u32 1.1754944e-38, %v2641_v33  ;;  %vm2640_vm15 = vcmp.eq.f32.partialorder %v2639_v7, 8.507059e+37 }
 0x3dd   : > { %3032 = vmatmul.f32.vlgmr.msrb.gmra.mxu2 %v6973_v51  ;;  %2961 = vmatmul.f32.gmra.mxu1 %v6975_v31  ;;  %v8733_v26 = vpop.f32.mrf.mxu1  ;;  %v6426_v51 = vld [vmem:[%s11260_s5 + $0x1d8] sm:$0xff]  ;;  %v6978_v31 = vld [vmem:[#allocation5 + $0x4f] sm:$0xff] }
 0x3de   : > { %3106 = vmatmul.f32.vlgmr.msrb.gmra.mxu3 %v6974_v24  ;;  %v8738_v24 = vpop.f32.mrf.mxu2  ;;  %3777 = vmatpush.msrb.mxu0 %v6426_v51 }
 0x3df   : > { %3325 = vmatpush.msra.mxu3 %v6362_v48  ;;  %v6396_v48 = vld [vmem:[%s11260_s5 + $0xe8] sm:$0xff] }
 0x3e0   : > { %v6841_v52 = vpop.eup %6840 }
 0x3e1   : > { %v2631_v6 = vmul.f32 %v6841_v52, %v2524_v46  ;;  %vm2636_vm12 = vweird.f32 %v6841_v52  ;;  %3326 = vmatpush.msra.mxu3 %v6361_v45  ;;  %v3140_v46 = vld [vmem:[#allocation5 + $0x37] sm:$0xff] }
 0x3e2   : > { %vm2637_vm14 = vmor %vm2635_vm13, %vm2636_vm12 }
 0x3e3   : > { %v2632_v22 = vsub.f32 1.0, %v2631_v6  ;;  %3327 = vmatpush.msra.mxu3 %v6360_v35 }
 0x3e5   : > { %3035 = vmatmul.f32.gmra.mxu2 %v6976_v34  ;;  %2964 = vmatmul.f32.gmra.mxu1 %v8275_v13  ;;  %v2633_v23 = vmul.f32 %v6841_v52, %v2632_v22  ;;  %v8742_v28 = vpop.f32.mrf.mxu1 }
 0x3e6   : > { %3109 = vmatmul.f32.gmra.mxu3 %v6977_v60  ;;  %v8745_v16 = vpop.f32.mrf.mxu2 }
 0x3e7   : > { %v2634_v13 = vadd.f32 %v6841_v52, %v2633_v23 }
 0x3e9   : > { %v2638_v61 = vsel %vm2637_vm14, %v6841_v52, %v2634_v13  ;;  %v6425_v52 = vld [vmem:[%s11260_s5 + $0x1d0] sm:$0xff] }
 0x3ea   : > { %v2643_v10 = vsel %vm2640_vm15, %v2642_v55, %v2638_v61  ;;  %3778 = vmatpush.msrb.mxu0 %v6425_v52  ;;  %v6422_v55 = vld [vmem:[%s11260_s5 + $0x1b8] sm:$0xff] }
 0x3eb   : > { %v8665_v9 = vmul.f32 %v2643_v10, %v8597_v21  ;;  %v6359_v21 = vld [vmem:[%s11258_s3 + $0x400] sm:$0xff]  ;;  %v6398_v61 = vld [vmem:[%s11260_s5 + $0xf8] sm:$0xff] }
 0x3ec   : > { %3328 = vmatpush.msra.mxu3 %v6359_v21  ;;  %v6393_v21 = vld [vmem:[%s11260_s5 + $0xd0] sm:$0xff]  ;;  %v3566_v52 = vld [vmem:[%s11260_s5 + $0x78] sm:$0xff] }
 0x3ed   : > { %3038 = vmatmul.f32.gmra.mxu2 %v8260_v38  ;;  %2967 = vmatmul.f32.gmra.mxu1 %v8308_v19  ;;  %v6330_v38 = vld [vmem:[%s11258_s3 + $0x318] sm:$0xff]  ;;  %2711 = vst [vmem:[#allocation5 + $0xc8] sm:$0xff] %v8665_v9  ;;  %v8749_v30 = vpop.f32.mrf.mxu1 }
 0x3ee   : > { %3112 = vmatmul.f32.gmra.mxu3 %v8277_v50  ;;  %v6345_v50 = vld [vmem:[%s11258_s3 + $0x390] sm:$0xff]  ;;  %3177 = vmatpush.msra.mxu1 %v6330_v38  ;;  %v8757_v6 = vpop.f32.mrf.mxu2 }
 0x3ef   : > { %3252 = vmatpush.msra.mxu2 %v6345_v50 }
 0x3f0   : > { %3178 = vmatpush.msra.mxu1 %v6329_v40  ;;  %v6421_v40 = vld [vmem:[%s11260_s5 + $0x1b0] sm:$0xff] }
 0x3f1   : > { %3253 = vmatpush.msra.mxu2 %v6344_v41  ;;  %v6394_v41 = vld [vmem:[%s11260_s5 + $0xd8] sm:$0xff] }
 0x3f2   : > { %3179 = vmatpush.msra.mxu1 %v6328_v59 }
 0x3f3   : > { %3254 = vmatpush.msra.mxu2 %v6343_v18 }
 0x3f4   : > { %3180 = vmatpush.msra.mxu1 %v6327_v53  ;;  %v2924_v47 = vld [vmem:[#allocation5 + $0xc7] sm:$0xff] }
 0x3f5   : > { %3041 = vmatmul.f32.gmra.mxu2 %v8297_v12  ;;  %2970 = vmatmul.f32.gmra.mxu1 %v8376_v14  ;;  %v3072_v32 = vld [vmem:[#allocation5 + $0xc9] sm:$0xff]  ;;  %v8761_v22 = vpop.f32.mrf.mxu1 }
 0x3f6   : > { %3115 = vmatmul.f32.gmra.mxu3 %v8310_v39  ;;  %3592 = vmatpush.msrb.mxu1 %v6398_v61  ;;  %v3563_v61 = vld [vmem:[%s11260_s5 + $0x60] sm:$0xff] }
 0x3f7   : > { %3633 = vmatpush.msrb.mxu2 %v3566_v52  ;;  %v6409_v52 = vld [vmem:[%s11260_s5 + $0x150] sm:$0xff] }
 0x3f8   : > { %3593 = vmatpush.msrb.mxu1 %v6397_v58  ;;  %v3562_v58 = vld [vmem:[%s11260_s5 + $0x58] sm:$0xff] }
 0x3fa   : > { %3594 = vmatpush.msrb.mxu1 %v6396_v48  ;;  %v6411_v48 = vld [vmem:[%s11260_s5 + $0x160] sm:$0xff] }
 0x3fc   : > { %3595 = vmatpush.msrb.mxu1 %v6395_v42 }
 0x3fd   : > { %3044 = vmatmul.f32.gmra.mxu2 %v8332_v49  ;;  %2973 = vmatmul.f32.gmra.mxu1 %v8497_v37 }
 0x3fe   : > { %3118 = vmatmul.f32.gmra.mxu3 %v8378_v44  ;;  %3596 = vmatpush.msrb.mxu1 %v6394_v41 }
 0x400   : > { %3597 = vmatpush.msrb.mxu1 %v6393_v21 }
 0x402   : > { %3598 = vmatpush.msrb.mxu1 %v6392_v27  ;;  %v2826_v27 = vadd.f32 %v8757_v6, %v8742_v28  ;;  %v3559_v6 = vld [vmem:[%s11260_s5 + $0x40] sm:$0xff] }
 0x405   : > { %3047 = vmatmul.f32.gmra.mxu2 %v8438_v62  ;;  %2976 = vmatmul.f32.gmra.mxu1 %v8600_v15 }
 0x406   : > { %3121 = vmatmul.f32.gmra.mxu3 %v8499_v57 }
 0x40a   : > { %v8770_v34 = vpop.f32.mrf.mxu1 }
 0x40d   : > { %3050 = vmatmul.f32.gmra.mxu2 %v8574_v56  ;;  %2979 = vmatmul.f32.gmra.mxu1 %v2924_v47 }
 0x40e   : > { %3124 = vmatmul.f32.gmra.mxu3 %v8602_v43 }
 0x415   : > { %3053 = vmatmul.f32.gmra.mxu2 %v8665_v9  ;;  %3181 = vmatmul.f32.vlgmr.msra.gmra.mxu1 %v3140_v46 }
 0x416   : > { %3127 = vmatmul.f32.gmra.mxu3 %v3072_v32 }
 0x41d   : > { %3255 = vmatmul.f32.vlgmr.msra.gmra.mxu2 %v3214_v8  ;;  %3184 = vmatmul.f32.gmra.mxu1 %v6978_v31  ;;  %v2820_v31 = vadd.f32 %v8738_v24, %v8730_v4  ;;  %v6414_v4 = vld [vmem:[%s11260_s5 + $0x178] sm:$0xff]  ;;  %v2823_v24 = vadd.f32 %v8745_v16, %v8733_v26  ;;  %v6412_v26 = vld [vmem:[%s11260_s5 + $0x168] sm:$0xff] }
 0x41e   : > { %3329 = vmatmul.f32.vlgmr.msra.gmra.mxu3 %v3288_v54 }
 0x41f   : > { %3699 = vmatpush.msrb.mxu3 %v6414_v4  ;;  %v2910_v16 = vadd.f32 %v8747_v5, %v2823_v24  ;;  %v3561_v5 = vld [vmem:[%s11260_s5 + $0x50] sm:$0xff] }
 0x425   : > { %3258 = vmatmul.f32.gmra.mxu2 %v6979_v25  ;;  %3187 = vmatmul.f32.gmra.mxu1 %v8308_v19  ;;  %v8759_v19 = vpop.f32.mrf.mxu3 }
 0x426   : > { %3332 = vmatmul.f32.gmra.mxu3 %v6980_v0  ;;  %v2909_v0 = vadd.f32 %v8740_v11, %v2820_v31 }
 0x42d   : > { %3261 = vmatmul.f32.gmra.mxu2 %v8297_v12  ;;  %3190 = vmatmul.f32.gmra.mxu1 %v8376_v14  ;;  %v8766_v12 = vpop.f32.mrf.mxu2 }
 0x42e   : > { %3335 = vmatmul.f32.gmra.mxu3 %v8310_v39  ;;  %v8768_v39 = vpop.f32.mrf.mxu3 }
 0x435   : > { %3264 = vmatmul.f32.gmra.mxu2 %v8332_v49  ;;  %3193 = vmatmul.f32.gmra.mxu1 %v8497_v37  ;;  %v8775_v14 = vpop.f32.mrf.mxu2  ;;  %v8779_v49 = vpop.f32.mrf.mxu1 }
 0x436   : > { %3338 = vmatmul.f32.gmra.mxu3 %v8378_v44  ;;  %v8777_v60 = vpop.f32.mrf.mxu3  ;;  %v6424_v44 = vld [vmem:[%s11260_s5 + $0x1c8] sm:$0xff] }
 0x437   : > { %3779 = vmatpush.msrb.mxu0 %v6424_v44 }
 0x43d   : > { %3267 = vmatmul.f32.gmra.mxu2 %v8438_v62  ;;  %3196 = vmatmul.f32.gmra.mxu1 %v8600_v15  ;;  %v8786_v62 = vpop.f32.mrf.mxu2  ;;  %v3147_v15 = vld [vmem:[#allocation5 + $0xdf] sm:$0xff] }
 0x43e   : > { %3341 = vmatmul.f32.gmra.mxu3 %v8499_v57  ;;  %v8788_v37 = vpop.f32.mrf.mxu3 }
 0x445   : > { %3270 = vmatmul.f32.gmra.mxu2 %v8574_v56  ;;  %3199 = vmatmul.f32.gmra.mxu1 %v2924_v47  ;;  %v8793_v20 = vpop.f32.mrf.mxu2  ;;  %v3295_v56 = vld [vmem:[#allocation5 + $0xe1] sm:$0xff] }
 0x446   : > { %3344 = vmatmul.f32.gmra.mxu3 %v8602_v43  ;;  %v8795_v17 = vpop.f32.mrf.mxu3  ;;  %v6423_v43 = vld [vmem:[%s11260_s5 + $0x1c0] sm:$0xff] }
 0x447   : > { %3780 = vmatpush.msrb.mxu0 %v6423_v43  ;;  %v6413_v43 = vld [vmem:[%s11260_s5 + $0x170] sm:$0xff] }
 0x448   : > { %3700 = vmatpush.msrb.mxu3 %v6413_v43  ;;  %v6390_v43 = vld [vmem:[%s11260_s5 + $0xb8] sm:$0xff] }
 0x449   : > { %3781 = vmatpush.msrb.mxu0 %v6422_v55 }
 0x44a   : > { %v8790_v57 = vpop.f32.mrf.mxu1  ;;  %3701 = vmatpush.msrb.mxu3 %v6412_v26 }
 0x44b   : > { %3782 = vmatpush.msrb.mxu0 %v6421_v40 }
 0x44c   : > { %3702 = vmatpush.msrb.mxu3 %v6411_v48  ;;  %v3557_v48 = vld [vmem:[%s11260_s5 + $0x30] sm:$0xff] }
 0x44d   : > { %3273 = vmatmul.f32.gmra.mxu2 %v8665_v9  ;;  %3202 = vmatmul.f32.gmra.mxu1 %v3147_v15 }
 0x44e   : > { %3347 = vmatmul.f32.gmra.mxu3 %v3072_v32 }
 0x452   : > { %v2959_v33 = vpop.f32.mrf.mxu1 }
 0x453   : > { %v2983_v44 = vadd.f32 %v2959_v33, %v2909_v0  ;;  %v3564_v33 = vld [vmem:[%s11260_s5 + $0x68] sm:$0xff] }
 0x455   : > { %3276 = vmatmul.f32.gmra.mxu2 %v3221_v3 }
 0x456   : > { %3350 = vmatmul.f32.gmra.mxu3 %v3295_v56  ;;  %v3565_v56 = vld [vmem:[%s11260_s5 + $0x70] sm:$0xff] }
 0x457   : > { %3634 = vmatpush.msrb.mxu2 %v3565_v56  ;;  %v2911_v56 = vadd.f32 %v8759_v19, %v2826_v27  ;;  %v3558_v19 = vld [vmem:[%s11260_s5 + $0x38] sm:$0xff] }
 0x458   : > { %v8800_v2 = vpop.f32.mrf.mxu2 }
 0x459   : > { %v8802_v36 = vpop.f32.mrf.mxu3  ;;  %3635 = vmatpush.msrb.mxu2 %v3564_v33  ;;  %v6420_v33 = vld [vmem:[%s11260_s5 + $0x1a8] sm:$0xff] }
 0x45a   : > { %v8804_v29 = vpop.f32.mrf.mxu1  ;;  %3783 = vmatpush.msrb.mxu0 %v6420_v33  ;;  %v3553_v33 = vld [vmem:[%s11260_s5 + $0x10] sm:$0xff] }
 0x45b   : > { %3636 = vmatpush.msrb.mxu2 %v3563_v61  ;;  %v2984_v42 = vadd.f32 %v8804_v29, %v2910_v16  ;;  %v8919_v29 = vld [vmem:[%s11259_s4] ss:$0 sm:$0xff] }
 0x45d   : > { %3637 = vmatpush.msrb.mxu2 %v3562_v58 }
 0x45f   : > { %3638 = vmatpush.msrb.mxu2 %v3561_v5 }
 0x460   : > { %v3033_v23 = vpop.f32.mrf.mxu2 }
 0x461   : > { %v3107_v7 = vpop.f32.mrf.mxu3  ;;  %v3057_v11 = vadd.f32 %v3033_v23, %v2983_v44 }
 0x462   : > { %v8806_v13 = vpop.f32.mrf.mxu1 }
 0x463   : > { %v3131_v23 = vadd.f32 %v3107_v7, %v3057_v11  ;;  %v6410_v7 = vld [vmem:[%s11260_s5 + $0x158] sm:$0xff]  ;;  %v6391_v11 = vld [vmem:[%s11260_s5 + $0xc0] sm:$0xff]  ;;  %v2985_v61 = vadd.f32 %v8806_v13, %v2911_v56 }
 0x464   : > { %3703 = vmatpush.msrb.mxu3 %v6410_v7  ;;  %3599 = vmatpush.msrb.mxu1 %v6391_v11 }
 0x466   : > { %3704 = vmatpush.msrb.mxu3 %v6409_v52  ;;  %3600 = vmatpush.msrb.mxu1 %v6390_v43  ;;  %v6402_v43 = vld [vmem:[%s11260_s5 + $0x118] sm:$0xff] }
 0x468   : > { %v8814_v10 = vpop.f32.mrf.mxu2 }
 0x469   : > { %v8816_v9 = vpop.f32.mrf.mxu3  ;;  %v3058_v31 = vadd.f32 %v8814_v10, %v2984_v42  ;;  %v6408_v10 = vld [vmem:[%s11260_s5 + $0x148] sm:$0xff]  ;;  %v6406_v42 = vld [vmem:[%s11260_s5 + $0x138] sm:$0xff] }
 0x46a   : > { %v8818_v1 = vpop.f32.mrf.mxu1  ;;  %3705 = vmatpush.msrb.mxu3 %v6408_v10 }
 0x46b   : > { %v3132_v4 = vadd.f32 %v8816_v9, %v3058_v31  ;;  %v6407_v9 = vld [vmem:[%s11260_s5 + $0x140] sm:$0xff] }
 0x46c   : > { %3706 = vmatpush.msrb.mxu3 %v6407_v9  ;;  %v3552_v9 = vld [vmem:[%s11260_s5 + $0x8] sm:$0xff] }
 0x46e   : > { %3707 = vmatpush.msrb.mxu3 %v6406_v42 }
 0x470   : > { %v8826_v38 = vpop.f32.mrf.mxu2 }
 0x471   : > { %v8828_v50 = vpop.f32.mrf.mxu3  ;;  %v3059_v13 = vadd.f32 %v8826_v38, %v2985_v61  ;;  %v6401_v61 = vld [vmem:[%s11260_s5 + $0x110] sm:$0xff] }
 0x472   : > { %v8830_v45 = vpop.f32.mrf.mxu1 }
 0x473   : > { %v3133_v27 = vadd.f32 %v8828_v50, %v3059_v13  ;;  %v6403_v50 = vld [vmem:[%s11260_s5 + $0x120] sm:$0xff]  ;;  %v6385_v13 = vld [vmem:[%s11260_s5 + $0x90] sm:$0xff] }
 0x478   : > { %v8841_v35 = vpop.f32.mrf.mxu2 }
 0x479   : > { %v8843_v59 = vpop.f32.mrf.mxu3 }
 0x47a   : > { %v8845_v18 = vpop.f32.mrf.mxu1 }
 0x480   : > { %v8853_v53 = vpop.f32.mrf.mxu2 }
 0x481   : > { %v8855_v47 = vpop.f32.mrf.mxu3 }
 0x482   : > { %v8857_v63 = vpop.f32.mrf.mxu1 }
 0x488   : > { %v8859_v32 = vpop.f32.mrf.mxu2 }
 0x489   : > { %v8861_v46 = vpop.f32.mrf.mxu3 }
 0x48a   : > { %v8863_v8 = vpop.f32.mrf.mxu1 }
 0x490   : > { %v8865_v54 = vpop.f32.mrf.mxu2 }
 0x491   : > { %v8867_v51 = vpop.f32.mrf.mxu3 }
 0x492   : > { %v3182_v25 = vpop.f32.mrf.mxu1 }
 0x493   : > { %v3206_v40 = vadd.f32 %v3182_v25, %v3131_v23  ;;  %v3560_v25 = vld [vmem:[%s11260_s5 + $0x48] sm:$0xff] }
 0x494   : > { %3639 = vmatpush.msrb.mxu2 %v3560_v25  ;;  %v6388_v25 = vld [vmem:[%s11260_s5 + $0xa8] sm:$0xff] }
 0x496   : > { %3640 = vmatpush.msrb.mxu2 %v3559_v6 }
 0x498   : > { %v8875_v15 = vpop.f32.mrf.mxu2  ;;  %3641 = vmatpush.msrb.mxu2 %v3558_v19 }
 0x499   : > { %v8877_v3 = vpop.f32.mrf.mxu3 }
 0x49a   : > { %v3185_v55 = vpop.f32.mrf.mxu1  ;;  %3642 = vmatpush.msrb.mxu2 %v3557_v48 }
 0x49b   : > { %v3207_v16 = vadd.f32 %v3185_v55, %v3132_v4 }
 0x4a0   : > { %v3256_v41 = vpop.f32.mrf.mxu2 }
 0x4a1   : > { %v3330_v21 = vpop.f32.mrf.mxu3  ;;  %v3280_v0 = vadd.f32 %v3256_v41, %v3206_v40  ;;  %v2829_v40 = vadd.f32 %v8766_v12, %v8749_v30  ;;  %v3556_v41 = vld [vmem:[%s11260_s5 + $0x28] sm:$0xff]  ;;  %v3555_v30 = vld [vmem:[%s11260_s5 + $0x20] sm:$0xff] }
 0x4a2   : > { %v3188_v28 = vpop.f32.mrf.mxu1  ;;  %3643 = vmatpush.msrb.mxu2 %v3556_v41  ;;  %v6404_v12 = vld [vmem:[%s11260_s5 + $0x128] sm:$0xff] }
 0x4a3   : > { %v3354_v44 = vadd.f32 %v3330_v21, %v3280_v0  ;;  %v6405_v21 = vld [vmem:[%s11260_s5 + $0x130] sm:$0xff]  ;;  %v2912_v38 = vadd.f32 %v8768_v39, %v2829_v40  ;;  %v3554_v39 = vld [vmem:[%s11260_s5 + $0x18] sm:$0xff]  ;;  %v3208_v10 = vadd.f32 %v3188_v28, %v3133_v27  ;;  %v6387_v28 = vld [vmem:[%s11260_s5 + $0xa0] sm:$0xff] }
 0x4a4   : > { %3708 = vmatpush.msrb.mxu3 %v6405_v21  ;;  %v6389_v0 = vld [vmem:[%s11260_s5 + $0xb0] sm:$0xff]  ;;  %3644 = vmatpush.msrb.mxu2 %v3555_v30  ;;  %v3674_v30 = vld [vmem:[#allocation6 + $0x9] sm:$0xff] }
 0x4a5   : > { %v8936_v24 = vadd.f32 %v8919_v29, %v3354_v44  ;;  %3601 = vmatpush.msrb.mxu1 %v6389_v0  ;;  %v2986_v44 = vadd.f32 %v8818_v1, %v2912_v38  ;;  %v3543_v40 = vld [vmem:[#allocation6 + $0x7] sm:$0xff] }
 0x4a6   : > { %3709 = vmatpush.msrb.mxu3 %v6404_v12  ;;  %3645 = vmatpush.msrb.mxu2 %v3554_v39 }
 0x4a7   : > { %v6375_v26 = vmul.f32 -1.442695, %v8936_v24  ;;  %3602 = vmatpush.msrb.mxu1 %v6388_v25  ;;  %v3060_v1 = vadd.f32 %v8841_v35, %v2986_v44  ;;  %v2832_v35 = vadd.f32 %v8775_v14, %v8761_v22  ;;  %v6419_v14 = vld [vmem:[%s11260_s5 + $0x1a0] sm:$0xff]  ;;  %v6384_v25 = vld [vmem:[%s11260_s5 + $0x88] sm:$0xff] }
 0x4a8   : > { %v3259_v23 = vpop.f32.mrf.mxu2  ;;  %3710 = vmatpush.msrb.mxu3 %v6403_v50  ;;  %3646 = vmatpush.msrb.mxu2 %v3553_v33 }
 0x4a9   : > { %v3333_v58 = vpop.f32.mrf.mxu3  ;;  %6842 = vpow2.f32 %v6375_v26  ;;  %v3281_v55 = vadd.f32 %v3259_v23, %v3207_v16  ;;  %3603 = vmatpush.msrb.mxu1 %v6387_v28  ;;  %v6386_v16 = vld [vmem:[%s11260_s5 + $0x98] sm:$0xff]  ;;  %v3551_v23 = vld [vmem:[%s11260_s5] sm:$0xff]  ;;  %v3134_v48 = vadd.f32 %v8843_v59, %v3060_v1  ;;  %3784 = vmatpush.msrb.mxu0 %v6419_v14  ;;  %v2913_v41 = vadd.f32 %v8777_v60, %v2832_v35 }
 0x4aa   : > { %v3191_v7 = vpop.f32.mrf.mxu1  ;;  %3711 = vmatpush.msrb.mxu3 %v6402_v43  ;;  %3647 = vmatpush.msrb.mxu2 %v3552_v9  ;;  %v6399_v59 = vld [vmem:[%s11260_s5 + $0x100] sm:$0xff] }
 0x4ab   : > { %v3355_v5 = vadd.f32 %v3333_v58, %v3281_v55  ;;  %v6400_v58 = vld [vmem:[%s11260_s5 + $0x108] sm:$0xff]  ;;  %3604 = vmatpush.msrb.mxu1 %v6386_v16  ;;  %v2987_v39 = vadd.f32 %v8830_v45, %v2913_v41  ;;  %v3567_v45 = vld [vmem:[#allocation6 + $0x8] sm:$0xff] }
 0x4ac   : > { %3712 = vmatpush.msrb.mxu3 %v6401_v61  ;;  %3648 = vmatpush.msrb.mxu2 %v3551_v23  ;;  %v2838_v61 = vadd.f32 %v8793_v20, %v8779_v49 }
 0x4ad   : > { %v8979_v31 = vadd.f32 %v8919_v29, %v3355_v5  ;;  %v3209_v5 = vadd.f32 %v3191_v7, %v3134_v48  ;;  %3605 = vmatpush.msrb.mxu1 %v6385_v13  ;;  %3649 = vmatmul.f32.vlgmr.msrb.gmra.mxu2 %v3543_v40  ;;  %v2835_v7 = vadd.f32 %v8786_v62, %v8770_v34 }
 0x4ae   : > { %3713 = vmatpush.msrb.mxu3 %v6400_v58  ;;  %v3061_v44 = vadd.f32 %v8853_v53, %v2987_v39  ;;  %v2915_v40 = vadd.f32 %v8795_v17, %v2838_v61  ;;  %v6416_v39 = vld [vmem:[%s11260_s5 + $0x188] sm:$0xff] }
 0x4af   : > { %v6843_v52 = vpop.eup %6842  ;;  %v6376_v6 = vmul.f32 -1.442695, %v8979_v31  ;;  %3606 = vmatpush.msrb.mxu1 %v6384_v25  ;;  %v2914_v62 = vadd.f32 %v8788_v37, %v2835_v7 }
 0x4b0   : > { %v8995_v56 = vadd.f32 1.0, %v6843_v52  ;;  %v3262_v4 = vpop.f32.mrf.mxu2  ;;  %3714 = vmatpush.msrb.mxu3 %v6399_v59  ;;  %v6383_v52 = vld [vmem:[%s11260_s5 + $0x80] sm:$0xff]  ;;  %v3135_v1 = vadd.f32 %v8855_v47, %v3061_v44  ;;  %v2989_v17 = vadd.f32 %v8857_v63, %v2915_v40 }
 0x4b1   : > { %v3336_v11 = vpop.f32.mrf.mxu3  ;;  %6844 = vpow2.f32 %v6376_v6  ;;  %v3282_v19 = vadd.f32 %v3262_v4, %v3208_v10  ;;  %3715 = vmatmul.f32.vlgmr.msrb.gmra.mxu3 %v3674_v30  ;;  %3607 = vmatpush.msrb.mxu1 %v6383_v52  ;;  %v6415_v44 = vld [vmem:[%s11260_s5 + $0x180] sm:$0xff] }
 0x4b2   : > { %6846 = vrcp.f32 %v8995_v56  ;;  %v3194_v42 = vpop.f32.mrf.mxu1  ;;  %v3415_v4 = vand.u32 2147483647, %v8995_v56  ;;  %3608 = vmatmul.f32.vlgmr.msrb.gmra.mxu1 %v3567_v45  ;;  %vm3411_vm1 = vweird.f32 %v8995_v56 }
 0x4b3   : > { %v3356_v26 = vadd.f32 %v3336_v11, %v3282_v19  ;;  %v3417_v11 = vand.u32 2147483648, %v8995_v56  ;;  %v3210_v58 = vadd.f32 %v3194_v42, %v3135_v1  ;;  %v6418_v42 = vld [vmem:[%s11260_s5 + $0x198] sm:$0xff] }
 0x4b4   : > { %vm3416_vm3 = vcmp.eq.f32.partialorder %v3415_v4, 8.507059e+37  ;;  %3785 = vmatpush.msrb.mxu0 %v6418_v42 }
 0x4b5   : > { %v9027_v22 = vadd.f32 %v8919_v29, %v3356_v26  ;;  %v3418_v35 = vor.u32 1.1754944e-38, %v3417_v11 }
 0x4b7   : > { %v6845_v55 = vpop.eup %6844  ;;  %v6377_v21 = vmul.f32 -1.442695, %v9027_v22 }
 0x4b8   : > { %v6847_v12 = vpop.eup %6846  ;;  %v9040_v38 = vadd.f32 1.0, %v6845_v55  ;;  %v3265_v27 = vpop.f32.mrf.mxu2 }
 0x4b9   : > { %v3339_v0 = vpop.f32.mrf.mxu3  ;;  %v3407_v60 = vmul.f32 %v6847_v12, %v8995_v56  ;;  %6848 = vpow2.f32 %v6377_v21  ;;  %v3283_v50 = vadd.f32 %v3265_v27, %v3209_v5  ;;  %vm3412_vm0 = vweird.f32 %v6847_v12 }
 0x4ba   : > { %6850 = vrcp.f32 %v9040_v38  ;;  %v3197_v28 = vpop.f32.mrf.mxu1  ;;  %vm3413_vm2 = vmor %vm3411_vm1, %vm3412_vm0  ;;  %v2988_v56 = vadd.f32 %v8845_v18, %v2914_v62  ;;  %v3432_v59 = vand.u32 2147483648, %v9040_v38  ;;  %v3430_v55 = vand.u32 2147483647, %v9040_v38 }
 0x4bb   : > { %v3408_v6 = vsub.f32 1.0, %v3407_v60  ;;  %v3357_v10 = vadd.f32 %v3339_v0, %v3283_v50  ;;  %v2841_v21 = vadd.f32 %v8800_v2, %v8790_v57  ;;  %vm3426_vm5 = vweird.f32 %v9040_v38 }
 0x4bc   : > { %v3062_v13 = vadd.f32 %v8859_v32, %v2988_v56  ;;  %v6417_v32 = vld [vmem:[%s11260_s5 + $0x190] sm:$0xff]  ;;  %v3063_v0 = vadd.f32 %v8865_v54, %v2989_v17  ;;  %v3433_v25 = vor.u32 1.1754944e-38, %v3432_v59  ;;  %vm3431_vm7 = vcmp.eq.f32.partialorder %v3430_v55, 8.507059e+37 }
 0x4bd   : > { %v3409_v33 = vmul.f32 %v6847_v12, %v3408_v6  ;;  %v9057_v34 = vadd.f32 %v8919_v29, %v3357_v10  ;;  %3786 = vmatpush.msrb.mxu0 %v6417_v32  ;;  %v2916_v45 = vadd.f32 %v8802_v36, %v2841_v21 }
 0x4be   : > { %v3136_v27 = vadd.f32 %v8861_v46, %v3062_v13 }
 0x4bf   : > { %v6849_v43 = vpop.eup %6848  ;;  %v3410_v53 = vadd.f32 %v6847_v12, %v3409_v33  ;;  %v6378_v19 = vmul.f32 -1.442695, %v9057_v34  ;;  %3787 = vmatpush.msrb.mxu0 %v6416_v39 }
 0x4c0   : > { %v6851_v9 = vpop.eup %6850  ;;  %v9065_v26 = vadd.f32 1.0, %v6849_v43  ;;  %v3268_v16 = vpop.f32.mrf.mxu2  ;;  %v3211_v7 = vadd.f32 %v3197_v28, %v3136_v27  ;;  %v3137_v43 = vadd.f32 %v8867_v51, %v3063_v0 }
 0x4c1   : > { %v3342_v37 = vpop.f32.mrf.mxu3  ;;  %v3414_v23 = vsel %vm3413_vm2, %v6847_v12, %v3410_v53  ;;  %v3422_v47 = vmul.f32 %v6851_v9, %v9040_v38  ;;  %6852 = vpow2.f32 %v6378_v19  ;;  %v3284_v20 = vadd.f32 %v3268_v16, %v3210_v58  ;;  %v6446_v12 = vld [vmem:[%s11260_s5 + $0x278] sm:$0xff]  ;;  %3788 = vmatpush.msrb.mxu0 %v6415_v44 }
 0x4c2   : > { %v3419_v48 = vsel %vm3416_vm3, %v3418_v35, %v3414_v23  ;;  %6854 = vrcp.f32 %v9065_v26  ;;  %vm3427_vm4 = vweird.f32 %v6851_v9  ;;  %3847 = vmatpush.msra.mxu1 %v6446_v12  ;;  %v3200_v52 = vpop.f32.mrf.mxu1  ;;  %v3447_v4 = vand.u32 2147483648, %v9065_v26 }
 0x4c3   : > { %v9071_v14 = vmul.f32 %v3419_v48, %v8936_v24  ;;  %v3423_v49 = vsub.f32 1.0, %v3422_v47  ;;  %v3358_v24 = vadd.f32 %v3342_v37, %v3284_v20  ;;  %vm3428_vm6 = vmor %vm3426_vm5, %vm3427_vm4  ;;  %v2990_v53 = vadd.f32 %v8863_v8, %v2916_v45 }
 0x4c4   : > { %vm3441_vm9 = vweird.f32 %v9065_v26  ;;  %v3212_v28 = vadd.f32 %v3200_v52, %v3137_v43  ;;  %v3448_v61 = vor.u32 1.1754944e-38, %v3447_v4  ;;  %v6439_v4 = vld [vmem:[%s11260_s5 + $0x240] sm:$0xff]  ;;  %v6461_v43 = vld [vmem:[%s11260_s5 + $0x2f0] sm:$0xff] }
 0x4c5   : > { %3535 = vst [vmem:[#allocation6 + $0x20] sm:$0xff] %v9071_v14  ;;  %v3424_v18 = vmul.f32 %v6851_v9, %v3423_v49  ;;  %3611 = vmatmul.f32.gmra.mxu1 %v9071_v14  ;;  %v9090_v30 = vadd.f32 %v8919_v29, %v3358_v24 }
 0x4c7   : > { %v6853_v41 = vpop.eup %6852  ;;  %v3425_v5 = vadd.f32 %v6851_v9, %v3424_v18  ;;  %v6379_v46 = vmul.f32 -1.442695, %v9090_v30 }
 0x4c8   : > { %v6855_v63 = vpop.eup %6854  ;;  %v9098_v57 = vadd.f32 1.0, %v6853_v41  ;;  %v3271_v2 = vpop.f32.mrf.mxu2  ;;  %v6442_v41 = vld [vmem:[%s11260_s5 + $0x258] sm:$0xff] }
 0x4c9   : > { %v3345_v38 = vpop.f32.mrf.mxu3  ;;  %v3429_v60 = vsel %vm3428_vm6, %v6851_v9, %v3425_v5  ;;  %v3437_v50 = vmul.f32 %v6855_v63, %v9065_v26  ;;  %v3285_v11 = vadd.f32 %v3271_v2, %v3211_v7  ;;  %vm3442_vm8 = vweird.f32 %v6855_v63 }
 0x4ca   : > { %v3434_v54 = vsel %vm3431_vm7, %v3433_v25, %v3429_v60  ;;  %6856 = vrcp.f32 %v9098_v57  ;;  %v3064_v9 = vadd.f32 %v8875_v15, %v2990_v53  ;;  %vm3443_vm10 = vmor %vm3441_vm9, %vm3442_vm8  ;;  %v6444_v15 = vld [vmem:[%s11260_s5 + $0x268] sm:$0xff]  ;;  %v3460_v42 = vand.u32 2147483647, %v9098_v57  ;;  %v3203_v55 = vpop.f32.mrf.mxu1 }
 0x4cb   : > { %v9110_v6 = vmul.f32 %v3434_v54, %v8979_v31  ;;  %v3438_v10 = vsub.f32 1.0, %v3437_v50  ;;  %6858 = vpow2.f32 %v6379_v46  ;;  %v3445_v31 = vand.u32 2147483647, %v9065_v26  ;;  %v6445_v26 = vld [vmem:[%s11260_s5 + $0x270] sm:$0xff] }
 0x4cc   : > { %v3544_v33 = vld [vmem:[#allocation6 + $0x1f] sm:$0xff]  ;;  %v3359_v36 = vadd.f32 %v3345_v38, %v3285_v11  ;;  %3848 = vmatpush.msra.mxu1 %v6445_v26  ;;  %v3138_v59 = vadd.f32 %v8877_v3, %v3064_v9  ;;  %v3462_v18 = vand.u32 2147483648, %v9098_v57  ;;  %v6443_v3 = vld [vmem:[%s11260_s5 + $0x260] sm:$0xff]  ;;  %vm3456_vm13 = vweird.f32 %v9098_v57 }
 0x4cd   : > { %v9114_v62 = vld [vmem:[#allocation6 + $0x21] sm:$0xff]  ;;  %3536 = vst [vmem:[#allocation6 + $0x38] sm:$0xff] %v9110_v6  ;;  %v3439_v1 = vmul.f32 %v6855_v63, %v3438_v10  ;;  %3652 = vmatmul.f32.gmra.mxu2 %v3544_v33  ;;  %3789 = vmatmul.f32.vlgmr.msrb.gmra.mxu0 %v3544_v33  ;;  %vm3446_vm11 = vcmp.eq.f32.partialorder %v3445_v31, 8.507059e+37  ;;  %vm3461_vm15 = vcmp.eq.f32.partialorder %v3460_v42, 8.507059e+37  ;;  %v6460_v9 = vld [vmem:[%s11260_s5 + $0x2e8] sm:$0xff]  ;;  %v6459_v26 = vld [vmem:[%s11260_s5 + $0x2e0] sm:$0xff] }
 0x4ce   : > { %3718 = vmatmul.f32.gmra.mxu3 %v9114_v62  ;;  %3614 = vmatmul.f32.gmra.mxu1 %v9110_v6  ;;  %v9125_v35 = vadd.f32 %v8919_v29, %v3359_v36  ;;  %v3213_v12 = vadd.f32 %v3203_v55, %v3138_v59  ;;  %v3463_v27 = vor.u32 1.1754944e-38, %v3462_v18  ;;  %v6478_v33 = vld [vmem:[%s11260_s5 + $0x378] sm:$0xff]  ;;  %v6436_v59 = vld [vmem:[%s11260_s5 + $0x228] sm:$0xff]  ;;  %v6493_v18 = vld [vmem:[%s11260_s5 + $0x3f0] sm:$0xff] }
 0x4cf   : > { %v3440_v19 = vadd.f32 %v6855_v63, %v3439_v1  ;;  %3849 = vmatpush.msra.mxu1 %v6444_v15  ;;  %3996 = vmatpush.msra.mxu3 %v6478_v33  ;;  %v6458_v42 = vld [vmem:[%s11260_s5 + $0x2d8] sm:$0xff] }
 0x4d0   : > { %v6857_v51 = vpop.eup %6856  ;;  %v3274_v16 = vpop.f32.mrf.mxu2  ;;  %v6380_v49 = vmul.f32 -1.442695, %v9125_v35 }
 0x4d1   : > { %v3348_v37 = vpop.f32.mrf.mxu3  ;;  %v6859_v23 = vpop.eup %6858  ;;  %v3444_v8 = vsel %vm3443_vm10, %v6855_v63, %v3440_v19  ;;  %v3452_v47 = vmul.f32 %v6857_v51, %v9098_v57  ;;  %v3286_v58 = vadd.f32 %v3274_v16, %v3212_v28  ;;  %vm3457_vm12 = vweird.f32 %v6857_v51  ;;  %3850 = vmatpush.msra.mxu1 %v6443_v3  ;;  %v6441_v63 = vld [vmem:[%s11260_s5 + $0x250] sm:$0xff]  ;;  %v6438_v19 = vld [vmem:[%s11260_s5 + $0x238] sm:$0xff] }
 0x4d2   : > { %v3449_v56 = vsel %vm3446_vm11, %v3448_v61, %v3444_v8  ;;  %v9134_v48 = vadd.f32 1.0, %v6859_v23  ;;  %vm3458_vm14 = vmor %vm3456_vm13, %vm3457_vm12  ;;  %v6477_v28 = vld [vmem:[%s11260_s5 + $0x370] sm:$0xff]  ;;  %v6494_v8 = vld [vmem:[%s11260_s5 + $0x3f8] sm:$0xff] }
 0x4d3   : > { %v9138_v20 = vmul.f32 %v3449_v56, %v9027_v22  ;;  %v3453_v40 = vsub.f32 1.0, %v3452_v47  ;;  %v3360_v13 = vadd.f32 %v3348_v37, %v3286_v58  ;;  %3851 = vmatpush.msra.mxu1 %v6442_v41  ;;  %v6437_v16 = vld [vmem:[%s11260_s5 + $0x230] sm:$0xff]  ;;  %v6476_v37 = vld [vmem:[%s11260_s5 + $0x368] sm:$0xff]  ;;  %3997 = vmatpush.msra.mxu3 %v6477_v28  ;;  %v6435_v41 = vld [vmem:[%s11260_s5 + $0x220] sm:$0xff] }
 0x4d4   : > { %6860 = vrcp.f32 %v9134_v48  ;;  %v9144_v24 = vld [vmem:[#allocation6 + $0x37] sm:$0xff]  ;;  %v3477_v11 = vand.u32 2147483648, %v9134_v48  ;;  %v3475_v53 = vand.u32 2147483647, %v9134_v48  ;;  %vm3471_vm1 = vweird.f32 %v9134_v48  ;;  %4070 = vmatpush.msra.mxu0 %v6494_v8  ;;  %v6457_v3 = vld [vmem:[%s11260_s5 + $0x2d0] sm:$0xff] }
 0x4d5   : > { %v9146_v17 = vld [vmem:[#allocation6 + $0x39] sm:$0xff]  ;;  %3537 = vst [vmem:[#allocation6 + $0x50] sm:$0xff] %v9138_v20  ;;  %v3454_v22 = vmul.f32 %v6857_v51, %v3453_v40  ;;  %6862 = vpow2.f32 %v6380_v49  ;;  %v9150_v32 = vadd.f32 %v8919_v29, %v3360_v13  ;;  %3655 = vmatmul.f32.gmra.mxu2 %v9144_v24  ;;  %3792 = vmatmul.f32.gmra.mxu0 %v9144_v24  ;;  %v6475_v49 = vld [vmem:[%s11260_s5 + $0x360] sm:$0xff] }
 0x4d6   : > { %3721 = vmatmul.f32.gmra.mxu3 %v9146_v17  ;;  %3617 = vmatmul.f32.gmra.mxu1 %v9138_v20  ;;  %v3478_v23 = vor.u32 1.1754944e-38, %v3477_v11  ;;  %vm3476_vm3 = vcmp.eq.f32.partialorder %v3475_v53, 8.507059e+37 }
 0x4d7   : > { %v3455_v21 = vadd.f32 %v6857_v51, %v3454_v22  ;;  %v6381_v5 = vmul.f32 -1.442695, %v9150_v32  ;;  %3852 = vmatpush.msra.mxu1 %v6441_v63  ;;  %3998 = vmatpush.msra.mxu3 %v6476_v37  ;;  %v6432_v37 = vld [vmem:[%s11260_s5 + $0x208] sm:$0xff] }
 0x4d8   : > { %v3277_v0 = vpop.f32.mrf.mxu2  ;;  %4071 = vmatpush.msra.mxu0 %v6493_v18 }
 0x4d9   : > { %v3351_v25 = vpop.f32.mrf.mxu3  ;;  %v3459_v2 = vsel %vm3458_vm14, %v6857_v51, %v3455_v21  ;;  %6864 = vpow2.f32 %v6381_v5  ;;  %v3287_v38 = vadd.f32 %v3277_v0, %v3213_v12  ;;  %3999 = vmatpush.msra.mxu3 %v6475_v49  ;;  %v6492_v0 = vld [vmem:[%s11260_s5 + $0x3e8] sm:$0xff]  ;;  %v6431_v49 = vld [vmem:[%s11260_s5 + $0x200] sm:$0xff] }
 0x4da   : > { %v6861_v57 = vpop.eup %6860  ;;  %v3464_v39 = vsel %vm3461_vm15, %v3463_v27, %v3459_v2  ;;  %v6473_v27 = vld [vmem:[%s11260_s5 + $0x350] sm:$0xff]  ;;  %4072 = vmatpush.msra.mxu0 %v6492_v0 }
 0x4db   : > { %v6863_v60 = vpop.eup %6862  ;;  %v9169_v50 = vmul.f32 %v3464_v39, %v9057_v34  ;;  %v3467_v46 = vmul.f32 %v6861_v57, %v9134_v48  ;;  %v3361_v54 = vadd.f32 %v3351_v25, %v3287_v38  ;;  %v6440_v34 = vld [vmem:[%s11260_s5 + $0x248] sm:$0xff]  ;;  %vm3472_vm0 = vweird.f32 %v6861_v57 }
 0x4dc   : > { %v9172_v7 = vadd.f32 1.0, %v6863_v60  ;;  %v9174_v52 = vld [vmem:[#allocation6 + $0x4f] sm:$0xff]  ;;  %3853 = vmatpush.msra.mxu1 %v6440_v34  ;;  %vm3473_vm2 = vmor %vm3471_vm1, %vm3472_vm0  ;;  %v6456_v38 = vld [vmem:[%s11260_s5 + $0x2c8] sm:$0xff] }
 0x4dd   : > { %v9176_v44 = vld [vmem:[#allocation6 + $0x51] sm:$0xff]  ;;  %3538 = vst [vmem:[#allocation6 + $0x68] sm:$0xff] %v9169_v50  ;;  %v3468_v10 = vsub.f32 1.0, %v3467_v46  ;;  %v9180_v45 = vadd.f32 %v8919_v29, %v3361_v54  ;;  %3658 = vmatmul.f32.gmra.mxu2 %v9174_v52  ;;  %3795 = vmatmul.f32.gmra.mxu0 %v9174_v52  ;;  %v6462_v29 = vld [vmem:[%s11260_s5 + $0x2f8] sm:$0xff]  ;;  %v6433_v34 = vld [vmem:[%s11260_s5 + $0x210] sm:$0xff] }
 0x4de   : > { %3724 = vmatmul.f32.gmra.mxu3 %v9176_v44  ;;  %6866 = vrcp.f32 %v9172_v7  ;;  %3620 = vmatmul.f32.gmra.mxu1 %v9169_v50  ;;  %v3490_v5 = vand.u32 2147483647, %v9172_v7  ;;  %v3492_v12 = vand.u32 2147483648, %v9172_v7  ;;  %v6472_v39 = vld [vmem:[%s11260_s5 + $0x348] sm:$0xff]  ;;  %v6491_v60 = vld [vmem:[%s11260_s5 + $0x3e0] sm:$0xff]  ;;  %vm3486_vm5 = vweird.f32 %v9172_v7 }
 0x4df   : > { %v6865_v1 = vpop.eup %6864  ;;  %v3469_v31 = vmul.f32 %v6861_v57, %v3468_v10  ;;  %v6382_v36 = vmul.f32 -1.442695, %v9180_v45  ;;  %3921 = vmatpush.msra.mxu2 %v6462_v29  ;;  %3854 = vmatpush.msra.mxu1 %v6439_v4  ;;  %v6455_v10 = vld [vmem:[%s11260_s5 + $0x2c0] sm:$0xff] }
 0x4e0   : > { %v9211_v51 = vadd.f32 1.0, %v6865_v1  ;;  %vm3491_vm7 = vcmp.eq.f32.partialorder %v3490_v5, 8.507059e+37  ;;  %v3493_v4 = vor.u32 1.1754944e-38, %v3492_v12  ;;  %4073 = vmatpush.msra.mxu0 %v6491_v60  ;;  %v6450_v12 = vld [vmem:[%s11260_s5 + $0x298] sm:$0xff]  ;;  %v6449_v60 = vld [vmem:[%s11260_s5 + $0x290] sm:$0xff] }
 0x4e1   : > { %v3470_v61 = vadd.f32 %v6861_v57, %v3469_v31  ;;  %6868 = vpow2.f32 %v6382_v36  ;;  %3922 = vmatpush.msra.mxu2 %v6461_v43  ;;  %3855 = vmatpush.msra.mxu1 %v6438_v19  ;;  %v6471_v43 = vld [vmem:[%s11260_s5 + $0x340] sm:$0xff]  ;;  %v6454_v36 = vld [vmem:[%s11260_s5 + $0x2b8] sm:$0xff] }
 0x4e2   : > { %6870 = vrcp.f32 %v9211_v51  ;;  %v3507_v11 = vand.u32 2147483648, %v9211_v51  ;;  %v3505_v33 = vand.u32 2147483647, %v9211_v51  ;;  %vm3501_vm9 = vweird.f32 %v9211_v51 }
 0x4e3   : > { %v3474_v47 = vsel %vm3473_vm2, %v6861_v57, %v3470_v61  ;;  %3923 = vmatpush.msra.mxu2 %v6460_v9  ;;  %3856 = vmatpush.msra.mxu1 %v6437_v16  ;;  %v6434_v57 = vld [vmem:[%s11260_s5 + $0x218] sm:$0xff] }
 0x4e4   : > { %v9231_v15 = vpop.eup %6866  ;;  %v3479_v58 = vsel %vm3476_vm3, %v3478_v23, %v3474_v47  ;;  %v9233_v56 = vld [vmem:[#allocation6 + $0x67] sm:$0xff]  ;;  %vm3506_vm11 = vcmp.eq.f32.partialorder %v3505_v33, 8.507059e+37 }
 0x4e5   : > { %v9235_v48 = vld [vmem:[#allocation6 + $0x69] sm:$0xff]  ;;  %v9241_v40 = vmul.f32 %v3479_v58, %v9090_v30  ;;  %v3482_v13 = vmul.f32 %v9231_v15, %v9172_v7  ;;  %3661 = vmatmul.f32.gmra.mxu2 %v9233_v56  ;;  %3798 = vmatmul.f32.gmra.mxu0 %v9233_v56  ;;  %vm3487_vm4 = vweird.f32 %v9231_v15  ;;  %v6469_v47 = vld [vmem:[%s11260_s5 + $0x330] sm:$0xff]  ;;  %v6452_v58 = vld [vmem:[%s11260_s5 + $0x2a8] sm:$0xff] }
 0x4e6   : > { %3727 = vmatmul.f32.gmra.mxu3 %v9235_v48  ;;  %3924 = vmatpush.msra.mxu2 %v6459_v26  ;;  %v6474_v30 = vld [vmem:[%s11260_s5 + $0x358] sm:$0xff]  ;;  %vm3488_vm6 = vmor %vm3486_vm5, %vm3487_vm4  ;;  %v6489_v26 = vld [vmem:[%s11260_s5 + $0x3d0] sm:$0xff] }
 0x4e7   : > { %v6869_v55 = vpop.eup %6868  ;;  %3539 = vst [vmem:[#allocation6 + $0x80] sm:$0xff] %v9241_v40  ;;  %v3483_v22 = vsub.f32 1.0, %v3482_v13  ;;  %3623 = vmatmul.f32.gmra.mxu1 %v9241_v40  ;;  %4000 = vmatpush.msra.mxu3 %v6474_v30  ;;  %v6470_v9 = vld [vmem:[%s11260_s5 + $0x338] sm:$0xff]  ;;  %v6488_v30 = vld [vmem:[%s11260_s5 + $0x3c8] sm:$0xff] }
 0x4e8   : > { %v9268_v21 = vpop.eup %6870  ;;  %v9272_v63 = vadd.f32 1.0, %v6869_v55  ;;  %3857 = vmatpush.msra.mxu1 %v6436_v59  ;;  %3925 = vmatpush.msra.mxu2 %v6458_v42  ;;  %v6490_v61 = vld [vmem:[%s11260_s5 + $0x3d8] sm:$0xff]  ;;  %v6468_v42 = vld [vmem:[%s11260_s5 + $0x328] sm:$0xff] }
 0x4e9   : > { %v3484_v25 = vmul.f32 %v9231_v15, %v3483_v22  ;;  %v3497_v2 = vmul.f32 %v9268_v21, %v9211_v51  ;;  %4001 = vmatpush.msra.mxu3 %v6473_v27  ;;  %vm3502_vm8 = vweird.f32 %v9268_v21  ;;  %v6453_v51 = vld [vmem:[%s11260_s5 + $0x2b0] sm:$0xff]  ;;  %4074 = vmatpush.msra.mxu0 %v6490_v61  ;;  %v6510_v55 = vld [vmem:[%s11260_s5 + $0x478] sm:$0xff] }
 0x4ea   : > { %6872 = vrcp.f32 %v9272_v63  ;;  %3926 = vmatpush.msra.mxu2 %v6457_v3  ;;  %3858 = vmatpush.msra.mxu1 %v6435_v41  ;;  %vm3503_vm10 = vmor %vm3501_vm9, %vm3502_vm8  ;;  %v3522_v18 = vand.u32 2147483648, %v9272_v63  ;;  %v3520_v3 = vand.u32 2147483647, %v9272_v63  ;;  %v6467_v41 = vld [vmem:[%s11260_s5 + $0x320] sm:$0xff]  ;;  %vm3516_vm13 = vweird.f32 %v9272_v63  ;;  %v6466_v27 = vld [vmem:[%s11260_s5 + $0x318] sm:$0xff] }
 0x4eb   : > { %v3485_v46 = vadd.f32 %v9231_v15, %v3484_v25  ;;  %v3498_v54 = vsub.f32 1.0, %v3497_v2  ;;  %4002 = vmatpush.msra.mxu3 %v6472_v39  ;;  %4075 = vmatpush.msra.mxu0 %v6489_v26  ;;  %v6481_v61 = vld [vmem:[%s11260_s5 + $0x390] sm:$0xff] }
 0x4ec   : > { %3927 = vmatpush.msra.mxu2 %v6456_v38  ;;  %3859 = vmatpush.msra.mxu1 %v6434_v57  ;;  %v3523_v0 = vor.u32 1.1754944e-38, %v3522_v18  ;;  %vm3521_vm15 = vcmp.eq.f32.partialorder %v3520_v3, 8.507059e+37  ;;  %v6509_v57 = vld [vmem:[%s11260_s5 + $0x470] sm:$0xff] }
 0x4ed   : > { %v3489_v7 = vsel %vm3488_vm6, %v9231_v15, %v3485_v46  ;;  %v3499_v29 = vmul.f32 %v9268_v21, %v3498_v54  ;;  %4003 = vmatpush.msra.mxu3 %v6471_v43  ;;  %4076 = vmatpush.msra.mxu0 %v6488_v30  ;;  %v6465_v46 = vld [vmem:[%s11260_s5 + $0x310] sm:$0xff]  ;;  %v6447_v43 = vld [vmem:[%s11260_s5 + $0x280] sm:$0xff] }
 0x4ee   : > { %v3494_v1 = vsel %vm3491_vm7, %v3493_v4, %v3489_v7  ;;  %v9315_v31 = vld [vmem:[#allocation6 + $0x7f] sm:$0xff]  ;;  %3928 = vmatpush.msra.mxu2 %v6455_v10  ;;  %3860 = vmatpush.msra.mxu1 %v6433_v34  ;;  %v6507_v7 = vld [vmem:[%s11260_s5 + $0x460] sm:$0xff] }
 0x4ef   : > { %v9317_v53 = vld [vmem:[#allocation6 + $0x81] sm:$0xff]  ;;  %v9323_v19 = vmul.f32 %v3494_v1, %v9125_v35  ;;  %v3500_v28 = vadd.f32 %v9268_v21, %v3499_v29  ;;  %3664 = vmatmul.f32.gmra.mxu2 %v9315_v31  ;;  %v3508_v35 = vor.u32 1.1754944e-38, %v3507_v11  ;;  %3801 = vmatmul.f32.gmra.mxu0 %v9315_v31  ;;  %v6508_v34 = vld [vmem:[%s11260_s5 + $0x468] sm:$0xff]  ;;  %v6463_v1 = vld [vmem:[%s11260_s5 + $0x300] sm:$0xff] }
 0x4f0   : > { %3730 = vmatmul.f32.gmra.mxu3 %v9317_v53  ;;  %v6873_v16 = vpop.eup %6872  ;;  %3929 = vmatpush.msra.mxu2 %v6454_v36  ;;  %v6485_v10 = vld [vmem:[%s11260_s5 + $0x3b0] sm:$0xff]  ;;  %v6448_v4 = vld [vmem:[%s11260_s5 + $0x288] sm:$0xff]  ;;  %v6483_v36 = vld [vmem:[%s11260_s5 + $0x3a0] sm:$0xff] }
 0x4f1   : > { %3540 = vst [vmem:[#allocation6 + $0x98] sm:$0xff] %v9323_v19  ;;  %v3504_v23 = vsel %vm3503_vm10, %v9268_v21, %v3500_v28  ;;  %v3512_v8 = vmul.f32 %v6873_v16, %v9272_v63  ;;  %3626 = vmatmul.f32.gmra.mxu1 %v9323_v19  ;;  %4004 = vmatpush.msra.mxu3 %v6470_v9  ;;  %vm3517_vm12 = vweird.f32 %v6873_v16  ;;  %v6487_v21 = vld [vmem:[%s11260_s5 + $0x3c0] sm:$0xff]  ;;  %v6486_v63 = vld [vmem:[%s11260_s5 + $0x3b8] sm:$0xff]  ;;  %v6484_v11 = vld [vmem:[%s11260_s5 + $0x3a8] sm:$0xff] }
 0x4f2   : > { %v3509_v15 = vsel %vm3506_vm11, %v3508_v35, %v3504_v23  ;;  %3930 = vmatpush.msra.mxu2 %v6453_v51  ;;  %3861 = vmatpush.msra.mxu1 %v6432_v37  ;;  %vm3518_vm14 = vmor %vm3516_vm13, %vm3517_vm12  ;;  %v6482_v28 = vld [vmem:[%s11260_s5 + $0x398] sm:$0xff]  ;;  %v6504_v51 = vld [vmem:[%s11260_s5 + $0x448] sm:$0xff] }
 0x4f3   : > { %v9361_v13 = vmul.f32 %v3509_v15, %v9150_v32  ;;  %v3513_v59 = vsub.f32 1.0, %v3512_v8  ;;  %4005 = vmatpush.msra.mxu3 %v6469_v47  ;;  %v6451_v32 = vld [vmem:[%s11260_s5 + $0x2a0] sm:$0xff]  ;;  %4077 = vmatpush.msra.mxu0 %v6487_v21  ;;  %v6506_v9 = vld [vmem:[%s11260_s5 + $0x458] sm:$0xff] }
 0x4f4   : > { %3931 = vmatpush.msra.mxu2 %v6452_v58  ;;  %3862 = vmatpush.msra.mxu1 %v6431_v49  ;;  %v6479_v37 = vld [vmem:[%s11260_s5 + $0x380] sm:$0xff]  ;;  %v6502_v8 = vld [vmem:[%s11260_s5 + $0x438] sm:$0xff] }
 0x4f5   : > { %3541 = vst [vmem:[#allocation6 + $0xb0] sm:$0xff] %v9361_v13  ;;  %v3514_v22 = vmul.f32 %v6873_v16, %v3513_v59  ;;  %4006 = vmatpush.msra.mxu3 %v6468_v42  ;;  %4078 = vmatpush.msra.mxu0 %v6486_v63  ;;  %v6503_v23 = vld [vmem:[%s11260_s5 + $0x440] sm:$0xff]  ;;  %v6534_v63 = vld [vmem:[%s11262_s7 + $0xf8] sm:$0xff] }
 0x4f6   : > { %3932 = vmatpush.msra.mxu2 %v6451_v32  ;;  %4144 = vmatpush.msrb.mxu1 %v6510_v55  ;;  %v6499_v47 = vld [vmem:[%s11260_s5 + $0x420] sm:$0xff] }
 0x4f7   : > { %v3515_v5 = vadd.f32 %v6873_v16, %v3514_v22  ;;  %4007 = vmatpush.msra.mxu3 %v6467_v41  ;;  %4079 = vmatpush.msra.mxu0 %v6485_v10  ;;  %v4126_v41 = vld [vmem:[#allocation6 + $0xe1] sm:$0xff] }
 0x4f8   : > { %v9391_v25 = vld [vmem:[#allocation6 + $0x97] sm:$0xff]  ;;  %3933 = vmatpush.msra.mxu2 %v6450_v12  ;;  %4145 = vmatpush.msrb.mxu1 %v6509_v57 }
 0x4f9   : > { %v9393_v2 = vld [vmem:[#allocation6 + $0x99] sm:$0xff]  ;;  %v3519_v38 = vsel %vm3518_vm14, %v6873_v16, %v3515_v5  ;;  %3667 = vmatmul.f32.gmra.mxu2 %v9391_v25  ;;  %3804 = vmatmul.f32.gmra.mxu0 %v9391_v25 }
 0x4fa   : > { %3733 = vmatmul.f32.gmra.mxu3 %v9393_v2  ;;  %v3524_v39 = vsel %vm3521_vm15, %v3523_v0, %v3519_v38  ;;  %3629 = vmatmul.f32.gmra.mxu1 %v9361_v13  ;;  %v6505_v16 = vld [vmem:[%s11260_s5 + $0x450] sm:$0xff] }
 0x4fb   : > { %v9412_v54 = vmul.f32 %v3524_v39, %v9180_v45  ;;  %4008 = vmatpush.msra.mxu3 %v6466_v27  ;;  %v6464_v45 = vld [vmem:[%s11260_s5 + $0x308] sm:$0xff]  ;;  %3934 = vmatpush.msra.mxu2 %v6449_v60  ;;  %v6533_v60 = vld [vmem:[%s11262_s7 + $0xf0] sm:$0xff] }
 0x4fc   : > { %v9433_v29 = vld [vmem:[#allocation6 + $0xaf] sm:$0xff]  ;;  %4146 = vmatpush.msrb.mxu1 %v6508_v34  ;;  %4080 = vmatpush.msra.mxu0 %v6484_v11 }
 0x4fd   : > { %3542 = vst [vmem:[#allocation6 + $0xc8] sm:$0xff] %v9412_v54  ;;  %4009 = vmatpush.msra.mxu3 %v6465_v46  ;;  %v9435_v33 = vld [vmem:[#allocation6 + $0xb1] sm:$0xff]  ;;  %3935 = vmatpush.msra.mxu2 %v6448_v4  ;;  %v6530_v11 = vld [vmem:[%s11262_s7 + $0xd8] sm:$0xff] }
 0x4fe   : > { %4147 = vmatpush.msrb.mxu1 %v6507_v7  ;;  %4081 = vmatpush.msra.mxu0 %v6483_v36  ;;  %v6532_v46 = vld [vmem:[%s11262_s7 + $0xe8] sm:$0xff] }
 0x4ff   : > { %4010 = vmatpush.msra.mxu3 %v6464_v45  ;;  %3936 = vmatpush.msra.mxu2 %v6447_v43  ;;  %v6531_v45 = vld [vmem:[%s11262_s7 + $0xe0] sm:$0xff]  ;;  %v6529_v43 = vld [vmem:[%s11262_s7 + $0xd0] sm:$0xff] }
 0x500   : > { %4082 = vmatpush.msra.mxu0 %v6482_v28  ;;  %4148 = vmatpush.msrb.mxu1 %v6506_v9 }
 0x501   : > { %3670 = vmatmul.f32.gmra.mxu2 %v9433_v29  ;;  %3807 = vmatmul.f32.gmra.mxu0 %v9433_v29 }
 0x502   : > { %3736 = vmatmul.f32.gmra.mxu3 %v9435_v33  ;;  %3863 = vmatmul.f32.vlgmr.msra.gmra.mxu1 %v9071_v14  ;;  %v6480_v14 = vld [vmem:[%s11260_s5 + $0x388] sm:$0xff] }
 0x503   : > { %4011 = vmatpush.msra.mxu3 %v6463_v1  ;;  %4083 = vmatpush.msra.mxu0 %v6481_v61  ;;  %v6528_v1 = vld [vmem:[%s11262_s7 + $0xc8] sm:$0xff] }
 0x504   : > { %v3755_v35 = vld [vmem:[#allocation6 + $0xc7] sm:$0xff]  ;;  %4149 = vmatpush.msrb.mxu1 %v6505_v16  ;;  %4430 = vmatpush.msrb.mxu2 %v6534_v63 }
 0x505   : > { %4084 = vmatpush.msra.mxu0 %v6480_v14  ;;  %v4399_v63 = vld [vmem:[%s11262_s7 + $0x50] sm:$0xff] }
 0x506   : > { %4150 = vmatpush.msrb.mxu1 %v6504_v51  ;;  %4431 = vmatpush.msrb.mxu2 %v6533_v60 }
 0x507   : > { %4085 = vmatpush.msra.mxu0 %v6479_v37 }
 0x508   : > { %4151 = vmatpush.msrb.mxu1 %v6503_v23  ;;  %4432 = vmatpush.msrb.mxu2 %v6532_v46 }
 0x509   : > { %3937 = vmatmul.f32.vlgmr.msra.gmra.mxu2 %v9114_v62  ;;  %3810 = vmatmul.f32.gmra.mxu0 %v3755_v35  ;;  %v6501_v62 = vld [vmem:[%s11260_s5 + $0x430] sm:$0xff] }
 0x50a   : > { %4012 = vmatmul.f32.vlgmr.msra.gmra.mxu3 %v9144_v24  ;;  %3866 = vmatmul.f32.gmra.mxu1 %v9110_v6  ;;  %v6500_v24 = vld [vmem:[%s11260_s5 + $0x428] sm:$0xff] }
 0x50b   : > { %4152 = vmatpush.msrb.mxu1 %v6502_v8  ;;  %4433 = vmatpush.msrb.mxu2 %v6531_v45  ;;  %v6548_v45 = vld [vmem:[%s11262_s7 + $0x168] sm:$0xff] }
 0x50d   : > { %4153 = vmatpush.msrb.mxu1 %v6501_v62  ;;  %4434 = vmatpush.msrb.mxu2 %v6530_v11  ;;  %v4398_v11 = vld [vmem:[%s11262_s7 + $0x48] sm:$0xff] }
 0x50f   : > { %4154 = vmatpush.msrb.mxu1 %v6500_v24  ;;  %4435 = vmatpush.msrb.mxu2 %v6529_v43 }
 0x511   : > { %3940 = vmatmul.f32.gmra.mxu2 %v9146_v17  ;;  %4086 = vmatmul.f32.vlgmr.msra.gmra.mxu0 %v9110_v6  ;;  %v6498_v6 = vld [vmem:[%s11260_s5 + $0x418] sm:$0xff] }
 0x512   : > { %4015 = vmatmul.f32.gmra.mxu3 %v9174_v52  ;;  %3869 = vmatmul.f32.gmra.mxu1 %v9138_v20  ;;  %v6497_v52 = vld [vmem:[%s11260_s5 + $0x410] sm:$0xff] }
 0x513   : > { %4155 = vmatpush.msrb.mxu1 %v6499_v47  ;;  %4436 = vmatpush.msrb.mxu2 %v6528_v1  ;;  %v4404_v47 = vld [vmem:[%s11262_s7 + $0x78] sm:$0xff] }
 0x514   : > { %4471 = vmatpush.msrb.mxu3 %v4404_v47  ;;  %v6566_v47 = vld [vmem:[%s11262_s7 + $0x1f8] sm:$0xff] }
 0x515   : > { %4156 = vmatpush.msrb.mxu1 %v6498_v6 }
 0x517   : > { %4157 = vmatpush.msrb.mxu1 %v6497_v52 }
 0x519   : > { %3943 = vmatmul.f32.gmra.mxu2 %v9176_v44  ;;  %4089 = vmatmul.f32.gmra.mxu0 %v9138_v20  ;;  %v6496_v20 = vld [vmem:[%s11260_s5 + $0x408] sm:$0xff] }
 0x51a   : > { %4018 = vmatmul.f32.gmra.mxu3 %v9233_v56  ;;  %3872 = vmatmul.f32.gmra.mxu1 %v9169_v50  ;;  %v6495_v56 = vld [vmem:[%s11260_s5 + $0x400] sm:$0xff] }
 0x51b   : > { %4158 = vmatpush.msrb.mxu1 %v6496_v20 }
 0x51d   : > { %4159 = vmatpush.msrb.mxu1 %v6495_v56  ;;  %v4403_v56 = vld [vmem:[%s11262_s7 + $0x70] sm:$0xff] }
 0x51e   : > { %4472 = vmatpush.msrb.mxu3 %v4403_v56 }
 0x51f   : > { %4611 = vmatpush.msra.mxu1 %v6566_v47  ;;  %v4391_v47 = vld [vmem:[%s11262_s7 + $0x10] sm:$0xff] }
 0x521   : > { %3946 = vmatmul.f32.gmra.mxu2 %v9235_v48  ;;  %4092 = vmatmul.f32.gmra.mxu0 %v9169_v50 }
 0x522   : > { %4021 = vmatmul.f32.gmra.mxu3 %v9315_v31  ;;  %3875 = vmatmul.f32.gmra.mxu1 %v9241_v40  ;;  %v3903_v31 = vld [vmem:[#allocation6 + $0xc9] sm:$0xff] }
 0x529   : > { %3949 = vmatmul.f32.gmra.mxu2 %v9317_v53  ;;  %4095 = vmatmul.f32.gmra.mxu0 %v9241_v40  ;;  %v3978_v40 = vld [vmem:[#allocation6 + $0xdf] sm:$0xff] }
 0x52a   : > { %4024 = vmatmul.f32.gmra.mxu3 %v9391_v25  ;;  %3878 = vmatmul.f32.gmra.mxu1 %v9323_v19 }
 0x52f   : > { %v9522_v50 = vpop.f32.mrf.mxu1 }
 0x530   : > { %v3650_v49 = vpop.f32.mrf.mxu2 }
 0x531   : > { %3952 = vmatmul.f32.gmra.mxu2 %v9393_v2  ;;  %4098 = vmatmul.f32.gmra.mxu0 %v9323_v19  ;;  %v4052_v19 = vld [vmem:[#allocation6 + $0xe0] sm:$0xff] }
 0x532   : > { %4027 = vmatmul.f32.gmra.mxu3 %v9433_v29  ;;  %3881 = vmatmul.f32.gmra.mxu1 %v9361_v13 }
 0x534   : > { %v3716_v59 = vpop.f32.mrf.mxu3 }
 0x539   : > { %3955 = vmatmul.f32.gmra.mxu2 %v9435_v33  ;;  %4101 = vmatmul.f32.gmra.mxu0 %v9361_v13 }
 0x53a   : > { %4030 = vmatmul.f32.gmra.mxu3 %v3755_v35  ;;  %3884 = vmatmul.f32.gmra.mxu1 %v9412_v54  ;;  %v3651_v35 = vadd.f32 %v3650_v49, %v9522_v50 }
 0x53c   : > { %v3740_v23 = vadd.f32 %v3716_v59, %v3651_v35 }
 0x541   : > { %3958 = vmatmul.f32.gmra.mxu2 %v3903_v31  ;;  %4104 = vmatmul.f32.gmra.mxu0 %v9412_v54 }
 0x542   : > { %4033 = vmatmul.f32.gmra.mxu3 %v3978_v40  ;;  %v9527_v26 = vpop.f32.mrf.mxu1  ;;  %4160 = vmatmul.f32.vlgmr.msrb.gmra.mxu1 %v9146_v17 }
 0x549   : > { %4107 = vmatmul.f32.gmra.mxu0 %v4052_v19 }
 0x54a   : > { %4163 = vmatmul.f32.gmra.mxu1 %v9176_v44  ;;  %v3790_v42 = vpop.f32.mrf.mxu0 }
 0x54b   : > { %v9530_v15 = vpop.f32.mrf.mxu1  ;;  %v3814_v8 = vadd.f32 %v3790_v42, %v3740_v23  ;;  %v4401_v42 = vld [vmem:[%s11262_s7 + $0x60] sm:$0xff] }
 0x550   : > { %v3653_v30 = vpop.f32.mrf.mxu2 }
 0x551   : > { %v3719_v18 = vpop.f32.mrf.mxu3  ;;  %v3654_v62 = vadd.f32 %v3653_v30, %v9527_v26 }
 0x552   : > { %4166 = vmatmul.f32.gmra.mxu1 %v9235_v48  ;;  %v9542_v32 = vpop.f32.mrf.mxu0 }
 0x553   : > { %v9534_v58 = vpop.f32.mrf.mxu1  ;;  %v3741_v52 = vadd.f32 %v3719_v18, %v3654_v62  ;;  %v6550_v18 = vld [vmem:[%s11262_s7 + $0x178] sm:$0xff] }
 0x554   : > { %4537 = vmatpush.msrb.mxu0 %v6550_v18  ;;  %v6526_v62 = vld [vmem:[%s11262_s7 + $0xb8] sm:$0xff] }
 0x555   : > { %v3815_v19 = vadd.f32 %v9542_v32, %v3741_v52 }
 0x558   : > { %v9544_v44 = vpop.f32.mrf.mxu2 }
 0x559   : > { %v9549_v55 = vpop.f32.mrf.mxu3  ;;  %v3657_v49 = vadd.f32 %v9544_v44, %v9530_v15 }
 0x55a   : > { %4169 = vmatmul.f32.gmra.mxu1 %v9317_v53  ;;  %v9551_v53 = vpop.f32.mrf.mxu0 }
 0x55b   : > { %v9537_v13 = vpop.f32.mrf.mxu1  ;;  %v3742_v32 = vadd.f32 %v9549_v55, %v3657_v49  ;;  %v6565_v49 = vld [vmem:[%s11262_s7 + $0x1f0] sm:$0xff] }
 0x55c   : > { %4612 = vmatpush.msra.mxu1 %v6565_v49  ;;  %v6559_v49 = vld [vmem:[%s11262_s7 + $0x1c0] sm:$0xff] }
 0x55d   : > { %v3816_v43 = vadd.f32 %v9551_v53, %v3742_v32  ;;  %v4397_v53 = vld [vmem:[%s11262_s7 + $0x40] sm:$0xff] }
 0x560   : > { %v9553_v22 = vpop.f32.mrf.mxu2 }
 0x561   : > { %v9557_v21 = vpop.f32.mrf.mxu3  ;;  %v3660_v1 = vadd.f32 %v9553_v22, %v9534_v58  ;;  %v6981_v22 = vld [vmem:[#allocation5 + $0x20] sm:$0xff] }
 0x562   : > { %4172 = vmatmul.f32.gmra.mxu1 %v9393_v2  ;;  %v9559_v5 = vpop.f32.mrf.mxu0 }
 0x564   : > { %v9540_v17 = vpop.f32.mrf.mxu1 }
 0x568   : > { %v9561_v12 = vpop.f32.mrf.mxu2 }
 0x569   : > { %v9563_v0 = vpop.f32.mrf.mxu3 }
 0x56a   : > { %4175 = vmatmul.f32.gmra.mxu1 %v9435_v33 }
 0x56c   : > { %v9565_v25 = vpop.f32.mrf.mxu0 }
 0x56e   : > { %v9547_v48 = vpop.f32.mrf.mxu1 }
 0x572   : > { %4178 = vmatmul.f32.gmra.mxu1 %v3903_v31  ;;  %v9567_v2 = vpop.f32.mrf.mxu2  ;;  %v4402_v31 = vld [vmem:[%s11262_s7 + $0x68] sm:$0xff] }
 0x573   : > { %v9572_v57 = vpop.f32.mrf.mxu3  ;;  %4473 = vmatpush.msrb.mxu3 %v4402_v31  ;;  %v6525_v31 = vld [vmem:[%s11262_s7 + $0xb0] sm:$0xff] }
 0x575   : > { %4474 = vmatpush.msrb.mxu3 %v4401_v42  ;;  %v6544_v42 = vld [vmem:[%s11262_s7 + $0x148] sm:$0xff] }
 0x576   : > { %v9582_v54 = vpop.f32.mrf.mxu0 }
 0x577   : > { %v9555_v3 = vpop.f32.mrf.mxu1 }
 0x57a   : > { %4181 = vmatmul.f32.gmra.mxu1 %v4126_v41  ;;  %v4400_v41 = vld [vmem:[%s11262_s7 + $0x58] sm:$0xff] }
 0x57b   : > { %4475 = vmatpush.msrb.mxu3 %v4400_v41  ;;  %v4394_v41 = vld [vmem:[%s11262_s7 + $0x28] sm:$0xff] }
 0x57c   : > { %v9584_v10 = vpop.f32.mrf.mxu2 }
 0x57d   : > { %v9586_v34 = vpop.f32.mrf.mxu3  ;;  %4476 = vmatpush.msrb.mxu3 %v4399_v63  ;;  %v6543_v63 = vld [vmem:[%s11262_s7 + $0x140] sm:$0xff] }
 0x57e   : > { %v9596_v7 = vpop.f32.mrf.mxu0 }
 0x57f   : > { %v3864_v27 = vpop.f32.mrf.mxu1  ;;  %4477 = vmatpush.msrb.mxu3 %v4398_v11  ;;  %v6982_v11 = vld [vmem:[#allocation5 + $0x38] sm:$0xff] }
 0x580   : > { %v3888_v24 = vadd.f32 %v3864_v27, %v3814_v8  ;;  %v9645_v27 = vld [vmem:[%s11261_s6] ss:$0 sm:$0xff] }
 0x581   : > { %4478 = vmatpush.msrb.mxu3 %v4397_v53 }
 0x584   : > { %v9598_v29 = vpop.f32.mrf.mxu2 }
 0x585   : > { %v9608_v36 = vpop.f32.mrf.mxu3 }
 0x586   : > { %v9610_v28 = vpop.f32.mrf.mxu0 }
 0x587   : > { %v3867_v38 = vpop.f32.mrf.mxu1 }
 0x588   : > { %v3889_v30 = vadd.f32 %v3867_v38, %v3815_v19  ;;  %v6549_v38 = vld [vmem:[%s11262_s7 + $0x170] sm:$0xff] }
 0x589   : > { %4538 = vmatpush.msrb.mxu0 %v6549_v38  ;;  %v6545_v19 = vld [vmem:[%s11262_s7 + $0x150] sm:$0xff]  ;;  %v6523_v38 = vld [vmem:[%s11262_s7 + $0xa0] sm:$0xff] }
 0x58b   : > { %4539 = vmatpush.msrb.mxu0 %v6548_v45 }
 0x58c   : > { %v3938_v9 = vpop.f32.mrf.mxu2 }
 0x58d   : > { %v4013_v16 = vpop.f32.mrf.mxu3  ;;  %v3962_v20 = vadd.f32 %v3938_v9, %v3888_v24  ;;  %v6546_v24 = vld [vmem:[%s11262_s7 + $0x158] sm:$0xff] }
 0x58e   : > { %v4087_v51 = vpop.f32.mrf.mxu0 }
 0x58f   : > { %v9574_v39 = vpop.f32.mrf.mxu1  ;;  %v4037_v59 = vadd.f32 %v4013_v16, %v3962_v20 }
 0x590   : > { %v3890_v58 = vadd.f32 %v9574_v39, %v3816_v43  ;;  %v4396_v39 = vld [vmem:[%s11262_s7 + $0x38] sm:$0xff] }
 0x591   : > { %v4111_v15 = vadd.f32 %v4087_v51, %v4037_v59  ;;  %v6527_v51 = vld [vmem:[%s11262_s7 + $0xc0] sm:$0xff]  ;;  %4479 = vmatpush.msrb.mxu3 %v4396_v39 }
 0x592   : > { %4437 = vmatpush.msrb.mxu2 %v6527_v51 }
 0x594   : > { %v3941_v14 = vpop.f32.mrf.mxu2  ;;  %4438 = vmatpush.msrb.mxu2 %v6526_v62  ;;  %v6521_v62 = vld [vmem:[%s11262_s7 + $0x90] sm:$0xff] }
 0x595   : > { %v4016_v6 = vpop.f32.mrf.mxu3  ;;  %v3963_v44 = vadd.f32 %v3941_v14, %v3889_v30  ;;  %v6547_v14 = vld [vmem:[%s11262_s7 + $0x160] sm:$0xff]  ;;  %v6564_v30 = vld [vmem:[%s11262_s7 + $0x1e8] sm:$0xff] }
 0x596   : > { %v4090_v40 = vpop.f32.mrf.mxu0  ;;  %4540 = vmatpush.msrb.mxu0 %v6547_v14  ;;  %4439 = vmatpush.msrb.mxu2 %v6525_v31 }
 0x597   : > { %v9588_v4 = vpop.f32.mrf.mxu1  ;;  %v4038_v9 = vadd.f32 %v4016_v6, %v3963_v44  ;;  %v3743_v6 = vadd.f32 %v9557_v21, %v3660_v1  ;;  %v4395_v21 = vld [vmem:[%s11262_s7 + $0x30] sm:$0xff]  ;;  %4613 = vmatpush.msra.mxu1 %v6564_v30  ;;  %v6522_v1 = vld [vmem:[%s11262_s7 + $0x98] sm:$0xff]  ;;  %v4381_v30 = vld [vmem:[#allocation5 + $0x7] sm:$0xff] }
 0x598   : > { %4541 = vmatpush.msrb.mxu0 %v6546_v24  ;;  %4480 = vmatpush.msrb.mxu3 %v4395_v21 }
 0x599   : > { %v4112_v52 = vadd.f32 %v4090_v40, %v4038_v9  ;;  %v3817_v32 = vadd.f32 %v9559_v5, %v3743_v6  ;;  %v3663_v5 = vadd.f32 %v9561_v12, %v9537_v13  ;;  %v6542_v13 = vld [vmem:[%s11262_s7 + $0x138] sm:$0xff]  ;;  %v6540_v6 = vld [vmem:[%s11262_s7 + $0x128] sm:$0xff] }
 0x59a   : > { %4542 = vmatpush.msrb.mxu0 %v6545_v19  ;;  %4481 = vmatpush.msrb.mxu3 %v4394_v41  ;;  %v6562_v12 = vld [vmem:[%s11262_s7 + $0x1d8] sm:$0xff]  ;;  %v6539_v19 = vld [vmem:[%s11262_s7 + $0x120] sm:$0xff] }
 0x59b   : > { %v4392_v9 = vld [vmem:[%s11262_s7 + $0x18] sm:$0xff] }
 0x59c   : > { %v3944_v26 = vpop.f32.mrf.mxu2  ;;  %4543 = vmatpush.msrb.mxu0 %v6544_v42  ;;  %v4405_v42 = vld [vmem:[#allocation5 + $0x8] sm:$0xff] }
 0x59d   : > { %v4019_v60 = vpop.f32.mrf.mxu3  ;;  %v3964_v20 = vadd.f32 %v3944_v26, %v3890_v58  ;;  %v6524_v26 = vld [vmem:[%s11262_s7 + $0xa8] sm:$0xff]  ;;  %v6541_v58 = vld [vmem:[%s11262_s7 + $0x130] sm:$0xff] }
 0x59e   : > { %v9662_v16 = vpop.f32.mrf.mxu0  ;;  %4440 = vmatpush.msrb.mxu2 %v6524_v26  ;;  %4544 = vmatpush.msrb.mxu0 %v6543_v63  ;;  %v4389_v26 = vld [vmem:[%s11262_s7] sm:$0xff]  ;;  %v3669_v63 = vadd.f32 %v9584_v10, %v9547_v48 }
 0x59f   : > { %v9600_v33 = vpop.f32.mrf.mxu1 }
 0x5a0   : > { %4441 = vmatpush.msrb.mxu2 %v6523_v38  ;;  %4545 = vmatpush.msrb.mxu0 %v6542_v13  ;;  %v6536_v13 = vld [vmem:[%s11262_s7 + $0x108] sm:$0xff] }
 0x5a2   : > { %4442 = vmatpush.msrb.mxu2 %v6522_v1  ;;  %4546 = vmatpush.msrb.mxu0 %v6541_v58 }
 0x5a4   : > { %v9674_v23 = vpop.f32.mrf.mxu2  ;;  %4443 = vmatpush.msrb.mxu2 %v6521_v62  ;;  %4547 = vmatpush.msrb.mxu0 %v6540_v6 }
 0x5a5   : > { %v4022_v18 = vpop.f32.mrf.mxu3 }
 0x5a6   : > { %v9734_v45 = vpop.f32.mrf.mxu0  ;;  %4548 = vmatpush.msrb.mxu0 %v6539_v19 }
 0x5a7   : > { %v9612_v61 = vpop.f32.mrf.mxu1 }
 0x5af   : > { %v9615_v37 = vpop.f32.mrf.mxu1 }
 0x5b7   : > { %v9624_v50 = vpop.f32.mrf.mxu1 }
 0x5bf   : > { %v4161_v46 = vpop.f32.mrf.mxu1 }
 0x5c0   : > { %v4185_v55 = vadd.f32 %v4161_v46, %v4111_v15  ;;  %v4039_v15 = vadd.f32 %v4019_v60, %v3964_v20  ;;  %v6563_v46 = vld [vmem:[%s11262_s7 + $0x1e0] sm:$0xff]  ;;  %v4390_v20 = vld [vmem:[%s11262_s7 + $0x8] sm:$0xff] }
 0x5c1   : > { %v4393_v60 = vld [vmem:[%s11262_s7 + $0x20] sm:$0xff]  ;;  %4614 = vmatpush.msra.mxu1 %v6563_v46 }
 0x5c2   : > { %v4197_v35 = vadd.f32 %v9645_v27, %v4185_v55  ;;  %v3891_v55 = vadd.f32 %v9588_v4, %v3817_v32  ;;  %4482 = vmatpush.msrb.mxu3 %v4393_v60  ;;  %v9747_v4 = vpop.f32.mrf.mxu2  ;;  %v4113_v51 = vadd.f32 %v9662_v16, %v4039_v15  ;;  %v3744_v16 = vadd.f32 %v9563_v0, %v3663_v5  ;;  %v6560_v0 = vld [vmem:[%s11262_s7 + $0x1c8] sm:$0xff]  ;;  %v6538_v32 = vld [vmem:[%s11262_s7 + $0x118] sm:$0xff]  ;;  %v4099_v5 = vpop.f32.mrf.mxu0 }
 0x5c3   : > { %4615 = vmatpush.msra.mxu1 %v6562_v12  ;;  %v3666_v15 = vadd.f32 %v9567_v2, %v9540_v17  ;;  %4549 = vmatpush.msrb.mxu0 %v6538_v32  ;;  %v6557_v17 = vld [vmem:[%s11262_s7 + $0x1b0] sm:$0xff]  ;;  %v6556_v12 = vld [vmem:[%s11262_s7 + $0x1a8] sm:$0xff] }
 0x5c4   : > { %v9677_v8 = vadd.f32 %v6981_v22, %v4197_v35  ;;  %v3965_v14 = vadd.f32 %v9674_v23, %v3891_v55  ;;  %v6561_v22 = vld [vmem:[%s11262_s7 + $0x1d0] sm:$0xff]  ;;  %4483 = vmatpush.msrb.mxu3 %v4392_v9  ;;  %v3818_v21 = vadd.f32 %v9565_v25, %v3744_v16  ;;  %v6558_v25 = vld [vmem:[%s11262_s7 + $0x1b8] sm:$0xff]  ;;  %v3746_v9 = vadd.f32 %v9586_v34, %v3669_v63  ;;  %v6984_v16 = vld [vmem:[#allocation5 + $0x68] sm:$0xff] }
 0x5c5   : > { %4616 = vmatpush.msra.mxu1 %v6561_v22  ;;  %v6537_v55 = vld [vmem:[%s11262_s7 + $0x110] sm:$0xff] }
 0x5c6   : > { %v6511_v56 = vmul.f32 -1.442695, %v9677_v8  ;;  %4484 = vmatpush.msrb.mxu3 %v4391_v47  ;;  %4550 = vmatpush.msrb.mxu0 %v6537_v55  ;;  %v4512_v22 = vld [vmem:[#allocation5 + $0x9] sm:$0xff]  ;;  %v6554_v47 = vld [vmem:[%s11262_s7 + $0x198] sm:$0xff] }
 0x5c7   : > { %v4164_v59 = vpop.f32.mrf.mxu1  ;;  %4617 = vmatpush.msra.mxu1 %v6560_v0 }
 0x5c8   : > { %6874 = vpow2.f32 %v6511_v56  ;;  %v4186_v40 = vadd.f32 %v4164_v59, %v4112_v52  ;;  %v6520_v52 = vld [vmem:[%s11262_s7 + $0x88] sm:$0xff]  ;;  %v4040_v56 = vadd.f32 %v4022_v18, %v3965_v14  ;;  %4485 = vmatpush.msrb.mxu3 %v4390_v20  ;;  %v6519_v59 = vld [vmem:[%s11262_s7 + $0x80] sm:$0xff]  ;;  %v6983_v18 = vld [vmem:[#allocation5 + $0x50] sm:$0xff]  ;;  %4551 = vmatpush.msrb.mxu0 %v6536_v13 }
 0x5c9   : > { %4444 = vmatpush.msrb.mxu2 %v6520_v52  ;;  %4618 = vmatpush.msra.mxu1 %v6559_v49  ;;  %v6535_v14 = vld [vmem:[%s11262_s7 + $0x100] sm:$0xff]  ;;  %v3820_v52 = vadd.f32 %v9596_v7, %v3746_v9 }
 0x5ca   : > { %v4198_v44 = vadd.f32 %v9645_v27, %v4186_v40  ;;  %v4025_v40 = vpop.f32.mrf.mxu3  ;;  %4486 = vmatpush.msrb.mxu3 %v4389_v26  ;;  %v4114_v46 = vadd.f32 %v9734_v45, %v4040_v56  ;;  %4552 = vmatpush.msrb.mxu0 %v6535_v14  ;;  %v6552_v26 = vld [vmem:[%s11262_s7 + $0x188] sm:$0xff] }
 0x5cb   : > { %4445 = vmatpush.msrb.mxu2 %v6519_v59  ;;  %4619 = vmatpush.msra.mxu1 %v6558_v25  ;;  %v3894_v63 = vadd.f32 %v9615_v37, %v3820_v52  ;;  %v6985_v37 = vld [vmem:[#allocation5 + $0x80] sm:$0xff] }
 0x5cc   : > { %v9736_v43 = vadd.f32 %v6982_v11, %v4198_v44  ;;  %v3892_v44 = vadd.f32 %v9600_v33, %v3818_v21  ;;  %4446 = vmatmul.f32.vlgmr.msrb.gmra.mxu2 %v4405_v42  ;;  %4487 = vmatmul.f32.vlgmr.msrb.gmra.mxu3 %v4381_v30  ;;  %v3953_v11 = vpop.f32.mrf.mxu2  ;;  %v4102_v30 = vpop.f32.mrf.mxu0 }
 0x5cd   : > { %4620 = vmatpush.msra.mxu1 %v6557_v17  ;;  %4553 = vmatmul.f32.vlgmr.msrb.gmra.mxu0 %v4512_v22 }
 0x5ce   : > { %v6875_v35 = vpop.eup %6874  ;;  %v6512_v53 = vmul.f32 -1.442695, %v9736_v43  ;;  %v3966_v33 = vadd.f32 %v9747_v4, %v3892_v44  ;;  %v3745_v4 = vadd.f32 %v9572_v57, %v3666_v15 }
 0x5cf   : > { %v9765_v24 = vadd.f32 1.0, %v6875_v35  ;;  %v4167_v23 = vpop.f32.mrf.mxu1  ;;  %4621 = vmatpush.msra.mxu1 %v6556_v12 }
 0x5d0   : > { %6876 = vpow2.f32 %v6512_v53  ;;  %v4187_v39 = vadd.f32 %v4167_v23, %v4113_v51  ;;  %v6555_v53 = vld [vmem:[%s11262_s7 + $0x1a0] sm:$0xff]  ;;  %v4041_v58 = vadd.f32 %v4025_v40, %v3966_v33 }
 0x5d1   : > { %6878 = vrcp.f32 %v9765_v24  ;;  %v4256_v57 = vand.u32 2147483648, %v9765_v24  ;;  %v4254_v34 = vand.u32 2147483647, %v9765_v24  ;;  %4622 = vmatpush.msra.mxu1 %v6555_v53  ;;  %vm4250_vm1 = vweird.f32 %v9765_v24 }
 0x5d2   : > { %v4199_v31 = vadd.f32 %v9645_v27, %v4187_v39  ;;  %v3819_v39 = vadd.f32 %v9582_v54, %v3745_v4  ;;  %v4028_v6 = vpop.f32.mrf.mxu3  ;;  %v4115_v59 = vadd.f32 %v4099_v5, %v4041_v58 }
 0x5d3   : > { %4623 = vmatpush.msra.mxu1 %v6554_v47  ;;  %v4257_v54 = vor.u32 1.1754944e-38, %v4256_v57  ;;  %vm4255_vm3 = vcmp.eq.f32.partialorder %v4254_v34, 8.507059e+37 }
 0x5d4   : > { %v9797_v41 = vadd.f32 %v6983_v18, %v4199_v31  ;;  %v6553_v31 = vld [vmem:[%s11262_s7 + $0x190] sm:$0xff]  ;;  %v3893_v49 = vadd.f32 %v9612_v61, %v3819_v39  ;;  %v3672_v61 = vadd.f32 %v9598_v29, %v9555_v3  ;;  %v3956_v18 = vpop.f32.mrf.mxu2  ;;  %v4105_v57 = vpop.f32.mrf.mxu0 }
 0x5d5   : > { %4624 = vmatpush.msra.mxu1 %v6553_v31  ;;  %v3968_v17 = vadd.f32 %v3956_v18, %v3894_v63 }
 0x5d6   : > { %v6877_v38 = vpop.eup %6876  ;;  %v6513_v60 = vmul.f32 -1.442695, %v9797_v41  ;;  %v3967_v42 = vadd.f32 %v3953_v11, %v3893_v49  ;;  %v3747_v5 = vadd.f32 %v9608_v36, %v3672_v61  ;;  %v6582_v11 = vld [vmem:[%s11262_s7 + $0x278] sm:$0xff] }
 0x5d7   : > { %v6879_v2 = vpop.eup %6878  ;;  %v9819_v48 = vadd.f32 1.0, %v6877_v38  ;;  %v4170_v10 = vpop.f32.mrf.mxu1  ;;  %4625 = vmatpush.msra.mxu1 %v6552_v26  ;;  %v6551_v38 = vld [vmem:[%s11262_s7 + $0x180] sm:$0xff]  ;;  %4685 = vmatpush.msra.mxu2 %v6582_v11 }
 0x5d8   : > { %v4246_v45 = vmul.f32 %v6879_v2, %v9765_v24  ;;  %6880 = vpow2.f32 %v6513_v60  ;;  %v4188_v1 = vadd.f32 %v4170_v10, %v4114_v46  ;;  %vm4251_vm0 = vweird.f32 %v6879_v2 }
 0x5d9   : > { %6882 = vrcp.f32 %v9819_v48  ;;  %vm4252_vm2 = vmor %vm4250_vm1, %vm4251_vm0  ;;  %v4271_v3 = vand.u32 2147483648, %v9819_v48  ;;  %v4269_v46 = vand.u32 2147483647, %v9819_v48  ;;  %4626 = vmatpush.msra.mxu1 %v6551_v38  ;;  %v4042_v60 = vadd.f32 %v4028_v6, %v3967_v42 }
 0x5da   : > { %v4247_v35 = vsub.f32 1.0, %v4246_v45  ;;  %v4200_v51 = vadd.f32 %v9645_v27, %v4188_v1  ;;  %vm4265_vm5 = vweird.f32 %v9819_v48  ;;  %v4031_v45 = vpop.f32.mrf.mxu3  ;;  %v3821_v9 = vadd.f32 %v9610_v28, %v3747_v5 }
 0x5db   : > { %v4272_v1 = vor.u32 1.1754944e-38, %v4271_v3  ;;  %vm4270_vm7 = vcmp.eq.f32.partialorder %v4269_v46, 8.507059e+37  ;;  %v4043_v14 = vadd.f32 %v4031_v45, %v3968_v17 }
 0x5dc   : > { %v4248_v62 = vmul.f32 %v6879_v2, %v4247_v35  ;;  %v9840_v23 = vadd.f32 %v6984_v16, %v4200_v51  ;;  %v4116_v35 = vadd.f32 %v4102_v30, %v4042_v60  ;;  %v3959_v22 = vpop.f32.mrf.mxu2  ;;  %v3895_v28 = vadd.f32 %v9624_v50, %v3821_v9  ;;  %v4108_v38 = vpop.f32.mrf.mxu0  ;;  %v6579_v60 = vld [vmem:[%s11262_s7 + $0x260] sm:$0xff] }
 0x5de   : > { %v6881_v0 = vpop.eup %6880  ;;  %v4249_v20 = vadd.f32 %v6879_v2, %v4248_v62  ;;  %v6514_v56 = vmul.f32 -1.442695, %v9840_v23  ;;  %v3969_v52 = vadd.f32 %v3959_v22, %v3895_v28  ;;  %v6614_v28 = vld [vmem:[%s11262_s7 + $0x378] sm:$0xff] }
 0x5df   : > { %v6883_v19 = vpop.eup %6882  ;;  %v9854_v21 = vadd.f32 1.0, %v6881_v0  ;;  %v4173_v7 = vpop.f32.mrf.mxu1  ;;  %v4117_v0 = vadd.f32 %v4105_v57, %v4043_v14  ;;  %v6988_v57 = vld [vmem:[#allocation5 + $0xc8] sm:$0xff]  ;;  %4833 = vmatpush.msra.mxu0 %v6614_v28  ;;  %v6591_v28 = vld [vmem:[%s11262_s7 + $0x2c0] sm:$0xff] }
 0x5e0   : > { %v4253_v40 = vsel %vm4252_vm2, %v6879_v2, %v4249_v20  ;;  %v4261_v24 = vmul.f32 %v6883_v19, %v9819_v48  ;;  %6884 = vpow2.f32 %v6514_v56  ;;  %v4189_v44 = vadd.f32 %v4173_v7, %v4115_v59 }
 0x5e1   : > { %v4258_v32 = vsel %vm4255_vm3, %v4257_v54, %v4253_v40  ;;  %6886 = vrcp.f32 %v9854_v21  ;;  %vm4266_vm4 = vweird.f32 %v6883_v19  ;;  %v4286_v62 = vand.u32 2147483648, %v9854_v21 }
 0x5e2   : > { %v9864_v25 = vmul.f32 %v4258_v32, %v9677_v8  ;;  %v4262_v15 = vsub.f32 1.0, %v4261_v24  ;;  %v4201_v8 = vadd.f32 %v9645_v27, %v4189_v44  ;;  %vm4267_vm6 = vmor %vm4265_vm5, %vm4266_vm4  ;;  %v4284_v6 = vand.u32 2147483647, %v9854_v21  ;;  %v4034_v56 = vpop.f32.mrf.mxu3  ;;  %v6581_v24 = vld [vmem:[%s11262_s7 + $0x270] sm:$0xff] }
 0x5e3   : > { %vm4280_vm9 = vweird.f32 %v9854_v21  ;;  %v4287_v31 = vor.u32 1.1754944e-38, %v4286_v62  ;;  %4686 = vmatpush.msra.mxu2 %v6581_v24  ;;  %v4044_v18 = vadd.f32 %v4034_v56, %v3969_v52  ;;  %v6597_v52 = vld [vmem:[%s11262_s7 + $0x2f0] sm:$0xff]  ;;  %v6596_v56 = vld [vmem:[%s11262_s7 + $0x2e8] sm:$0xff] }
 0x5e4   : > { %4373 = vst [vmem:[#allocation5 + $0x20] sm:$0xff] %v9864_v25  ;;  %v4263_v29 = vmul.f32 %v6883_v19, %v4262_v15  ;;  %4449 = vmatmul.f32.gmra.mxu2 %v9864_v25  ;;  %v9877_v33 = vadd.f32 %v6985_v37, %v4201_v8  ;;  %vm4285_vm11 = vcmp.eq.f32.partialorder %v4284_v6, 8.507059e+37  ;;  %v6573_v24 = vld [vmem:[%s11262_s7 + $0x230] sm:$0xff] }
 0x5e5   : > { %v4118_v17 = vadd.f32 %v4108_v38, %v4044_v18  ;;  %v6611_v18 = vld [vmem:[%s11262_s7 + $0x360] sm:$0xff]  ;;  %v6629_v38 = vld [vmem:[%s11262_s7 + $0x3f0] sm:$0xff] }
 0x5e6   : > { %v6885_v55 = vpop.eup %6884  ;;  %v4264_v2 = vadd.f32 %v6883_v19, %v4263_v29  ;;  %v6515_v4 = vmul.f32 -1.442695, %v9877_v33 }
 0x5e7   : > { %v6887_v10 = vpop.eup %6886  ;;  %v9883_v13 = vadd.f32 1.0, %v6885_v55  ;;  %v4176_v36 = vpop.f32.mrf.mxu1  ;;  %v6578_v55 = vld [vmem:[%s11262_s7 + $0x258] sm:$0xff] }
 0x5e8   : > { %v4268_v12 = vsel %vm4267_vm6, %v6883_v19, %v4264_v2  ;;  %v4276_v48 = vmul.f32 %v6887_v10, %v9854_v21  ;;  %v4190_v34 = vadd.f32 %v4176_v36, %v4116_v35  ;;  %vm4281_vm8 = vweird.f32 %v6887_v10  ;;  %v6986_v19 = vld [vmem:[#allocation5 + $0x98] sm:$0xff]  ;;  %v6580_v21 = vld [vmem:[%s11262_s7 + $0x268] sm:$0xff] }
 0x5e9   : > { %v4273_v51 = vsel %vm4270_vm7, %v4272_v1, %v4268_v12  ;;  %6888 = vrcp.f32 %v9883_v13  ;;  %vm4282_vm10 = vmor %vm4280_vm9, %vm4281_vm8  ;;  %v4299_v63 = vand.u32 2147483647, %v9883_v13  ;;  %v4301_v3 = vand.u32 2147483648, %v9883_v13  ;;  %4687 = vmatpush.msra.mxu2 %v6580_v21  ;;  %v6595_v21 = vld [vmem:[%s11262_s7 + $0x2e0] sm:$0xff] }
 0x5ea   : > { %v9890_v53 = vmul.f32 %v4273_v51, %v9736_v43  ;;  %v4277_v58 = vsub.f32 1.0, %v4276_v48  ;;  %6890 = vpow2.f32 %v6515_v4  ;;  %v4202_v43 = vadd.f32 %v9645_v27, %v4190_v34 }
 0x5eb   : > { %v4382_v16 = vld [vmem:[#allocation5 + $0x1f] sm:$0xff]  ;;  %4688 = vmatpush.msra.mxu2 %v6579_v60  ;;  %vm4295_vm13 = vweird.f32 %v9883_v13  ;;  %v4302_v11 = vor.u32 1.1754944e-38, %v4301_v3  ;;  %vm4300_vm15 = vcmp.eq.f32.partialorder %v4299_v63, 8.507059e+37  ;;  %v6572_v63 = vld [vmem:[%s11262_s7 + $0x228] sm:$0xff] }
 0x5ec   : > { %v9893_v47 = vld [vmem:[#allocation5 + $0x21] sm:$0xff]  ;;  %4374 = vst [vmem:[#allocation5 + $0x38] sm:$0xff] %v9890_v53  ;;  %v4278_v39 = vmul.f32 %v6887_v10, %v4277_v58  ;;  %4490 = vmatmul.f32.gmra.mxu3 %v4382_v16  ;;  %4627 = vmatmul.f32.vlgmr.msra.gmra.mxu1 %v4382_v16  ;;  %v9902_v49 = vadd.f32 %v6986_v19, %v4202_v43  ;;  %v6598_v16 = vld [vmem:[%s11262_s7 + $0x2f8] sm:$0xff] }
 0x5ed   : > { %4556 = vmatmul.f32.gmra.mxu0 %v9893_v47  ;;  %4452 = vmatmul.f32.gmra.mxu2 %v9890_v53  ;;  %v6574_v19 = vld [vmem:[%s11262_s7 + $0x238] sm:$0xff]  ;;  %v6628_v60 = vld [vmem:[%s11262_s7 + $0x3e8] sm:$0xff] }
 0x5ee   : > { %v4279_v20 = vadd.f32 %v6887_v10, %v4278_v39  ;;  %v6516_v30 = vmul.f32 -1.442695, %v9902_v49  ;;  %4689 = vmatpush.msra.mxu2 %v6578_v55  ;;  %4759 = vmatpush.msra.mxu3 %v6598_v16 }
 0x5ef   : > { %v6889_v50 = vpop.eup %6888  ;;  %v4179_v59 = vpop.f32.mrf.mxu1 }
 0x5f0   : > { %v6891_v54 = vpop.eup %6890  ;;  %v4283_v7 = vsel %vm4282_vm10, %v6887_v10, %v4279_v20  ;;  %v4291_v40 = vmul.f32 %v6889_v50, %v9883_v13  ;;  %v4191_v26 = vadd.f32 %v4179_v59, %v4117_v0  ;;  %vm4296_vm12 = vweird.f32 %v6889_v50  ;;  %v6575_v0 = vld [vmem:[%s11262_s7 + $0x240] sm:$0xff]  ;;  %v6613_v20 = vld [vmem:[%s11262_s7 + $0x370] sm:$0xff]  ;;  %4760 = vmatpush.msra.mxu3 %v6597_v52  ;;  %v6612_v59 = vld [vmem:[%s11262_s7 + $0x368] sm:$0xff] }
 0x5f1   : > { %v4288_v61 = vsel %vm4285_vm11, %v4287_v31, %v4283_v7  ;;  %v9911_v42 = vadd.f32 1.0, %v6891_v54  ;;  %vm4297_vm14 = vmor %vm4295_vm13, %vm4296_vm12  ;;  %4834 = vmatpush.msra.mxu0 %v6613_v20  ;;  %v6630_v7 = vld [vmem:[%s11262_s7 + $0x3f8] sm:$0xff] }
 0x5f2   : > { %v9915_v32 = vmul.f32 %v4288_v61, %v9797_v41  ;;  %v4292_v15 = vsub.f32 1.0, %v4291_v40  ;;  %v4203_v44 = vadd.f32 %v9645_v27, %v4191_v26  ;;  %v6987_v41 = vld [vmem:[#allocation5 + $0xb0] sm:$0xff]  ;;  %4761 = vmatpush.msra.mxu3 %v6596_v56  ;;  %4907 = vmatpush.msrb.mxu1 %v6630_v7  ;;  %v6590_v56 = vld [vmem:[%s11262_s7 + $0x2b8] sm:$0xff] }
 0x5f3   : > { %6892 = vrcp.f32 %v9911_v42  ;;  %v9921_v29 = vld [vmem:[#allocation5 + $0x37] sm:$0xff]  ;;  %v4314_v62 = vand.u32 2147483647, %v9911_v42  ;;  %v4316_v34 = vand.u32 2147483648, %v9911_v42  ;;  %vm4310_vm1 = vweird.f32 %v9911_v42  ;;  %4835 = vmatpush.msra.mxu0 %v6612_v59 }
 0x5f4   : > { %v9923_v46 = vld [vmem:[#allocation5 + $0x39] sm:$0xff]  ;;  %4375 = vst [vmem:[#allocation5 + $0x50] sm:$0xff] %v9915_v32  ;;  %v4293_v8 = vmul.f32 %v6889_v50, %v4292_v15  ;;  %6894 = vpow2.f32 %v6516_v30  ;;  %v9926_v5 = vadd.f32 %v6987_v41, %v4203_v44  ;;  %4493 = vmatmul.f32.gmra.mxu3 %v9921_v29  ;;  %4630 = vmatmul.f32.gmra.mxu1 %v9921_v29  ;;  %v6569_v59 = vld [vmem:[%s11262_s7 + $0x210] sm:$0xff] }
 0x5f5   : > { %4559 = vmatmul.f32.gmra.mxu0 %v9923_v46  ;;  %4455 = vmatmul.f32.gmra.mxu2 %v9915_v32  ;;  %v4317_v54 = vor.u32 1.1754944e-38, %v4316_v34  ;;  %vm4315_vm3 = vcmp.eq.f32.partialorder %v4314_v62, 8.507059e+37  ;;  %v6610_v41 = vld [vmem:[%s11262_s7 + $0x358] sm:$0xff] }
 0x5f6   : > { %v4294_v2 = vadd.f32 %v6889_v50, %v4293_v8  ;;  %v6517_v37 = vmul.f32 -1.442695, %v9926_v5  ;;  %4762 = vmatpush.msra.mxu3 %v6595_v21  ;;  %4836 = vmatpush.msra.mxu0 %v6611_v18 }
 0x5f7   : > { %v4182_v10 = vpop.f32.mrf.mxu1  ;;  %4908 = vmatpush.msrb.mxu1 %v6629_v38  ;;  %v6588_v38 = vld [vmem:[%s11262_s7 + $0x2a8] sm:$0xff] }
 0x5f8   : > { %v4298_v45 = vsel %vm4297_vm14, %v6889_v50, %v4294_v2  ;;  %6896 = vpow2.f32 %v6517_v37  ;;  %v4192_v1 = vadd.f32 %v4182_v10, %v4118_v17  ;;  %v6571_v10 = vld [vmem:[%s11262_s7 + $0x220] sm:$0xff]  ;;  %4837 = vmatpush.msra.mxu0 %v6610_v41 }
 0x5f9   : > { %v6893_v36 = vpop.eup %6892  ;;  %v4303_v12 = vsel %vm4300_vm15, %v4302_v11, %v4298_v45  ;;  %v6593_v11 = vld [vmem:[%s11262_s7 + $0x2d0] sm:$0xff]  ;;  %4909 = vmatpush.msrb.mxu1 %v6628_v60  ;;  %v6587_v60 = vld [vmem:[%s11262_s7 + $0x2a0] sm:$0xff] }
 0x5fa   : > { %v6895_v48 = vpop.eup %6894  ;;  %v9942_v4 = vmul.f32 %v4303_v12, %v9840_v23  ;;  %v4306_v13 = vmul.f32 %v6893_v36, %v9911_v42  ;;  %v4204_v9 = vadd.f32 %v9645_v27, %v4192_v1  ;;  %v6577_v23 = vld [vmem:[%s11262_s7 + $0x250] sm:$0xff]  ;;  %v6576_v27 = vld [vmem:[%s11262_s7 + $0x248] sm:$0xff]  ;;  %vm4311_vm0 = vweird.f32 %v6893_v36  ;;  %v6627_v12 = vld [vmem:[%s11262_s7 + $0x3e0] sm:$0xff] }
 0x5fb   : > { %v9946_v35 = vadd.f32 1.0, %v6895_v48  ;;  %v9948_v51 = vld [vmem:[#allocation5 + $0x4f] sm:$0xff]  ;;  %4690 = vmatpush.msra.mxu2 %v6577_v23  ;;  %vm4312_vm2 = vmor %vm4310_vm1, %vm4311_vm0  ;;  %v6626_v23 = vld [vmem:[%s11262_s7 + $0x3d8] sm:$0xff]  ;;  %4910 = vmatpush.msrb.mxu1 %v6627_v12 }
 0x5fc   : > { %v9950_v14 = vld [vmem:[#allocation5 + $0x51] sm:$0xff]  ;;  %4376 = vst [vmem:[#allocation5 + $0x68] sm:$0xff] %v9942_v4  ;;  %v4307_v58 = vsub.f32 1.0, %v4306_v13  ;;  %v9953_v22 = vadd.f32 %v6988_v57, %v4204_v9  ;;  %4496 = vmatmul.f32.gmra.mxu3 %v9948_v51  ;;  %4633 = vmatmul.f32.gmra.mxu1 %v9948_v51  ;;  %v6592_v48 = vld [vmem:[%s11262_s7 + $0x2c8] sm:$0xff] }
 0x5fd   : > { %4562 = vmatmul.f32.gmra.mxu0 %v9950_v14  ;;  %6898 = vrcp.f32 %v9946_v35  ;;  %4458 = vmatmul.f32.gmra.mxu2 %v9942_v4  ;;  %v4329_v17 = vand.u32 2147483647, %v9946_v35  ;;  %v4331_v2 = vand.u32 2147483648, %v9946_v35  ;;  %v6570_v13 = vld [vmem:[%s11262_s7 + $0x218] sm:$0xff]  ;;  %vm4325_vm5 = vweird.f32 %v9946_v35  ;;  %v6608_v57 = vld [vmem:[%s11262_s7 + $0x348] sm:$0xff]  ;;  %v6621_v12 = vld [vmem:[%s11262_s7 + $0x3b0] sm:$0xff] }
 0x5fe   : > { %v6897_v39 = vpop.eup %6896  ;;  %v4308_v6 = vmul.f32 %v6893_v36, %v4307_v58  ;;  %v6518_v43 = vmul.f32 -1.442695, %v9953_v22  ;;  %4691 = vmatpush.msra.mxu2 %v6576_v27  ;;  %4911 = vmatpush.msrb.mxu1 %v6626_v23  ;;  %v6620_v23 = vld [vmem:[%s11262_s7 + $0x3a8] sm:$0xff] }
 0x5ff   : > { %v9984_v50 = vadd.f32 1.0, %v6897_v39  ;;  %vm4330_vm7 = vcmp.eq.f32.partialorder %v4329_v17, 8.507059e+37  ;;  %v4332_v27 = vor.u32 1.1754944e-38, %v4331_v2  ;;  %v6603_v2 = vld [vmem:[%s11262_s7 + $0x320] sm:$0xff] }
 0x600   : > { %v4309_v31 = vadd.f32 %v6893_v36, %v4308_v6  ;;  %6900 = vpow2.f32 %v6518_v43  ;;  %4692 = vmatpush.msra.mxu2 %v6575_v0  ;;  %v6607_v0 = vld [vmem:[%s11262_s7 + $0x340] sm:$0xff] }
 0x601   : > { %6902 = vrcp.f32 %v9984_v50  ;;  %v4346_v62 = vand.u32 2147483648, %v9984_v50  ;;  %v4344_v16 = vand.u32 2147483647, %v9984_v50  ;;  %vm4340_vm9 = vweird.f32 %v9984_v50 }
 0x602   : > { %v4313_v40 = vsel %vm4312_vm2, %v6893_v36, %v4309_v31  ;;  %4693 = vmatpush.msra.mxu2 %v6574_v19  ;;  %v6609_v36 = vld [vmem:[%s11262_s7 + $0x350] sm:$0xff] }
 0x603   : > { %v10007_v26 = vpop.eup %6898  ;;  %v4318_v61 = vsel %vm4315_vm3, %v4317_v54, %v4313_v40  ;;  %v10009_v42 = vld [vmem:[#allocation5 + $0x67] sm:$0xff]  ;;  %4838 = vmatpush.msra.mxu0 %v6609_v36  ;;  %v6625_v31 = vld [vmem:[%s11262_s7 + $0x3d0] sm:$0xff]  ;;  %vm4345_vm11 = vcmp.eq.f32.partialorder %v4344_v16, 8.507059e+37 }
 0x604   : > { %v10011_v30 = vld [vmem:[#allocation5 + $0x69] sm:$0xff]  ;;  %v10017_v15 = vmul.f32 %v4318_v61, %v9877_v33  ;;  %v4321_v44 = vmul.f32 %v10007_v26, %v9946_v35  ;;  %4499 = vmatmul.f32.gmra.mxu3 %v10009_v42  ;;  %4636 = vmatmul.f32.gmra.mxu1 %v10009_v42  ;;  %v6594_v33 = vld [vmem:[%s11262_s7 + $0x2d8] sm:$0xff]  ;;  %vm4326_vm4 = vweird.f32 %v10007_v26 }
 0x605   : > { %4565 = vmatmul.f32.gmra.mxu0 %v10011_v30  ;;  %4694 = vmatpush.msra.mxu2 %v6573_v24  ;;  %vm4327_vm6 = vmor %vm4325_vm5, %vm4326_vm4  ;;  %v6589_v40 = vld [vmem:[%s11262_s7 + $0x2b0] sm:$0xff]  ;;  %v6624_v24 = vld [vmem:[%s11262_s7 + $0x3c8] sm:$0xff] }
 0x606   : > { %v6901_v3 = vpop.eup %6900  ;;  %4377 = vst [vmem:[#allocation5 + $0x80] sm:$0xff] %v10017_v15  ;;  %v4322_v8 = vsub.f32 1.0, %v4321_v44  ;;  %4461 = vmatmul.f32.gmra.mxu2 %v10017_v15  ;;  %4763 = vmatpush.msra.mxu3 %v6594_v33  ;;  %v6568_v61 = vld [vmem:[%s11262_s7 + $0x208] sm:$0xff] }
 0x607   : > { %v10040_v55 = vpop.eup %6902  ;;  %v10044_v37 = vadd.f32 1.0, %v6901_v3  ;;  %4695 = vmatpush.msra.mxu2 %v6572_v63  ;;  %4839 = vmatpush.msra.mxu0 %v6608_v57  ;;  %v6623_v63 = vld [vmem:[%s11262_s7 + $0x3c0] sm:$0xff]  ;;  %v6604_v3 = vld [vmem:[%s11262_s7 + $0x328] sm:$0xff]  ;;  %v6601_v57 = vld [vmem:[%s11262_s7 + $0x310] sm:$0xff] }
 0x608   : > { %v4323_v45 = vmul.f32 %v10007_v26, %v4322_v8  ;;  %v4336_v1 = vmul.f32 %v10040_v55, %v9984_v50  ;;  %4764 = vmatpush.msra.mxu3 %v6593_v11  ;;  %vm4341_vm8 = vweird.f32 %v10040_v55  ;;  %v6606_v50 = vld [vmem:[%s11262_s7 + $0x338] sm:$0xff]  ;;  %4912 = vmatpush.msrb.mxu1 %v6625_v31  ;;  %v6643_v31 = vld [vmem:[%s11262_s7 + $0x460] sm:$0xff] }
 0x609   : > { %6904 = vrcp.f32 %v10044_v37  ;;  %4696 = vmatpush.msra.mxu2 %v6571_v10  ;;  %vm4342_vm10 = vmor %vm4340_vm9, %vm4341_vm8  ;;  %4840 = vmatpush.msra.mxu0 %v6607_v0  ;;  %v4361_v33 = vand.u32 2147483648, %v10044_v37  ;;  %v4359_v41 = vand.u32 2147483647, %v10044_v37  ;;  %vm4355_vm13 = vweird.f32 %v10044_v37  ;;  %v6586_v11 = vld [vmem:[%s11262_s7 + $0x298] sm:$0xff] }
 0x60a   : > { %v4324_v9 = vadd.f32 %v10007_v26, %v4323_v45  ;;  %v4337_v58 = vsub.f32 1.0, %v4336_v1  ;;  %4765 = vmatpush.msra.mxu3 %v6592_v48  ;;  %4913 = vmatpush.msrb.mxu1 %v6624_v24  ;;  %v6618_v0 = vld [vmem:[%s11262_s7 + $0x398] sm:$0xff]  ;;  %v6635_v24 = vld [vmem:[%s11262_s7 + $0x420] sm:$0xff] }
 0x60b   : > { %4697 = vmatpush.msra.mxu2 %v6570_v13  ;;  %4841 = vmatpush.msra.mxu0 %v6606_v50  ;;  %v4362_v10 = vor.u32 1.1754944e-38, %v4361_v33  ;;  %vm4360_vm15 = vcmp.eq.f32.partialorder %v4359_v41, 8.507059e+37  ;;  %v6585_v13 = vld [vmem:[%s11262_s7 + $0x290] sm:$0xff] }
 0x60c   : > { %v4328_v35 = vsel %vm4327_vm6, %v10007_v26, %v4324_v9  ;;  %v4338_v34 = vmul.f32 %v10040_v55, %v4337_v58  ;;  %4766 = vmatpush.msra.mxu3 %v6591_v28  ;;  %v6605_v26 = vld [vmem:[%s11262_s7 + $0x330] sm:$0xff]  ;;  %4914 = vmatpush.msrb.mxu1 %v6623_v63  ;;  %v6646_v9 = vld [vmem:[%s11262_s7 + $0x478] sm:$0xff]  ;;  %v6583_v28 = vld [vmem:[%s11262_s7 + $0x280] sm:$0xff] }
 0x60d   : > { %v4333_v39 = vsel %vm4330_vm7, %v4332_v27, %v4328_v35  ;;  %v10088_v6 = vld [vmem:[#allocation5 + $0x7f] sm:$0xff]  ;;  %4698 = vmatpush.msra.mxu2 %v6569_v59  ;;  %4842 = vmatpush.msra.mxu0 %v6605_v26  ;;  %v6584_v27 = vld [vmem:[%s11262_s7 + $0x288] sm:$0xff]  ;;  %v6641_v50 = vld [vmem:[%s11262_s7 + $0x450] sm:$0xff] }
 0x60e   : > { %v10090_v43 = vld [vmem:[#allocation5 + $0x81] sm:$0xff]  ;;  %v10096_v52 = vmul.f32 %v4333_v39, %v9902_v49  ;;  %v4339_v20 = vadd.f32 %v10040_v55, %v4338_v34  ;;  %4502 = vmatmul.f32.gmra.mxu3 %v10088_v6  ;;  %v4347_v49 = vor.u32 1.1754944e-38, %v4346_v62  ;;  %4639 = vmatmul.f32.gmra.mxu1 %v10088_v6 }
 0x60f   : > { %4568 = vmatmul.f32.gmra.mxu0 %v10090_v43  ;;  %v6905_v19 = vpop.eup %6904  ;;  %4767 = vmatpush.msra.mxu3 %v6590_v56  ;;  %v6600_v62 = vld [vmem:[%s11262_s7 + $0x308] sm:$0xff]  ;;  %v6619_v35 = vld [vmem:[%s11262_s7 + $0x3a0] sm:$0xff]  ;;  %v6617_v56 = vld [vmem:[%s11262_s7 + $0x390] sm:$0xff] }
 0x610   : > { %4378 = vst [vmem:[#allocation5 + $0x98] sm:$0xff] %v10096_v52  ;;  %v4343_v54 = vsel %vm4342_vm10, %v10040_v55, %v4339_v20  ;;  %v4351_v7 = vmul.f32 %v6905_v19, %v10044_v37  ;;  %4464 = vmatmul.f32.gmra.mxu2 %v10096_v52  ;;  %vm4356_vm12 = vweird.f32 %v6905_v19  ;;  %v6622_v55 = vld [vmem:[%s11262_s7 + $0x3b8] sm:$0xff]  ;;  %4843 = vmatpush.msra.mxu0 %v6604_v3  ;;  %v6599_v39 = vld [vmem:[%s11262_s7 + $0x300] sm:$0xff]  ;;  %v6644_v20 = vld [vmem:[%s11262_s7 + $0x468] sm:$0xff] }
 0x611   : > { %v4348_v21 = vsel %vm4345_vm11, %v4347_v49, %v4343_v54  ;;  %4768 = vmatpush.msra.mxu3 %v6589_v40  ;;  %4699 = vmatpush.msra.mxu2 %v6568_v61  ;;  %vm4357_vm14 = vmor %vm4355_vm13, %vm4356_vm12  ;;  %v6602_v37 = vld [vmem:[%s11262_s7 + $0x318] sm:$0xff]  ;;  %v6615_v59 = vld [vmem:[%s11262_s7 + $0x380] sm:$0xff] }
 0x612   : > { %v10134_v18 = vmul.f32 %v4348_v21, %v9926_v5  ;;  %v4352_v44 = vsub.f32 1.0, %v4351_v7  ;;  %v6567_v5 = vld [vmem:[%s11262_s7 + $0x200] sm:$0xff]  ;;  %4915 = vmatpush.msrb.mxu1 %v6622_v55  ;;  %4844 = vmatpush.msra.mxu0 %v6603_v2  ;;  %v6642_v49 = vld [vmem:[%s11262_s7 + $0x458] sm:$0xff]  ;;  %v6640_v54 = vld [vmem:[%s11262_s7 + $0x448] sm:$0xff] }
 0x613   : > { %4769 = vmatpush.msra.mxu3 %v6588_v38  ;;  %4700 = vmatpush.msra.mxu2 %v6567_v5  ;;  %v6639_v7 = vld [vmem:[%s11262_s7 + $0x440] sm:$0xff]  ;;  %v6636_v40 = vld [vmem:[%s11262_s7 + $0x428] sm:$0xff] }
 0x614   : > { %4379 = vst [vmem:[#allocation5 + $0xb0] sm:$0xff] %v10134_v18  ;;  %v4353_v8 = vmul.f32 %v6905_v19, %v4352_v44  ;;  %4845 = vmatpush.msra.mxu0 %v6602_v37  ;;  %4916 = vmatpush.msrb.mxu1 %v6621_v12  ;;  %v6670_v12 = vld [vmem:[%s11264_s9 + $0xf8] sm:$0xff] }
 0x615   : > { %4770 = vmatpush.msra.mxu3 %v6587_v60  ;;  %4981 = vmatpush.msrb.mxu2 %v6646_v9 }
 0x616   : > { %v4354_v17 = vadd.f32 %v6905_v19, %v4353_v8  ;;  %4846 = vmatpush.msra.mxu0 %v6601_v57  ;;  %4917 = vmatpush.msrb.mxu1 %v6620_v23  ;;  %v4963_v8 = vld [vmem:[#allocation5 + $0xe1] sm:$0xff] }
 0x617   : > { %v10164_v45 = vld [vmem:[#allocation5 + $0x97] sm:$0xff]  ;;  %4771 = vmatpush.msra.mxu3 %v6586_v11  ;;  %v6668_v23 = vld [vmem:[%s11264_s9 + $0xe8] sm:$0xff] }
 0x618   : > { %v10166_v1 = vld [vmem:[#allocation5 + $0x99] sm:$0xff]  ;;  %v4358_v36 = vsel %vm4357_vm14, %v6905_v19, %v4354_v17  ;;  %4505 = vmatmul.f32.gmra.mxu3 %v10164_v45  ;;  %4642 = vmatmul.f32.gmra.mxu1 %v10164_v45  ;;  %v6616_v19 = vld [vmem:[%s11262_s7 + $0x388] sm:$0xff] }
 0x619   : > { %4571 = vmatmul.f32.gmra.mxu0 %v10166_v1  ;;  %v4363_v48 = vsel %vm4360_vm15, %v4362_v10, %v4358_v36  ;;  %4467 = vmatmul.f32.gmra.mxu2 %v10134_v18 }
 0x61a   : > { %v10184_v58 = vmul.f32 %v4363_v48, %v9953_v22  ;;  %v6645_v22 = vld [vmem:[%s11262_s7 + $0x470] sm:$0xff]  ;;  %4772 = vmatpush.msra.mxu3 %v6585_v13  ;;  %4847 = vmatpush.msra.mxu0 %v6600_v62 }
 0x61b   : > { %v10206_v34 = vld [vmem:[#allocation5 + $0xaf] sm:$0xff]  ;;  %4982 = vmatpush.msrb.mxu2 %v6645_v22  ;;  %4918 = vmatpush.msrb.mxu1 %v6619_v35 }
 0x61c   : > { %4380 = vst [vmem:[#allocation5 + $0xc8] sm:$0xff] %v10184_v58  ;;  %v10208_v16 = vld [vmem:[#allocation5 + $0xb1] sm:$0xff]  ;;  %4773 = vmatpush.msra.mxu3 %v6584_v27  ;;  %4848 = vmatpush.msra.mxu0 %v6599_v39  ;;  %v6667_v27 = vld [vmem:[%s11264_s9 + $0xe0] sm:$0xff]  ;;  %v6664_v39 = vld [vmem:[%s11264_s9 + $0xc8] sm:$0xff] }
 0x61d   : > { %4919 = vmatpush.msrb.mxu1 %v6618_v0  ;;  %4983 = vmatpush.msrb.mxu2 %v6644_v20  ;;  %v6669_v48 = vld [vmem:[%s11264_s9 + $0xf0] sm:$0xff] }
 0x61e   : > { %4774 = vmatpush.msra.mxu3 %v6583_v28  ;;  %v6665_v28 = vld [vmem:[%s11264_s9 + $0xd0] sm:$0xff] }
 0x61f   : > { %4920 = vmatpush.msrb.mxu1 %v6617_v56  ;;  %4984 = vmatpush.msrb.mxu2 %v6643_v31  ;;  %v6663_v56 = vld [vmem:[%s11264_s9 + $0xc0] sm:$0xff] }
 0x620   : > { %4508 = vmatmul.f32.gmra.mxu3 %v10206_v34  ;;  %4645 = vmatmul.f32.gmra.mxu1 %v10206_v34 }
 0x621   : > { %4574 = vmatmul.f32.gmra.mxu0 %v10208_v16  ;;  %4701 = vmatmul.f32.vlgmr.msra.gmra.mxu2 %v9864_v25 }
 0x622   : > { %4921 = vmatpush.msrb.mxu1 %v6616_v19  ;;  %4985 = vmatpush.msrb.mxu2 %v6642_v49 }
 0x623   : > { %v4593_v25 = vld [vmem:[#allocation5 + $0xc7] sm:$0xff]  ;;  %5259 = vmatpush.msrb.mxu3 %v6670_v12 }
 0x624   : > { %4986 = vmatpush.msrb.mxu2 %v6641_v50  ;;  %4922 = vmatpush.msrb.mxu1 %v6615_v59  ;;  %v6683_v12 = vld [vmem:[%s11264_s9 + $0x160] sm:$0xff] }
 0x625   : > { %5260 = vmatpush.msrb.mxu3 %v6669_v48  ;;  %v5229_v48 = vld [vmem:[%s11264_s9 + $0x58] sm:$0xff] }
 0x626   : > { %4987 = vmatpush.msrb.mxu2 %v6640_v54 }
 0x627   : > { %5261 = vmatpush.msrb.mxu3 %v6668_v23 }
 0x628   : > { %4775 = vmatmul.f32.vlgmr.msra.gmra.mxu3 %v9893_v47  ;;  %4648 = vmatmul.f32.gmra.mxu1 %v4593_v25  ;;  %v6638_v47 = vld [vmem:[%s11262_s7 + $0x438] sm:$0xff] }
 0x629   : > { %4849 = vmatmul.f32.vlgmr.msra.gmra.mxu0 %v9921_v29  ;;  %4704 = vmatmul.f32.gmra.mxu2 %v9890_v53  ;;  %v6637_v29 = vld [vmem:[%s11262_s7 + $0x430] sm:$0xff] }
 0x62a   : > { %4988 = vmatpush.msrb.mxu2 %v6639_v7  ;;  %5262 = vmatpush.msrb.mxu3 %v6667_v27 }
 0x62c   : > { %4989 = vmatpush.msrb.mxu2 %v6638_v47 }
 0x62e   : > { %4990 = vmatpush.msrb.mxu2 %v6637_v29 }
 0x630   : > { %4778 = vmatmul.f32.gmra.mxu3 %v9923_v46  ;;  %4923 = vmatmul.f32.vlgmr.msrb.gmra.mxu1 %v9890_v53  ;;  %v6634_v53 = vld [vmem:[%s11262_s7 + $0x418] sm:$0xff] }
 0x631   : > { %4852 = vmatmul.f32.gmra.mxu0 %v9948_v51  ;;  %4707 = vmatmul.f32.gmra.mxu2 %v9915_v32  ;;  %v6633_v51 = vld [vmem:[%s11262_s7 + $0x410] sm:$0xff] }
 0x632   : > { %4991 = vmatpush.msrb.mxu2 %v6636_v40 }
 0x634   : > { %4992 = vmatpush.msrb.mxu2 %v6635_v24  ;;  %v5233_v24 = vld [vmem:[%s11264_s9 + $0x78] sm:$0xff] }
 0x635   : > { %5300 = vmatpush.msrb.mxu0 %v5233_v24 }
 0x636   : > { %4993 = vmatpush.msrb.mxu2 %v6634_v53 }
 0x638   : > { %4781 = vmatmul.f32.gmra.mxu3 %v9950_v14  ;;  %4926 = vmatmul.f32.gmra.mxu1 %v9915_v32  ;;  %v6632_v32 = vld [vmem:[%s11262_s7 + $0x408] sm:$0xff] }
 0x639   : > { %4855 = vmatmul.f32.gmra.mxu0 %v10009_v42  ;;  %4710 = vmatmul.f32.gmra.mxu2 %v9942_v4  ;;  %v6631_v42 = vld [vmem:[%s11262_s7 + $0x400] sm:$0xff] }
 0x63a   : > { %4994 = vmatpush.msrb.mxu2 %v6633_v51 }
 0x63c   : > { %4995 = vmatpush.msrb.mxu2 %v6632_v32  ;;  %v6686_v32 = vld [vmem:[%s11264_s9 + $0x178] sm:$0xff] }
 0x63d   : > { %5366 = vmatpush.msra.mxu1 %v6686_v32 }
 0x63e   : > { %4996 = vmatpush.msrb.mxu2 %v6631_v42  ;;  %v5232_v42 = vld [vmem:[%s11264_s9 + $0x70] sm:$0xff] }
 0x63f   : > { %5301 = vmatpush.msrb.mxu0 %v5232_v42 }
 0x640   : > { %4784 = vmatmul.f32.gmra.mxu3 %v10011_v30  ;;  %4929 = vmatmul.f32.gmra.mxu1 %v9942_v4 }
 0x641   : > { %4858 = vmatmul.f32.gmra.mxu0 %v10088_v6  ;;  %4713 = vmatmul.f32.gmra.mxu2 %v10017_v15  ;;  %v4741_v6 = vld [vmem:[#allocation5 + $0xc9] sm:$0xff] }
 0x648   : > { %4787 = vmatmul.f32.gmra.mxu3 %v10090_v43  ;;  %4932 = vmatmul.f32.gmra.mxu1 %v10017_v15  ;;  %v4815_v15 = vld [vmem:[#allocation5 + $0xdf] sm:$0xff] }
 0x649   : > { %4861 = vmatmul.f32.gmra.mxu0 %v10164_v45  ;;  %4716 = vmatmul.f32.gmra.mxu2 %v10096_v52 }
 0x64a   : > { %v4554_v44 = vpop.f32.mrf.mxu0 }
 0x64f   : > { %v10300_v4 = vpop.f32.mrf.mxu2 }
 0x650   : > { %4790 = vmatmul.f32.gmra.mxu3 %v10166_v1  ;;  %4935 = vmatmul.f32.gmra.mxu1 %v10096_v52  ;;  %v4889_v52 = vld [vmem:[#allocation5 + $0xe0] sm:$0xff] }
 0x651   : > { %4864 = vmatmul.f32.gmra.mxu0 %v10206_v34  ;;  %4719 = vmatmul.f32.gmra.mxu2 %v10134_v18 }
 0x658   : > { %4793 = vmatmul.f32.gmra.mxu3 %v10208_v16  ;;  %4938 = vmatmul.f32.gmra.mxu1 %v10134_v18  ;;  %v4488_v18 = vpop.f32.mrf.mxu3 }
 0x659   : > { %4867 = vmatmul.f32.gmra.mxu0 %v4593_v25  ;;  %4722 = vmatmul.f32.gmra.mxu2 %v10184_v58  ;;  %v4489_v50 = vadd.f32 %v4488_v18, %v10300_v4 }
 0x65b   : > { %v4578_v47 = vadd.f32 %v4554_v44, %v4489_v50 }
 0x660   : > { %4796 = vmatmul.f32.gmra.mxu3 %v4741_v6  ;;  %4941 = vmatmul.f32.gmra.mxu1 %v10184_v58 }
 0x661   : > { %4870 = vmatmul.f32.gmra.mxu0 %v4815_v15  ;;  %4997 = vmatmul.f32.vlgmr.msrb.gmra.mxu2 %v9923_v46 }
 0x667   : > { %v10304_v21 = vpop.f32.mrf.mxu2 }
 0x668   : > { %4944 = vmatmul.f32.gmra.mxu1 %v4889_v52  ;;  %v5231_v52 = vld [vmem:[%s11264_s9 + $0x68] sm:$0xff] }
 0x669   : > { %5000 = vmatmul.f32.gmra.mxu2 %v9950_v14  ;;  %v4628_v46 = vpop.f32.mrf.mxu1  ;;  %5302 = vmatpush.msrb.mxu0 %v5231_v52  ;;  %v6679_v52 = vld [vmem:[%s11264_s9 + $0x140] sm:$0xff] }
 0x66a   : > { %v10316_v33 = vpop.f32.mrf.mxu0  ;;  %v4652_v29 = vadd.f32 %v4628_v46, %v4578_v47  ;;  %v6684_v46 = vld [vmem:[%s11264_s9 + $0x168] sm:$0xff] }
 0x66b   : > { %v6660_v47 = vld [vmem:[%s11264_s9 + $0xa8] sm:$0xff] }
 0x66f   : > { %v4491_v63 = vpop.f32.mrf.mxu3 }
 0x670   : > { %v10307_v26 = vpop.f32.mrf.mxu2  ;;  %v4492_v40 = vadd.f32 %v4491_v63, %v10304_v21  ;;  %v5230_v63 = vld [vmem:[%s11264_s9 + $0x60] sm:$0xff] }
 0x671   : > { %5003 = vmatmul.f32.gmra.mxu2 %v10011_v30  ;;  %v10321_v3 = vpop.f32.mrf.mxu1  ;;  %5303 = vmatpush.msrb.mxu0 %v5230_v63  ;;  %v6658_v63 = vld [vmem:[%s11264_s9 + $0x98] sm:$0xff] }
 0x672   : > { %v10327_v5 = vpop.f32.mrf.mxu0  ;;  %v4579_v4 = vadd.f32 %v10316_v33, %v4492_v40  ;;  %v6700_v40 = vld [vmem:[%s11264_s9 + $0x1e8] sm:$0xff] }
 0x673   : > { %5304 = vmatpush.msrb.mxu0 %v5229_v48 }
 0x677   : > { %v10323_v30 = vpop.f32.mrf.mxu3 }
 0x678   : > { %v10310_v61 = vpop.f32.mrf.mxu2  ;;  %v4495_v33 = vadd.f32 %v10323_v30, %v10307_v26  ;;  %v6662_v26 = vld [vmem:[%s11264_s9 + $0xb8] sm:$0xff] }
 0x679   : > { %5006 = vmatmul.f32.gmra.mxu2 %v10090_v43  ;;  %v10329_v41 = vpop.f32.mrf.mxu1  ;;  %v6702_v30 = vld [vmem:[%s11264_s9 + $0x1f8] sm:$0xff] }
 0x67a   : > { %v10335_v17 = vpop.f32.mrf.mxu0  ;;  %v4580_v27 = vadd.f32 %v10327_v5, %v4495_v33  ;;  %5440 = vmatpush.msra.mxu2 %v6702_v30  ;;  %v6681_v5 = vld [vmem:[%s11264_s9 + $0x150] sm:$0xff]  ;;  %v6678_v33 = vld [vmem:[%s11264_s9 + $0x138] sm:$0xff] }
 0x67c   : > { %v4654_v24 = vadd.f32 %v10329_v41, %v4580_v27  ;;  %v6659_v41 = vld [vmem:[%s11264_s9 + $0xa0] sm:$0xff]  ;;  %v6676_v27 = vld [vmem:[%s11264_s9 + $0x128] sm:$0xff] }
 0x67f   : > { %v10331_v60 = vpop.f32.mrf.mxu3 }
 0x680   : > { %v10313_v38 = vpop.f32.mrf.mxu2  ;;  %v4498_v32 = vadd.f32 %v10331_v60, %v10310_v61  ;;  %v6699_v61 = vld [vmem:[%s11264_s9 + $0x1e0] sm:$0xff]  ;;  %v5225_v60 = vld [vmem:[%s11264_s9 + $0x38] sm:$0xff] }
 0x681   : > { %5009 = vmatmul.f32.gmra.mxu2 %v10166_v1  ;;  %v10337_v2 = vpop.f32.mrf.mxu1 }
 0x682   : > { %v10341_v45 = vpop.f32.mrf.mxu0 }
 0x687   : > { %v10339_v11 = vpop.f32.mrf.mxu3 }
 0x689   : > { %5012 = vmatmul.f32.gmra.mxu2 %v10208_v16  ;;  %v10319_v14 = vpop.f32.mrf.mxu2  ;;  %v6666_v16 = vld [vmem:[%s11264_s9 + $0xd8] sm:$0xff] }
 0x68a   : > { %5263 = vmatpush.msrb.mxu3 %v6666_v16  ;;  %v10452_v16 = vld [vmem:[%s11263_s8] ss:$0 sm:$0xff] }
 0x68b   : > { %v10343_v1 = vpop.f32.mrf.mxu1 }
 0x68c   : > { %v10355_v13 = vpop.f32.mrf.mxu0  ;;  %5264 = vmatpush.msrb.mxu3 %v6665_v28 }
 0x68e   : > { %5265 = vmatpush.msrb.mxu3 %v6664_v39 }
 0x690   : > { %5266 = vmatpush.msrb.mxu3 %v6663_v56 }
 0x691   : > { %5015 = vmatmul.f32.gmra.mxu2 %v4741_v6  ;;  %v10345_v36 = vpop.f32.mrf.mxu3  ;;  %v6685_v6 = vld [vmem:[%s11264_s9 + $0x170] sm:$0xff] }
 0x692   : > { %5367 = vmatpush.msra.mxu1 %v6685_v6  ;;  %5267 = vmatpush.msrb.mxu3 %v6662_v26  ;;  %v6697_v26 = vld [vmem:[%s11264_s9 + $0x1d0] sm:$0xff] }
 0x693   : > { %v10325_v43 = vpop.f32.mrf.mxu2 }
 0x694   : > { %5368 = vmatpush.msra.mxu1 %v6684_v46 }
 0x695   : > { %v10359_v58 = vpop.f32.mrf.mxu1 }
 0x696   : > { %v10369_v22 = vpop.f32.mrf.mxu0  ;;  %5369 = vmatpush.msra.mxu1 %v6683_v12 }
 0x699   : > { %5018 = vmatmul.f32.gmra.mxu2 %v4963_v8  ;;  %v4653_v8 = vadd.f32 %v10321_v3, %v4579_v4  ;;  %v6682_v3 = vld [vmem:[%s11264_s9 + $0x158] sm:$0xff] }
 0x69a   : > { %5370 = vmatpush.msra.mxu1 %v6682_v3  ;;  %v6657_v3 = vld [vmem:[%s11264_s9 + $0x90] sm:$0xff] }
 0x69b   : > { %v10361_v57 = vpop.f32.mrf.mxu3 }
 0x69c   : > { %v10333_v55 = vpop.f32.mrf.mxu2  ;;  %5371 = vmatpush.msra.mxu1 %v6681_v5 }
 0x69d   : > { %v10373_v35 = vpop.f32.mrf.mxu1 }
 0x69e   : > { %v10388_v20 = vpop.f32.mrf.mxu0 }
 0x6a3   : > { %v10375_v34 = vpop.f32.mrf.mxu3 }
 0x6a4   : > { %v4702_v10 = vpop.f32.mrf.mxu2 }
 0x6a5   : > { %v10393_v31 = vpop.f32.mrf.mxu1  ;;  %v4726_v53 = vadd.f32 %v4702_v10, %v4652_v29  ;;  %v6680_v29 = vld [vmem:[%s11264_s9 + $0x148] sm:$0xff] }
 0x6a6   : > { %v4850_v25 = vpop.f32.mrf.mxu0  ;;  %5372 = vmatpush.msra.mxu1 %v6680_v29 }
 0x6a8   : > { %5373 = vmatpush.msra.mxu1 %v6679_v52 }
 0x6aa   : > { %5374 = vmatpush.msra.mxu1 %v6678_v33  ;;  %v5218_v33 = vld [vmem:[%s11264_s9] sm:$0xff] }
 0x6ab   : > { %v4776_v19 = vpop.f32.mrf.mxu3 }
 0x6ac   : > { %v10347_v37 = vpop.f32.mrf.mxu2  ;;  %v4800_v15 = vadd.f32 %v4776_v19, %v4726_v53  ;;  %v6661_v19 = vld [vmem:[%s11264_s9 + $0xb0] sm:$0xff]  ;;  %v5226_v53 = vld [vmem:[%s11264_s9 + $0x40] sm:$0xff] }
 0x6ad   : > { %v4924_v59 = vpop.f32.mrf.mxu1  ;;  %v4727_v23 = vadd.f32 %v10347_v37, %v4653_v8  ;;  %v5228_v37 = vld [vmem:[%s11264_s9 + $0x50] sm:$0xff]  ;;  %5268 = vmatpush.msrb.mxu3 %v6661_v19  ;;  %v6698_v8 = vld [vmem:[%s11264_s9 + $0x1d8] sm:$0xff]  ;;  %v6656_v19 = vld [vmem:[%s11264_s9 + $0x88] sm:$0xff] }
 0x6ae   : > { %v4853_v51 = vpop.f32.mrf.mxu0  ;;  %v4874_v10 = vadd.f32 %v4850_v25, %v4800_v15  ;;  %5305 = vmatpush.msrb.mxu0 %v5228_v37  ;;  %v6701_v25 = vld [vmem:[%s11264_s9 + $0x1f0] sm:$0xff]  ;;  %v6696_v37 = vld [vmem:[%s11264_s9 + $0x1c8] sm:$0xff] }
 0x6af   : > { %5441 = vmatpush.msra.mxu2 %v6701_v25  ;;  %5269 = vmatpush.msrb.mxu3 %v6660_v47 }
 0x6b0   : > { %v4948_v28 = vadd.f32 %v4924_v59, %v4874_v10  ;;  %v5227_v59 = vld [vmem:[%s11264_s9 + $0x48] sm:$0xff]  ;;  %v4581_v10 = vadd.f32 %v10335_v17, %v4498_v32  ;;  %v6694_v32 = vld [vmem:[%s11264_s9 + $0x1b8] sm:$0xff] }
 0x6b1   : > { %5306 = vmatpush.msrb.mxu0 %v5227_v59  ;;  %5442 = vmatpush.msra.mxu2 %v6700_v40  ;;  %v6675_v59 = vld [vmem:[%s11264_s9 + $0x120] sm:$0xff] }
 0x6b2   : > { %5270 = vmatpush.msrb.mxu3 %v6659_v41  ;;  %v4655_v5 = vadd.f32 %v10337_v2, %v4581_v10  ;;  %v6655_v2 = vld [vmem:[%s11264_s9 + $0x80] sm:$0xff]  ;;  %v5210_v10 = vld [vmem:[#allocation6 + $0x7] sm:$0xff] }
 0x6b3   : > { %v4779_v54 = vpop.f32.mrf.mxu3  ;;  %5307 = vmatpush.msrb.mxu0 %v5226_v53  ;;  %5443 = vmatpush.msra.mxu2 %v6699_v61  ;;  %v6674_v53 = vld [vmem:[%s11264_s9 + $0x118] sm:$0xff] }
 0x6b4   : > { %v10357_v9 = vpop.f32.mrf.mxu2  ;;  %v4801_v39 = vadd.f32 %v4779_v54, %v4727_v23  ;;  %5271 = vmatpush.msrb.mxu3 %v6658_v63  ;;  %v6677_v23 = vld [vmem:[%s11264_s9 + $0x130] sm:$0xff]  ;;  %v6692_v63 = vld [vmem:[%s11264_s9 + $0x1a8] sm:$0xff] }
 0x6b5   : > { %v10419_v18 = vpop.f32.mrf.mxu1  ;;  %5308 = vmatpush.msrb.mxu0 %v5225_v60  ;;  %5444 = vmatpush.msra.mxu2 %v6698_v8  ;;  %v6673_v60 = vld [vmem:[%s11264_s9 + $0x110] sm:$0xff] }
 0x6b6   : > { %v10457_v56 = vpop.f32.mrf.mxu0  ;;  %v4875_v42 = vadd.f32 %v4853_v51, %v4801_v39  ;;  %v4728_v51 = vadd.f32 %v10357_v9, %v4654_v24  ;;  %v5224_v9 = vld [vmem:[%s11264_s9 + $0x30] sm:$0xff]  ;;  %5375 = vmatpush.msra.mxu1 %v6677_v23  ;;  %5272 = vmatpush.msrb.mxu3 %v6657_v3  ;;  %v4501_v39 = vadd.f32 %v10339_v11, %v10313_v38  ;;  %v6695_v38 = vld [vmem:[%s11264_s9 + $0x1c0] sm:$0xff]  ;;  %v5221_v11 = vld [vmem:[%s11264_s9 + $0x18] sm:$0xff] }
 0x6b7   : > { %5309 = vmatpush.msrb.mxu0 %v5224_v9  ;;  %5445 = vmatpush.msra.mxu2 %v6697_v26  ;;  %v4504_v9 = vadd.f32 %v10345_v36, %v10319_v14  ;;  %v6671_v26 = vld [vmem:[%s11264_s9 + $0x100] sm:$0xff] }
 0x6b8   : > { %v4949_v12 = vadd.f32 %v10419_v18, %v4875_v42  ;;  %v5223_v18 = vld [vmem:[%s11264_s9 + $0x28] sm:$0xff]  ;;  %5376 = vmatpush.msra.mxu1 %v6676_v27  ;;  %5273 = vmatpush.msrb.mxu3 %v6656_v19  ;;  %v5220_v42 = vld [vmem:[%s11264_s9 + $0x10] sm:$0xff]  ;;  %v5341_v14 = vld [vmem:[#allocation6 + $0x9] sm:$0xff] }
 0x6b9   : > { %5310 = vmatpush.msrb.mxu0 %v5223_v18  ;;  %5446 = vmatpush.msra.mxu2 %v6696_v37  ;;  %v6690_v18 = vld [vmem:[%s11264_s9 + $0x198] sm:$0xff] }
 0x6ba   : > { %5377 = vmatpush.msra.mxu1 %v6675_v59  ;;  %5274 = vmatpush.msrb.mxu3 %v6655_v2 }
 0x6bb   : > { %v10421_v44 = vpop.f32.mrf.mxu3  ;;  %5447 = vmatpush.msra.mxu2 %v6695_v38 }
 0x6bc   : > { %v10371_v62 = vpop.f32.mrf.mxu2  ;;  %v4802_v48 = vadd.f32 %v10421_v44, %v4728_v51  ;;  %5378 = vmatpush.msra.mxu1 %v6674_v53  ;;  %v6693_v51 = vld [vmem:[%s11264_s9 + $0x1b0] sm:$0xff] }
 0x6bd   : > { %v10486_v4 = vpop.f32.mrf.mxu1  ;;  %v4729_v47 = vadd.f32 %v10371_v62, %v4655_v5  ;;  %v4582_v62 = vadd.f32 %v10341_v45, %v4501_v39  ;;  %5448 = vmatpush.msra.mxu2 %v6694_v32  ;;  %v5219_v45 = vld [vmem:[%s11264_s9 + $0x8] sm:$0xff]  ;;  %v6689_v5 = vld [vmem:[%s11264_s9 + $0x190] sm:$0xff] }
 0x6be   : > { %v4859_v44 = vpop.f32.mrf.mxu0  ;;  %v4876_v25 = vadd.f32 %v10457_v56, %v4802_v48  ;;  %v5234_v56 = vld [vmem:[#allocation6 + $0x8] sm:$0xff]  ;;  %5379 = vmatpush.msra.mxu1 %v6673_v60 }
 0x6bf   : > { %5275 = vmatmul.f32.vlgmr.msrb.gmra.mxu3 %v5234_v56  ;;  %5449 = vmatpush.msra.mxu2 %v6693_v51  ;;  %v4656_v8 = vadd.f32 %v10343_v1, %v4582_v62  ;;  %v6691_v1 = vld [vmem:[%s11264_s9 + $0x1a0] sm:$0xff] }
 0x6c0   : > { %v4950_v52 = vadd.f32 %v10486_v4, %v4876_v25 }
 0x6c1   : > { %5450 = vmatpush.msra.mxu2 %v6692_v63 }
 0x6c3   : > { %v10488_v15 = vpop.f32.mrf.mxu3  ;;  %5451 = vmatpush.msra.mxu2 %v6691_v1 }
 0x6c4   : > { %v10386_v0 = vpop.f32.mrf.mxu2  ;;  %v4803_v61 = vadd.f32 %v10488_v15, %v4729_v47 }
 0x6c5   : > { %v4933_v29 = vpop.f32.mrf.mxu1  ;;  %v4730_v3 = vadd.f32 %v10386_v0, %v4656_v8  ;;  %5452 = vmatpush.msra.mxu2 %v6690_v18 }
 0x6c6   : > { %v4877_v48 = vadd.f32 %v4859_v44, %v4803_v61 }
 0x6c7   : > { %5453 = vmatpush.msra.mxu2 %v6689_v5 }
 0x6cb   : > { %v4788_v40 = vpop.f32.mrf.mxu3 }
 0x6cc   : > { %v10395_v49 = vpop.f32.mrf.mxu2  ;;  %v4804_v27 = vadd.f32 %v4788_v40, %v4730_v3 }
 0x6cd   : > { %v4936_v0 = vpop.f32.mrf.mxu1 }
 0x6d3   : > { %v4791_v39 = vpop.f32.mrf.mxu3 }
 0x6d4   : > { %v10398_v7 = vpop.f32.mrf.mxu2 }
 0x6dc   : > { %v10417_v21 = vpop.f32.mrf.mxu2 }
 0x6e4   : > { %v4998_v50 = vpop.f32.mrf.mxu2 }
 0x6e5   : > { %v5022_v54 = vadd.f32 %v4998_v50, %v4948_v28  ;;  %v5222_v28 = vld [vmem:[%s11264_s9 + $0x20] sm:$0xff] }
 0x6e6   : > { %5311 = vmatpush.msrb.mxu0 %v5222_v28  ;;  %v4951_v28 = vadd.f32 %v4933_v29, %v4877_v48 }
 0x6e7   : > { %v10491_v6 = vadd.f32 %v10452_v16, %v5022_v54 }
 0x6e8   : > { %5312 = vmatpush.msrb.mxu0 %v5221_v11  ;;  %v6688_v11 = vld [vmem:[%s11264_s9 + $0x188] sm:$0xff] }
 0x6e9   : > { %v6647_v46 = vmul.f32 -1.442695, %v10491_v6  ;;  %5454 = vmatpush.msra.mxu2 %v6688_v11 }
 0x6ea   : > { %5313 = vmatpush.msrb.mxu0 %v5220_v42 }
 0x6eb   : > { %6906 = vpow2.f32 %v6647_v46  ;;  %v6672_v46 = vld [vmem:[%s11264_s9 + $0x108] sm:$0xff] }
 0x6ec   : > { %v5001_v17 = vpop.f32.mrf.mxu2  ;;  %5314 = vmatpush.msrb.mxu0 %v5219_v45  ;;  %5380 = vmatpush.msra.mxu1 %v6672_v46  ;;  %v4794_v46 = vpop.f32.mrf.mxu3 }
 0x6ed   : > { %v5023_v30 = vadd.f32 %v5001_v17, %v4949_v12  ;;  %v4862_v12 = vpop.f32.mrf.mxu0 }
 0x6ee   : > { %5315 = vmatpush.msrb.mxu0 %v5218_v33  ;;  %5381 = vmatpush.msra.mxu1 %v6671_v26  ;;  %v4878_v56 = vadd.f32 %v4862_v12, %v4804_v27 }
 0x6ef   : > { %v10551_v50 = vadd.f32 %v10452_v16, %v5023_v30  ;;  %5316 = vmatmul.f32.vlgmr.msrb.gmra.mxu0 %v5210_v10  ;;  %5382 = vmatmul.f32.vlgmr.msra.gmra.mxu1 %v5341_v14  ;;  %v4583_v30 = vadd.f32 %v10355_v13, %v4504_v9  ;;  %v4507_v13 = vadd.f32 %v10361_v57, %v10325_v43  ;;  %v6687_v43 = vld [vmem:[%s11264_s9 + $0x180] sm:$0xff] }
 0x6f0   : > { %5455 = vmatpush.msra.mxu2 %v6687_v43 }
 0x6f1   : > { %v6907_v54 = vpop.eup %6906  ;;  %v6648_v24 = vmul.f32 -1.442695, %v10551_v50  ;;  %v4657_v2 = vadd.f32 %v10359_v58, %v4583_v30  ;;  %v4584_v58 = vadd.f32 %v10369_v22, %v4507_v13 }
 0x6f2   : > { %v10577_v41 = vadd.f32 1.0, %v6907_v54 }
 0x6f3   : > { %6908 = vpow2.f32 %v6648_v24  ;;  %v4731_v57 = vadd.f32 %v10395_v49, %v4657_v2  ;;  %v4658_v9 = vadd.f32 %v10373_v35, %v4584_v58  ;;  %v6717_v35 = vld [vmem:[%s11264_s9 + $0x270] sm:$0xff] }
 0x6f4   : > { %6910 = vrcp.f32 %v10577_v41  ;;  %v5004_v4 = vpop.f32.mrf.mxu2  ;;  %v5085_v54 = vand.u32 2147483648, %v10577_v41  ;;  %v5083_v29 = vand.u32 2147483647, %v10577_v41  ;;  %vm5079_vm1 = vweird.f32 %v10577_v41 }
 0x6f5   : > { %v5024_v15 = vadd.f32 %v5004_v4, %v4950_v52  ;;  %v4865_v53 = vpop.f32.mrf.mxu0  ;;  %v4952_v52 = vadd.f32 %v4936_v0, %v4878_v56  ;;  %v4805_v61 = vadd.f32 %v4791_v39, %v4731_v57  ;;  %v4510_v4 = vadd.f32 %v10375_v34, %v10333_v55  ;;  %v6718_v34 = vld [vmem:[%s11264_s9 + $0x278] sm:$0xff]  ;;  %v4797_v56 = vpop.f32.mrf.mxu3 }
 0x6f6   : > { %v5086_v60 = vor.u32 1.1754944e-38, %v5085_v54  ;;  %vm5084_vm3 = vcmp.eq.f32.partialorder %v5083_v29, 8.507059e+37  ;;  %5514 = vmatpush.msra.mxu3 %v6718_v34  ;;  %v6715_v29 = vld [vmem:[%s11264_s9 + $0x260] sm:$0xff] }
 0x6f7   : > { %v10604_v23 = vadd.f32 %v10452_v16, %v5024_v15  ;;  %v4939_v15 = vpop.f32.mrf.mxu1  ;;  %v4879_v10 = vadd.f32 %v4865_v53, %v4805_v61  ;;  %v4585_v3 = vadd.f32 %v10388_v20, %v4510_v4 }
 0x6f8   : > { %5515 = vmatpush.msra.mxu3 %v6717_v35 }
 0x6f9   : > { %v6909_v36 = vpop.eup %6908  ;;  %v6649_v17 = vmul.f32 -1.442695, %v10604_v23  ;;  %v4953_v18 = vadd.f32 %v4939_v15, %v4879_v10 }
 0x6fa   : > { %v6911_v44 = vpop.eup %6910  ;;  %v10618_v37 = vadd.f32 1.0, %v6909_v36 }
 0x6fb   : > { %v5075_v19 = vmul.f32 %v6911_v44, %v10577_v41  ;;  %6912 = vpow2.f32 %v6649_v17  ;;  %vm5080_vm0 = vweird.f32 %v6911_v44 }
 0x6fc   : > { %6914 = vrcp.f32 %v10618_v37  ;;  %v5007_v25 = vpop.f32.mrf.mxu2  ;;  %vm5081_vm2 = vmor %vm5079_vm1, %vm5080_vm0  ;;  %v5100_v12 = vand.u32 2147483648, %v10618_v37  ;;  %v5098_v26 = vand.u32 2147483647, %v10618_v37  ;;  %vm5094_vm5 = vweird.f32 %v10618_v37 }
 0x6fd   : > { %v5076_v59 = vsub.f32 1.0, %v5075_v19  ;;  %v5025_v38 = vadd.f32 %v5007_v25, %v4951_v28  ;;  %v4868_v28 = vpop.f32.mrf.mxu0  ;;  %v4659_v25 = vadd.f32 %v10393_v31, %v4585_v3  ;;  %v6716_v31 = vld [vmem:[%s11264_s9 + $0x268] sm:$0xff] }
 0x6fe   : > { %v5101_v30 = vor.u32 1.1754944e-38, %v5100_v12  ;;  %vm5099_vm7 = vcmp.eq.f32.partialorder %v5098_v26, 8.507059e+37  ;;  %5516 = vmatpush.msra.mxu3 %v6716_v31  ;;  %v6747_v31 = vld [vmem:[%s11264_s9 + $0x360] sm:$0xff] }
 0x6ff   : > { %v5077_v47 = vmul.f32 %v6911_v44, %v5076_v59  ;;  %v10634_v40 = vadd.f32 %v10452_v16, %v5025_v38  ;;  %v4942_v2 = vpop.f32.mrf.mxu1  ;;  %v4733_v43 = vadd.f32 %v10417_v21, %v4659_v25 }
 0x700   : > { %5517 = vmatpush.msra.mxu3 %v6715_v29 }
 0x701   : > { %v6913_v24 = vpop.eup %6912  ;;  %v5078_v32 = vadd.f32 %v6911_v44, %v5077_v47  ;;  %v6650_v42 = vmul.f32 -1.442695, %v10634_v40 }
 0x702   : > { %v6915_v62 = vpop.eup %6914  ;;  %v10644_v51 = vadd.f32 1.0, %v6913_v24 }
 0x703   : > { %v5082_v45 = vsel %vm5081_vm2, %v6911_v44, %v5078_v32  ;;  %v5090_v49 = vmul.f32 %v6915_v62, %v10618_v37  ;;  %6916 = vpow2.f32 %v6650_v42  ;;  %vm5095_vm4 = vweird.f32 %v6915_v62 }
 0x704   : > { %v5087_v22 = vsel %vm5084_vm3, %v5086_v60, %v5082_v45  ;;  %6918 = vrcp.f32 %v10644_v51  ;;  %v5010_v41 = vpop.f32.mrf.mxu2  ;;  %vm5096_vm6 = vmor %vm5094_vm5, %vm5095_vm4  ;;  %v5115_v59 = vand.u32 2147483648, %v10644_v51  ;;  %v5113_v47 = vand.u32 2147483647, %v10644_v51 }
 0x705   : > { %v10651_v63 = vmul.f32 %v5087_v22, %v10491_v6  ;;  %v5091_v33 = vsub.f32 1.0, %v5090_v49  ;;  %v5026_v8 = vadd.f32 %v5010_v41, %v4952_v52  ;;  %v4732_v6 = vadd.f32 %v10398_v7, %v4658_v9  ;;  %v4871_v21 = vpop.f32.mrf.mxu0 }
 0x706   : > { %vm5109_vm9 = vweird.f32 %v10644_v51  ;;  %v4807_v42 = vadd.f32 %v4797_v56, %v4733_v43  ;;  %vm5114_vm11 = vcmp.eq.f32.partialorder %v5113_v47, 8.507059e+37  ;;  %v6710_v47 = vld [vmem:[%s11264_s9 + $0x238] sm:$0xff] }
 0x707   : > { %5202 = vst [vmem:[#allocation6 + $0x20] sm:$0xff] %v10651_v63  ;;  %v5092_v48 = vmul.f32 %v6915_v62, %v5091_v33  ;;  %v10658_v55 = vadd.f32 %v10452_v16, %v5026_v8  ;;  %5278 = vmatmul.f32.gmra.mxu3 %v10651_v63  ;;  %v4806_v44 = vadd.f32 %v4794_v46, %v4732_v6  ;;  %v4945_v8 = vpop.f32.mrf.mxu1  ;;  %v6734_v6 = vld [vmem:[%s11264_s9 + $0x2f8] sm:$0xff] }
 0x708   : > { %v4881_v4 = vadd.f32 %v4871_v21, %v4807_v42  ;;  %5588 = vmatpush.msra.mxu0 %v6734_v6  ;;  %v6746_v21 = vld [vmem:[%s11264_s9 + $0x358] sm:$0xff]  ;;  %v6764_v6 = vld [vmem:[%s11264_s9 + $0x3e8] sm:$0xff] }
 0x709   : > { %v6917_v1 = vpop.eup %6916  ;;  %v5093_v14 = vadd.f32 %v6915_v62, %v5092_v48  ;;  %v6651_v36 = vmul.f32 -1.442695, %v10658_v55  ;;  %v4880_v13 = vadd.f32 %v4868_v28, %v4806_v44  ;;  %v6713_v48 = vld [vmem:[%s11264_s9 + $0x250] sm:$0xff] }
 0x70a   : > { %v6919_v17 = vpop.eup %6918  ;;  %v10672_v27 = vadd.f32 1.0, %v6917_v1  ;;  %v6750_v1 = vld [vmem:[%s11264_s9 + $0x378] sm:$0xff] }
 0x70b   : > { %v5097_v7 = vsel %vm5096_vm6, %v6915_v62, %v5093_v14  ;;  %v5105_v0 = vmul.f32 %v6919_v17, %v10644_v51  ;;  %6920 = vpow2.f32 %v6651_v36  ;;  %vm5110_vm8 = vweird.f32 %v6919_v17  ;;  %5662 = vmatpush.msrb.mxu1 %v6750_v1  ;;  %v6727_v1 = vld [vmem:[%s11264_s9 + $0x2c0] sm:$0xff] }
 0x70c   : > { %v5102_v20 = vsel %vm5099_vm7, %v5101_v30, %v5097_v7  ;;  %6922 = vrcp.f32 %v10672_v27  ;;  %v5013_v37 = vpop.f32.mrf.mxu2  ;;  %v4954_v32 = vadd.f32 %v4942_v2, %v4880_v13  ;;  %vm5111_vm10 = vmor %vm5109_vm9, %vm5110_vm8  ;;  %v5116_v62 = vor.u32 1.1754944e-38, %v5115_v59  ;;  %v6733_v30 = vld [vmem:[%s11264_s9 + $0x2f0] sm:$0xff] }
 0x70d   : > { %v10677_v39 = vmul.f32 %v5102_v20, %v10551_v50  ;;  %v5106_v19 = vsub.f32 1.0, %v5105_v0  ;;  %v5027_v5 = vadd.f32 %v5013_v37, %v4953_v18  ;;  %v5130_v15 = vand.u32 2147483648, %v10672_v27  ;;  %5589 = vmatpush.msra.mxu0 %v6733_v30 }
 0x70e   : > { %v5211_v38 = vld [vmem:[#allocation6 + $0x1f] sm:$0xff]  ;;  %v5128_v10 = vand.u32 2147483647, %v10672_v27  ;;  %vm5124_vm13 = vweird.f32 %v10672_v27  ;;  %v4955_v14 = vadd.f32 %v4945_v8, %v4881_v4 }
 0x70f   : > { %v10681_v11 = vld [vmem:[#allocation6 + $0x21] sm:$0xff]  ;;  %5203 = vst [vmem:[#allocation6 + $0x38] sm:$0xff] %v10677_v39  ;;  %v5107_v54 = vmul.f32 %v6919_v17, %v5106_v19  ;;  %v10686_v50 = vadd.f32 %v10452_v16, %v5027_v5  ;;  %5319 = vmatmul.f32.gmra.mxu0 %v5211_v38  ;;  %5456 = vmatmul.f32.vlgmr.msra.gmra.mxu2 %v5211_v38  ;;  %v5131_v36 = vor.u32 1.1754944e-38, %v5130_v15  ;;  %v6712_v19 = vld [vmem:[%s11264_s9 + $0x248] sm:$0xff] }
 0x710   : > { %5385 = vmatmul.f32.gmra.mxu1 %v10681_v11  ;;  %5281 = vmatmul.f32.gmra.mxu3 %v10677_v39  ;;  %vm5129_vm15 = vcmp.eq.f32.partialorder %v5128_v10, 8.507059e+37  ;;  %v6732_v5 = vld [vmem:[%s11264_s9 + $0x2e8] sm:$0xff]  ;;  %v6745_v8 = vld [vmem:[%s11264_s9 + $0x350] sm:$0xff] }
 0x711   : > { %v6921_v57 = vpop.eup %6920  ;;  %v5108_v24 = vadd.f32 %v6919_v17, %v5107_v54  ;;  %v6652_v58 = vmul.f32 -1.442695, %v10686_v50  ;;  %5590 = vmatpush.msra.mxu0 %v6732_v5  ;;  %v6711_v54 = vld [vmem:[%s11264_s9 + $0x240] sm:$0xff] }
 0x712   : > { %v6923_v53 = vpop.eup %6922  ;;  %v10700_v52 = vadd.f32 1.0, %v6921_v57 }
 0x713   : > { %v5112_v61 = vsel %vm5111_vm10, %v6919_v17, %v5108_v24  ;;  %v5120_v60 = vmul.f32 %v6923_v53, %v10672_v27  ;;  %6924 = vpow2.f32 %v6652_v58  ;;  %vm5125_vm12 = vweird.f32 %v6923_v53  ;;  %v6749_v27 = vld [vmem:[%s11264_s9 + $0x370] sm:$0xff]  ;;  %v6730_v58 = vld [vmem:[%s11264_s9 + $0x2d8] sm:$0xff] }
 0x714   : > { %v5117_v51 = vsel %vm5114_vm11, %v5116_v62, %v5112_v61  ;;  %6926 = vrcp.f32 %v10700_v52  ;;  %v5016_v45 = vpop.f32.mrf.mxu2  ;;  %vm5126_vm14 = vmor %vm5124_vm13, %vm5125_vm12  ;;  %5663 = vmatpush.msrb.mxu1 %v6749_v27  ;;  %v5145_v25 = vand.u32 2147483648, %v10700_v52  ;;  %v5143_v2 = vand.u32 2147483647, %v10700_v52  ;;  %v6709_v24 = vld [vmem:[%s11264_s9 + $0x230] sm:$0xff] }
 0x715   : > { %v10705_v49 = vmul.f32 %v5117_v51, %v10604_v23  ;;  %v5121_v22 = vsub.f32 1.0, %v5120_v60  ;;  %v5028_v41 = vadd.f32 %v5016_v45, %v4954_v32  ;;  %v6714_v23 = vld [vmem:[%s11264_s9 + $0x258] sm:$0xff]  ;;  %vm5139_vm1 = vweird.f32 %v10700_v52  ;;  %v6765_v61 = vld [vmem:[%s11264_s9 + $0x3f0] sm:$0xff]  ;;  %v6708_v45 = vld [vmem:[%s11264_s9 + $0x228] sm:$0xff] }
 0x716   : > { %v10708_v46 = vld [vmem:[#allocation6 + $0x37] sm:$0xff]  ;;  %5518 = vmatpush.msra.mxu3 %v6714_v23  ;;  %v5146_v62 = vor.u32 1.1754944e-38, %v5145_v25  ;;  %vm5144_vm3 = vcmp.eq.f32.partialorder %v5143_v2, 8.507059e+37 }
 0x717   : > { %v10710_v33 = vld [vmem:[#allocation6 + $0x39] sm:$0xff]  ;;  %5204 = vst [vmem:[#allocation6 + $0x50] sm:$0xff] %v10705_v49  ;;  %v5122_v9 = vmul.f32 %v6923_v53, %v5121_v22  ;;  %v10715_v12 = vadd.f32 %v10452_v16, %v5028_v41  ;;  %5322 = vmatmul.f32.gmra.mxu0 %v10708_v46  ;;  %5459 = vmatmul.f32.gmra.mxu2 %v10708_v46 }
 0x718   : > { %5388 = vmatmul.f32.gmra.mxu1 %v10710_v33  ;;  %5284 = vmatmul.f32.gmra.mxu3 %v10705_v49  ;;  %v6729_v22 = vld [vmem:[%s11264_s9 + $0x2d0] sm:$0xff] }
 0x719   : > { %v6925_v26 = vpop.eup %6924  ;;  %v5123_v34 = vadd.f32 %v6923_v53, %v5122_v9  ;;  %v6653_v35 = vmul.f32 -1.442695, %v10715_v12  ;;  %5519 = vmatpush.msra.mxu3 %v6713_v48 }
 0x71a   : > { %v10735_v3 = vpop.eup %6926  ;;  %v10738_v17 = vadd.f32 1.0, %v6925_v26 }
 0x71b   : > { %v5127_v18 = vsel %vm5126_vm14, %v6923_v53, %v5123_v34  ;;  %v5135_v44 = vmul.f32 %v10735_v3, %v10700_v52  ;;  %6928 = vpow2.f32 %v6653_v35  ;;  %5520 = vmatpush.msra.mxu3 %v6712_v19  ;;  %vm5140_vm0 = vweird.f32 %v10735_v3  ;;  %v6766_v53 = vld [vmem:[%s11264_s9 + $0x3f8] sm:$0xff]  ;;  %v6707_v34 = vld [vmem:[%s11264_s9 + $0x220] sm:$0xff]  ;;  %v6744_v35 = vld [vmem:[%s11264_s9 + $0x348] sm:$0xff] }
 0x71c   : > { %v5132_v28 = vsel %vm5129_vm15, %v5131_v36, %v5127_v18  ;;  %6930 = vrcp.f32 %v10738_v17  ;;  %v5019_v7 = vpop.f32.mrf.mxu2  ;;  %vm10805_vm2 = vmor %vm5139_vm1, %vm5140_vm0  ;;  %5736 = vmatpush.msrb.mxu2 %v6766_v53  ;;  %v5160_v9 = vand.u32 2147483648, %v10738_v17  ;;  %v5158_v26 = vand.u32 2147483647, %v10738_v17  ;;  %v6743_v36 = vld [vmem:[%s11264_s9 + $0x340] sm:$0xff]  ;;  %v6706_v18 = vld [vmem:[%s11264_s9 + $0x218] sm:$0xff] }
 0x71d   : > { %v10750_v0 = vmul.f32 %v5132_v28, %v10634_v40  ;;  %v5136_v20 = vsub.f32 1.0, %v5135_v44  ;;  %v5029_v37 = vadd.f32 %v5019_v7, %v4955_v14  ;;  %v6748_v40 = vld [vmem:[%s11264_s9 + $0x368] sm:$0xff]  ;;  %5521 = vmatpush.msra.mxu3 %v6711_v54  ;;  %vm5154_vm5 = vweird.f32 %v10738_v17  ;;  %v6726_v28 = vld [vmem:[%s11264_s9 + $0x2b8] sm:$0xff]  ;;  %v6705_v19 = vld [vmem:[%s11264_s9 + $0x210] sm:$0xff] }
 0x71e   : > { %v10759_v13 = vld [vmem:[#allocation6 + $0x4f] sm:$0xff]  ;;  %5664 = vmatpush.msrb.mxu1 %v6748_v40  ;;  %5737 = vmatpush.msrb.mxu2 %v6765_v61  ;;  %v5161_v30 = vor.u32 1.1754944e-38, %v5160_v9  ;;  %vm5159_vm7 = vcmp.eq.f32.partialorder %v5158_v26, 8.507059e+37  ;;  %v6740_v53 = vld [vmem:[%s11264_s9 + $0x328] sm:$0xff] }
 0x71f   : > { %v10761_v59 = vld [vmem:[#allocation6 + $0x51] sm:$0xff]  ;;  %5205 = vst [vmem:[#allocation6 + $0x68] sm:$0xff] %v10750_v0  ;;  %v5137_v38 = vmul.f32 %v10735_v3, %v5136_v20  ;;  %v10771_v56 = vadd.f32 %v10452_v16, %v5029_v37  ;;  %5325 = vmatmul.f32.gmra.mxu0 %v10759_v13  ;;  %5462 = vmatmul.f32.gmra.mxu2 %v10759_v13  ;;  %v6742_v37 = vld [vmem:[%s11264_s9 + $0x338] sm:$0xff] }
 0x720   : > { %5391 = vmatmul.f32.gmra.mxu1 %v10761_v59  ;;  %v6731_v16 = vld [vmem:[%s11264_s9 + $0x2e0] sm:$0xff]  ;;  %5287 = vmatmul.f32.gmra.mxu3 %v10750_v0 }
 0x721   : > { %v6929_v29 = vpop.eup %6928  ;;  %v5138_v43 = vadd.f32 %v10735_v3, %v5137_v38  ;;  %v6654_v57 = vmul.f32 -1.442695, %v10771_v56  ;;  %5522 = vmatpush.msra.mxu3 %v6710_v47  ;;  %5591 = vmatpush.msra.mxu0 %v6731_v16  ;;  %v6725_v38 = vld [vmem:[%s11264_s9 + $0x2b0] sm:$0xff]  ;;  %v6762_v16 = vld [vmem:[%s11264_s9 + $0x3d8] sm:$0xff]  ;;  %v6759_v26 = vld [vmem:[%s11264_s9 + $0x3c0] sm:$0xff] }
 0x722   : > { %v10801_v32 = vpop.eup %6930  ;;  %v10809_v52 = vadd.f32 1.0, %v6929_v29  ;;  %5665 = vmatpush.msrb.mxu1 %v6747_v31  ;;  %5738 = vmatpush.msrb.mxu2 %v6764_v6  ;;  %v6741_v29 = vld [vmem:[%s11264_s9 + $0x330] sm:$0xff] }
 0x723   : > { %v5142_v60 = vsel %vm10805_vm2, %v10735_v3, %v5138_v43  ;;  %v5150_v51 = vmul.f32 %v10801_v32, %v10738_v17  ;;  %6932 = vpow2.f32 %v6654_v57  ;;  %5523 = vmatpush.msra.mxu3 %v6709_v24  ;;  %5592 = vmatpush.msra.mxu0 %v6730_v58  ;;  %vm5155_vm4 = vweird.f32 %v10801_v32  ;;  %v6763_v17 = vld [vmem:[%s11264_s9 + $0x3e0] sm:$0xff]  ;;  %v6724_v43 = vld [vmem:[%s11264_s9 + $0x2a8] sm:$0xff]  ;;  %v6761_v57 = vld [vmem:[%s11264_s9 + $0x3d0] sm:$0xff] }
 0x724   : > { %v5147_v41 = vsel %vm5144_vm3, %v5146_v62, %v5142_v60  ;;  %6934 = vrcp.f32 %v10809_v52  ;;  %5666 = vmatpush.msrb.mxu1 %v6746_v21  ;;  %vm5156_vm6 = vmor %vm5154_vm5, %vm5155_vm4  ;;  %5739 = vmatpush.msrb.mxu2 %v6763_v17  ;;  %v5175_v2 = vand.u32 2147483648, %v10809_v52  ;;  %v5173_v31 = vand.u32 2147483647, %v10809_v52  ;;  %v6704_v24 = vld [vmem:[%s11264_s9 + $0x208] sm:$0xff]  ;;  %v6703_v21 = vld [vmem:[%s11264_s9 + $0x200] sm:$0xff] }
 0x725   : > { %v10830_v4 = vmul.f32 %v5147_v41, %v10658_v55  ;;  %v5151_v15 = vsub.f32 1.0, %v5150_v51  ;;  %5524 = vmatpush.msra.mxu3 %v6708_v45  ;;  %5593 = vmatpush.msra.mxu0 %v6729_v22  ;;  %v6728_v55 = vld [vmem:[%s11264_s9 + $0x2c8] sm:$0xff]  ;;  %vm5169_vm9 = vweird.f32 %v10809_v52  ;;  %v6739_v51 = vld [vmem:[%s11264_s9 + $0x320] sm:$0xff]  ;;  %v6722_v45 = vld [vmem:[%s11264_s9 + $0x298] sm:$0xff] }
 0x726   : > { %v10836_v10 = vld [vmem:[#allocation6 + $0x67] sm:$0xff]  ;;  %5667 = vmatpush.msrb.mxu1 %v6745_v8  ;;  %5740 = vmatpush.msrb.mxu2 %v6762_v16  ;;  %v5176_v62 = vor.u32 1.1754944e-38, %v5175_v2  ;;  %vm5174_vm11 = vcmp.eq.f32.partialorder %v5173_v31, 8.507059e+37  ;;  %v6755_v2 = vld [vmem:[%s11264_s9 + $0x3a0] sm:$0xff] }
 0x727   : > { %v10838_v23 = vld [vmem:[#allocation6 + $0x69] sm:$0xff]  ;;  %5206 = vst [vmem:[#allocation6 + $0x80] sm:$0xff] %v10830_v4  ;;  %v5152_v48 = vmul.f32 %v10801_v32, %v5151_v15  ;;  %5328 = vmatmul.f32.gmra.mxu0 %v10836_v10  ;;  %5465 = vmatmul.f32.gmra.mxu2 %v10836_v10  ;;  %v6737_v6 = vld [vmem:[%s11264_s9 + $0x310] sm:$0xff] }
 0x728   : > { %5394 = vmatmul.f32.gmra.mxu1 %v10838_v23  ;;  %5290 = vmatmul.f32.gmra.mxu3 %v10830_v4  ;;  %v6738_v8 = vld [vmem:[%s11264_s9 + $0x318] sm:$0xff]  ;;  %v6777_v31 = vld [vmem:[%s11264_s9 + $0x450] sm:$0xff] }
 0x729   : > { %v6933_v3 = vpop.eup %6932  ;;  %v5153_v14 = vadd.f32 %v10801_v32, %v5152_v48  ;;  %5594 = vmatpush.msra.mxu0 %v6728_v55  ;;  %5525 = vmatpush.msra.mxu3 %v6707_v34  ;;  %v6778_v16 = vld [vmem:[%s11264_s9 + $0x458] sm:$0xff] }
 0x72a   : > { %v10871_v44 = vpop.eup %6934  ;;  %v10875_v27 = vadd.f32 1.0, %v6933_v3  ;;  %5668 = vmatpush.msrb.mxu1 %v6744_v35  ;;  %5741 = vmatpush.msrb.mxu2 %v6761_v57  ;;  %v6721_v35 = vld [vmem:[%s11264_s9 + $0x290] sm:$0xff]  ;;  %v6782_v3 = vld [vmem:[%s11264_s9 + $0x478] sm:$0xff]  ;;  %v6775_v57 = vld [vmem:[%s11264_s9 + $0x440] sm:$0xff] }
 0x72b   : > { %v5157_v7 = vsel %vm5156_vm6, %v10801_v32, %v5153_v14  ;;  %v5165_v20 = vmul.f32 %v10871_v44, %v10809_v52  ;;  %5595 = vmatpush.msra.mxu0 %v6727_v1  ;;  %5526 = vmatpush.msra.mxu3 %v6706_v18  ;;  %vm5170_vm8 = vweird.f32 %v10871_v44  ;;  %v6723_v32 = vld [vmem:[%s11264_s9 + $0x2a0] sm:$0xff]  ;;  %v6760_v52 = vld [vmem:[%s11264_s9 + $0x3c8] sm:$0xff]  ;;  %v6758_v1 = vld [vmem:[%s11264_s9 + $0x3b8] sm:$0xff] }
 0x72c   : > { %v5162_v5 = vsel %vm5159_vm7, %v5161_v30, %v5157_v7  ;;  %6936 = vrcp.f32 %v10875_v27  ;;  %5669 = vmatpush.msrb.mxu1 %v6743_v36  ;;  %vm5171_vm10 = vmor %vm5169_vm9, %vm5170_vm8  ;;  %5742 = vmatpush.msrb.mxu2 %v6760_v52  ;;  %v5190_v9 = vand.u32 2147483648, %v10875_v27  ;;  %v5188_v34 = vand.u32 2147483647, %v10875_v27  ;;  %v6720_v36 = vld [vmem:[%s11264_s9 + $0x288] sm:$0xff]  ;;  %v6757_v30 = vld [vmem:[%s11264_s9 + $0x3b0] sm:$0xff] }
 0x72d   : > { %v10894_v25 = vmul.f32 %v5162_v5, %v10686_v50  ;;  %v5166_v40 = vsub.f32 1.0, %v5165_v20  ;;  %5596 = vmatpush.msra.mxu0 %v6726_v28  ;;  %5527 = vmatpush.msra.mxu3 %v6705_v19  ;;  %vm5184_vm13 = vweird.f32 %v10875_v27  ;;  %v6736_v18 = vld [vmem:[%s11264_s9 + $0x308] sm:$0xff]  ;;  %v6719_v28 = vld [vmem:[%s11264_s9 + $0x280] sm:$0xff] }
 0x72e   : > { %v10900_v54 = vld [vmem:[#allocation6 + $0x7f] sm:$0xff]  ;;  %5670 = vmatpush.msrb.mxu1 %v6742_v37  ;;  %5743 = vmatpush.msrb.mxu2 %v6759_v26  ;;  %vm5189_vm15 = vcmp.eq.f32.partialorder %v5188_v34, 8.507059e+37  ;;  %v6735_v7 = vld [vmem:[%s11264_s9 + $0x300] sm:$0xff] }
 0x72f   : > { %v10902_v47 = vld [vmem:[#allocation6 + $0x81] sm:$0xff]  ;;  %5207 = vst [vmem:[#allocation6 + $0x98] sm:$0xff] %v10894_v25  ;;  %v5167_v50 = vmul.f32 %v10871_v44, %v5166_v40  ;;  %5331 = vmatmul.f32.gmra.mxu0 %v10900_v54  ;;  %5468 = vmatmul.f32.gmra.mxu2 %v10900_v54  ;;  %v6780_v19 = vld [vmem:[%s11264_s9 + $0x468] sm:$0xff] }
 0x730   : > { %5397 = vmatmul.f32.gmra.mxu1 %v10902_v47  ;;  %5597 = vmatpush.msra.mxu0 %v6725_v38  ;;  %v6756_v38 = vld [vmem:[%s11264_s9 + $0x3a8] sm:$0xff] }
 0x731   : > { %v5168_v58 = vadd.f32 %v10871_v44, %v5167_v50  ;;  %5293 = vmatmul.f32.gmra.mxu3 %v10894_v25  ;;  %5671 = vmatpush.msrb.mxu1 %v6741_v29  ;;  %v6754_v50 = vld [vmem:[%s11264_s9 + $0x398] sm:$0xff] }
 0x732   : > { %v6937_v42 = vpop.eup %6936  ;;  %5598 = vmatpush.msra.mxu0 %v6724_v43  ;;  %5528 = vmatpush.msra.mxu3 %v6704_v24  ;;  %v6753_v43 = vld [vmem:[%s11264_s9 + $0x390] sm:$0xff]  ;;  %v6752_v24 = vld [vmem:[%s11264_s9 + $0x388] sm:$0xff] }
 0x733   : > { %v5172_v61 = vsel %vm5171_vm10, %v10871_v44, %v5168_v58  ;;  %v5180_v60 = vmul.f32 %v6937_v42, %v10875_v27  ;;  %5672 = vmatpush.msrb.mxu1 %v6740_v53  ;;  %vm5185_vm12 = vweird.f32 %v6937_v42  ;;  %v5191_v44 = vor.u32 1.1754944e-38, %v5190_v9  ;;  %v6781_v27 = vld [vmem:[%s11264_s9 + $0x470] sm:$0xff]  ;;  %5744 = vmatpush.msrb.mxu2 %v6758_v1  ;;  %v6774_v58 = vld [vmem:[%s11264_s9 + $0x438] sm:$0xff]  ;;  %v6772_v53 = vld [vmem:[%s11264_s9 + $0x428] sm:$0xff] }
 0x734   : > { %v5177_v22 = vsel %vm5174_vm11, %v5176_v62, %v5172_v61  ;;  %5599 = vmatpush.msra.mxu0 %v6723_v32  ;;  %5529 = vmatpush.msra.mxu3 %v6703_v21  ;;  %vm5186_vm14 = vmor %vm5184_vm13, %vm5185_vm12  ;;  %v6771_v32 = vld [vmem:[%s11264_s9 + $0x420] sm:$0xff] }
 0x735   : > { %v10952_v41 = vmul.f32 %v5177_v22, %v10715_v12  ;;  %v5181_v15 = vsub.f32 1.0, %v5180_v60  ;;  %5673 = vmatpush.msrb.mxu1 %v6739_v51  ;;  %5745 = vmatpush.msrb.mxu2 %v6757_v30 }
 0x736   : > { %v10958_v55 = vld [vmem:[#allocation6 + $0x97] sm:$0xff]  ;;  %5600 = vmatpush.msra.mxu0 %v6722_v45  ;;  %5810 = vmatpush.msrb.mxu3 %v6782_v3 }
 0x737   : > { %v10960_v48 = vld [vmem:[#allocation6 + $0x99] sm:$0xff]  ;;  %5208 = vst [vmem:[#allocation6 + $0xb0] sm:$0xff] %v10952_v41  ;;  %v5182_v12 = vmul.f32 %v6937_v42, %v5181_v15  ;;  %5334 = vmatmul.f32.gmra.mxu0 %v10958_v55  ;;  %5471 = vmatmul.f32.gmra.mxu2 %v10958_v55  ;;  %v5792_v15 = vld [vmem:[#allocation6 + $0xe1] sm:$0xff] }
 0x738   : > { %5400 = vmatmul.f32.gmra.mxu1 %v10960_v48  ;;  %5601 = vmatpush.msra.mxu0 %v6721_v35 }
 0x739   : > { %5674 = vmatpush.msrb.mxu1 %v6738_v8  ;;  %v5183_v14 = vadd.f32 %v6937_v42, %v5182_v12  ;;  %5296 = vmatmul.f32.gmra.mxu3 %v10952_v41 }
 0x73a   : > { %5602 = vmatpush.msra.mxu0 %v6720_v36  ;;  %5811 = vmatpush.msrb.mxu3 %v6781_v27 }
 0x73b   : > { %5675 = vmatpush.msrb.mxu1 %v6737_v6  ;;  %v5187_v17 = vsel %vm5186_vm14, %v6937_v42, %v5183_v14  ;;  %5746 = vmatpush.msrb.mxu2 %v6756_v38  ;;  %v5718_v42 = vld [vmem:[#allocation6 + $0xe0] sm:$0xff] }
 0x73c   : > { %v5192_v20 = vsel %vm5189_vm15, %v5191_v44, %v5187_v17  ;;  %5603 = vmatpush.msra.mxu0 %v6719_v28  ;;  %5812 = vmatpush.msrb.mxu3 %v6780_v19 }
 0x73d   : > { %5676 = vmatpush.msrb.mxu1 %v6736_v18  ;;  %v11004_v37 = vmul.f32 %v5192_v20, %v10771_v56  ;;  %v6779_v56 = vld [vmem:[%s11264_s9 + $0x460] sm:$0xff]  ;;  %5747 = vmatpush.msrb.mxu2 %v6755_v2 }
 0x73e   : > { %v11009_v5 = vld [vmem:[#allocation6 + $0xaf] sm:$0xff]  ;;  %5813 = vmatpush.msrb.mxu3 %v6779_v56 }
 0x73f   : > { %v11011_v40 = vld [vmem:[#allocation6 + $0xb1] sm:$0xff]  ;;  %5677 = vmatpush.msrb.mxu1 %v6735_v7  ;;  %5209 = vst [vmem:[#allocation6 + $0xc8] sm:$0xff] %v11004_v37  ;;  %5337 = vmatmul.f32.gmra.mxu0 %v11009_v5 }
 0x740   : > { %5403 = vmatmul.f32.gmra.mxu1 %v11011_v40  ;;  %5474 = vmatmul.f32.gmra.mxu2 %v11009_v5 }
 0x741   : > { %5530 = vmatmul.f32.vlgmr.msra.gmra.mxu3 %v10651_v63  ;;  %5748 = vmatpush.msrb.mxu2 %v6754_v50  ;;  %v6776_v63 = vld [vmem:[%s11264_s9 + $0x448] sm:$0xff] }
 0x742   : > { %5814 = vmatpush.msrb.mxu3 %v6778_v16 }
 0x743   : > { %5749 = vmatpush.msrb.mxu2 %v6753_v43 }
 0x744   : > { %5815 = vmatpush.msrb.mxu3 %v6777_v31 }
 0x745   : > { %5750 = vmatpush.msrb.mxu2 %v6752_v24 }
 0x746   : > { %v5422_v29 = vld [vmem:[#allocation6 + $0xc7] sm:$0xff]  ;;  %5816 = vmatpush.msrb.mxu3 %v6776_v63 }
 0x747   : > { %5604 = vmatmul.f32.vlgmr.msra.gmra.mxu0 %v10681_v11  ;;  %v6751_v11 = vld [vmem:[%s11264_s9 + $0x380] sm:$0xff] }
 0x748   : > { %5678 = vmatmul.f32.vlgmr.msrb.gmra.mxu1 %v10708_v46  ;;  %5477 = vmatmul.f32.gmra.mxu2 %v5422_v29  ;;  %v6773_v46 = vld [vmem:[%s11264_s9 + $0x430] sm:$0xff] }
 0x749   : > { %5533 = vmatmul.f32.gmra.mxu3 %v10677_v39  ;;  %5751 = vmatpush.msrb.mxu2 %v6751_v11 }
 0x74a   : > { %5817 = vmatpush.msrb.mxu3 %v6775_v57 }
 0x74c   : > { %5818 = vmatpush.msrb.mxu3 %v6774_v58 }
 0x74e   : > { %5819 = vmatpush.msrb.mxu3 %v6773_v46 }
 0x74f   : > { %5607 = vmatmul.f32.gmra.mxu0 %v10710_v33 }
 0x750   : > { %5681 = vmatmul.f32.gmra.mxu1 %v10759_v13  ;;  %5752 = vmatmul.f32.vlgmr.msrb.gmra.mxu2 %v10677_v39  ;;  %v6770_v39 = vld [vmem:[%s11264_s9 + $0x418] sm:$0xff]  ;;  %v6769_v13 = vld [vmem:[%s11264_s9 + $0x410] sm:$0xff] }
 0x751   : > { %5536 = vmatmul.f32.gmra.mxu3 %v10705_v49 }
 0x752   : > { %5820 = vmatpush.msrb.mxu3 %v6772_v53 }
 0x754   : > { %5821 = vmatpush.msrb.mxu3 %v6771_v32 }
 0x756   : > { %5822 = vmatpush.msrb.mxu3 %v6770_v39 }
 0x757   : > { %5610 = vmatmul.f32.gmra.mxu0 %v10761_v59 }
 0x758   : > { %5684 = vmatmul.f32.gmra.mxu1 %v10836_v10  ;;  %5755 = vmatmul.f32.gmra.mxu2 %v10705_v49  ;;  %v6768_v49 = vld [vmem:[%s11264_s9 + $0x408] sm:$0xff]  ;;  %v6767_v10 = vld [vmem:[%s11264_s9 + $0x400] sm:$0xff] }
 0x759   : > { %5539 = vmatmul.f32.gmra.mxu3 %v10750_v0 }
 0x75a   : > { %5823 = vmatpush.msrb.mxu3 %v6769_v13 }
 0x75c   : > { %5824 = vmatpush.msrb.mxu3 %v6768_v49 }
 0x75e   : > { %5825 = vmatpush.msrb.mxu3 %v6767_v10  ;;  %v11153_v10 = vld [vmem:[%s11265_s10] ss:$0 sm:$0xff] }
 0x75f   : > { %5613 = vmatmul.f32.gmra.mxu0 %v10838_v23 }
 0x760   : > { %5687 = vmatmul.f32.gmra.mxu1 %v10900_v54  ;;  %5758 = vmatmul.f32.gmra.mxu2 %v10750_v0  ;;  %v5644_v0 = vld [vmem:[#allocation6 + $0xdf] sm:$0xff]  ;;  %v5570_v54 = vld [vmem:[#allocation6 + $0xc9] sm:$0xff] }
 0x761   : > { %5542 = vmatmul.f32.gmra.mxu3 %v10830_v4 }
 0x767   : > { %5616 = vmatmul.f32.gmra.mxu0 %v10902_v47 }
 0x768   : > { %5690 = vmatmul.f32.gmra.mxu1 %v10958_v55  ;;  %5761 = vmatmul.f32.gmra.mxu2 %v10830_v4  ;;  %v5276_v4 = vpop.f32.mrf.mxu3 }
 0x769   : > { %5545 = vmatmul.f32.gmra.mxu3 %v10894_v25 }
 0x76c   : > { %v5317_v21 = vpop.f32.mrf.mxu0  ;;  %v5383_v61 = vpop.f32.mrf.mxu1 }
 0x76f   : > { %5619 = vmatmul.f32.gmra.mxu0 %v10960_v48 }
 0x770   : > { %5693 = vmatmul.f32.gmra.mxu1 %v11009_v5  ;;  %5764 = vmatmul.f32.gmra.mxu2 %v10894_v25 }
 0x771   : > { %5548 = vmatmul.f32.gmra.mxu3 %v10952_v41 }
 0x777   : > { %5622 = vmatmul.f32.gmra.mxu0 %v11011_v40 }
 0x778   : > { %5696 = vmatmul.f32.gmra.mxu1 %v5422_v29  ;;  %5767 = vmatmul.f32.gmra.mxu2 %v10952_v41 }
 0x779   : > { %5551 = vmatmul.f32.gmra.mxu3 %v11004_v37 }
 0x77f   : > { %5625 = vmatmul.f32.gmra.mxu0 %v5570_v54 }
 0x780   : > { %5699 = vmatmul.f32.gmra.mxu1 %v5644_v0  ;;  %5770 = vmatmul.f32.gmra.mxu2 %v11004_v37 }
 0x781   : > { %5826 = vmatmul.f32.vlgmr.msrb.gmra.mxu3 %v10710_v33 }
 0x788   : > { %5773 = vmatmul.f32.gmra.mxu2 %v5718_v42 }
 0x789   : > { %5829 = vmatmul.f32.gmra.mxu3 %v10761_v59 }
 0x78a   : > { %v5279_v25 = vpop.f32.mrf.mxu3 }
 0x78c   : > { %v5320_v33 = vpop.f32.mrf.mxu0 }
 0x78d   : > { %v5386_v45 = vpop.f32.mrf.mxu1  ;;  %v5321_v63 = vadd.f32 %v5320_v33, %v5279_v25 }
 0x78f   : > { %v5408_v58 = vadd.f32 %v5386_v45, %v5321_v63 }
 0x791   : > { %5832 = vmatmul.f32.gmra.mxu3 %v10838_v23 }
 0x792   : > { %v5457_v60 = vpop.f32.mrf.mxu2 }
 0x793   : > { %v5282_v62 = vpop.f32.mrf.mxu3 }
 0x794   : > { %v5323_v23 = vpop.f32.mrf.mxu0 }
 0x795   : > { %v5324_v32 = vadd.f32 %v5323_v23, %v5282_v62  ;;  %v6989_v23 = vld [vmem:[#allocation5 + $0x20] sm:$0xff] }
 0x799   : > { %5835 = vmatmul.f32.gmra.mxu3 %v10902_v47  ;;  %v5389_v47 = vpop.f32.mrf.mxu1 }
 0x79a   : > { %v5460_v59 = vpop.f32.mrf.mxu2 }
 0x79b   : > { %v11106_v52 = vpop.f32.mrf.mxu3  ;;  %v5482_v46 = vadd.f32 %v5460_v59, %v5408_v58 }
 0x79c   : > { %v5326_v9 = vpop.f32.mrf.mxu0 }
 0x79d   : > { %v5327_v33 = vadd.f32 %v5326_v9, %v11106_v52 }
 0x7a1   : > { %5838 = vmatmul.f32.gmra.mxu3 %v10960_v48  ;;  %v5392_v48 = vpop.f32.mrf.mxu1 }
 0x7a2   : > { %v5463_v8 = vpop.f32.mrf.mxu2 }
 0x7a3   : > { %v11109_v51 = vpop.f32.mrf.mxu3 }
 0x7a4   : > { %v11118_v12 = vpop.f32.mrf.mxu0 }
 0x7a5   : > { %v5330_v63 = vadd.f32 %v11118_v12, %v11109_v51  ;;  %v6991_v51 = vld [vmem:[#allocation5 + $0x50] sm:$0xff] }
 0x7a9   : > { %5841 = vmatmul.f32.gmra.mxu3 %v11011_v40  ;;  %v11120_v35 = vpop.f32.mrf.mxu1  ;;  %v5318_v40 = vadd.f32 %v5317_v21, %v5276_v4 }
 0x7aa   : > { %v5466_v26 = vpop.f32.mrf.mxu2 }
 0x7ab   : > { %v11112_v22 = vpop.f32.mrf.mxu3  ;;  %v5407_v16 = vadd.f32 %v5383_v61, %v5318_v40 }
 0x7ac   : > { %v11124_v3 = vpop.f32.mrf.mxu0 }
 0x7ad   : > { %v5481_v31 = vadd.f32 %v5457_v60, %v5407_v16 }
 0x7b1   : > { %5844 = vmatmul.f32.gmra.mxu3 %v5570_v54  ;;  %v11126_v14 = vpop.f32.mrf.mxu1  ;;  %v5409_v54 = vadd.f32 %v5389_v47, %v5324_v32  ;;  %v5410_v47 = vadd.f32 %v5392_v48, %v5327_v33 }
 0x7b2   : > { %v11122_v6 = vpop.f32.mrf.mxu2 }
 0x7b3   : > { %v5483_v61 = vadd.f32 %v5463_v8, %v5409_v54 }
 0x7b4   : > { %v11114_v41 = vpop.f32.mrf.mxu3  ;;  %v11130_v44 = vpop.f32.mrf.mxu0 }
 0x7b9   : > { %5847 = vmatmul.f32.gmra.mxu3 %v5792_v15  ;;  %v11132_v27 = vpop.f32.mrf.mxu1 }
 0x7ba   : > { %v11128_v36 = vpop.f32.mrf.mxu2 }
 0x7bc   : > { %v11116_v55 = vpop.f32.mrf.mxu3  ;;  %v11136_v28 = vpop.f32.mrf.mxu0 }
 0x7c1   : > { %v11140_v20 = vpop.f32.mrf.mxu1 }
 0x7c3   : > { %v11134_v17 = vpop.f32.mrf.mxu2 }
 0x7c4   : > { %v5531_v34 = vpop.f32.mrf.mxu3  ;;  %v5605_v19 = vpop.f32.mrf.mxu0 }
 0x7c5   : > { %v5555_v29 = vadd.f32 %v5531_v34, %v5481_v31 }
 0x7c7   : > { %v5629_v11 = vadd.f32 %v5605_v19, %v5555_v29 }
 0x7c9   : > { %v5679_v38 = vpop.f32.mrf.mxu1 }
 0x7ca   : > { %v5703_v13 = vadd.f32 %v5679_v38, %v5629_v11 }
 0x7cb   : > { %v11142_v37 = vpop.f32.mrf.mxu2 }
 0x7cc   : > { %v5534_v1 = vpop.f32.mrf.mxu3  ;;  %v5608_v50 = vpop.f32.mrf.mxu0 }
 0x7cd   : > { %v5556_v39 = vadd.f32 %v5534_v1, %v5482_v46 }
 0x7cf   : > { %v5630_v4 = vadd.f32 %v5608_v50, %v5556_v39 }
 0x7d1   : > { %v5682_v43 = vpop.f32.mrf.mxu1 }
 0x7d2   : > { %v5704_v45 = vadd.f32 %v5682_v43, %v5630_v4 }
 0x7d3   : > { %v5753_v56 = vpop.f32.mrf.mxu2 }
 0x7d4   : > { %v5537_v18 = vpop.f32.mrf.mxu3  ;;  %v5611_v53 = vpop.f32.mrf.mxu0  ;;  %v5777_v49 = vadd.f32 %v5753_v56, %v5703_v13  ;;  %v5484_v56 = vadd.f32 %v5466_v26, %v5410_v47 }
 0x7d5   : > { %v5557_v62 = vadd.f32 %v5537_v18, %v5483_v61  ;;  %v6990_v18 = vld [vmem:[#allocation5 + $0x38] sm:$0xff] }
 0x7d7   : > { %v5631_v40 = vadd.f32 %v5611_v53, %v5557_v62  ;;  %v5411_v53 = vadd.f32 %v11120_v35, %v5330_v63  ;;  %v5333_v35 = vadd.f32 %v11124_v3, %v11112_v22 }
 0x7d9   : > { %v5685_v42 = vpop.f32.mrf.mxu1  ;;  %v5485_v32 = vadd.f32 %v11122_v6, %v5411_v53 }
 0x7da   : > { %v5705_v9 = vadd.f32 %v5685_v42, %v5631_v40 }
 0x7db   : > { %v5756_v57 = vpop.f32.mrf.mxu2 }
 0x7dc   : > { %v5540_v30 = vpop.f32.mrf.mxu3  ;;  %v5614_v59 = vpop.f32.mrf.mxu0  ;;  %v5778_v34 = vadd.f32 %v5756_v57, %v5704_v45 }
 0x7dd   : > { %v5558_v52 = vadd.f32 %v5540_v30, %v5484_v56 }
 0x7df   : > { %v5632_v26 = vadd.f32 %v5614_v59, %v5558_v52 }
 0x7e1   : > { %v5688_v8 = vpop.f32.mrf.mxu1 }
 0x7e2   : > { %v5706_v13 = vadd.f32 %v5688_v8, %v5632_v26 }
 0x7e3   : > { %v5759_v21 = vpop.f32.mrf.mxu2 }
 0x7e4   : > { %v11138_v7 = vpop.f32.mrf.mxu3  ;;  %v5779_v43 = vadd.f32 %v5759_v21, %v5705_v9  ;;  %v5617_v57 = vpop.f32.mrf.mxu0 }
 0x7e9   : > { %v5691_v39 = vpop.f32.mrf.mxu1 }
 0x7eb   : > { %v5762_v50 = vpop.f32.mrf.mxu2 }
 0x7ec   : > { %v11144_v5 = vpop.f32.mrf.mxu3  ;;  %v5780_v4 = vadd.f32 %v5762_v50, %v5706_v13  ;;  %v5620_v6 = vpop.f32.mrf.mxu0 }
 0x7f1   : > { %v5694_v8 = vpop.f32.mrf.mxu1 }
 0x7f4   : > { %v11146_v2 = vpop.f32.mrf.mxu3 }
 0x7fc   : > { %v11148_v24 = vpop.f32.mrf.mxu3 }
 0x804   : > { %v5827_v0 = vpop.f32.mrf.mxu3 }
 0x805   : > { %v5851_v25 = vadd.f32 %v5827_v0, %v5777_v49  ;;  %v5559_v49 = vadd.f32 %v11138_v7, %v5485_v32  ;;  %v5765_v0 = vpop.f32.mrf.mxu2  ;;  %v5336_v7 = vadd.f32 %v11130_v44, %v11114_v41 }
 0x807   : > { %v5863_v60 = vadd.f32 %v11153_v10, %v5851_v25  ;;  %v5633_v62 = vadd.f32 %v5617_v57, %v5559_v49  ;;  %v5413_v56 = vadd.f32 %v11132_v27, %v5336_v7  ;;  %v5623_v57 = vpop.f32.mrf.mxu0 }
 0x809   : > { %v11157_v15 = vadd.f32 %v6989_v23, %v5863_v60  ;;  %v5412_v23 = vadd.f32 %v11126_v14, %v5333_v35  ;;  %v5707_v40 = vadd.f32 %v5691_v39, %v5633_v62 }
 0x80b   : > { %v6783_v1 = vmul.f32 -1.442695, %v11157_v15  ;;  %v5486_v47 = vadd.f32 %v11128_v36, %v5412_v23  ;;  %v5781_v50 = vadd.f32 %v5765_v0, %v5707_v40 }
 0x80c   : > { %v5830_v19 = vpop.f32.mrf.mxu3 }
 0x80d   : > { %6938 = vpow2.f32 %v6783_v1  ;;  %v5852_v38 = vadd.f32 %v5830_v19, %v5778_v34  ;;  %v6992_v1 = vld [vmem:[#allocation5 + $0x68] sm:$0xff]  ;;  %v5768_v52 = vpop.f32.mrf.mxu2 }
 0x80f   : > { %v5864_v16 = vadd.f32 %v11153_v10, %v5852_v38  ;;  %v5626_v23 = vpop.f32.mrf.mxu0 }
 0x811   : > { %v11161_v31 = vadd.f32 %v6990_v18, %v5864_v16  ;;  %v5560_v16 = vadd.f32 %v11144_v5, %v5486_v47 }
 0x813   : > { %v6939_v29 = vpop.eup %6938  ;;  %v6784_v48 = vmul.f32 -1.442695, %v11161_v31  ;;  %v5634_v26 = vadd.f32 %v5620_v6, %v5560_v16 }
 0x814   : > { %v5903_v58 = vadd.f32 1.0, %v6939_v29  ;;  %v5833_v11 = vpop.f32.mrf.mxu3  ;;  %v5487_v29 = vadd.f32 %v11134_v17, %v5413_v56 }
 0x815   : > { %6940 = vpow2.f32 %v6784_v48  ;;  %v5853_v46 = vadd.f32 %v5833_v11, %v5779_v43  ;;  %v5339_v43 = vadd.f32 %v11136_v28, %v11116_v55  ;;  %v5708_v49 = vadd.f32 %v5694_v8, %v5634_v26  ;;  %v5771_v6 = vpop.f32.mrf.mxu2 }
 0x816   : > { %6942 = vrcp.f32 %v5903_v58  ;;  %v5922_v22 = vand.u32 2147483648, %v5903_v58  ;;  %v5920_v34 = vand.u32 2147483647, %v5903_v58  ;;  %vm5916_vm1 = vweird.f32 %v5903_v58 }
 0x817   : > { %v5865_v30 = vadd.f32 %v11153_v10, %v5853_v46  ;;  %v5561_v17 = vadd.f32 %v11146_v2, %v5487_v29  ;;  %v5414_v55 = vadd.f32 %v11140_v20, %v5339_v43 }
 0x818   : > { %v5923_v9 = vor.u32 1.1754944e-38, %v5922_v22  ;;  %vm5921_vm3 = vcmp.eq.f32.partialorder %v5920_v34, 8.507059e+37 }
 0x819   : > { %v11169_v12 = vadd.f32 %v6991_v51, %v5865_v30  ;;  %v5635_v2 = vadd.f32 %v5623_v57, %v5561_v17 }
 0x81b   : > { %v6941_v54 = vpop.eup %6940  ;;  %v6785_v42 = vmul.f32 -1.442695, %v11169_v12 }
 0x81c   : > { %v6943_v25 = vpop.eup %6942  ;;  %v11175_v21 = vadd.f32 1.0, %v6941_v54  ;;  %v5836_v61 = vpop.f32.mrf.mxu3 }
 0x81d   : > { %v5912_v60 = vmul.f32 %v6943_v25, %v5903_v58  ;;  %6944 = vpow2.f32 %v6785_v42  ;;  %v5854_v33 = vadd.f32 %v5836_v61, %v5780_v4  ;;  %vm5917_vm0 = vweird.f32 %v6943_v25  ;;  %v5697_v42 = vpop.f32.mrf.mxu1 }
 0x81e   : > { %6946 = vrcp.f32 %v11175_v21  ;;  %vm5918_vm2 = vmor %vm5916_vm1, %vm5917_vm0  ;;  %v5937_v46 = vand.u32 2147483648, %v11175_v21  ;;  %v5935_v30 = vand.u32 2147483647, %v11175_v21  ;;  %vm5931_vm5 = vweird.f32 %v11175_v21 }
 0x81f   : > { %v5913_v45 = vsub.f32 1.0, %v5912_v60  ;;  %v5866_v59 = vadd.f32 %v11153_v10, %v5854_v33  ;;  %v5782_v61 = vadd.f32 %v5768_v52, %v5708_v49  ;;  %v5709_v22 = vadd.f32 %v5697_v42, %v5635_v2 }
 0x820   : > { %v5938_v0 = vor.u32 1.1754944e-38, %v5937_v46  ;;  %vm5936_vm7 = vcmp.eq.f32.partialorder %v5935_v30, 8.507059e+37 }
 0x821   : > { %v5914_v3 = vmul.f32 %v6943_v25, %v5913_v45  ;;  %v11182_v19 = vadd.f32 %v6992_v1, %v5866_v59  ;;  %v5783_v1 = vadd.f32 %v5771_v6, %v5709_v22 }
 0x823   : > { %v6945_v38 = vpop.eup %6944  ;;  %v5915_v41 = vadd.f32 %v6943_v25, %v5914_v3  ;;  %v6786_v44 = vmul.f32 -1.442695, %v11182_v19 }
 0x824   : > { %v6947_v14 = vpop.eup %6946  ;;  %v11190_v18 = vadd.f32 1.0, %v6945_v38  ;;  %v5839_v36 = vpop.f32.mrf.mxu3  ;;  %v6994_v38 = vld [vmem:[#allocation5 + $0x98] sm:$0xff] }
 0x825   : > { %v5919_v63 = vsel %vm5918_vm2, %v6943_v25, %v5915_v41  ;;  %v5927_v27 = vmul.f32 %v6947_v14, %v11175_v21  ;;  %6948 = vpow2.f32 %v6786_v44  ;;  %v5855_v11 = vadd.f32 %v5839_v36, %v5781_v50  ;;  %v5700_v44 = vpop.f32.mrf.mxu1 }
 0x826   : > { %v5924_v5 = vsel %vm5921_vm3, %v5923_v9, %v5919_v63  ;;  %6950 = vrcp.f32 %v11190_v18  ;;  %vm5932_vm4 = vweird.f32 %v6947_v14  ;;  %v5488_v21 = vadd.f32 %v11142_v37, %v5414_v55 }
 0x827   : > { %v6031_v48 = vmul.f32 %v5924_v5, %v11157_v15  ;;  %v5928_v58 = vsub.f32 1.0, %v5927_v27  ;;  %v5867_v32 = vadd.f32 %v11153_v10, %v5855_v11  ;;  %v6993_v15 = vld [vmem:[#allocation5 + $0x80] sm:$0xff]  ;;  %vm5933_vm6 = vmor %vm5931_vm5, %vm5932_vm4  ;;  %v5952_v45 = vand.u32 2147483648, %v11190_v18  ;;  %v5774_v5 = vpop.f32.mrf.mxu2 }
 0x828   : > { %v5562_v7 = vadd.f32 %v11148_v24, %v5488_v21  ;;  %v5950_v37 = vand.u32 2147483647, %v11190_v18  ;;  %vm5946_vm9 = vweird.f32 %v11190_v18 }
 0x829   : > { %6039 = vst [vmem:[%s11197_s20] sm:$0xff] %v6031_v48  ;;  %v5929_v53 = vmul.f32 %v6947_v14, %v5928_v58  ;;  %v11210_v13 = vadd.f32 %v6993_v15, %v5867_v32  ;;  %v5953_v24 = vor.u32 1.1754944e-38, %v5952_v45  ;;  %v6995_v58 = vld [vmem:[#allocation5 + $0xb0] sm:$0xff] }
 0x82a   : > { %v5636_v40 = vadd.f32 %v5626_v23, %v5562_v7  ;;  %vm5951_vm11 = vcmp.eq.f32.partialorder %v5950_v37, 8.507059e+37 }
 0x82b   : > { %v6949_v39 = vpop.eup %6948  ;;  %v5930_v28 = vadd.f32 %v6947_v14, %v5929_v53  ;;  %v6787_v35 = vmul.f32 -1.442695, %v11210_v13 }
 0x82c   : > { %v6951_v51 = vpop.eup %6950  ;;  %v11212_v54 = vadd.f32 1.0, %v6949_v39  ;;  %v5842_v4 = vpop.f32.mrf.mxu3  ;;  %v5710_v29 = vadd.f32 %v5700_v44, %v5636_v40 }
 0x82d   : > { %v5934_v25 = vsel %vm5933_vm6, %v6947_v14, %v5930_v28  ;;  %v5942_v20 = vmul.f32 %v6951_v51, %v11190_v18  ;;  %v5856_v59 = vadd.f32 %v5842_v4, %v5782_v61  ;;  %vm5947_vm8 = vweird.f32 %v6951_v51 }
 0x82e   : > { %v5939_v60 = vsel %vm5936_vm7, %v5938_v0, %v5934_v25  ;;  %6952 = vrcp.f32 %v11212_v54  ;;  %vm5948_vm10 = vmor %vm5946_vm9, %vm5947_vm8  ;;  %v5965_v43 = vand.u32 2147483647, %v11212_v54  ;;  %v5967_v57 = vand.u32 2147483648, %v11212_v54 }
 0x82f   : > { %v6032_v33 = vmul.f32 %v5939_v60, %v11161_v31  ;;  %v5943_v62 = vsub.f32 1.0, %v5942_v20  ;;  %6954 = vpow2.f32 %v6787_v35  ;;  %v5868_v34 = vadd.f32 %v11153_v10, %v5856_v59 }
 0x830   : > { %v5784_v26 = vadd.f32 %v5774_v5, %v5710_v29  ;;  %vm5961_vm13 = vweird.f32 %v11212_v54  ;;  %v5968_v46 = vor.u32 1.1754944e-38, %v5967_v57  ;;  %vm5966_vm15 = vcmp.eq.f32.partialorder %v5965_v43, 8.507059e+37 }
 0x831   : > { %6040 = vst [vmem:[%s11197_s20 + $0x8] sm:$0xff] %v6032_v33  ;;  %v5944_v3 = vmul.f32 %v6951_v51, %v5943_v62  ;;  %v11225_v56 = vadd.f32 %v6994_v38, %v5868_v34 }
 0x833   : > { %v5945_v47 = vadd.f32 %v6951_v51, %v5944_v3  ;;  %v6788_v18 = vmul.f32 -1.442695, %v11225_v56 }
 0x834   : > { %v6953_v31 = vpop.eup %6952  ;;  %v5845_v8 = vpop.f32.mrf.mxu3 }
 0x835   : > { %v6955_v41 = vpop.eup %6954  ;;  %v5949_v14 = vsel %vm5948_vm10, %v6951_v51, %v5945_v47  ;;  %v5957_v16 = vmul.f32 %v6953_v31, %v11212_v54  ;;  %v5857_v50 = vadd.f32 %v5845_v8, %v5783_v1  ;;  %vm5962_vm12 = vweird.f32 %v6953_v31  ;;  %v6996_v54 = vld [vmem:[#allocation5 + $0xc8] sm:$0xff] }
 0x836   : > { %v5954_v52 = vsel %vm5951_vm11, %v5953_v24, %v5949_v14  ;;  %v5907_v9 = vadd.f32 1.0, %v6955_v41  ;;  %vm5963_vm14 = vmor %vm5961_vm13, %vm5962_vm12 }
 0x837   : > { %v6033_v36 = vmul.f32 %v5954_v52, %v11169_v12  ;;  %v5958_v63 = vsub.f32 1.0, %v5957_v16  ;;  %v5869_v27 = vadd.f32 %v11153_v10, %v5857_v50 }
 0x838   : > { %6956 = vrcp.f32 %v5907_v9  ;;  %v5982_v42 = vand.u32 2147483648, %v5907_v9  ;;  %v5980_v35 = vand.u32 2147483647, %v5907_v9  ;;  %vm5976_vm1 = vweird.f32 %v5907_v9 }
 0x839   : > { %6041 = vst [vmem:[%s11197_s20 + $0x10] sm:$0xff] %v6033_v36  ;;  %v5959_v48 = vmul.f32 %v6953_v31, %v5958_v63  ;;  %6958 = vpow2.f32 %v6788_v18  ;;  %v11234_v11 = vadd.f32 %v6995_v58, %v5869_v27 }
 0x83a   : > { %vm5981_vm3 = vcmp.eq.f32.partialorder %v5980_v35, 8.507059e+37 }
 0x83b   : > { %v5960_v17 = vadd.f32 %v6953_v31, %v5959_v48  ;;  %v6789_v12 = vmul.f32 -1.442695, %v11234_v11 }
 0x83c   : > { %v5848_v53 = vpop.f32.mrf.mxu3 }
 0x83d   : > { %v5964_v30 = vsel %vm5963_vm14, %v6953_v31, %v5960_v17  ;;  %6960 = vpow2.f32 %v6789_v12  ;;  %v5858_v32 = vadd.f32 %v5848_v53, %v5784_v26 }
 0x83e   : > { %v6957_v39 = vpop.eup %6956  ;;  %v5969_v55 = vsel %vm5966_vm15, %v5968_v46, %v5964_v30 }
 0x83f   : > { %v6959_v28 = vpop.eup %6958  ;;  %v6034_v15 = vmul.f32 %v5969_v55, %v11182_v19  ;;  %v5972_v51 = vmul.f32 %v6957_v39, %v5907_v9  ;;  %v5870_v2 = vadd.f32 %v11153_v10, %v5858_v32  ;;  %vm5977_vm0 = vweird.f32 %v6957_v39 }
 0x840   : > { %v5908_v49 = vadd.f32 1.0, %v6959_v28  ;;  %vm5978_vm2 = vmor %vm5976_vm1, %vm5977_vm0  ;;  %v5983_v10 = vor.u32 1.1754944e-38, %v5982_v42 }
 0x841   : > { %6042 = vst [vmem:[%s11197_s20 + $0x18] sm:$0xff] %v6034_v15  ;;  %v5973_v0 = vsub.f32 1.0, %v5972_v51  ;;  %v11241_v4 = vadd.f32 %v6996_v54, %v5870_v2 }
 0x842   : > { %6962 = vrcp.f32 %v5908_v49  ;;  %v5995_v22 = vand.u32 2147483647, %v5908_v49  ;;  %v5997_v3 = vand.u32 2147483648, %v5908_v49  ;;  %vm5991_vm5 = vweird.f32 %v5908_v49 }
 0x843   : > { %v6961_v25 = vpop.eup %6960  ;;  %v5974_v20 = vmul.f32 %v6957_v39, %v5973_v0  ;;  %v6790_v21 = vmul.f32 -1.442695, %v11241_v4 }
 0x844   : > { %v5909_v61 = vadd.f32 1.0, %v6961_v25  ;;  %vm5996_vm7 = vcmp.eq.f32.partialorder %v5995_v22, 8.507059e+37  ;;  %v5998_v40 = vor.u32 1.1754944e-38, %v5997_v3 }
 0x845   : > { %v5975_v19 = vadd.f32 %v6957_v39, %v5974_v20  ;;  %6964 = vpow2.f32 %v6790_v21 }
 0x846   : > { %6966 = vrcp.f32 %v5909_v61  ;;  %v6010_v8 = vand.u32 2147483647, %v5909_v61  ;;  %vm6006_vm9 = vweird.f32 %v5909_v61 }
 0x847   : > { %v5979_v6 = vsel %vm5978_vm2, %v6957_v39, %v5975_v19 }
 0x848   : > { %v6963_v60 = vpop.eup %6962  ;;  %v5984_v33 = vsel %vm5981_vm3, %v5983_v10, %v5979_v6  ;;  %vm6011_vm11 = vcmp.eq.f32.partialorder %v6010_v8, 8.507059e+37 }
 0x849   : > { %v6035_v62 = vmul.f32 %v5984_v33, %v11210_v13  ;;  %v5987_v7 = vmul.f32 %v6963_v60, %v5908_v49  ;;  %vm5992_vm4 = vweird.f32 %v6963_v60  ;;  %v6012_v13 = vand.u32 2147483648, %v5909_v61 }
 0x84a   : > { %vm5993_vm6 = vmor %vm5991_vm5, %vm5992_vm4 }
 0x84b   : > { %v6965_v45 = vpop.eup %6964  ;;  %6043 = vst [vmem:[%s11197_s20 + $0x20] sm:$0xff] %v6035_v62  ;;  %v5988_v59 = vsub.f32 1.0, %v5987_v7  ;;  %v6013_v50 = vor.u32 1.1754944e-38, %v6012_v13 }
 0x84c   : > { %v6967_v23 = vpop.eup %6966  ;;  %v5910_v37 = vadd.f32 1.0, %v6965_v45 }
 0x84d   : > { %v5989_v34 = vmul.f32 %v6963_v60, %v5988_v59  ;;  %v6002_v1 = vmul.f32 %v6967_v23, %v5909_v61  ;;  %vm6007_vm8 = vweird.f32 %v6967_v23 }
 0x84e   : > { %6968 = vrcp.f32 %v5910_v37  ;;  %vm6008_vm10 = vmor %vm6006_vm9, %vm6007_vm8  ;;  %v6027_v27 = vand.u32 2147483648, %v5910_v37  ;;  %v6025_v5 = vand.u32 2147483647, %v5910_v37  ;;  %vm6021_vm13 = vweird.f32 %v5910_v37 }
 0x84f   : > { %v5990_v47 = vadd.f32 %v6963_v60, %v5989_v34  ;;  %v6003_v31 = vsub.f32 1.0, %v6002_v1 }
 0x850   : > { %v6028_v43 = vor.u32 1.1754944e-38, %v6027_v27  ;;  %vm6026_vm15 = vcmp.eq.f32.partialorder %v6025_v5, 8.507059e+37 }
 0x851   : > { %v5994_v24 = vsel %vm5993_vm6, %v6963_v60, %v5990_v47  ;;  %v6004_v38 = vmul.f32 %v6967_v23, %v6003_v31 }
 0x852   : > { %v5999_v41 = vsel %vm5996_vm7, %v5998_v40, %v5994_v24 }
 0x853   : > { %v6036_v44 = vmul.f32 %v5999_v41, %v11225_v56  ;;  %v6005_v14 = vadd.f32 %v6967_v23, %v6004_v38 }
 0x854   : > { %v6969_v16 = vpop.eup %6968 }
 0x855   : > { %6044 = vst [vmem:[%s11197_s20 + $0x28] sm:$0xff] %v6036_v44  ;;  %v6009_v52 = vsel %vm6008_vm10, %v6967_v23, %v6005_v14  ;;  %v6017_v9 = vmul.f32 %v6969_v16, %v5910_v37  ;;  %vm6022_vm12 = vweird.f32 %v6969_v16 }
 0x856   : > { %v6014_v18 = vsel %vm6011_vm11, %v6013_v50, %v6009_v52  ;;  %vm6023_vm14 = vmor %vm6021_vm13, %vm6022_vm12 }
 0x857   : > { %v6037_v36 = vmul.f32 %v6014_v18, %v11234_v11  ;;  %v6018_v63 = vsub.f32 1.0, %v6017_v9 }
 0x859   : > { %6045 = vst [vmem:[%s11197_s20 + $0x30] sm:$0xff] %v6037_v36  ;;  %v6019_v29 = vmul.f32 %v6969_v16, %v6018_v63 }
 0x85b   : > { %v6020_v56 = vadd.f32 %v6969_v16, %v6019_v29 }
 0x85d   : > { %v6024_v57 = vsel %vm6023_vm14, %v6969_v16, %v6020_v56 }
 0x85e   : > { %v6029_v48 = vsel %vm6026_vm15, %v6028_v43, %v6024_v57 }
 0x85f   : > { %v6038_v58 = vmul.f32 %v6029_v48, %v11241_v4 }
 0x861   : > { %6046 = vst [vmem:[%s11197_s20 + $0x38] sm:$0xff] %v6038_v58 }
 0x862 PF: > { %s21_s17 = sadd.s32 1, %s7003_s17  }
 0x863   : > { %p18_p4 = scmp.ge.s32.totalorder %s21_s17, 4  }
 0x865   :  { %20 = sbr.rel (!%p18_p4) target bundleno = 1 (0x1), region = 201 }

</bundles_post_ra>
